<compile_context>
chip_gen: v6e
topology: v6e:2x2x1
jax: 0.10.0
libtpu: 0.0.40
codegen_flags: <defaults>
</compile_context>

<pallas_src>
import numpy as np
import jax
import jax.numpy as jnp
from jax import lax
from jax.experimental import pallas as pl
from jax.experimental.pallas import tpu as pltpu

# ---- static configuration (mirrors the PyTorch script) ---------------------
N_CHANNEL = 8          # args.nChannel
N_CONV = 3             # args.nConv  (FCN.forward reads output['3'] => must be 3)
BN_EPS = 1e-5

# Input geometry.  IMG is chosen so the pooled sizes (9, 5, 3) are exactly
# re-expanded by the stride-2 deconvs (3->5->9->17), as the residual adds in
# FCN.forward require.
BATCH = 2
IN_DIM = 3
IMG = 18

S0 = IMG                       # 18  (conv1 output)
S1 = -(-S0 // 2)               # 9   (x1)
S2 = -(-S1 // 2)               # 5   (x2)
S3 = -(-S2 // 2)               # 3   (x3)
assert 2 * S3 - 1 == S2 and 2 * S2 - 1 == S1, "residual sizes must line up"
OUT_IMG = 2 * S1 - 1           # 17  (decoder spatial size)

# One fixed "frame": each image is a (HB, WB) zero-bordered block, flattened
# onto the lane axis.  Coarser feature maps live on stride-2/4/8 sub-grids of
# the same frame (kept dilated in place).
MAX_DIL = 4                                    # largest dilation used
BORDER = 4                                     # >= MAX_DIL
HB = IMG + 2 * BORDER                          # 26
WB = IMG + 2 * BORDER                          # 26 -> rounded up below
while (BATCH * HB * WB) % 128:                 # make the frame lane-dense
    WB += 1                                    # -> 32
LFRAME = BATCH * HB * WB                       # 1664 = 13 * 128
MAX_OFF = MAX_DIL * WB + MAX_DIL               # largest |tap offset|
MARGIN = MAX_OFF                               # buf margins on each side

# Invariants the kernel's raw VMEM slicing relies on (no runtime bounds check).
assert BORDER >= MAX_DIL, "frame border must cover the largest tap reach"
assert MARGIN >= MAX_OFF, "buf margin must cover the largest tap offset"


# ---------------------------------------------------------------------------
# The single fused Pallas kernel
# ---------------------------------------------------------------------------
def fcn_fused_kernel(x_ref, w3_ref, w1_ref, pv_ref, mk_ref, o_ref,
                     buf_ref, stk_ref, x1_ref, x2_ref):
    """Whole FCN forward on a VMEM-resident, lane-dense dilated frame.

    x_ref  : (C, L)     input image on the stride-1 grid, zeros elsewhere
    w3_ref : (6, C, 9C) per-layer (Cout, tap*Cin) matrices of the six 3x3
                        stages [conv1, conv2_0, conv2_1, deconv3, deconv2,
                        deconv1] (deconvs pre-flipped / channel-swapped)
    w1_ref : (2, C, C)  1x1 weights [conv_final, classifier]
    pv_ref : (C, 24)    per-channel params, col = 3*layer + {0:bias,1:g,2:b}
    mk_ref : (5, L)     sub-grid validity masks [G18, G9, G5, G3, G17]
    o_ref  : (C, L)     classifier output on the stride-1 decoder grid
    buf_ref: (C, MARGIN+L+MARGIN) shift buffer (margins stay zero)
    stk_ref: (9C, L)    stacked shifted-tap RHS for the fused MXU contraction
    x1_ref : (C, L)     stash of pooled x1 (residual skip)
    x2_ref : (C, L)     stash of pooled x2 (residual skip)
    """
    C = N_CHANNEL
    L = x_ref.shape[1]

    def mask(k):                              # (1, L)
        return mk_ref[k:k + 1, :]

    def pcol(idx):                            # (C, 1)
        return pv_ref[:, idx:idx + 1]

    def conv3x3(x_masked, layer, d):
        # 3x3 conv with dilation d as ONE MXU contraction: 9 shifted VMEM
        # views stacked into a (9C, L) RHS, then (C,9C) @ (9C,L).  All 9 tap
        # partials accumulate inside the MXU (no per-tap pops / VPU adds).
        buf_ref[:, MARGIN:MARGIN + L] = x_masked
        for t in range(9):
            dy, dx = t // 3, t % 3
            off = (dy - 1) * d * WB + (dx - 1) * d
            stk_ref[t * C:(t + 1) * C, :] = \
                buf_ref[:, MARGIN + off:MARGIN + off + L]
        return jnp.dot(w3_ref[layer], stk_ref[...],
                       preferred_element_type=jnp.float32)

    def bias_relu_bn(y, layer, mk, count):
        # bias -> ReLU -> BatchNorm2d (training-mode batch stats, biased var),
        # single pass over y: sum and sum-of-squares together.
        y = jnp.maximum(y + pcol(3 * layer), 0.0)
        ym = y * mk
        s1 = jnp.sum(ym, axis=1, keepdims=True)
        s2 = jnp.sum(ym * ym, axis=1, keepdims=True)
        inv = 1.0 / count
        mean = s1 * inv
        var = s2 * inv - mean * mean
        y = (y - mean) * lax.rsqrt(var + BN_EPS)
        return y * pcol(3 * layer + 1) + pcol(3 * layer + 2)

    def maxpool2(y, mk_in, mk_out, d):
        # MaxPool2d(2, stride=2, ceil_mode=True) of a map on the spacing-d
        # grid; result lands on the spacing-2d grid, in place.  The output is
        # masked onto the coarse grid so the -1e30 sentinel never escapes.
        ym = y * mk_in + (mk_in - 1.0) * 1e30      # -1e30 everywhere off-grid
        buf_ref[:, MARGIN:MARGIN + L] = ym
        m1 = buf_ref[:, MARGIN + d:MARGIN + d + L]
        m2 = buf_ref[:, MARGIN + d * WB:MARGIN + d * WB + L]
        m3 = buf_ref[:, MARGIN + d * WB + d:MARGIN + d * WB + d + L]
        return jnp.maximum(jnp.maximum(ym, m1), jnp.maximum(m2, m3)) * mk_out

    # Zero only the two margin strips once; the interior is fully overwritten
    # before every shifted read.
    buf_ref[:, :MARGIN] = jnp.zeros((C, MARGIN), jnp.float32)
    buf_ref[:, MARGIN + L:] = jnp.zeros((C, MARGIN), jnp.float32)

    # ------------- MyNet encoder: (conv -> relu -> bn -> pool) x 3 ----------
    y = conv3x3(x_ref[...], layer=0, d=1)
    y = bias_relu_bn(y, 0, mask(0), BATCH * S0 * S0)
    x1 = maxpool2(y, mask(0), mask(1), d=1)        # 9x9 on spacing-2 grid
    x1_ref[...] = x1                               # stash for residual add
    y = conv3x3(x1, layer=1, d=2)
    y = bias_relu_bn(y, 1, mask(1), BATCH * S1 * S1)
    x2 = maxpool2(y, mask(1), mask(2), d=2)        # 5x5 on spacing-4 grid
    x2_ref[...] = x2
    y = conv3x3(x2, layer=2, d=4)
    y = bias_relu_bn(y, 2, mask(2), BATCH * S2 * S2)
    x3 = maxpool2(y, mask(2), mask(3), d=4)        # 3x3 on spacing-8 grid

    # ------------- FCN decoder ----------------------------------------------
    # stride-2 ConvTranspose2d(k=3, p=1) == dilated 3x3 conv over the in-place
    # (masked) input grid with flipped / channel-swapped weights.
    s = conv3x3(x3, layer=3, d=4)                  # deconv3 -> 5x5
    s = bias_relu_bn(s, 3, mask(2), BATCH * S2 * S2)
    s = s + x2_ref[...]                            # residual (same grid)
    s = conv3x3(s * mask(2), layer=4, d=2)         # deconv2 -> 9x9
    s = bias_relu_bn(s, 4, mask(1), BATCH * S1 * S1)
    s = s + x1_ref[...]                            # residual (same grid)
    s = conv3x3(s * mask(1), layer=5, d=1)         # deconv1 -> 17x17
    s = bias_relu_bn(s, 5, mask(4), BATCH * OUT_IMG * OUT_IMG)
    # conv_final (1x1) -> relu -> bn
    s = jnp.dot(w1_ref[0], s, preferred_element_type=jnp.float32)
    s = bias_relu_bn(s, 6, mask(4), BATCH * OUT_IMG * OUT_IMG)
    # classifier (1x1, bias only)
    s = jnp.dot(w1_ref[1], s, preferred_element_type=jnp.float32) + pcol(21)
    o_ref[...] = s


# ---------------------------------------------------------------------------
# pallas_call wrapper
# ---------------------------------------------------------------------------
def _fullspec(shape):
    nd = len(shape)
    return pl.BlockSpec(shape, lambda i, _nd=nd: (0,) * _nd)


@jax.jit
def fcn_forward(x_nchw, w3, w1x1, pvec, masks):
    C = N_CHANNEL
    # NCHW -> frame layout (C, L): pixels on the stride-1 grid, zeros elsewhere
    # (extra channels 3..7 stay zero; conv1's weight is zero there too).
    xf = jnp.zeros((C, BATCH, HB, WB), jnp.float32)
    xf = xf.at[:IN_DIM, :, BORDER:BORDER + IMG, BORDER:BORDER + IMG].set(
        jnp.transpose(x_nchw, (1, 0, 2, 3)).astype(jnp.float32))
    x_in = xf.reshape(C, LFRAME)

    out = pl.pallas_call(
        fcn_fused_kernel,
        out_shape=jax.ShapeDtypeStruct((C, LFRAME), jnp.float32),
        grid=(1,),
        in_specs=[_fullspec((C, LFRAME)),
                  _fullspec((6, C, 9 * C)),
                  _fullspec((2, C, C)),
                  _fullspec((C, 24)),
                  _fullspec((5, LFRAME))],
        out_specs=_fullspec((C, LFRAME)),
        scratch_shapes=[
            pltpu.VMEM((C, MARGIN + LFRAME + MARGIN), jnp.float32),  # buf
            pltpu.VMEM((9 * C, LFRAME), jnp.float32),                # stacked RHS
            pltpu.VMEM((C, LFRAME), jnp.float32),                    # x1 stash
            pltpu.VMEM((C, LFRAME), jnp.float32),                    # x2 stash
        ],
        compiler_params=pltpu.CompilerParams(
            dimension_semantics=("arbitrary",),
            vmem_limit_bytes=32 * 1024 * 1024),
    )(x_in, w3, w1x1, pvec, masks)

    # frame -> NCHW on the valid decoder grid
    o = out.reshape(C, BATCH, HB, WB)[:, :, BORDER:BORDER + OUT_IMG,
                                      BORDER:BORDER + OUT_IMG]
    return jnp.transpose(o, (1, 0, 2, 3))


# ---------------------------------------------------------------------------
# Parameter packing (pure-JAX, one-time glue)
# ---------------------------------------------------------------------------
def pack_params(p):
    C = N_CHANNEL

    def conv_block(w):              # Conv2d (Cout, Cin, 3, 3) -> (C, 9C)
        cout, cin = w.shape[0], w.shape[1]
        w = jnp.pad(w, ((0, C - cout), (0, C - cin), (0, 0), (0, 0)))
        taps = jnp.transpose(w, (2, 3, 0, 1)).reshape(9, C, C)   # (t,cout,cin)
        return jnp.transpose(taps, (1, 0, 2)).reshape(C, 9 * C)  # col = t*C+cin

    def deconv_block(w):            # ConvTranspose2d (Cin, Cout, 3, 3)
        w = w[:, :, ::-1, ::-1]                     # flip both spatial dims
        taps = jnp.transpose(w, (2, 3, 1, 0)).reshape(9, C, C)   # swap in/out
        return jnp.transpose(taps, (1, 0, 2)).reshape(C, 9 * C)

    w3 = jnp.stack([
        conv_block(p['conv1_w']),
        conv_block(p['conv2_0_w']),
        conv_block(p['conv2_1_w']),
        deconv_block(p['deconv3_w']),
        deconv_block(p['deconv2_w']),
        deconv_block(p['deconv1_w']),
    ], axis=0).astype(jnp.float32)                  # (6, C, 9C)

    w1x1 = jnp.stack([p['convf_w'][:, :, 0, 0],
                      p['cls_w'][:, :, 0, 0]]).astype(jnp.float32)  # (2, C, C)

    ones, zeros = jnp.ones((C,), jnp.float32), jnp.zeros((C,), jnp.float32)
    cols = []
    for (b, g, bt) in [
        (p['conv1_b'], p['bn1_g'], p['bn1_b']),
        (p['conv2_0_b'], p['bn2_0_g'], p['bn2_0_b']),
        (p['conv2_1_b'], p['bn2_1_g'], p['bn2_1_b']),
        (p['deconv3_b'], p['fbn3_g'], p['fbn3_b']),
        (p['deconv2_b'], p['fbn2_g'], p['fbn2_b']),
        (p['deconv1_b'], p['fbn1_g'], p['fbn1_b']),
        (p['convf_b'], p['bnf_g'], p['bnf_b']),
        (p['cls_b'], ones, zeros),                  # classifier: bias only
    ]:
        cols += [b, g, bt]
    pvec = jnp.stack(cols, axis=1).astype(jnp.float32)          # (C, 24)
    return w3, w1x1, pvec


def build_masks():
    grids = [(S0, 1), (S1, 2), (S2, 4), (S3, 8), (OUT_IMG, 1)]
    masks = np.zeros((len(grids), BATCH, HB, WB), np.float32)
    for k, (npts, sp) in enumerate(grids):
        idx = BORDER + sp * np.arange(npts)
        masks[k][:, idx[:, None], idx[None, :]] = 1.0
    return jnp.asarray(masks.reshape(len(grids), LFRAME))


# ---------------------------------------------------------------------------
# Deterministic parameter init (synthetic, matches the module's shapes)
# ---------------------------------------------------------------------------
def init_params(key, in_dim, C=N_CHANNEL):
    keys = iter(jax.random.split(key, 64))

    def rnd(shape, scale=0.1):
        return scale * jax.random.normal(next(keys), shape, jnp.float32)

    p = {}
    p['conv1_w'], p['conv1_b'] = rnd((C, in_dim, 3, 3)), rnd((C,))
    p['bn1_g'], p['bn1_b'] = 1.0 + rnd((C,), 0.05), rnd((C,), 0.05)
    for i in range(N_CONV - 1):
        p[f'conv2_{i}_w'], p[f'conv2_{i}_b'] = rnd((C, C, 3, 3)), rnd((C,))
        p[f'bn2_{i}_g'], p[f'bn2_{i}_b'] = 1.0 + rnd((C,), 0.05), rnd((C,), 0.05)
    for j in (1, 2, 3):     # ConvTranspose2d weights are (Cin, Cout, 3, 3)
        p[f'deconv{j}_w'], p[f'deconv{j}_b'] = rnd((C, C, 3, 3)), rnd((C,))
        p[f'fbn{j}_g'], p[f'fbn{j}_b'] = 1.0 + rnd((C,), 0.05), rnd((C,), 0.05)
    p['convf_w'], p['convf_b'] = rnd((C, C, 1, 1)), rnd((C,))
    p['bnf_g'], p['bnf_b'] = 1.0 + rnd((C,), 0.05), rnd((C,), 0.05)
    p['cls_w'], p['cls_b'] = rnd((C, C, 1, 1)), rnd((C,))
    return p


if __name__ == "__main__":
    key = jax.random.PRNGKey(0)
    pkey, xkey = jax.random.split(key)

    x = jax.random.normal(xkey, (BATCH, IN_DIM, IMG, IMG), jnp.float32)
    params = init_params(pkey, in_dim=IN_DIM)

    w3, w1x1, pvec = pack_params(params)
    masks = build_masks()

    out = fcn_forward(x, w3, w1x1, pvec, masks)
    out = jax.block_until_ready(out)

    assert out.shape == (BATCH, N_CHANNEL, OUT_IMG, OUT_IMG), out.shape
    assert bool(jnp.all(jnp.isfinite(out)))
    print("KERNEL_OK")
</pallas_src>

<mosaic_0001>
module attributes {stable_mosaic.version = 11 : i64} {
  func.func @fcn_fused_kernel(%arg0: i32, %arg1: memref<8x1664xf32, #tpu.memory_space<vmem>>, %arg2: memref<6x8x72xf32, #tpu.memory_space<vmem>>, %arg3: memref<2x8x8xf32, #tpu.memory_space<vmem>>, %arg4: memref<8x24xf32, #tpu.memory_space<vmem>>, %arg5: memref<5x1664xf32, #tpu.memory_space<vmem>>, %arg6: memref<8x1664xf32, #tpu.memory_space<vmem>>, %arg7: memref<8x1928xf32, #tpu.memory_space<vmem>>, %arg8: memref<72x1664xf32, #tpu.memory_space<vmem>>, %arg9: memref<8x1664xf32, #tpu.memory_space<vmem>>, %arg10: memref<8x1664xf32, #tpu.memory_space<vmem>>) attributes {dimension_semantics = [#tpu.dimension_semantics<arbitrary>], iteration_bounds = array<i64: 1>, scalar_prefetch = 0 : i64, scratch_operands = 4 : i64, tpu.core_type = #tpu.core_type<tc>, window_params = [{pipeline_mode = #tpu.pipeline_mode<synchronous>, transform_indices = @transform_0, window_bounds = array<i64: 8, 1664>}, {pipeline_mode = #tpu.pipeline_mode<synchronous>, transform_indices = @transform_1, window_bounds = array<i64: 6, 8, 72>}, {pipeline_mode = #tpu.pipeline_mode<synchronous>, transform_indices = @transform_2, window_bounds = array<i64: 2, 8, 8>}, {pipeline_mode = #tpu.pipeline_mode<synchronous>, transform_indices = @transform_3, window_bounds = array<i64: 8, 24>}, {pipeline_mode = #tpu.pipeline_mode<synchronous>, transform_indices = @transform_4, window_bounds = array<i64: 5, 1664>}, {pipeline_mode = #tpu.pipeline_mode<synchronous>, transform_indices = @transform_5, window_bounds = array<i64: 8, 1664>}]} {
    %cst = arith.constant 0.000000e+00 : f32
    %0 = vector.broadcast %cst : f32 to vector<8x132xf32>
    %c0 = arith.constant 0 : index
    %c0_0 = arith.constant 0 : index
    %1 = vector.load %arg7[%c0, %c0_0] : memref<8x1928xf32, #tpu.memory_space<vmem>>, vector<8x132xf32>
    tpu.vector_store %arg7[%c0, %c0_0], %0 {strides = array<i32>} : memref<8x1928xf32, #tpu.memory_space<vmem>>, vector<8x132xf32>,
    %cst_1 = arith.constant 0.000000e+00 : f32
    %2 = vector.broadcast %cst_1 : f32 to vector<8x132xf32>
    %c0_2 = arith.constant 0 : index
    %c1796 = arith.constant 1796 : index
    %3 = vector.load %arg7[%c0_2, %c1796] : memref<8x1928xf32, #tpu.memory_space<vmem>>, vector<8x132xf32>
    tpu.vector_store %arg7[%c0_2, %c1796], %2 {strides = array<i32>} : memref<8x1928xf32, #tpu.memory_space<vmem>>, vector<8x132xf32>,
    %c0_3 = arith.constant 0 : index
    %c0_4 = arith.constant 0 : index
    %4 = vector.load %arg1[%c0_3, %c0_4] : memref<8x1664xf32, #tpu.memory_space<vmem>>, vector<8x1664xf32>
    %c0_5 = arith.constant 0 : index
    %c132 = arith.constant 132 : index
    %5 = vector.load %arg7[%c0_5, %c132] : memref<8x1928xf32, #tpu.memory_space<vmem>>, vector<8x1664xf32>
    tpu.vector_store %arg7[%c0_5, %c132], %4 {strides = array<i32>} : memref<8x1928xf32, #tpu.memory_space<vmem>>, vector<8x1664xf32>,
    %c0_6 = arith.constant 0 : index
    %c99 = arith.constant 99 : index
    %6 = vector.load %arg7[%c0_6, %c99] : memref<8x1928xf32, #tpu.memory_space<vmem>>, vector<8x1664xf32>
    %c0_7 = arith.constant 0 : index
    %c0_8 = arith.constant 0 : index
    %7 = vector.load %arg8[%c0_7, %c0_8] : memref<72x1664xf32, #tpu.memory_space<vmem>>, vector<8x1664xf32>
    tpu.vector_store %arg8[%c0_7, %c0_8], %6 {strides = array<i32>} : memref<72x1664xf32, #tpu.memory_space<vmem>>, vector<8x1664xf32>,
    %c0_9 = arith.constant 0 : index
    %c100 = arith.constant 100 : index
    %8 = vector.load %arg7[%c0_9, %c100] : memref<8x1928xf32, #tpu.memory_space<vmem>>, vector<8x1664xf32>
    %c8 = arith.constant 8 : index
    %c0_10 = arith.constant 0 : index
    %9 = vector.load %arg8[%c8, %c0_10] : memref<72x1664xf32, #tpu.memory_space<vmem>>, vector<8x1664xf32>
    tpu.vector_store %arg8[%c8, %c0_10], %8 {strides = array<i32>} : memref<72x1664xf32, #tpu.memory_space<vmem>>, vector<8x1664xf32>,
    %c0_11 = arith.constant 0 : index
    %c101 = arith.constant 101 : index
    %10 = vector.load %arg7[%c0_11, %c101] : memref<8x1928xf32, #tpu.memory_space<vmem>>, vector<8x1664xf32>
    %c16 = arith.constant 16 : index
    %c0_12 = arith.constant 0 : index
    %11 = vector.load %arg8[%c16, %c0_12] : memref<72x1664xf32, #tpu.memory_space<vmem>>, vector<8x1664xf32>
    tpu.vector_store %arg8[%c16, %c0_12], %10 {strides = array<i32>} : memref<72x1664xf32, #tpu.memory_space<vmem>>, vector<8x1664xf32>,
    %c0_13 = arith.constant 0 : index
    %c131 = arith.constant 131 : index
    %12 = vector.load %arg7[%c0_13, %c131] : memref<8x1928xf32, #tpu.memory_space<vmem>>, vector<8x1664xf32>
    %c24 = arith.constant 24 : index
    %c0_14 = arith.constant 0 : index
    %13 = vector.load %arg8[%c24, %c0_14] : memref<72x1664xf32, #tpu.memory_space<vmem>>, vector<8x1664xf32>
    tpu.vector_store %arg8[%c24, %c0_14], %12 {strides = array<i32>} : memref<72x1664xf32, #tpu.memory_space<vmem>>, vector<8x1664xf32>,
    %c0_15 = arith.constant 0 : index
    %c132_16 = arith.constant 132 : index
    %14 = vector.load %arg7[%c0_15, %c132_16] : memref<8x1928xf32, #tpu.memory_space<vmem>>, vector<8x1664xf32>
    %c32 = arith.constant 32 : index
    %c0_17 = arith.constant 0 : index
    %15 = vector.load %arg8[%c32, %c0_17] : memref<72x1664xf32, #tpu.memory_space<vmem>>, vector<8x1664xf32>
    tpu.vector_store %arg8[%c32, %c0_17], %14 {strides = array<i32>} : memref<72x1664xf32, #tpu.memory_space<vmem>>, vector<8x1664xf32>,
    %c0_18 = arith.constant 0 : index
    %c133 = arith.constant 133 : index
    %16 = vector.load %arg7[%c0_18, %c133] : memref<8x1928xf32, #tpu.memory_space<vmem>>, vector<8x1664xf32>
    %c40 = arith.constant 40 : index
    %c0_19 = arith.constant 0 : index
    %17 = vector.load %arg8[%c40, %c0_19] : memref<72x1664xf32, #tpu.memory_space<vmem>>, vector<8x1664xf32>
    tpu.vector_store %arg8[%c40, %c0_19], %16 {strides = array<i32>} : memref<72x1664xf32, #tpu.memory_space<vmem>>, vector<8x1664xf32>,
    %c0_20 = arith.constant 0 : index
    %c163 = arith.constant 163 : index
    %18 = vector.load %arg7[%c0_20, %c163] : memref<8x1928xf32, #tpu.memory_space<vmem>>, vector<8x1664xf32>
    %c48 = arith.constant 48 : index
    %c0_21 = arith.constant 0 : index
    %19 = vector.load %arg8[%c48, %c0_21] : memref<72x1664xf32, #tpu.memory_space<vmem>>, vector<8x1664xf32>
    tpu.vector_store %arg8[%c48, %c0_21], %18 {strides = array<i32>} : memref<72x1664xf32, #tpu.memory_space<vmem>>, vector<8x1664xf32>,
    %c0_22 = arith.constant 0 : index
    %c164 = arith.constant 164 : index
    %20 = vector.load %arg7[%c0_22, %c164] : memref<8x1928xf32, #tpu.memory_space<vmem>>, vector<8x1664xf32>
    %c56 = arith.constant 56 : index
    %c0_23 = arith.constant 0 : index
    %21 = vector.load %arg8[%c56, %c0_23] : memref<72x1664xf32, #tpu.memory_space<vmem>>, vector<8x1664xf32>
    tpu.vector_store %arg8[%c56, %c0_23], %20 {strides = array<i32>} : memref<72x1664xf32, #tpu.memory_space<vmem>>, vector<8x1664xf32>,
    %c0_24 = arith.constant 0 : index
    %c165 = arith.constant 165 : index
    %22 = vector.load %arg7[%c0_24, %c165] : memref<8x1928xf32, #tpu.memory_space<vmem>>, vector<8x1664xf32>
    %c64 = arith.constant 64 : index
    %c0_25 = arith.constant 0 : index
    %23 = vector.load %arg8[%c64, %c0_25] : memref<72x1664xf32, #tpu.memory_space<vmem>>, vector<8x1664xf32>
    tpu.vector_store %arg8[%c64, %c0_25], %22 {strides = array<i32>} : memref<72x1664xf32, #tpu.memory_space<vmem>>, vector<8x1664xf32>,
    %c0_26 = arith.constant 0 : index
    %c0_27 = arith.constant 0 : index
    %c0_28 = arith.constant 0 : index
    %24 = vector.load %arg2[%c0_26, %c0_27, %c0_28] : memref<6x8x72xf32, #tpu.memory_space<vmem>>, vector<1x8x72xf32>
    %25 = vector.shape_cast %24 : vector<1x8x72xf32> to vector<8x72xf32>
    %c0_29 = arith.constant 0 : index
    %c0_30 = arith.constant 0 : index
    %26 = vector.load %arg8[%c0_29, %c0_30] : memref<72x1664xf32, #tpu.memory_space<vmem>>, vector<72x1664xf32>
    %cst_31 = arith.constant dense<0.000000e+00> : vector<8x1664xf32>
    %27 = tpu.matmul %25, %26, %cst_31 {dimension_numbers = #tpu.dot_dimension_numbers<[1], [0], [0], [1], [0, 0, 1, 1], [], []>} : vector<8x72xf32>, vector<72x1664xf32>, vector<8x1664xf32> -> vector<8x1664xf32>
    %c0_32 = arith.constant 0 : index
    %c0_33 = arith.constant 0 : index
    %28 = vector.load %arg5[%c0_32, %c0_33] : memref<5x1664xf32, #tpu.memory_space<vmem>>, vector<1x1664xf32>
    %c0_34 = arith.constant 0 : index
    %c0_35 = arith.constant 0 : index
    %29 = vector.load %arg4[%c0_34, %c0_35] : memref<8x24xf32, #tpu.memory_space<vmem>>, vector<8x1xf32>
    %30 = vector.broadcast %29 : vector<8x1xf32> to vector<8x1664xf32>
    %31 = arith.addf %27, %30 : vector<8x1664xf32>
    %cst_36 = arith.constant 0.000000e+00 : f32
    %32 = vector.broadcast %cst_36 : f32 to vector<8x1664xf32>
    %33 = arith.maximumf %31, %32 : vector<8x1664xf32>
    %34 = vector.broadcast %28 : vector<1x1664xf32> to vector<8x1664xf32>
    %35 = arith.mulf %33, %34 : vector<8x1664xf32>
    %cst_37 = arith.constant dense<0.000000e+00> : vector<8xf32>
    %36 = vector.multi_reduction <add>, %35, %cst_37 [1] : vector<8x1664xf32> to vector<8xf32>
    %37 = vector.shape_cast %36 : vector<8xf32> to vector<8x1xf32>
    %38 = arith.mulf %35, %35 : vector<8x1664xf32>
    %cst_38 = arith.constant dense<0.000000e+00> : vector<8xf32>
    %39 = vector.multi_reduction <add>, %38, %cst_38 [1] : vector<8x1664xf32> to vector<8xf32>
    %40 = vector.shape_cast %39 : vector<8xf32> to vector<8x1xf32>
    %cst_39 = arith.constant 0.00154320989 : f32
    %41 = vector.broadcast %cst_39 : f32 to vector<8x1xf32>
    %42 = arith.mulf %37, %41 : vector<8x1xf32>
    %cst_40 = arith.constant 0.00154320989 : f32
    %43 = vector.broadcast %cst_40 : f32 to vector<8x1xf32>
    %44 = arith.mulf %40, %43 : vector<8x1xf32>
    %45 = arith.mulf %42, %42 : vector<8x1xf32>
    %46 = arith.subf %44, %45 : vector<8x1xf32>
    %47 = vector.broadcast %42 : vector<8x1xf32> to vector<8x1664xf32>
    %48 = arith.subf %33, %47 : vector<8x1664xf32>
    %cst_41 = arith.constant 9.99999974E-6 : f32
    %49 = vector.broadcast %cst_41 : f32 to vector<8x1xf32>
    %50 = arith.addf %46, %49 : vector<8x1xf32>
    %51 = math.rsqrt %50 : vector<8x1xf32>
    %52 = vector.broadcast %51 : vector<8x1xf32> to vector<8x1664xf32>
    %53 = arith.mulf %48, %52 : vector<8x1664xf32>
    %c0_42 = arith.constant 0 : index
    %c1 = arith.constant 1 : index
    %54 = vector.load %arg4[%c0_42, %c1] : memref<8x24xf32, #tpu.memory_space<vmem>>, vector<8x1xf32>
    %55 = vector.broadcast %54 : vector<8x1xf32> to vector<8x1664xf32>
    %56 = arith.mulf %53, %55 : vector<8x1664xf32>
    %c0_43 = arith.constant 0 : index
    %c2 = arith.constant 2 : index
    %57 = vector.load %arg4[%c0_43, %c2] : memref<8x24xf32, #tpu.memory_space<vmem>>, vector<8x1xf32>
    %58 = vector.broadcast %57 : vector<8x1xf32> to vector<8x1664xf32>
    %59 = arith.addf %56, %58 : vector<8x1664xf32>
    %c0_44 = arith.constant 0 : index
    %c0_45 = arith.constant 0 : index
    %60 = vector.load %arg5[%c0_44, %c0_45] : memref<5x1664xf32, #tpu.memory_space<vmem>>, vector<1x1664xf32>
    %c1_46 = arith.constant 1 : index
    %c0_47 = arith.constant 0 : index
    %61 = vector.load %arg5[%c1_46, %c0_47] : memref<5x1664xf32, #tpu.memory_space<vmem>>, vector<1x1664xf32>
    %62 = vector.broadcast %60 : vector<1x1664xf32> to vector<8x1664xf32>
    %63 = arith.mulf %59, %62 : vector<8x1664xf32>
    %cst_48 = arith.constant 1.000000e+00 : f32
    %64 = vector.broadcast %cst_48 : f32 to vector<1x1664xf32>
    %65 = arith.subf %60, %64 : vector<1x1664xf32>
    %cst_49 = arith.constant 1.000000e+30 : f32
    %66 = vector.broadcast %cst_49 : f32 to vector<1x1664xf32>
    %67 = arith.mulf %65, %66 : vector<1x1664xf32>
    %68 = vector.broadcast %67 : vector<1x1664xf32> to vector<8x1664xf32>
    %69 = arith.addf %63, %68 : vector<8x1664xf32>
    %c0_50 = arith.constant 0 : index
    %c132_51 = arith.constant 132 : index
    %70 = vector.load %arg7[%c0_50, %c132_51] : memref<8x1928xf32, #tpu.memory_space<vmem>>, vector<8x1664xf32>
    tpu.vector_store %arg7[%c0_50, %c132_51], %69 {strides = array<i32>} : memref<8x1928xf32, #tpu.memory_space<vmem>>, vector<8x1664xf32>,
    %c0_52 = arith.constant 0 : index
    %c133_53 = arith.constant 133 : index
    %71 = vector.load %arg7[%c0_52, %c133_53] : memref<8x1928xf32, #tpu.memory_space<vmem>>, vector<8x1664xf32>
    %c0_54 = arith.constant 0 : index
    %c164_55 = arith.constant 164 : index
    %72 = vector.load %arg7[%c0_54, %c164_55] : memref<8x1928xf32, #tpu.memory_space<vmem>>, vector<8x1664xf32>
    %c0_56 = arith.constant 0 : index
    %c165_57 = arith.constant 165 : index
    %73 = vector.load %arg7[%c0_56, %c165_57] : memref<8x1928xf32, #tpu.memory_space<vmem>>, vector<8x1664xf32>
    %74 = arith.maximumf %69, %71 : vector<8x1664xf32>
    %75 = arith.maximumf %72, %73 : vector<8x1664xf32>
    %76 = arith.maximumf %74, %75 : vector<8x1664xf32>
    %77 = vector.broadcast %61 : vector<1x1664xf32> to vector<8x1664xf32>
    %78 = arith.mulf %76, %77 : vector<8x1664xf32>
    %c0_58 = arith.constant 0 : index
    %c0_59 = arith.constant 0 : index
    %79 = vector.load %arg9[%c0_58, %c0_59] : memref<8x1664xf32, #tpu.memory_space<vmem>>, vector<8x1664xf32>
    tpu.vector_store %arg9[%c0_58, %c0_59], %78 {strides = array<i32>} : memref<8x1664xf32, #tpu.memory_space<vmem>>, vector<8x1664xf32>,
    %c0_60 = arith.constant 0 : index
    %c132_61 = arith.constant 132 : index
    %80 = vector.load %arg7[%c0_60, %c132_61] : memref<8x1928xf32, #tpu.memory_space<vmem>>, vector<8x1664xf32>
    tpu.vector_store %arg7[%c0_60, %c132_61], %78 {strides = array<i32>} : memref<8x1928xf32, #tpu.memory_space<vmem>>, vector<8x1664xf32>,
    %c0_62 = arith.constant 0 : index
    %c66 = arith.constant 66 : index
    %81 = vector.load %arg7[%c0_62, %c66] : memref<8x1928xf32, #tpu.memory_space<vmem>>, vector<8x1664xf32>
    %c0_63 = arith.constant 0 : index
    %c0_64 = arith.constant 0 : index
    %82 = vector.load %arg8[%c0_63, %c0_64] : memref<72x1664xf32, #tpu.memory_space<vmem>>, vector<8x1664xf32>
    tpu.vector_store %arg8[%c0_63, %c0_64], %81 {strides = array<i32>} : memref<72x1664xf32, #tpu.memory_space<vmem>>, vector<8x1664xf32>,
    %c0_65 = arith.constant 0 : index
    %c68 = arith.constant 68 : index
    %83 = vector.load %arg7[%c0_65, %c68] : memref<8x1928xf32, #tpu.memory_space<vmem>>, vector<8x1664xf32>
    %c8_66 = arith.constant 8 : index
    %c0_67 = arith.constant 0 : index
    %84 = vector.load %arg8[%c8_66, %c0_67] : memref<72x1664xf32, #tpu.memory_space<vmem>>, vector<8x1664xf32>
    tpu.vector_store %arg8[%c8_66, %c0_67], %83 {strides = array<i32>} : memref<72x1664xf32, #tpu.memory_space<vmem>>, vector<8x1664xf32>,
    %c0_68 = arith.constant 0 : index
    %c70 = arith.constant 70 : index
    %85 = vector.load %arg7[%c0_68, %c70] : memref<8x1928xf32, #tpu.memory_space<vmem>>, vector<8x1664xf32>
    %c16_69 = arith.constant 16 : index
    %c0_70 = arith.constant 0 : index
    %86 = vector.load %arg8[%c16_69, %c0_70] : memref<72x1664xf32, #tpu.memory_space<vmem>>, vector<8x1664xf32>
    tpu.vector_store %arg8[%c16_69, %c0_70], %85 {strides = array<i32>} : memref<72x1664xf32, #tpu.memory_space<vmem>>, vector<8x1664xf32>,
    %c0_71 = arith.constant 0 : index
    %c130 = arith.constant 130 : index
    %87 = vector.load %arg7[%c0_71, %c130] : memref<8x1928xf32, #tpu.memory_space<vmem>>, vector<8x1664xf32>
    %c24_72 = arith.constant 24 : index
    %c0_73 = arith.constant 0 : index
    %88 = vector.load %arg8[%c24_72, %c0_73] : memref<72x1664xf32, #tpu.memory_space<vmem>>, vector<8x1664xf32>
    tpu.vector_store %arg8[%c24_72, %c0_73], %87 {strides = array<i32>} : memref<72x1664xf32, #tpu.memory_space<vmem>>, vector<8x1664xf32>,
    %c0_74 = arith.constant 0 : index
    %c132_75 = arith.constant 132 : index
    %89 = vector.load %arg7[%c0_74, %c132_75] : memref<8x1928xf32, #tpu.memory_space<vmem>>, vector<8x1664xf32>
    %c32_76 = arith.constant 32 : index
    %c0_77 = arith.constant 0 : index
    %90 = vector.load %arg8[%c32_76, %c0_77] : memref<72x1664xf32, #tpu.memory_space<vmem>>, vector<8x1664xf32>
    tpu.vector_store %arg8[%c32_76, %c0_77], %89 {strides = array<i32>} : memref<72x1664xf32, #tpu.memory_space<vmem>>, vector<8x1664xf32>,
    %c0_78 = arith.constant 0 : index
    %c134 = arith.constant 134 : index
    %91 = vector.load %arg7[%c0_78, %c134] : memref<8x1928xf32, #tpu.memory_space<vmem>>, vector<8x1664xf32>
    %c40_79 = arith.constant 40 : index
    %c0_80 = arith.constant 0 : index
    %92 = vector.load %arg8[%c40_79, %c0_80] : memref<72x1664xf32, #tpu.memory_space<vmem>>, vector<8x1664xf32>
    tpu.vector_store %arg8[%c40_79, %c0_80], %91 {strides = array<i32>} : memref<72x1664xf32, #tpu.memory_space<vmem>>, vector<8x1664xf32>,
    %c0_81 = arith.constant 0 : index
    %c194 = arith.constant 194 : index
    %93 = vector.load %arg7[%c0_81, %c194] : memref<8x1928xf32, #tpu.memory_space<vmem>>, vector<8x1664xf32>
    %c48_82 = arith.constant 48 : index
    %c0_83 = arith.constant 0 : index
    %94 = vector.load %arg8[%c48_82, %c0_83] : memref<72x1664xf32, #tpu.memory_space<vmem>>, vector<8x1664xf32>
    tpu.vector_store %arg8[%c48_82, %c0_83], %93 {strides = array<i32>} : memref<72x1664xf32, #tpu.memory_space<vmem>>, vector<8x1664xf32>,
    %c0_84 = arith.constant 0 : index
    %c196 = arith.constant 196 : index
    %95 = vector.load %arg7[%c0_84, %c196] : memref<8x1928xf32, #tpu.memory_space<vmem>>, vector<8x1664xf32>
    %c56_85 = arith.constant 56 : index
    %c0_86 = arith.constant 0 : index
    %96 = vector.load %arg8[%c56_85, %c0_86] : memref<72x1664xf32, #tpu.memory_space<vmem>>, vector<8x1664xf32>
    tpu.vector_store %arg8[%c56_85, %c0_86], %95 {strides = array<i32>} : memref<72x1664xf32, #tpu.memory_space<vmem>>, vector<8x1664xf32>,
    %c0_87 = arith.constant 0 : index
    %c198 = arith.constant 198 : index
    %97 = vector.load %arg7[%c0_87, %c198] : memref<8x1928xf32, #tpu.memory_space<vmem>>, vector<8x1664xf32>
    %c64_88 = arith.constant 64 : index
    %c0_89 = arith.constant 0 : index
    %98 = vector.load %arg8[%c64_88, %c0_89] : memref<72x1664xf32, #tpu.memory_space<vmem>>, vector<8x1664xf32>
    tpu.vector_store %arg8[%c64_88, %c0_89], %97 {strides = array<i32>} : memref<72x1664xf32, #tpu.memory_space<vmem>>, vector<8x1664xf32>,
    %c1_90 = arith.constant 1 : index
    %c0_91 = arith.constant 0 : index
    %c0_92 = arith.constant 0 : index
    %99 = vector.load %arg2[%c1_90, %c0_91, %c0_92] : memref<6x8x72xf32, #tpu.memory_space<vmem>>, vector<1x8x72xf32>
    %100 = vector.shape_cast %99 : vector<1x8x72xf32> to vector<8x72xf32>
    %c0_93 = arith.constant 0 : index
    %c0_94 = arith.constant 0 : index
    %101 = vector.load %arg8[%c0_93, %c0_94] : memref<72x1664xf32, #tpu.memory_space<vmem>>, vector<72x1664xf32>
    %cst_95 = arith.constant dense<0.000000e+00> : vector<8x1664xf32>
    %102 = tpu.matmul %100, %101, %cst_95 {dimension_numbers = #tpu.dot_dimension_numbers<[1], [0], [0], [1], [0, 0, 1, 1], [], []>} : vector<8x72xf32>, vector<72x1664xf32>, vector<8x1664xf32> -> vector<8x1664xf32>
    %c1_96 = arith.constant 1 : index
    %c0_97 = arith.constant 0 : index
    %103 = vector.load %arg5[%c1_96, %c0_97] : memref<5x1664xf32, #tpu.memory_space<vmem>>, vector<1x1664xf32>
    %c0_98 = arith.constant 0 : index
    %c3 = arith.constant 3 : index
    %104 = vector.load %arg4[%c0_98, %c3] : memref<8x24xf32, #tpu.memory_space<vmem>>, vector<8x1xf32>
    %105 = vector.broadcast %104 : vector<8x1xf32> to vector<8x1664xf32>
    %106 = arith.addf %102, %105 : vector<8x1664xf32>
    %cst_99 = arith.constant 0.000000e+00 : f32
    %107 = vector.broadcast %cst_99 : f32 to vector<8x1664xf32>
    %108 = arith.maximumf %106, %107 : vector<8x1664xf32>
    %109 = vector.broadcast %103 : vector<1x1664xf32> to vector<8x1664xf32>
    %110 = arith.mulf %108, %109 : vector<8x1664xf32>
    %cst_100 = arith.constant dense<0.000000e+00> : vector<8xf32>
    %111 = vector.multi_reduction <add>, %110, %cst_100 [1] : vector<8x1664xf32> to vector<8xf32>
    %112 = vector.shape_cast %111 : vector<8xf32> to vector<8x1xf32>
    %113 = arith.mulf %110, %110 : vector<8x1664xf32>
    %cst_101 = arith.constant dense<0.000000e+00> : vector<8xf32>
    %114 = vector.multi_reduction <add>, %113, %cst_101 [1] : vector<8x1664xf32> to vector<8xf32>
    %115 = vector.shape_cast %114 : vector<8xf32> to vector<8x1xf32>
    %cst_102 = arith.constant 0.00617283955 : f32
    %116 = vector.broadcast %cst_102 : f32 to vector<8x1xf32>
    %117 = arith.mulf %112, %116 : vector<8x1xf32>
    %cst_103 = arith.constant 0.00617283955 : f32
    %118 = vector.broadcast %cst_103 : f32 to vector<8x1xf32>
    %119 = arith.mulf %115, %118 : vector<8x1xf32>
    %120 = arith.mulf %117, %117 : vector<8x1xf32>
    %121 = arith.subf %119, %120 : vector<8x1xf32>
    %122 = vector.broadcast %117 : vector<8x1xf32> to vector<8x1664xf32>
    %123 = arith.subf %108, %122 : vector<8x1664xf32>
    %cst_104 = arith.constant 9.99999974E-6 : f32
    %124 = vector.broadcast %cst_104 : f32 to vector<8x1xf32>
    %125 = arith.addf %121, %124 : vector<8x1xf32>
    %126 = math.rsqrt %125 : vector<8x1xf32>
    %127 = vector.broadcast %126 : vector<8x1xf32> to vector<8x1664xf32>
    %128 = arith.mulf %123, %127 : vector<8x1664xf32>
    %c0_105 = arith.constant 0 : index
    %c4 = arith.constant 4 : index
    %129 = vector.load %arg4[%c0_105, %c4] : memref<8x24xf32, #tpu.memory_space<vmem>>, vector<8x1xf32>
    %130 = vector.broadcast %129 : vector<8x1xf32> to vector<8x1664xf32>
    %131 = arith.mulf %128, %130 : vector<8x1664xf32>
    %c0_106 = arith.constant 0 : index
    %c5 = arith.constant 5 : index
    %132 = vector.load %arg4[%c0_106, %c5] : memref<8x24xf32, #tpu.memory_space<vmem>>, vector<8x1xf32>
    %133 = vector.broadcast %132 : vector<8x1xf32> to vector<8x1664xf32>
    %134 = arith.addf %131, %133 : vector<8x1664xf32>
    %c1_107 = arith.constant 1 : index
    %c0_108 = arith.constant 0 : index
    %135 = vector.load %arg5[%c1_107, %c0_108] : memref<5x1664xf32, #tpu.memory_space<vmem>>, vector<1x1664xf32>
    %c2_109 = arith.constant 2 : index
    %c0_110 = arith.constant 0 : index
    %136 = vector.load %arg5[%c2_109, %c0_110] : memref<5x1664xf32, #tpu.memory_space<vmem>>, vector<1x1664xf32>
    %137 = vector.broadcast %135 : vector<1x1664xf32> to vector<8x1664xf32>
    %138 = arith.mulf %134, %137 : vector<8x1664xf32>
    %cst_111 = arith.constant 1.000000e+00 : f32
    %139 = vector.broadcast %cst_111 : f32 to vector<1x1664xf32>
    %140 = arith.subf %135, %139 : vector<1x1664xf32>
    %cst_112 = arith.constant 1.000000e+30 : f32
    %141 = vector.broadcast %cst_112 : f32 to vector<1x1664xf32>
    %142 = arith.mulf %140, %141 : vector<1x1664xf32>
    %143 = vector.broadcast %142 : vector<1x1664xf32> to vector<8x1664xf32>
    %144 = arith.addf %138, %143 : vector<8x1664xf32>
    %c0_113 = arith.constant 0 : index
    %c132_114 = arith.constant 132 : index
    %145 = vector.load %arg7[%c0_113, %c132_114] : memref<8x1928xf32, #tpu.memory_space<vmem>>, vector<8x1664xf32>
    tpu.vector_store %arg7[%c0_113, %c132_114], %144 {strides = array<i32>} : memref<8x1928xf32, #tpu.memory_space<vmem>>, vector<8x1664xf32>,
    %c0_115 = arith.constant 0 : index
    %c134_116 = arith.constant 134 : index
    %146 = vector.load %arg7[%c0_115, %c134_116] : memref<8x1928xf32, #tpu.memory_space<vmem>>, vector<8x1664xf32>
    %c0_117 = arith.constant 0 : index
    %c196_118 = arith.constant 196 : index
    %147 = vector.load %arg7[%c0_117, %c196_118] : memref<8x1928xf32, #tpu.memory_space<vmem>>, vector<8x1664xf32>
    %c0_119 = arith.constant 0 : index
    %c198_120 = arith.constant 198 : index
    %148 = vector.load %arg7[%c0_119, %c198_120] : memref<8x1928xf32, #tpu.memory_space<vmem>>, vector<8x1664xf32>
    %149 = arith.maximumf %144, %146 : vector<8x1664xf32>
    %150 = arith.maximumf %147, %148 : vector<8x1664xf32>
    %151 = arith.maximumf %149, %150 : vector<8x1664xf32>
    %152 = vector.broadcast %136 : vector<1x1664xf32> to vector<8x1664xf32>
    %153 = arith.mulf %151, %152 : vector<8x1664xf32>
    %c0_121 = arith.constant 0 : index
    %c0_122 = arith.constant 0 : index
    %154 = vector.load %arg10[%c0_121, %c0_122] : memref<8x1664xf32, #tpu.memory_space<vmem>>, vector<8x1664xf32>
    tpu.vector_store %arg10[%c0_121, %c0_122], %153 {strides = array<i32>} : memref<8x1664xf32, #tpu.memory_space<vmem>>, vector<8x1664xf32>,
    %c0_123 = arith.constant 0 : index
    %c132_124 = arith.constant 132 : index
    %155 = vector.load %arg7[%c0_123, %c132_124] : memref<8x1928xf32, #tpu.memory_space<vmem>>, vector<8x1664xf32>
    tpu.vector_store %arg7[%c0_123, %c132_124], %153 {strides = array<i32>} : memref<8x1928xf32, #tpu.memory_space<vmem>>, vector<8x1664xf32>,
    %c0_125 = arith.constant 0 : index
    %c0_126 = arith.constant 0 : index
    %156 = vector.load %arg7[%c0_125, %c0_126] : memref<8x1928xf32, #tpu.memory_space<vmem>>, vector<8x1664xf32>
    %c0_127 = arith.constant 0 : index
    %c0_128 = arith.constant 0 : index
    %157 = vector.load %arg8[%c0_127, %c0_128] : memref<72x1664xf32, #tpu.memory_space<vmem>>, vector<8x1664xf32>
    tpu.vector_store %arg8[%c0_127, %c0_128], %156 {strides = array<i32>} : memref<72x1664xf32, #tpu.memory_space<vmem>>, vector<8x1664xf32>,
    %c0_129 = arith.constant 0 : index
    %c4_130 = arith.constant 4 : index
    %158 = vector.load %arg7[%c0_129, %c4_130] : memref<8x1928xf32, #tpu.memory_space<vmem>>, vector<8x1664xf32>
    %c8_131 = arith.constant 8 : index
    %c0_132 = arith.constant 0 : index
    %159 = vector.load %arg8[%c8_131, %c0_132] : memref<72x1664xf32, #tpu.memory_space<vmem>>, vector<8x1664xf32>
    tpu.vector_store %arg8[%c8_131, %c0_132], %158 {strides = array<i32>} : memref<72x1664xf32, #tpu.memory_space<vmem>>, vector<8x1664xf32>,
    %c0_133 = arith.constant 0 : index
    %c8_134 = arith.constant 8 : index
    %160 = vector.load %arg7[%c0_133, %c8_134] : memref<8x1928xf32, #tpu.memory_space<vmem>>, vector<8x1664xf32>
    %c16_135 = arith.constant 16 : index
    %c0_136 = arith.constant 0 : index
    %161 = vector.load %arg8[%c16_135, %c0_136] : memref<72x1664xf32, #tpu.memory_space<vmem>>, vector<8x1664xf32>
    tpu.vector_store %arg8[%c16_135, %c0_136], %160 {strides = array<i32>} : memref<72x1664xf32, #tpu.memory_space<vmem>>, vector<8x1664xf32>,
    %c0_137 = arith.constant 0 : index
    %c128 = arith.constant 128 : index
    %162 = vector.load %arg7[%c0_137, %c128] : memref<8x1928xf32, #tpu.memory_space<vmem>>, vector<8x1664xf32>
    %c24_138 = arith.constant 24 : index
    %c0_139 = arith.constant 0 : index
    %163 = vector.load %arg8[%c24_138, %c0_139] : memref<72x1664xf32, #tpu.memory_space<vmem>>, vector<8x1664xf32>
    tpu.vector_store %arg8[%c24_138, %c0_139], %162 {strides = array<i32>} : memref<72x1664xf32, #tpu.memory_space<vmem>>, vector<8x1664xf32>,
    %c0_140 = arith.constant 0 : index
    %c132_141 = arith.constant 132 : index
    %164 = vector.load %arg7[%c0_140, %c132_141] : memref<8x1928xf32, #tpu.memory_space<vmem>>, vector<8x1664xf32>
    %c32_142 = arith.constant 32 : index
    %c0_143 = arith.constant 0 : index
    %165 = vector.load %arg8[%c32_142, %c0_143] : memref<72x1664xf32, #tpu.memory_space<vmem>>, vector<8x1664xf32>
    tpu.vector_store %arg8[%c32_142, %c0_143], %164 {strides = array<i32>} : memref<72x1664xf32, #tpu.memory_space<vmem>>, vector<8x1664xf32>,
    %c0_144 = arith.constant 0 : index
    %c136 = arith.constant 136 : index
    %166 = vector.load %arg7[%c0_144, %c136] : memref<8x1928xf32, #tpu.memory_space<vmem>>, vector<8x1664xf32>
    %c40_145 = arith.constant 40 : index
    %c0_146 = arith.constant 0 : index
    %167 = vector.load %arg8[%c40_145, %c0_146] : memref<72x1664xf32, #tpu.memory_space<vmem>>, vector<8x1664xf32>
    tpu.vector_store %arg8[%c40_145, %c0_146], %166 {strides = array<i32>} : memref<72x1664xf32, #tpu.memory_space<vmem>>, vector<8x1664xf32>,
    %c0_147 = arith.constant 0 : index
    %c256 = arith.constant 256 : index
    %168 = vector.load %arg7[%c0_147, %c256] : memref<8x1928xf32, #tpu.memory_space<vmem>>, vector<8x1664xf32>
    %c48_148 = arith.constant 48 : index
    %c0_149 = arith.constant 0 : index
    %169 = vector.load %arg8[%c48_148, %c0_149] : memref<72x1664xf32, #tpu.memory_space<vmem>>, vector<8x1664xf32>
    tpu.vector_store %arg8[%c48_148, %c0_149], %168 {strides = array<i32>} : memref<72x1664xf32, #tpu.memory_space<vmem>>, vector<8x1664xf32>,
    %c0_150 = arith.constant 0 : index
    %c260 = arith.constant 260 : index
    %170 = vector.load %arg7[%c0_150, %c260] : memref<8x1928xf32, #tpu.memory_space<vmem>>, vector<8x1664xf32>
    %c56_151 = arith.constant 56 : index
    %c0_152 = arith.constant 0 : index
    %171 = vector.load %arg8[%c56_151, %c0_152] : memref<72x1664xf32, #tpu.memory_space<vmem>>, vector<8x1664xf32>
    tpu.vector_store %arg8[%c56_151, %c0_152], %170 {strides = array<i32>} : memref<72x1664xf32, #tpu.memory_space<vmem>>, vector<8x1664xf32>,
    %c0_153 = arith.constant 0 : index
    %c264 = arith.constant 264 : index
    %172 = vector.load %arg7[%c0_153, %c264] : memref<8x1928xf32, #tpu.memory_space<vmem>>, vector<8x1664xf32>
    %c64_154 = arith.constant 64 : index
    %c0_155 = arith.constant 0 : index
    %173 = vector.load %arg8[%c64_154, %c0_155] : memref<72x1664xf32, #tpu.memory_space<vmem>>, vector<8x1664xf32>
    tpu.vector_store %arg8[%c64_154, %c0_155], %172 {strides = array<i32>} : memref<72x1664xf32, #tpu.memory_space<vmem>>, vector<8x1664xf32>,
    %c2_156 = arith.constant 2 : index
    %c0_157 = arith.constant 0 : index
    %c0_158 = arith.constant 0 : index
    %174 = vector.load %arg2[%c2_156, %c0_157, %c0_158] : memref<6x8x72xf32, #tpu.memory_space<vmem>>, vector<1x8x72xf32>
    %175 = vector.shape_cast %174 : vector<1x8x72xf32> to vector<8x72xf32>
    %c0_159 = arith.constant 0 : index
    %c0_160 = arith.constant 0 : index
    %176 = vector.load %arg8[%c0_159, %c0_160] : memref<72x1664xf32, #tpu.memory_space<vmem>>, vector<72x1664xf32>
    %cst_161 = arith.constant dense<0.000000e+00> : vector<8x1664xf32>
    %177 = tpu.matmul %175, %176, %cst_161 {dimension_numbers = #tpu.dot_dimension_numbers<[1], [0], [0], [1], [0, 0, 1, 1], [], []>} : vector<8x72xf32>, vector<72x1664xf32>, vector<8x1664xf32> -> vector<8x1664xf32>
    %c2_162 = arith.constant 2 : index
    %c0_163 = arith.constant 0 : index
    %178 = vector.load %arg5[%c2_162, %c0_163] : memref<5x1664xf32, #tpu.memory_space<vmem>>, vector<1x1664xf32>
    %c0_164 = arith.constant 0 : index
    %c6 = arith.constant 6 : index
    %179 = vector.load %arg4[%c0_164, %c6] : memref<8x24xf32, #tpu.memory_space<vmem>>, vector<8x1xf32>
    %180 = vector.broadcast %179 : vector<8x1xf32> to vector<8x1664xf32>
    %181 = arith.addf %177, %180 : vector<8x1664xf32>
    %cst_165 = arith.constant 0.000000e+00 : f32
    %182 = vector.broadcast %cst_165 : f32 to vector<8x1664xf32>
    %183 = arith.maximumf %181, %182 : vector<8x1664xf32>
    %184 = vector.broadcast %178 : vector<1x1664xf32> to vector<8x1664xf32>
    %185 = arith.mulf %183, %184 : vector<8x1664xf32>
    %cst_166 = arith.constant dense<0.000000e+00> : vector<8xf32>
    %186 = vector.multi_reduction <add>, %185, %cst_166 [1] : vector<8x1664xf32> to vector<8xf32>
    %187 = vector.shape_cast %186 : vector<8xf32> to vector<8x1xf32>
    %188 = arith.mulf %185, %185 : vector<8x1664xf32>
    %cst_167 = arith.constant dense<0.000000e+00> : vector<8xf32>
    %189 = vector.multi_reduction <add>, %188, %cst_167 [1] : vector<8x1664xf32> to vector<8xf32>
    %190 = vector.shape_cast %189 : vector<8xf32> to vector<8x1xf32>
    %cst_168 = arith.constant 2.000000e-02 : f32
    %191 = vector.broadcast %cst_168 : f32 to vector<8x1xf32>
    %192 = arith.mulf %187, %191 : vector<8x1xf32>
    %cst_169 = arith.constant 2.000000e-02 : f32
    %193 = vector.broadcast %cst_169 : f32 to vector<8x1xf32>
    %194 = arith.mulf %190, %193 : vector<8x1xf32>
    %195 = arith.mulf %192, %192 : vector<8x1xf32>
    %196 = arith.subf %194, %195 : vector<8x1xf32>
    %197 = vector.broadcast %192 : vector<8x1xf32> to vector<8x1664xf32>
    %198 = arith.subf %183, %197 : vector<8x1664xf32>
    %cst_170 = arith.constant 9.99999974E-6 : f32
    %199 = vector.broadcast %cst_170 : f32 to vector<8x1xf32>
    %200 = arith.addf %196, %199 : vector<8x1xf32>
    %201 = math.rsqrt %200 : vector<8x1xf32>
    %202 = vector.broadcast %201 : vector<8x1xf32> to vector<8x1664xf32>
    %203 = arith.mulf %198, %202 : vector<8x1664xf32>
    %c0_171 = arith.constant 0 : index
    %c7 = arith.constant 7 : index
    %204 = vector.load %arg4[%c0_171, %c7] : memref<8x24xf32, #tpu.memory_space<vmem>>, vector<8x1xf32>
    %205 = vector.broadcast %204 : vector<8x1xf32> to vector<8x1664xf32>
    %206 = arith.mulf %203, %205 : vector<8x1664xf32>
    %c0_172 = arith.constant 0 : index
    %c8_173 = arith.constant 8 : index
    %207 = vector.load %arg4[%c0_172, %c8_173] : memref<8x24xf32, #tpu.memory_space<vmem>>, vector<8x1xf32>
    %208 = vector.broadcast %207 : vector<8x1xf32> to vector<8x1664xf32>
    %209 = arith.addf %206, %208 : vector<8x1664xf32>
    %c2_174 = arith.constant 2 : index
    %c0_175 = arith.constant 0 : index
    %210 = vector.load %arg5[%c2_174, %c0_175] : memref<5x1664xf32, #tpu.memory_space<vmem>>, vector<1x1664xf32>
    %c3_176 = arith.constant 3 : index
    %c0_177 = arith.constant 0 : index
    %211 = vector.load %arg5[%c3_176, %c0_177] : memref<5x1664xf32, #tpu.memory_space<vmem>>, vector<1x1664xf32>
    %212 = vector.broadcast %210 : vector<1x1664xf32> to vector<8x1664xf32>
    %213 = arith.mulf %209, %212 : vector<8x1664xf32>
    %cst_178 = arith.constant 1.000000e+00 : f32
    %214 = vector.broadcast %cst_178 : f32 to vector<1x1664xf32>
    %215 = arith.subf %210, %214 : vector<1x1664xf32>
    %cst_179 = arith.constant 1.000000e+30 : f32
    %216 = vector.broadcast %cst_179 : f32 to vector<1x1664xf32>
    %217 = arith.mulf %215, %216 : vector<1x1664xf32>
    %218 = vector.broadcast %217 : vector<1x1664xf32> to vector<8x1664xf32>
    %219 = arith.addf %213, %218 : vector<8x1664xf32>
    %c0_180 = arith.constant 0 : index
    %c132_181 = arith.constant 132 : index
    %220 = vector.load %arg7[%c0_180, %c132_181] : memref<8x1928xf32, #tpu.memory_space<vmem>>, vector<8x1664xf32>
    tpu.vector_store %arg7[%c0_180, %c132_181], %219 {strides = array<i32>} : memref<8x1928xf32, #tpu.memory_space<vmem>>, vector<8x1664xf32>,
    %c0_182 = arith.constant 0 : index
    %c136_183 = arith.constant 136 : index
    %221 = vector.load %arg7[%c0_182, %c136_183] : memref<8x1928xf32, #tpu.memory_space<vmem>>, vector<8x1664xf32>
    %c0_184 = arith.constant 0 : index
    %c260_185 = arith.constant 260 : index
    %222 = vector.load %arg7[%c0_184, %c260_185] : memref<8x1928xf32, #tpu.memory_space<vmem>>, vector<8x1664xf32>
    %c0_186 = arith.constant 0 : index
    %c264_187 = arith.constant 264 : index
    %223 = vector.load %arg7[%c0_186, %c264_187] : memref<8x1928xf32, #tpu.memory_space<vmem>>, vector<8x1664xf32>
    %224 = arith.maximumf %219, %221 : vector<8x1664xf32>
    %225 = arith.maximumf %222, %223 : vector<8x1664xf32>
    %226 = arith.maximumf %224, %225 : vector<8x1664xf32>
    %227 = vector.broadcast %211 : vector<1x1664xf32> to vector<8x1664xf32>
    %228 = arith.mulf %226, %227 : vector<8x1664xf32>
    %c0_188 = arith.constant 0 : index
    %c132_189 = arith.constant 132 : index
    %229 = vector.load %arg7[%c0_188, %c132_189] : memref<8x1928xf32, #tpu.memory_space<vmem>>, vector<8x1664xf32>
    tpu.vector_store %arg7[%c0_188, %c132_189], %228 {strides = array<i32>} : memref<8x1928xf32, #tpu.memory_space<vmem>>, vector<8x1664xf32>,
    %c0_190 = arith.constant 0 : index
    %c0_191 = arith.constant 0 : index
    %230 = vector.load %arg7[%c0_190, %c0_191] : memref<8x1928xf32, #tpu.memory_space<vmem>>, vector<8x1664xf32>
    %c0_192 = arith.constant 0 : index
    %c0_193 = arith.constant 0 : index
    %231 = vector.load %arg8[%c0_192, %c0_193] : memref<72x1664xf32, #tpu.memory_space<vmem>>, vector<8x1664xf32>
    tpu.vector_store %arg8[%c0_192, %c0_193], %230 {strides = array<i32>} : memref<72x1664xf32, #tpu.memory_space<vmem>>, vector<8x1664xf32>,
    %c0_194 = arith.constant 0 : index
    %c4_195 = arith.constant 4 : index
    %232 = vector.load %arg7[%c0_194, %c4_195] : memref<8x1928xf32, #tpu.memory_space<vmem>>, vector<8x1664xf32>
    %c8_196 = arith.constant 8 : index
    %c0_197 = arith.constant 0 : index
    %233 = vector.load %arg8[%c8_196, %c0_197] : memref<72x1664xf32, #tpu.memory_space<vmem>>, vector<8x1664xf32>
    tpu.vector_store %arg8[%c8_196, %c0_197], %232 {strides = array<i32>} : memref<72x1664xf32, #tpu.memory_space<vmem>>, vector<8x1664xf32>,
    %c0_198 = arith.constant 0 : index
    %c8_199 = arith.constant 8 : index
    %234 = vector.load %arg7[%c0_198, %c8_199] : memref<8x1928xf32, #tpu.memory_space<vmem>>, vector<8x1664xf32>
    %c16_200 = arith.constant 16 : index
    %c0_201 = arith.constant 0 : index
    %235 = vector.load %arg8[%c16_200, %c0_201] : memref<72x1664xf32, #tpu.memory_space<vmem>>, vector<8x1664xf32>
    tpu.vector_store %arg8[%c16_200, %c0_201], %234 {strides = array<i32>} : memref<72x1664xf32, #tpu.memory_space<vmem>>, vector<8x1664xf32>,
    %c0_202 = arith.constant 0 : index
    %c128_203 = arith.constant 128 : index
    %236 = vector.load %arg7[%c0_202, %c128_203] : memref<8x1928xf32, #tpu.memory_space<vmem>>, vector<8x1664xf32>
    %c24_204 = arith.constant 24 : index
    %c0_205 = arith.constant 0 : index
    %237 = vector.load %arg8[%c24_204, %c0_205] : memref<72x1664xf32, #tpu.memory_space<vmem>>, vector<8x1664xf32>
    tpu.vector_store %arg8[%c24_204, %c0_205], %236 {strides = array<i32>} : memref<72x1664xf32, #tpu.memory_space<vmem>>, vector<8x1664xf32>,
    %c0_206 = arith.constant 0 : index
    %c132_207 = arith.constant 132 : index
    %238 = vector.load %arg7[%c0_206, %c132_207] : memref<8x1928xf32, #tpu.memory_space<vmem>>, vector<8x1664xf32>
    %c32_208 = arith.constant 32 : index
    %c0_209 = arith.constant 0 : index
    %239 = vector.load %arg8[%c32_208, %c0_209] : memref<72x1664xf32, #tpu.memory_space<vmem>>, vector<8x1664xf32>
    tpu.vector_store %arg8[%c32_208, %c0_209], %238 {strides = array<i32>} : memref<72x1664xf32, #tpu.memory_space<vmem>>, vector<8x1664xf32>,
    %c0_210 = arith.constant 0 : index
    %c136_211 = arith.constant 136 : index
    %240 = vector.load %arg7[%c0_210, %c136_211] : memref<8x1928xf32, #tpu.memory_space<vmem>>, vector<8x1664xf32>
    %c40_212 = arith.constant 40 : index
    %c0_213 = arith.constant 0 : index
    %241 = vector.load %arg8[%c40_212, %c0_213] : memref<72x1664xf32, #tpu.memory_space<vmem>>, vector<8x1664xf32>
    tpu.vector_store %arg8[%c40_212, %c0_213], %240 {strides = array<i32>} : memref<72x1664xf32, #tpu.memory_space<vmem>>, vector<8x1664xf32>,
    %c0_214 = arith.constant 0 : index
    %c256_215 = arith.constant 256 : index
    %242 = vector.load %arg7[%c0_214, %c256_215] : memref<8x1928xf32, #tpu.memory_space<vmem>>, vector<8x1664xf32>
    %c48_216 = arith.constant 48 : index
    %c0_217 = arith.constant 0 : index
    %243 = vector.load %arg8[%c48_216, %c0_217] : memref<72x1664xf32, #tpu.memory_space<vmem>>, vector<8x1664xf32>
    tpu.vector_store %arg8[%c48_216, %c0_217], %242 {strides = array<i32>} : memref<72x1664xf32, #tpu.memory_space<vmem>>, vector<8x1664xf32>,
    %c0_218 = arith.constant 0 : index
    %c260_219 = arith.constant 260 : index
    %244 = vector.load %arg7[%c0_218, %c260_219] : memref<8x1928xf32, #tpu.memory_space<vmem>>, vector<8x1664xf32>
    %c56_220 = arith.constant 56 : index
    %c0_221 = arith.constant 0 : index
    %245 = vector.load %arg8[%c56_220, %c0_221] : memref<72x1664xf32, #tpu.memory_space<vmem>>, vector<8x1664xf32>
    tpu.vector_store %arg8[%c56_220, %c0_221], %244 {strides = array<i32>} : memref<72x1664xf32, #tpu.memory_space<vmem>>, vector<8x1664xf32>,
    %c0_222 = arith.constant 0 : index
    %c264_223 = arith.constant 264 : index
    %246 = vector.load %arg7[%c0_222, %c264_223] : memref<8x1928xf32, #tpu.memory_space<vmem>>, vector<8x1664xf32>
    %c64_224 = arith.constant 64 : index
    %c0_225 = arith.constant 0 : index
    %247 = vector.load %arg8[%c64_224, %c0_225] : memref<72x1664xf32, #tpu.memory_space<vmem>>, vector<8x1664xf32>
    tpu.vector_store %arg8[%c64_224, %c0_225], %246 {strides = array<i32>} : memref<72x1664xf32, #tpu.memory_space<vmem>>, vector<8x1664xf32>,
    %c3_226 = arith.constant 3 : index
    %c0_227 = arith.constant 0 : index
    %c0_228 = arith.constant 0 : index
    %248 = vector.load %arg2[%c3_226, %c0_227, %c0_228] : memref<6x8x72xf32, #tpu.memory_space<vmem>>, vector<1x8x72xf32>
    %249 = vector.shape_cast %248 : vector<1x8x72xf32> to vector<8x72xf32>
    %c0_229 = arith.constant 0 : index
    %c0_230 = arith.constant 0 : index
    %250 = vector.load %arg8[%c0_229, %c0_230] : memref<72x1664xf32, #tpu.memory_space<vmem>>, vector<72x1664xf32>
    %cst_231 = arith.constant dense<0.000000e+00> : vector<8x1664xf32>
    %251 = tpu.matmul %249, %250, %cst_231 {dimension_numbers = #tpu.dot_dimension_numbers<[1], [0], [0], [1], [0, 0, 1, 1], [], []>} : vector<8x72xf32>, vector<72x1664xf32>, vector<8x1664xf32> -> vector<8x1664xf32>
    %c2_232 = arith.constant 2 : index
    %c0_233 = arith.constant 0 : index
    %252 = vector.load %arg5[%c2_232, %c0_233] : memref<5x1664xf32, #tpu.memory_space<vmem>>, vector<1x1664xf32>
    %c0_234 = arith.constant 0 : index
    %c9 = arith.constant 9 : index
    %253 = vector.load %arg4[%c0_234, %c9] : memref<8x24xf32, #tpu.memory_space<vmem>>, vector<8x1xf32>
    %254 = vector.broadcast %253 : vector<8x1xf32> to vector<8x1664xf32>
    %255 = arith.addf %251, %254 : vector<8x1664xf32>
    %cst_235 = arith.constant 0.000000e+00 : f32
    %256 = vector.broadcast %cst_235 : f32 to vector<8x1664xf32>
    %257 = arith.maximumf %255, %256 : vector<8x1664xf32>
    %258 = vector.broadcast %252 : vector<1x1664xf32> to vector<8x1664xf32>
    %259 = arith.mulf %257, %258 : vector<8x1664xf32>
    %cst_236 = arith.constant dense<0.000000e+00> : vector<8xf32>
    %260 = vector.multi_reduction <add>, %259, %cst_236 [1] : vector<8x1664xf32> to vector<8xf32>
    %261 = vector.shape_cast %260 : vector<8xf32> to vector<8x1xf32>
    %262 = arith.mulf %259, %259 : vector<8x1664xf32>
    %cst_237 = arith.constant dense<0.000000e+00> : vector<8xf32>
    %263 = vector.multi_reduction <add>, %262, %cst_237 [1] : vector<8x1664xf32> to vector<8xf32>
    %264 = vector.shape_cast %263 : vector<8xf32> to vector<8x1xf32>
    %cst_238 = arith.constant 2.000000e-02 : f32
    %265 = vector.broadcast %cst_238 : f32 to vector<8x1xf32>
    %266 = arith.mulf %261, %265 : vector<8x1xf32>
    %cst_239 = arith.constant 2.000000e-02 : f32
    %267 = vector.broadcast %cst_239 : f32 to vector<8x1xf32>
    %268 = arith.mulf %264, %267 : vector<8x1xf32>
    %269 = arith.mulf %266, %266 : vector<8x1xf32>
    %270 = arith.subf %268, %269 : vector<8x1xf32>
    %271 = vector.broadcast %266 : vector<8x1xf32> to vector<8x1664xf32>
    %272 = arith.subf %257, %271 : vector<8x1664xf32>
    %cst_240 = arith.constant 9.99999974E-6 : f32
    %273 = vector.broadcast %cst_240 : f32 to vector<8x1xf32>
    %274 = arith.addf %270, %273 : vector<8x1xf32>
    %275 = math.rsqrt %274 : vector<8x1xf32>
    %276 = vector.broadcast %275 : vector<8x1xf32> to vector<8x1664xf32>
    %277 = arith.mulf %272, %276 : vector<8x1664xf32>
    %c0_241 = arith.constant 0 : index
    %c10 = arith.constant 10 : index
    %278 = vector.load %arg4[%c0_241, %c10] : memref<8x24xf32, #tpu.memory_space<vmem>>, vector<8x1xf32>
    %279 = vector.broadcast %278 : vector<8x1xf32> to vector<8x1664xf32>
    %280 = arith.mulf %277, %279 : vector<8x1664xf32>
    %c0_242 = arith.constant 0 : index
    %c11 = arith.constant 11 : index
    %281 = vector.load %arg4[%c0_242, %c11] : memref<8x24xf32, #tpu.memory_space<vmem>>, vector<8x1xf32>
    %282 = vector.broadcast %281 : vector<8x1xf32> to vector<8x1664xf32>
    %283 = arith.addf %280, %282 : vector<8x1664xf32>
    %c0_243 = arith.constant 0 : index
    %c0_244 = arith.constant 0 : index
    %284 = vector.load %arg10[%c0_243, %c0_244] : memref<8x1664xf32, #tpu.memory_space<vmem>>, vector<8x1664xf32>
    %285 = arith.addf %283, %284 : vector<8x1664xf32>
    %c2_245 = arith.constant 2 : index
    %c0_246 = arith.constant 0 : index
    %286 = vector.load %arg5[%c2_245, %c0_246] : memref<5x1664xf32, #tpu.memory_space<vmem>>, vector<1x1664xf32>
    %287 = vector.broadcast %286 : vector<1x1664xf32> to vector<8x1664xf32>
    %288 = arith.mulf %285, %287 : vector<8x1664xf32>
    %c0_247 = arith.constant 0 : index
    %c132_248 = arith.constant 132 : index
    %289 = vector.load %arg7[%c0_247, %c132_248] : memref<8x1928xf32, #tpu.memory_space<vmem>>, vector<8x1664xf32>
    tpu.vector_store %arg7[%c0_247, %c132_248], %288 {strides = array<i32>} : memref<8x1928xf32, #tpu.memory_space<vmem>>, vector<8x1664xf32>,
    %c0_249 = arith.constant 0 : index
    %c66_250 = arith.constant 66 : index
    %290 = vector.load %arg7[%c0_249, %c66_250] : memref<8x1928xf32, #tpu.memory_space<vmem>>, vector<8x1664xf32>
    %c0_251 = arith.constant 0 : index
    %c0_252 = arith.constant 0 : index
    %291 = vector.load %arg8[%c0_251, %c0_252] : memref<72x1664xf32, #tpu.memory_space<vmem>>, vector<8x1664xf32>
    tpu.vector_store %arg8[%c0_251, %c0_252], %290 {strides = array<i32>} : memref<72x1664xf32, #tpu.memory_space<vmem>>, vector<8x1664xf32>,
    %c0_253 = arith.constant 0 : index
    %c68_254 = arith.constant 68 : index
    %292 = vector.load %arg7[%c0_253, %c68_254] : memref<8x1928xf32, #tpu.memory_space<vmem>>, vector<8x1664xf32>
    %c8_255 = arith.constant 8 : index
    %c0_256 = arith.constant 0 : index
    %293 = vector.load %arg8[%c8_255, %c0_256] : memref<72x1664xf32, #tpu.memory_space<vmem>>, vector<8x1664xf32>
    tpu.vector_store %arg8[%c8_255, %c0_256], %292 {strides = array<i32>} : memref<72x1664xf32, #tpu.memory_space<vmem>>, vector<8x1664xf32>,
    %c0_257 = arith.constant 0 : index
    %c70_258 = arith.constant 70 : index
    %294 = vector.load %arg7[%c0_257, %c70_258] : memref<8x1928xf32, #tpu.memory_space<vmem>>, vector<8x1664xf32>
    %c16_259 = arith.constant 16 : index
    %c0_260 = arith.constant 0 : index
    %295 = vector.load %arg8[%c16_259, %c0_260] : memref<72x1664xf32, #tpu.memory_space<vmem>>, vector<8x1664xf32>
    tpu.vector_store %arg8[%c16_259, %c0_260], %294 {strides = array<i32>} : memref<72x1664xf32, #tpu.memory_space<vmem>>, vector<8x1664xf32>,
    %c0_261 = arith.constant 0 : index
    %c130_262 = arith.constant 130 : index
    %296 = vector.load %arg7[%c0_261, %c130_262] : memref<8x1928xf32, #tpu.memory_space<vmem>>, vector<8x1664xf32>
    %c24_263 = arith.constant 24 : index
    %c0_264 = arith.constant 0 : index
    %297 = vector.load %arg8[%c24_263, %c0_264] : memref<72x1664xf32, #tpu.memory_space<vmem>>, vector<8x1664xf32>
    tpu.vector_store %arg8[%c24_263, %c0_264], %296 {strides = array<i32>} : memref<72x1664xf32, #tpu.memory_space<vmem>>, vector<8x1664xf32>,
    %c0_265 = arith.constant 0 : index
    %c132_266 = arith.constant 132 : index
    %298 = vector.load %arg7[%c0_265, %c132_266] : memref<8x1928xf32, #tpu.memory_space<vmem>>, vector<8x1664xf32>
    %c32_267 = arith.constant 32 : index
    %c0_268 = arith.constant 0 : index
    %299 = vector.load %arg8[%c32_267, %c0_268] : memref<72x1664xf32, #tpu.memory_space<vmem>>, vector<8x1664xf32>
    tpu.vector_store %arg8[%c32_267, %c0_268], %298 {strides = array<i32>} : memref<72x1664xf32, #tpu.memory_space<vmem>>, vector<8x1664xf32>,
    %c0_269 = arith.constant 0 : index
    %c134_270 = arith.constant 134 : index
    %300 = vector.load %arg7[%c0_269, %c134_270] : memref<8x1928xf32, #tpu.memory_space<vmem>>, vector<8x1664xf32>
    %c40_271 = arith.constant 40 : index
    %c0_272 = arith.constant 0 : index
    %301 = vector.load %arg8[%c40_271, %c0_272] : memref<72x1664xf32, #tpu.memory_space<vmem>>, vector<8x1664xf32>
    tpu.vector_store %arg8[%c40_271, %c0_272], %300 {strides = array<i32>} : memref<72x1664xf32, #tpu.memory_space<vmem>>, vector<8x1664xf32>,
    %c0_273 = arith.constant 0 : index
    %c194_274 = arith.constant 194 : index
    %302 = vector.load %arg7[%c0_273, %c194_274] : memref<8x1928xf32, #tpu.memory_space<vmem>>, vector<8x1664xf32>
    %c48_275 = arith.constant 48 : index
    %c0_276 = arith.constant 0 : index
    %303 = vector.load %arg8[%c48_275, %c0_276] : memref<72x1664xf32, #tpu.memory_space<vmem>>, vector<8x1664xf32>
    tpu.vector_store %arg8[%c48_275, %c0_276], %302 {strides = array<i32>} : memref<72x1664xf32, #tpu.memory_space<vmem>>, vector<8x1664xf32>,
    %c0_277 = arith.constant 0 : index
    %c196_278 = arith.constant 196 : index
    %304 = vector.load %arg7[%c0_277, %c196_278] : memref<8x1928xf32, #tpu.memory_space<vmem>>, vector<8x1664xf32>
    %c56_279 = arith.constant 56 : index
    %c0_280 = arith.constant 0 : index
    %305 = vector.load %arg8[%c56_279, %c0_280] : memref<72x1664xf32, #tpu.memory_space<vmem>>, vector<8x1664xf32>
    tpu.vector_store %arg8[%c56_279, %c0_280], %304 {strides = array<i32>} : memref<72x1664xf32, #tpu.memory_space<vmem>>, vector<8x1664xf32>,
    %c0_281 = arith.constant 0 : index
    %c198_282 = arith.constant 198 : index
    %306 = vector.load %arg7[%c0_281, %c198_282] : memref<8x1928xf32, #tpu.memory_space<vmem>>, vector<8x1664xf32>
    %c64_283 = arith.constant 64 : index
    %c0_284 = arith.constant 0 : index
    %307 = vector.load %arg8[%c64_283, %c0_284] : memref<72x1664xf32, #tpu.memory_space<vmem>>, vector<8x1664xf32>
    tpu.vector_store %arg8[%c64_283, %c0_284], %306 {strides = array<i32>} : memref<72x1664xf32, #tpu.memory_space<vmem>>, vector<8x1664xf32>,
    %c4_285 = arith.constant 4 : index
    %c0_286 = arith.constant 0 : index
    %c0_287 = arith.constant 0 : index
    %308 = vector.load %arg2[%c4_285, %c0_286, %c0_287] : memref<6x8x72xf32, #tpu.memory_space<vmem>>, vector<1x8x72xf32>
    %309 = vector.shape_cast %308 : vector<1x8x72xf32> to vector<8x72xf32>
    %c0_288 = arith.constant 0 : index
    %c0_289 = arith.constant 0 : index
    %310 = vector.load %arg8[%c0_288, %c0_289] : memref<72x1664xf32, #tpu.memory_space<vmem>>, vector<72x1664xf32>
    %cst_290 = arith.constant dense<0.000000e+00> : vector<8x1664xf32>
    %311 = tpu.matmul %309, %310, %cst_290 {dimension_numbers = #tpu.dot_dimension_numbers<[1], [0], [0], [1], [0, 0, 1, 1], [], []>} : vector<8x72xf32>, vector<72x1664xf32>, vector<8x1664xf32> -> vector<8x1664xf32>
    %c1_291 = arith.constant 1 : index
    %c0_292 = arith.constant 0 : index
    %312 = vector.load %arg5[%c1_291, %c0_292] : memref<5x1664xf32, #tpu.memory_space<vmem>>, vector<1x1664xf32>
    %c0_293 = arith.constant 0 : index
    %c12 = arith.constant 12 : index
    %313 = vector.load %arg4[%c0_293, %c12] : memref<8x24xf32, #tpu.memory_space<vmem>>, vector<8x1xf32>
    %314 = vector.broadcast %313 : vector<8x1xf32> to vector<8x1664xf32>
    %315 = arith.addf %311, %314 : vector<8x1664xf32>
    %cst_294 = arith.constant 0.000000e+00 : f32
    %316 = vector.broadcast %cst_294 : f32 to vector<8x1664xf32>
    %317 = arith.maximumf %315, %316 : vector<8x1664xf32>
    %318 = vector.broadcast %312 : vector<1x1664xf32> to vector<8x1664xf32>
    %319 = arith.mulf %317, %318 : vector<8x1664xf32>
    %cst_295 = arith.constant dense<0.000000e+00> : vector<8xf32>
    %320 = vector.multi_reduction <add>, %319, %cst_295 [1] : vector<8x1664xf32> to vector<8xf32>
    %321 = vector.shape_cast %320 : vector<8xf32> to vector<8x1xf32>
    %322 = arith.mulf %319, %319 : vector<8x1664xf32>
    %cst_296 = arith.constant dense<0.000000e+00> : vector<8xf32>
    %323 = vector.multi_reduction <add>, %322, %cst_296 [1] : vector<8x1664xf32> to vector<8xf32>
    %324 = vector.shape_cast %323 : vector<8xf32> to vector<8x1xf32>
    %cst_297 = arith.constant 0.00617283955 : f32
    %325 = vector.broadcast %cst_297 : f32 to vector<8x1xf32>
    %326 = arith.mulf %321, %325 : vector<8x1xf32>
    %cst_298 = arith.constant 0.00617283955 : f32
    %327 = vector.broadcast %cst_298 : f32 to vector<8x1xf32>
    %328 = arith.mulf %324, %327 : vector<8x1xf32>
    %329 = arith.mulf %326, %326 : vector<8x1xf32>
    %330 = arith.subf %328, %329 : vector<8x1xf32>
    %331 = vector.broadcast %326 : vector<8x1xf32> to vector<8x1664xf32>
    %332 = arith.subf %317, %331 : vector<8x1664xf32>
    %cst_299 = arith.constant 9.99999974E-6 : f32
    %333 = vector.broadcast %cst_299 : f32 to vector<8x1xf32>
    %334 = arith.addf %330, %333 : vector<8x1xf32>
    %335 = math.rsqrt %334 : vector<8x1xf32>
    %336 = vector.broadcast %335 : vector<8x1xf32> to vector<8x1664xf32>
    %337 = arith.mulf %332, %336 : vector<8x1664xf32>
    %c0_300 = arith.constant 0 : index
    %c13 = arith.constant 13 : index
    %338 = vector.load %arg4[%c0_300, %c13] : memref<8x24xf32, #tpu.memory_space<vmem>>, vector<8x1xf32>
    %339 = vector.broadcast %338 : vector<8x1xf32> to vector<8x1664xf32>
    %340 = arith.mulf %337, %339 : vector<8x1664xf32>
    %c0_301 = arith.constant 0 : index
    %c14 = arith.constant 14 : index
    %341 = vector.load %arg4[%c0_301, %c14] : memref<8x24xf32, #tpu.memory_space<vmem>>, vector<8x1xf32>
    %342 = vector.broadcast %341 : vector<8x1xf32> to vector<8x1664xf32>
    %343 = arith.addf %340, %342 : vector<8x1664xf32>
    %c0_302 = arith.constant 0 : index
    %c0_303 = arith.constant 0 : index
    %344 = vector.load %arg9[%c0_302, %c0_303] : memref<8x1664xf32, #tpu.memory_space<vmem>>, vector<8x1664xf32>
    %345 = arith.addf %343, %344 : vector<8x1664xf32>
    %c1_304 = arith.constant 1 : index
    %c0_305 = arith.constant 0 : index
    %346 = vector.load %arg5[%c1_304, %c0_305] : memref<5x1664xf32, #tpu.memory_space<vmem>>, vector<1x1664xf32>
    %347 = vector.broadcast %346 : vector<1x1664xf32> to vector<8x1664xf32>
    %348 = arith.mulf %345, %347 : vector<8x1664xf32>
    %c0_306 = arith.constant 0 : index
    %c132_307 = arith.constant 132 : index
    %349 = vector.load %arg7[%c0_306, %c132_307] : memref<8x1928xf32, #tpu.memory_space<vmem>>, vector<8x1664xf32>
    tpu.vector_store %arg7[%c0_306, %c132_307], %348 {strides = array<i32>} : memref<8x1928xf32, #tpu.memory_space<vmem>>, vector<8x1664xf32>,
    %c0_308 = arith.constant 0 : index
    %c99_309 = arith.constant 99 : index
    %350 = vector.load %arg7[%c0_308, %c99_309] : memref<8x1928xf32, #tpu.memory_space<vmem>>, vector<8x1664xf32>
    %c0_310 = arith.constant 0 : index
    %c0_311 = arith.constant 0 : index
    %351 = vector.load %arg8[%c0_310, %c0_311] : memref<72x1664xf32, #tpu.memory_space<vmem>>, vector<8x1664xf32>
    tpu.vector_store %arg8[%c0_310, %c0_311], %350 {strides = array<i32>} : memref<72x1664xf32, #tpu.memory_space<vmem>>, vector<8x1664xf32>,
    %c0_312 = arith.constant 0 : index
    %c100_313 = arith.constant 100 : index
    %352 = vector.load %arg7[%c0_312, %c100_313] : memref<8x1928xf32, #tpu.memory_space<vmem>>, vector<8x1664xf32>
    %c8_314 = arith.constant 8 : index
    %c0_315 = arith.constant 0 : index
    %353 = vector.load %arg8[%c8_314, %c0_315] : memref<72x1664xf32, #tpu.memory_space<vmem>>, vector<8x1664xf32>
    tpu.vector_store %arg8[%c8_314, %c0_315], %352 {strides = array<i32>} : memref<72x1664xf32, #tpu.memory_space<vmem>>, vector<8x1664xf32>,
    %c0_316 = arith.constant 0 : index
    %c101_317 = arith.constant 101 : index
    %354 = vector.load %arg7[%c0_316, %c101_317] : memref<8x1928xf32, #tpu.memory_space<vmem>>, vector<8x1664xf32>
    %c16_318 = arith.constant 16 : index
    %c0_319 = arith.constant 0 : index
    %355 = vector.load %arg8[%c16_318, %c0_319] : memref<72x1664xf32, #tpu.memory_space<vmem>>, vector<8x1664xf32>
    tpu.vector_store %arg8[%c16_318, %c0_319], %354 {strides = array<i32>} : memref<72x1664xf32, #tpu.memory_space<vmem>>, vector<8x1664xf32>,
    %c0_320 = arith.constant 0 : index
    %c131_321 = arith.constant 131 : index
    %356 = vector.load %arg7[%c0_320, %c131_321] : memref<8x1928xf32, #tpu.memory_space<vmem>>, vector<8x1664xf32>
    %c24_322 = arith.constant 24 : index
    %c0_323 = arith.constant 0 : index
    %357 = vector.load %arg8[%c24_322, %c0_323] : memref<72x1664xf32, #tpu.memory_space<vmem>>, vector<8x1664xf32>
    tpu.vector_store %arg8[%c24_322, %c0_323], %356 {strides = array<i32>} : memref<72x1664xf32, #tpu.memory_space<vmem>>, vector<8x1664xf32>,
    %c0_324 = arith.constant 0 : index
    %c132_325 = arith.constant 132 : index
    %358 = vector.load %arg7[%c0_324, %c132_325] : memref<8x1928xf32, #tpu.memory_space<vmem>>, vector<8x1664xf32>
    %c32_326 = arith.constant 32 : index
    %c0_327 = arith.constant 0 : index
    %359 = vector.load %arg8[%c32_326, %c0_327] : memref<72x1664xf32, #tpu.memory_space<vmem>>, vector<8x1664xf32>
    tpu.vector_store %arg8[%c32_326, %c0_327], %358 {strides = array<i32>} : memref<72x1664xf32, #tpu.memory_space<vmem>>, vector<8x1664xf32>,
    %c0_328 = arith.constant 0 : index
    %c133_329 = arith.constant 133 : index
    %360 = vector.load %arg7[%c0_328, %c133_329] : memref<8x1928xf32, #tpu.memory_space<vmem>>, vector<8x1664xf32>
    %c40_330 = arith.constant 40 : index
    %c0_331 = arith.constant 0 : index
    %361 = vector.load %arg8[%c40_330, %c0_331] : memref<72x1664xf32, #tpu.memory_space<vmem>>, vector<8x1664xf32>
    tpu.vector_store %arg8[%c40_330, %c0_331], %360 {strides = array<i32>} : memref<72x1664xf32, #tpu.memory_space<vmem>>, vector<8x1664xf32>,
    %c0_332 = arith.constant 0 : index
    %c163_333 = arith.constant 163 : index
    %362 = vector.load %arg7[%c0_332, %c163_333] : memref<8x1928xf32, #tpu.memory_space<vmem>>, vector<8x1664xf32>
    %c48_334 = arith.constant 48 : index
    %c0_335 = arith.constant 0 : index
    %363 = vector.load %arg8[%c48_334, %c0_335] : memref<72x1664xf32, #tpu.memory_space<vmem>>, vector<8x1664xf32>
    tpu.vector_store %arg8[%c48_334, %c0_335], %362 {strides = array<i32>} : memref<72x1664xf32, #tpu.memory_space<vmem>>, vector<8x1664xf32>,
    %c0_336 = arith.constant 0 : index
    %c164_337 = arith.constant 164 : index
    %364 = vector.load %arg7[%c0_336, %c164_337] : memref<8x1928xf32, #tpu.memory_space<vmem>>, vector<8x1664xf32>
    %c56_338 = arith.constant 56 : index
    %c0_339 = arith.constant 0 : index
    %365 = vector.load %arg8[%c56_338, %c0_339] : memref<72x1664xf32, #tpu.memory_space<vmem>>, vector<8x1664xf32>
    tpu.vector_store %arg8[%c56_338, %c0_339], %364 {strides = array<i32>} : memref<72x1664xf32, #tpu.memory_space<vmem>>, vector<8x1664xf32>,
    %c0_340 = arith.constant 0 : index
    %c165_341 = arith.constant 165 : index
    %366 = vector.load %arg7[%c0_340, %c165_341] : memref<8x1928xf32, #tpu.memory_space<vmem>>, vector<8x1664xf32>
    %c64_342 = arith.constant 64 : index
    %c0_343 = arith.constant 0 : index
    %367 = vector.load %arg8[%c64_342, %c0_343] : memref<72x1664xf32, #tpu.memory_space<vmem>>, vector<8x1664xf32>
    tpu.vector_store %arg8[%c64_342, %c0_343], %366 {strides = array<i32>} : memref<72x1664xf32, #tpu.memory_space<vmem>>, vector<8x1664xf32>,
    %c5_344 = arith.constant 5 : index
    %c0_345 = arith.constant 0 : index
    %c0_346 = arith.constant 0 : index
    %368 = vector.load %arg2[%c5_344, %c0_345, %c0_346] : memref<6x8x72xf32, #tpu.memory_space<vmem>>, vector<1x8x72xf32>
    %369 = vector.shape_cast %368 : vector<1x8x72xf32> to vector<8x72xf32>
    %c0_347 = arith.constant 0 : index
    %c0_348 = arith.constant 0 : index
    %370 = vector.load %arg8[%c0_347, %c0_348] : memref<72x1664xf32, #tpu.memory_space<vmem>>, vector<72x1664xf32>
    %cst_349 = arith.constant dense<0.000000e+00> : vector<8x1664xf32>
    %371 = tpu.matmul %369, %370, %cst_349 {dimension_numbers = #tpu.dot_dimension_numbers<[1], [0], [0], [1], [0, 0, 1, 1], [], []>} : vector<8x72xf32>, vector<72x1664xf32>, vector<8x1664xf32> -> vector<8x1664xf32>
    %c4_350 = arith.constant 4 : index
    %c0_351 = arith.constant 0 : index
    %372 = vector.load %arg5[%c4_350, %c0_351] : memref<5x1664xf32, #tpu.memory_space<vmem>>, vector<1x1664xf32>
    %c0_352 = arith.constant 0 : index
    %c15 = arith.constant 15 : index
    %373 = vector.load %arg4[%c0_352, %c15] : memref<8x24xf32, #tpu.memory_space<vmem>>, vector<8x1xf32>
    %374 = vector.broadcast %373 : vector<8x1xf32> to vector<8x1664xf32>
    %375 = arith.addf %371, %374 : vector<8x1664xf32>
    %cst_353 = arith.constant 0.000000e+00 : f32
    %376 = vector.broadcast %cst_353 : f32 to vector<8x1664xf32>
    %377 = arith.maximumf %375, %376 : vector<8x1664xf32>
    %378 = vector.broadcast %372 : vector<1x1664xf32> to vector<8x1664xf32>
    %379 = arith.mulf %377, %378 : vector<8x1664xf32>
    %cst_354 = arith.constant dense<0.000000e+00> : vector<8xf32>
    %380 = vector.multi_reduction <add>, %379, %cst_354 [1] : vector<8x1664xf32> to vector<8xf32>
    %381 = vector.shape_cast %380 : vector<8xf32> to vector<8x1xf32>
    %382 = arith.mulf %379, %379 : vector<8x1664xf32>
    %cst_355 = arith.constant dense<0.000000e+00> : vector<8xf32>
    %383 = vector.multi_reduction <add>, %382, %cst_355 [1] : vector<8x1664xf32> to vector<8xf32>
    %384 = vector.shape_cast %383 : vector<8xf32> to vector<8x1xf32>
    %cst_356 = arith.constant 0.00173010386 : f32
    %385 = vector.broadcast %cst_356 : f32 to vector<8x1xf32>
    %386 = arith.mulf %381, %385 : vector<8x1xf32>
    %cst_357 = arith.constant 0.00173010386 : f32
    %387 = vector.broadcast %cst_357 : f32 to vector<8x1xf32>
    %388 = arith.mulf %384, %387 : vector<8x1xf32>
    %389 = arith.mulf %386, %386 : vector<8x1xf32>
    %390 = arith.subf %388, %389 : vector<8x1xf32>
    %391 = vector.broadcast %386 : vector<8x1xf32> to vector<8x1664xf32>
    %392 = arith.subf %377, %391 : vector<8x1664xf32>
    %cst_358 = arith.constant 9.99999974E-6 : f32
    %393 = vector.broadcast %cst_358 : f32 to vector<8x1xf32>
    %394 = arith.addf %390, %393 : vector<8x1xf32>
    %395 = math.rsqrt %394 : vector<8x1xf32>
    %396 = vector.broadcast %395 : vector<8x1xf32> to vector<8x1664xf32>
    %397 = arith.mulf %392, %396 : vector<8x1664xf32>
    %c0_359 = arith.constant 0 : index
    %c16_360 = arith.constant 16 : index
    %398 = vector.load %arg4[%c0_359, %c16_360] : memref<8x24xf32, #tpu.memory_space<vmem>>, vector<8x1xf32>
    %399 = vector.broadcast %398 : vector<8x1xf32> to vector<8x1664xf32>
    %400 = arith.mulf %397, %399 : vector<8x1664xf32>
    %c0_361 = arith.constant 0 : index
    %c17 = arith.constant 17 : index
    %401 = vector.load %arg4[%c0_361, %c17] : memref<8x24xf32, #tpu.memory_space<vmem>>, vector<8x1xf32>
    %402 = vector.broadcast %401 : vector<8x1xf32> to vector<8x1664xf32>
    %403 = arith.addf %400, %402 : vector<8x1664xf32>
    %c0_362 = arith.constant 0 : index
    %c0_363 = arith.constant 0 : index
    %c0_364 = arith.constant 0 : index
    %404 = vector.load %arg3[%c0_362, %c0_363, %c0_364] : memref<2x8x8xf32, #tpu.memory_space<vmem>>, vector<1x8x8xf32>
    %405 = vector.shape_cast %404 : vector<1x8x8xf32> to vector<8x8xf32>
    %cst_365 = arith.constant dense<0.000000e+00> : vector<8x1664xf32>
    %406 = tpu.matmul %405, %403, %cst_365 {dimension_numbers = #tpu.dot_dimension_numbers<[1], [0], [0], [1], [0, 0, 1, 1], [], []>} : vector<8x8xf32>, vector<8x1664xf32>, vector<8x1664xf32> -> vector<8x1664xf32>
    %c4_366 = arith.constant 4 : index
    %c0_367 = arith.constant 0 : index
    %407 = vector.load %arg5[%c4_366, %c0_367] : memref<5x1664xf32, #tpu.memory_space<vmem>>, vector<1x1664xf32>
    %c0_368 = arith.constant 0 : index
    %c18 = arith.constant 18 : index
    %408 = vector.load %arg4[%c0_368, %c18] : memref<8x24xf32, #tpu.memory_space<vmem>>, vector<8x1xf32>
    %409 = vector.broadcast %408 : vector<8x1xf32> to vector<8x1664xf32>
    %410 = arith.addf %406, %409 : vector<8x1664xf32>
    %cst_369 = arith.constant 0.000000e+00 : f32
    %411 = vector.broadcast %cst_369 : f32 to vector<8x1664xf32>
    %412 = arith.maximumf %410, %411 : vector<8x1664xf32>
    %413 = vector.broadcast %407 : vector<1x1664xf32> to vector<8x1664xf32>
    %414 = arith.mulf %412, %413 : vector<8x1664xf32>
    %cst_370 = arith.constant dense<0.000000e+00> : vector<8xf32>
    %415 = vector.multi_reduction <add>, %414, %cst_370 [1] : vector<8x1664xf32> to vector<8xf32>
    %416 = vector.shape_cast %415 : vector<8xf32> to vector<8x1xf32>
    %417 = arith.mulf %414, %414 : vector<8x1664xf32>
    %cst_371 = arith.constant dense<0.000000e+00> : vector<8xf32>
    %418 = vector.multi_reduction <add>, %417, %cst_371 [1] : vector<8x1664xf32> to vector<8xf32>
    %419 = vector.shape_cast %418 : vector<8xf32> to vector<8x1xf32>
    %cst_372 = arith.constant 0.00173010386 : f32
    %420 = vector.broadcast %cst_372 : f32 to vector<8x1xf32>
    %421 = arith.mulf %416, %420 : vector<8x1xf32>
    %cst_373 = arith.constant 0.00173010386 : f32
    %422 = vector.broadcast %cst_373 : f32 to vector<8x1xf32>
    %423 = arith.mulf %419, %422 : vector<8x1xf32>
    %424 = arith.mulf %421, %421 : vector<8x1xf32>
    %425 = arith.subf %423, %424 : vector<8x1xf32>
    %426 = vector.broadcast %421 : vector<8x1xf32> to vector<8x1664xf32>
    %427 = arith.subf %412, %426 : vector<8x1664xf32>
    %cst_374 = arith.constant 9.99999974E-6 : f32
    %428 = vector.broadcast %cst_374 : f32 to vector<8x1xf32>
    %429 = arith.addf %425, %428 : vector<8x1xf32>
    %430 = math.rsqrt %429 : vector<8x1xf32>
    %431 = vector.broadcast %430 : vector<8x1xf32> to vector<8x1664xf32>
    %432 = arith.mulf %427, %431 : vector<8x1664xf32>
    %c0_375 = arith.constant 0 : index
    %c19 = arith.constant 19 : index
    %433 = vector.load %arg4[%c0_375, %c19] : memref<8x24xf32, #tpu.memory_space<vmem>>, vector<8x1xf32>
    %434 = vector.broadcast %433 : vector<8x1xf32> to vector<8x1664xf32>
    %435 = arith.mulf %432, %434 : vector<8x1664xf32>
    %c0_376 = arith.constant 0 : index
    %c20 = arith.constant 20 : index
    %436 = vector.load %arg4[%c0_376, %c20] : memref<8x24xf32, #tpu.memory_space<vmem>>, vector<8x1xf32>
    %437 = vector.broadcast %436 : vector<8x1xf32> to vector<8x1664xf32>
    %438 = arith.addf %435, %437 : vector<8x1664xf32>
    %c1_377 = arith.constant 1 : index
    %c0_378 = arith.constant 0 : index
    %c0_379 = arith.constant 0 : index
    %439 = vector.load %arg3[%c1_377, %c0_378, %c0_379] : memref<2x8x8xf32, #tpu.memory_space<vmem>>, vector<1x8x8xf32>
    %440 = vector.shape_cast %439 : vector<1x8x8xf32> to vector<8x8xf32>
    %cst_380 = arith.constant dense<0.000000e+00> : vector<8x1664xf32>
    %441 = tpu.matmul %440, %438, %cst_380 {dimension_numbers = #tpu.dot_dimension_numbers<[1], [0], [0], [1], [0, 0, 1, 1], [], []>} : vector<8x8xf32>, vector<8x1664xf32>, vector<8x1664xf32> -> vector<8x1664xf32>
    %c0_381 = arith.constant 0 : index
    %c21 = arith.constant 21 : index
    %442 = vector.load %arg4[%c0_381, %c21] : memref<8x24xf32, #tpu.memory_space<vmem>>, vector<8x1xf32>
    %443 = vector.broadcast %442 : vector<8x1xf32> to vector<8x1664xf32>
    %444 = arith.addf %441, %443 : vector<8x1664xf32>
    %c0_382 = arith.constant 0 : index
    %c0_383 = arith.constant 0 : index
    %445 = vector.load %arg6[%c0_382, %c0_383] : memref<8x1664xf32, #tpu.memory_space<vmem>>, vector<8x1664xf32>
    tpu.vector_store %arg6[%c0_382, %c0_383], %444 {strides = array<i32>} : memref<8x1664xf32, #tpu.memory_space<vmem>>, vector<8x1664xf32>,
    return
  }
  func.func @transform_0(%arg0: i32) -> (i32, i32) {
    %c0_i32 = arith.constant 0 : i32
    %c0_i32_0 = arith.constant 0 : i32
    %c0_i32_1 = arith.constant 0 : i32
    return %c0_i32, %c0_i32_0 : i32, i32
  }
  func.func @transform_1(%arg0: i32) -> (i32, i32, i32) {
    %c0_i32 = arith.constant 0 : i32
    %c0_i32_0 = arith.constant 0 : i32
    %c0_i32_1 = arith.constant 0 : i32
    %c0_i32_2 = arith.constant 0 : i32
    return %c0_i32, %c0_i32_0, %c0_i32_1 : i32, i32, i32
  }
  func.func @transform_2(%arg0: i32) -> (i32, i32, i32) {
    %c0_i32 = arith.constant 0 : i32
    %c0_i32_0 = arith.constant 0 : i32
    %c0_i32_1 = arith.constant 0 : i32
    %c0_i32_2 = arith.constant 0 : i32
    return %c0_i32, %c0_i32_0, %c0_i32_1 : i32, i32, i32
  }
  func.func @transform_3(%arg0: i32) -> (i32, i32) {
    %c0_i32 = arith.constant 0 : i32
    %c0_i32_0 = arith.constant 0 : i32
    %c0_i32_1 = arith.constant 0 : i32
    return %c0_i32, %c0_i32_0 : i32, i32
  }
  func.func @transform_4(%arg0: i32) -> (i32, i32) {
    %c0_i32 = arith.constant 0 : i32
    %c0_i32_0 = arith.constant 0 : i32
    %c0_i32_1 = arith.constant 0 : i32
    return %c0_i32, %c0_i32_0 : i32, i32
  }
  func.func @transform_5(%arg0: i32) -> (i32, i32) {
    %c0_i32 = arith.constant 0 : i32
    %c0_i32_0 = arith.constant 0 : i32
    %c0_i32_1 = arith.constant 0 : i32
    return %c0_i32, %c0_i32_0 : i32, i32
  }
}

</mosaic_0001>

<bundles_post_ra>
// kernel: fcn_forward.1
= control target key start
LH: loop header
LB: loop body
LE: loop exit
PB: predicated region body
PF: predicated region fallthrough
CT: control target
= control target key end

     0   :  { %vm21_vm0 = vcmask 31744   ;;  %vm23_vm1 = vcmask 1047584   ;;  %v13410_v2 = vmov 0.0   ;;  %s13411_s22 = smov 4   ;;  %s13412_s20 = smov 27   ;;  %vm943_vm2 = vcmask 744448   ;;  %s19339_s0 = inlined_call_operand.vmem [shape: f32[8,1664], index: 0, kind: input, shape index: {}]   ;;  %s19340_s1 = inlined_call_operand.vmem [shape: f32[6,8,72], index: 1, kind: input, shape index: {}]   ;;  %s19341_s3 = inlined_call_operand.vmem [shape: f32[8,24], index: 3, kind: input, shape index: {}]   ;;  %s19342_s4 = inlined_call_operand.vmem [shape: f32[5,1664], index: 4, kind: input, shape index: {}]   ;;  %s19343_s2 = inlined_call_operand.vmem [shape: f32[2,8,8], index: 2, kind: input, shape index: {}]   ;;  %s19344_s5 = inlined_call_operand.vmem [shape: f32[8,1664], index: 5, kind: output, shape index: {}]  }
   0x1   :  { %v27_v0 = vld [vmem:[%s19339_s0] sm:$0xff]  ;;  %v29_v1 = vld [vmem:[%s19339_s0 + $0x10] sm:$0xff]  ;;  %22 = vst.msk [vmem:[#allocation2 + $0x8] sm:$0xff] %vm21_vm0, %v13410_v2  ;;  %20 = vst [vmem:[#allocation2] sm:$0xff] %v13410_v2  ;;  %1182 = vmatprep.mubr.f32.mxu0 %v13410_v2  ;;  %1253 = vmatprep.mubr.f32.mxu1 %v13410_v2  ;;  %s13413_s21 = smov 29   ;;  %s13414_s23 = smov 28  }
   0x2   :  { %24 = vst.msk [vmem:[#allocation2 + $0x70] sm:$0xff] %vm23_vm1, %v13410_v2  ;;  %53 = vrot.lane.b32.xlu0 %v27_v0, %s13411_s22  ;;  %57 = vrot.lane.b32.xlu1 %v29_v1, %s13411_s22  ;;  %v28_v3 = vld [vmem:[%s19339_s0 + $0x8] sm:$0xff]  ;;  %v30_v4 = vld [vmem:[%s19339_s0 + $0x18] sm:$0xff]  ;;  %s13416_s24 = smov 92   ;;  %s13417_s25 = smov 93   ;;  %vm847_vm3 = vcmask 752640  }
   0x3   :  { %v31_v5 = vld [vmem:[%s19339_s0 + $0x20] sm:$0xff]  ;;  %v32_v6 = vld [vmem:[%s19339_s0 + $0x28] sm:$0xff]  ;;  %v33_v7 = vld [vmem:[%s19339_s0 + $0x30] sm:$0xff]  ;;  %s13418_s26 = smov 123   ;;  %s13419_s27 = smov 124   ;;  %vm751_vm4 = vcmask 760832  }
   0x4   :  { %v34_v8 = vld [vmem:[%s19339_s0 + $0x38] sm:$0xff]  ;;  %v35_v9 = vld [vmem:[%s19339_s0 + $0x40] sm:$0xff]  ;;  %v36_v10 = vld [vmem:[%s19339_s0 + $0x48] sm:$0xff]  ;;  %s13420_s28 = smov 125   ;;  %vm655_vm5 = vcmask 1006592   ;;  %vm559_vm6 = vcmask 1014784  }
   0x5   :  { %v37_v11 = vld [vmem:[%s19339_s0 + $0x50] sm:$0xff]  ;;  %v38_v12 = vld [vmem:[%s19339_s0 + $0x58] sm:$0xff]  ;;  %v39_v13 = vld [vmem:[%s19339_s0 + $0x60] sm:$0xff]  ;;  %s13415_s0 = smov 91   ;;  %vm463_vm7 = vcmask 1022976   ;;  %vm19363_vm8 = vcmask 220160  }
   0x6   :  { %55 = vrot.lane.b32.xlu0 %v28_v3, %s13411_s22  ;;  %59 = vrot.lane.b32.xlu1 %v30_v4, %s13411_s22  ;;  %vm19349_vm9 = vcmask 228352   ;;  %vm19348_vm10 = vcmask 236544   ;;  %vm1114_vm11 = vcmask 588800   ;;  %vm13422_vm12 = vmmov 0   ;;  %s13425_s16 = smov 60   ;;  %s13426_s17 = smov 58  }
   0x7   :  { %s13427_s18 = smov 62   ;;  %s13428_s19 = smov 127   ;;  %vm2121_vm13 = vcmask 1039360   ;;  %vm2664_vm14 = vcmask 474112   ;;  %vm2568_vm15 = vcmask 490496  }
   0x8   :  { %s13429_s12 = smov 122   ;;  %s13430_s13 = smov 126  }
   0x9   :  { %s13434_s15 = smov 120  }
   0xa   :  { %61 = vrot.lane.b32.xlu0 %v31_v5, %s13411_s22  ;;  %63 = vrot.lane.b32.xlu1 %v32_v6, %s13411_s22 }
   0xe   :  { %65 = vrot.lane.b32.xlu0 %v33_v7, %s13411_s22  ;;  %67 = vrot.lane.b32.xlu1 %v34_v8, %s13411_s22 }
  0x12   :  { %69 = vrot.lane.b32.xlu0 %v35_v9, %s13411_s22  ;;  %71 = vrot.lane.b32.xlu1 %v36_v10, %s13411_s22 }
  0x16   :  { %73 = vrot.lane.b32.xlu0 %v37_v11, %s13411_s22  ;;  %75 = vrot.lane.b32.xlu1 %v38_v12, %s13411_s22 }
  0x1a   :  { %77 = vrot.lane.b32.xlu0 %v39_v13, %s13411_s22  ;;  %339 = vrot.lane.b32.xlu1 %v13410_v2, %s13412_s20 }
  0x1e   :  { %147 = vrot.lane.b32.xlu1 %v13410_v2, %s13413_s21  ;;  %243 = vrot.lane.b32.xlu0 %v13410_v2, %s13414_s23 }
  0x74   :  { %v54_v14 = vpop.permute.xlu0 %53  ;;  %v58_v21 = vpop.permute.xlu1 %57 }
  0x75   :  { %105 = vst.msk [vmem:[#allocation2 + $0x8] sm:$0xff] %vm23_vm1, %v54_v14 }
  0x78   :  { %v56_v15 = vpop.permute.xlu0 %55  ;;  %v60_v25 = vpop.permute.xlu1 %59 }
  0x79   :  { %v80_v22 = vsel %vm21_vm0, %v56_v15, %v58_v21  ;;  %v79_v24 = vsel %vm21_vm0, %v54_v14, %v56_v15  ;;  %v81_v26 = vsel %vm21_vm0, %v58_v21, %v60_v25 }
  0x7c   :  { %v887_v16 = vld [vmem:[#allocation2 + $0x8] sm:$0xff]  ;;  %v62_v17 = vpop.permute.xlu0 %61  ;;  %v64_v28 = vpop.permute.xlu1 %63 }
  0x7d   :  { %915 = vrot.lane.b32.xlu1 %v887_v16, %s13415_s0  ;;  %819 = vrot.lane.b32.xlu0 %v887_v16, %s13416_s24  ;;  %v82_v27 = vsel %vm21_vm0, %v60_v25, %v62_v17  ;;  %v83_v30 = vsel %vm21_vm0, %v62_v17, %v64_v28 }
  0x80   :  { %v13549_v18 = vpop.permute.xlu0 %65  ;;  %v68_v31 = vpop.permute.xlu1 %67 }
  0x81   :  { %723 = vrot.lane.b32.xlu1 %v887_v16, %s13417_s25  ;;  %627 = vrot.lane.b32.xlu0 %v887_v16, %s13418_s26  ;;  %v13593_v29 = vsel %vm21_vm0, %v64_v28, %v13549_v18  ;;  %v13640_v39 = vsel %vm21_vm0, %v13549_v18, %v68_v31 }
  0x84   :  { %v13553_v19 = vpop.permute.xlu0 %69  ;;  %v72_v32 = vpop.permute.xlu1 %71 }
  0x85   :  { %531 = vrot.lane.b32.xlu1 %v887_v16, %s13419_s27  ;;  %435 = vrot.lane.b32.xlu0 %v887_v16, %s13420_s28  ;;  %v13644_v40 = vsel %vm21_vm0, %v68_v31, %v13553_v19  ;;  %v13672_v49 = vsel %vm21_vm0, %v13553_v19, %v72_v32 }
  0x88   :  { %v13557_v20 = vpop.permute.xlu0 %73  ;;  %v13621_v33 = vpop.permute.xlu1 %75 }
  0x89   :  { %341 = vrot.lane.b32.xlu1 %v887_v16, %s13412_s20  ;;  %245 = vrot.lane.b32.xlu0 %v887_v16, %s13414_s23  ;;  %v13676_v50 = vsel %vm21_vm0, %v72_v32, %v13557_v20 }
  0x8c   :  { %v13562_v23 = vpop.permute.xlu0 %77  ;;  %v13626_v34 = vpop.permute.xlu1 %339 }
  0x8d   :  { %149 = vrot.lane.b32.xlu1 %v887_v16, %s13413_s21  ;;  %919 = vrot.lane.b32.xlu0 %v80_v22, %s13415_s0  ;;  %118 = vst.msk [vmem:[#allocation2 + $0x70] sm:$0xff] %vm21_vm0, %v13562_v23 }
  0x90   :  { %v13632_v35 = vpop.permute.xlu1 %147  ;;  %v13634_v36 = vpop.permute.xlu0 %243 }
  0x91   :  { %917 = vrot.lane.b32.xlu1 %v79_v24, %s13415_s0  ;;  %821 = vrot.lane.b32.xlu0 %v79_v24, %s13416_s24 }
  0x95   :  { %823 = vrot.lane.b32.xlu1 %v80_v22, %s13416_s24  ;;  %727 = vrot.lane.b32.xlu0 %v80_v22, %s13417_s25 }
  0x99   :  { %725 = vrot.lane.b32.xlu1 %v79_v24, %s13417_s25  ;;  %629 = vrot.lane.b32.xlu0 %v79_v24, %s13418_s26 }
  0x9d   :  { %631 = vrot.lane.b32.xlu1 %v80_v22, %s13418_s26  ;;  %535 = vrot.lane.b32.xlu0 %v80_v22, %s13419_s27 }
  0xa1   :  { %533 = vrot.lane.b32.xlu1 %v79_v24, %s13419_s27  ;;  %437 = vrot.lane.b32.xlu0 %v79_v24, %s13420_s28 }
  0xa5   :  { %439 = vrot.lane.b32.xlu1 %v80_v22, %s13420_s28  ;;  %343 = vrot.lane.b32.xlu0 %v79_v24, %s13412_s20 }
  0xa9   :  { %921 = vrot.lane.b32.xlu0 %v81_v26, %s13415_s0  ;;  %247 = vrot.lane.b32.xlu1 %v79_v24, %s13414_s23 }
  0xad   :  { %151 = vrot.lane.b32.xlu0 %v79_v24, %s13413_s21  ;;  %923 = vrot.lane.b32.xlu1 %v82_v27, %s13415_s0  ;;  %v13766_v24 = vld [vmem:[%s19340_s1] sm:$0xff] }
  0xb1   :  { %825 = vrot.lane.b32.xlu1 %v81_v26, %s13416_s24  ;;  %827 = vrot.lane.b32.xlu0 %v82_v27, %s13416_s24 }
  0xb5   :  { %729 = vrot.lane.b32.xlu0 %v81_v26, %s13417_s25  ;;  %731 = vrot.lane.b32.xlu1 %v82_v27, %s13417_s25 }
  0xb9   :  { %925 = vrot.lane.b32.xlu0 %v83_v30, %s13415_s0  ;;  %927 = vrot.lane.b32.xlu1 %v13593_v29, %s13415_s0 }
  0xbd   :  { %633 = vrot.lane.b32.xlu0 %v81_v26, %s13418_s26  ;;  %635 = vrot.lane.b32.xlu1 %v82_v27, %s13418_s26 }
  0xc1   :  { %829 = vrot.lane.b32.xlu0 %v83_v30, %s13416_s24  ;;  %831 = vrot.lane.b32.xlu1 %v13593_v29, %s13416_s24 }
  0xc5   :  { %537 = vrot.lane.b32.xlu0 %v81_v26, %s13419_s27  ;;  %539 = vrot.lane.b32.xlu1 %v82_v27, %s13419_s27 }
  0xc9   :  { %733 = vrot.lane.b32.xlu0 %v83_v30, %s13417_s25  ;;  %735 = vrot.lane.b32.xlu1 %v13593_v29, %s13417_s25 }
  0xcd   :  { %441 = vrot.lane.b32.xlu0 %v81_v26, %s13420_s28  ;;  %443 = vrot.lane.b32.xlu1 %v82_v27, %s13420_s28 }
  0xd1   :  { %637 = vrot.lane.b32.xlu0 %v83_v30, %s13418_s26  ;;  %639 = vrot.lane.b32.xlu1 %v13593_v29, %s13418_s26 }
  0xd5   :  { %345 = vrot.lane.b32.xlu0 %v80_v22, %s13412_s20  ;;  %347 = vrot.lane.b32.xlu1 %v81_v26, %s13412_s20 }
  0xd9   :  { %541 = vrot.lane.b32.xlu0 %v83_v30, %s13419_s27  ;;  %543 = vrot.lane.b32.xlu1 %v13593_v29, %s13419_s27 }
  0xdd   :  { %249 = vrot.lane.b32.xlu0 %v80_v22, %s13414_s23  ;;  %251 = vrot.lane.b32.xlu1 %v81_v26, %s13414_s23 }
  0xe1   :  { %445 = vrot.lane.b32.xlu0 %v83_v30, %s13420_s28  ;;  %447 = vrot.lane.b32.xlu1 %v13593_v29, %s13420_s28 }
  0xe5   :  { %153 = vrot.lane.b32.xlu0 %v80_v22, %s13413_s21  ;;  %155 = vrot.lane.b32.xlu1 %v81_v26, %s13413_s21 }
  0xe9   :  { %349 = vrot.lane.b32.xlu0 %v82_v27, %s13412_s20  ;;  %351 = vrot.lane.b32.xlu1 %v83_v30, %s13412_s20 }
  0xed   :  { %253 = vrot.lane.b32.xlu0 %v82_v27, %s13414_s23  ;;  %255 = vrot.lane.b32.xlu1 %v83_v30, %s13414_s23 }
  0xef   :  { %v916_v37 = vpop.permute.xlu1 %915  ;;  %v820_v38 = vpop.permute.xlu0 %819 }
  0xf1   :  { %929 = vrot.lane.b32.xlu0 %v13640_v39, %s13415_s0  ;;  %931 = vrot.lane.b32.xlu1 %v13644_v40, %s13415_s0 }
  0xf3   :  { %v724_v41 = vpop.permute.xlu1 %723  ;;  %v628_v42 = vpop.permute.xlu0 %627 }
  0xf5   :  { %157 = vrot.lane.b32.xlu0 %v82_v27, %s13413_s21  ;;  %159 = vrot.lane.b32.xlu1 %v83_v30, %s13413_s21 }
  0xf7   :  { %v532_v43 = vpop.permute.xlu1 %531  ;;  %v13652_v44 = vpop.permute.xlu0 %435 }
  0xf9   :  { %833 = vrot.lane.b32.xlu0 %v13640_v39, %s13416_s24  ;;  %835 = vrot.lane.b32.xlu1 %v13644_v40, %s13416_s24 }
  0xfb   :  { %v13658_v45 = vpop.permute.xlu1 %341  ;;  %v13660_v46 = vpop.permute.xlu0 %245 }
  0xfc   :  { %v368_v15 = vsel %vm19363_vm8, %v13626_v34, %v13658_v45  ;;  %v272_v17 = vsel %vm19349_vm9, %v13634_v36, %v13660_v46 }
  0xfd   :  { %737 = vrot.lane.b32.xlu0 %v13640_v39, %s13417_s25  ;;  %739 = vrot.lane.b32.xlu1 %v13644_v40, %s13417_s25 }
  0xff   :  { %v13666_v47 = vpop.permute.xlu1 %149  ;;  %v13668_v48 = vpop.permute.xlu0 %919 }
 0x100   :  { %v176_v25 = vsel %vm19348_vm10, %v13632_v35, %v13666_v47 }
 0x101   :  { %933 = vrot.lane.b32.xlu0 %v13672_v49, %s13415_s0  ;;  %935 = vrot.lane.b32.xlu1 %v13676_v50, %s13415_s0 }
 0x103   :  { %v918_v51 = vpop.permute.xlu1 %917  ;;  %v822_v52 = vpop.permute.xlu0 %821 }
 0x104   :  { %v945_v53 = vsel %vm943_vm2, %v918_v51, %v13668_v48  ;;  %v944_v54 = vsel %vm943_vm2, %v916_v37, %v918_v51  ;;  %v848_v58 = vsel %vm847_vm3, %v820_v38, %v822_v52 }
 0x105   :  { %641 = vrot.lane.b32.xlu0 %v13640_v39, %s13418_s26  ;;  %643 = vrot.lane.b32.xlu1 %v13644_v40, %s13418_s26 }
 0x106   :  { %1132 = vmatprep.subr.mxu0 %v945_v53  ;;  %v13820_v53 = vsel %vm21_vm0, %v13557_v20, %v13621_v33 }
 0x107   :  { %1133 = vmatpush1.msra.mxu0 %v944_v54  ;;  %v13689_v55 = vpop.permute.xlu1 %823  ;;  %v13691_v56 = vpop.permute.xlu0 %727 }
 0x108   :  { %v849_v57 = vsel %vm847_vm3, %v822_v52, %v13689_v55 }
 0x109   :  { %837 = vrot.lane.b32.xlu0 %v13672_v49, %s13416_s24  ;;  %839 = vrot.lane.b32.xlu1 %v13676_v50, %s13416_s24 }
 0x10a   :  { %1134 = vmatprep.subr.mxu0 %v849_v57 }
 0x10b   :  { %1135 = vmatpush1.msra.mxu0 %v848_v58  ;;  %v726_v59 = vpop.permute.xlu1 %725  ;;  %v630_v60 = vpop.permute.xlu0 %629 }
 0x10c   :  { %v753_v61 = vsel %vm751_vm4, %v726_v59, %v13691_v56  ;;  %v752_v62 = vsel %vm751_vm4, %v724_v41, %v726_v59  ;;  %v656_v3 = vsel %vm655_vm5, %v628_v42, %v630_v60 }
 0x10d   :  { %545 = vrot.lane.b32.xlu0 %v13640_v39, %s13419_s27  ;;  %547 = vrot.lane.b32.xlu1 %v13644_v40, %s13419_s27 }
 0x10e   :  { %1136 = vmatprep.subr.mxu0 %v753_v61 }
 0x10f   :  { %1137 = vmatpush1.msra.mxu0 %v752_v62  ;;  %v13707_v63 = vpop.permute.xlu1 %631  ;;  %v13709_v0 = vpop.permute.xlu0 %535 }
 0x110   :  { %v657_v1 = vsel %vm655_vm5, %v630_v60, %v13707_v63 }
 0x111   :  { %741 = vrot.lane.b32.xlu0 %v13672_v49, %s13417_s25  ;;  %743 = vrot.lane.b32.xlu1 %v13676_v50, %s13417_s25 }
 0x112   :  { %1138 = vmatprep.subr.mxu0 %v657_v1 }
 0x113   :  { %1139 = vmatpush1.msra.mxu0 %v656_v3  ;;  %v534_v4 = vpop.permute.xlu1 %533  ;;  %v438_v5 = vpop.permute.xlu0 %437  ;;  %v900_v3 = vld [vmem:[#allocation2 + $0x70] sm:$0xff] }
 0x114   :  { %v561_v6 = vsel %vm559_vm6, %v534_v4, %v13709_v0  ;;  %v560_v7 = vsel %vm559_vm6, %v532_v43, %v534_v4  ;;  %v464_v11 = vsel %vm463_vm7, %v13652_v44, %v438_v5 }
 0x115   :  { %449 = vrot.lane.b32.xlu0 %v13640_v39, %s13420_s28  ;;  %451 = vrot.lane.b32.xlu1 %v13644_v40, %s13420_s28 }
 0x116   :  { %1140 = vmatprep.subr.mxu0 %v561_v6 }
 0x117   :  { %1141 = vmatpush1.msra.mxu0 %v560_v7  ;;  %v13725_v8 = vpop.permute.xlu1 %439  ;;  %v13727_v9 = vpop.permute.xlu0 %343 }
 0x118   :  { %v465_v10 = vsel %vm463_vm7, %v438_v5, %v13725_v8  ;;  %v369_v13 = vsel %vm19363_vm8, %v13658_v45, %v13727_v9 }
 0x119   :  { %645 = vrot.lane.b32.xlu0 %v13672_v49, %s13418_s26  ;;  %647 = vrot.lane.b32.xlu1 %v13676_v50, %s13418_s26 }
 0x11a   :  { %1142 = vmatprep.subr.mxu0 %v465_v10 }
 0x11b   :  { %1143 = vmatpush1.msra.mxu0 %v464_v11  ;;  %v13737_v12 = vpop.permute.xlu1 %247  ;;  %v922_v14 = vpop.permute.xlu0 %921 }
 0x11c   :  { %1144 = vmatprep.subr.mxu0 %v369_v13  ;;  %v273_v16 = vsel %vm19349_vm9, %v13660_v46, %v13737_v12  ;;  %v946_v26 = vsel %vm943_vm2, %v13668_v48, %v922_v14 }
 0x11d   :  { %1145 = vmatpush1.msra.mxu0 %v368_v15  ;;  %353 = vrot.lane.b32.xlu0 %v13593_v29, %s13412_s20 }
 0x11e   :  { %355 = vrot.lane.b32.xlu1 %v13640_v39, %s13412_s20  ;;  %1146 = vmatprep.subr.mxu0 %v273_v16 }
 0x11f   :  { %1147 = vmatpush1.msra.mxu0 %v272_v17  ;;  %v924_v18 = vpop.permute.xlu1 %923  ;;  %v13755_v19 = vpop.permute.xlu0 %151 }
 0x120   :  { %v177_v21 = vsel %vm19348_vm10, %v13666_v47, %v13755_v19  ;;  %v947_v22 = vsel %vm943_vm2, %v922_v14, %v924_v18 }
 0x121   :  { %549 = vrot.lane.b32.xlu0 %v13672_v49, %s13419_s27  ;;  %1148 = vmatprep.subr.mxu0 %v177_v21 }
 0x122   :  { %551 = vrot.lane.b32.xlu1 %v13676_v50, %s13419_s27  ;;  %1203 = vmatprep.subr.mxu1 %v947_v22 }
 0x123   :  { %1149 = vmatpush1.msra.mxu0 %v176_v25  ;;  %1204 = vmatpush1.msra.mxu1 %v946_v26  ;;  %v826_v27 = vpop.permute.xlu1 %825  ;;  %v828_v28 = vpop.permute.xlu0 %827 }
 0x124   :  { %v851_v30 = vsel %vm847_vm3, %v826_v27, %v828_v28  ;;  %v850_v31 = vsel %vm847_vm3, %v13689_v55, %v826_v27  ;;  %13023 = vmatmul.mubr.msk.f32.vlgmr.msra.gmra.mxu0 %vm1114_vm11, %v13766_v24 }
 0x125   :  { %257 = vrot.lane.b32.xlu0 %v13593_v29, %s13414_s23  ;;  %1205 = vmatprep.subr.mxu1 %v851_v30 }
 0x126   :  { %259 = vrot.lane.b32.xlu1 %v13640_v39, %s13414_s23  ;;  %1206 = vmatpush1.msra.mxu1 %v850_v31 }
 0x127   :  { %v732_v32 = vpop.permute.xlu1 %731  ;;  %v730_v34 = vpop.permute.xlu0 %729  ;;  %1324 = vmatprep.mubr.f32.mxu0 %v13410_v2 }
 0x128   :  { %v755_v35 = vsel %vm751_vm4, %v730_v34, %v732_v32  ;;  %v754_v36 = vsel %vm751_vm4, %v13691_v56, %v730_v34  ;;  %v13828_v56 = vsel %vm21_vm0, %v13621_v33, %v13562_v23 }
 0x129   :  { %453 = vrot.lane.b32.xlu0 %v13672_v49, %s13420_s28  ;;  %1207 = vmatprep.subr.mxu1 %v755_v35 }
 0x12a   :  { %455 = vrot.lane.b32.xlu1 %v13676_v50, %s13420_s28  ;;  %1208 = vmatpush1.msra.mxu1 %v754_v36 }
 0x12b   :  { %v13792_v37 = vpop.permute.xlu1 %927  ;;  %v926_v38 = vpop.permute.xlu0 %925 }
 0x12c   :  { %v949_v41 = vsel %vm943_vm2, %v926_v38, %v13792_v37  ;;  %v948_v42 = vsel %vm943_vm2, %v924_v18, %v926_v38 }
 0x12d   :  { %161 = vrot.lane.b32.xlu0 %v13593_v29, %s13413_s21  ;;  %1274 = vmatprep.subr.mxu0 %v949_v41 }
 0x12e   :  { %163 = vrot.lane.b32.xlu1 %v13640_v39, %s13413_s21  ;;  %1275 = vmatpush1.msra.mxu0 %v948_v42 }
 0x12f   :  { %v636_v43 = vpop.permute.xlu1 %635  ;;  %v634_v44 = vpop.permute.xlu0 %633 }
 0x130   :  { %v659_v45 = vsel %vm655_vm5, %v634_v44, %v636_v43  ;;  %v658_v46 = vsel %vm655_vm5, %v13707_v63, %v634_v44  ;;  %v13421_v44 = vmov 0  }
 0x131   :  { %357 = vrot.lane.b32.xlu0 %v13644_v40, %s13412_s20  ;;  %1209 = vmatprep.subr.mxu1 %v659_v45 }
 0x132   :  { %359 = vrot.lane.b32.xlu1 %v13672_v49, %s13412_s20  ;;  %1210 = vmatpush1.msra.mxu1 %v658_v46 }
 0x133   :  { %v13808_v29 = vpop.permute.xlu1 %831  ;;  %v830_v47 = vpop.permute.xlu0 %829  ;;  %13364 = vset.pattern.permute.xlu1 %v13421_v44 }
 0x134   :  { %v853_v39 = vsel %vm847_vm3, %v830_v47, %v13808_v29  ;;  %v852_v48 = vsel %vm847_vm3, %v828_v28, %v830_v47 }
 0x135   :  { %261 = vrot.lane.b32.xlu0 %v13644_v40, %s13414_s23  ;;  %1276 = vmatprep.subr.mxu0 %v853_v39 }
 0x136   :  { %263 = vrot.lane.b32.xlu1 %v13672_v49, %s13414_s23  ;;  %1277 = vmatpush1.msra.mxu0 %v852_v48 }
 0x137   :  { %v540_v51 = vpop.permute.xlu1 %539  ;;  %v538_v52 = vpop.permute.xlu0 %537 }
 0x138   :  { %v563_v54 = vsel %vm559_vm6, %v538_v52, %v540_v51  ;;  %v562_v55 = vsel %vm559_vm6, %v13709_v0, %v538_v52  ;;  %v13942_v52 = vld [vmem:[%s19341_s3] sm:$0xff] }
 0x139   :  { %937 = vrot.lane.b32.xlu0 %v13820_v53, %s13415_s0  ;;  %1211 = vmatprep.subr.mxu1 %v563_v54 }
 0x13a   :  { %939 = vrot.lane.b32.xlu1 %v13828_v56, %s13415_s0  ;;  %1212 = vmatpush1.msra.mxu1 %v562_v55 }
 0x13b   :  { %v13834_v20 = vpop.permute.xlu1 %735  ;;  %v734_v57 = vpop.permute.xlu0 %733 }
 0x13c   :  { %v757_v58 = vsel %vm751_vm4, %v734_v57, %v13834_v20  ;;  %v756_v59 = vsel %vm751_vm4, %v732_v32, %v734_v57 }
 0x13d   :  { %165 = vrot.lane.b32.xlu0 %v13644_v40, %s13413_s21  ;;  %1278 = vmatprep.subr.mxu0 %v757_v58 }
 0x13e   :  { %167 = vrot.lane.b32.xlu1 %v13672_v49, %s13413_s21  ;;  %1279 = vmatpush1.msra.mxu0 %v756_v59 }
 0x13f   :  { %v444_v23 = vpop.permute.xlu1 %443  ;;  %v442_v33 = vpop.permute.xlu0 %441 }
 0x140   :  { %v467_v60 = vsel %vm463_vm7, %v442_v33, %v444_v23  ;;  %v466_v61 = vsel %vm463_vm7, %v13725_v8, %v442_v33 }
 0x141   :  { %841 = vrot.lane.b32.xlu0 %v13820_v53, %s13416_s24  ;;  %1213 = vmatprep.subr.mxu1 %v467_v60 }
 0x142   :  { %843 = vrot.lane.b32.xlu1 %v13828_v56, %s13416_s24  ;;  %1214 = vmatpush1.msra.mxu1 %v466_v61 }
 0x143   :  { %v13850_v40 = vpop.permute.xlu1 %639  ;;  %v638_v62 = vpop.permute.xlu0 %637 }
 0x144   :  { %v661_v49 = vsel %vm655_vm5, %v638_v62, %v13850_v40  ;;  %v660_v63 = vsel %vm655_vm5, %v636_v43, %v638_v62 }
 0x145   :  { %745 = vrot.lane.b32.xlu0 %v13820_v53, %s13417_s25  ;;  %1280 = vmatprep.subr.mxu0 %v661_v49 }
 0x146   :  { %747 = vrot.lane.b32.xlu1 %v13828_v56, %s13417_s25  ;;  %1281 = vmatpush1.msra.mxu0 %v660_v63 }
 0x147   :  { %v348_v0 = vpop.permute.xlu1 %347  ;;  %v346_v1 = vpop.permute.xlu0 %345 }
 0x148   :  { %v371_v4 = vsel %vm19363_vm8, %v346_v1, %v348_v0  ;;  %v370_v5 = vsel %vm19363_vm8, %v13727_v9, %v346_v1 }
 0x149   :  { %941 = vrot.lane.b32.xlu0 %v900_v3, %s13415_s0  ;;  %1215 = vmatprep.subr.mxu1 %v371_v4 }
 0x14a   :  { %649 = vrot.lane.b32.xlu1 %v13820_v53, %s13418_s26  ;;  %1216 = vmatpush1.msra.mxu1 %v370_v5 }
 0x14b   :  { %v13865_v6 = vpop.permute.xlu1 %543  ;;  %v542_v7 = vpop.permute.xlu0 %541 }
 0x14c   :  { %v565_v8 = vsel %vm559_vm6, %v542_v7, %v13865_v6  ;;  %v564_v10 = vsel %vm559_vm6, %v540_v51, %v542_v7 }
 0x14d   :  { %651 = vrot.lane.b32.xlu0 %v13828_v56, %s13418_s26  ;;  %1282 = vmatprep.subr.mxu0 %v565_v8 }
 0x14e   :  { %845 = vrot.lane.b32.xlu1 %v900_v3, %s13416_s24  ;;  %1283 = vmatpush1.msra.mxu0 %v564_v10 }
 0x14f   :  { %v252_v9 = vpop.permute.xlu1 %251  ;;  %v250_v11 = vpop.permute.xlu0 %249 }
 0x150   :  { %v275_v13 = vsel %vm19349_vm9, %v250_v11, %v252_v9  ;;  %v274_v14 = vsel %vm19349_vm9, %v13737_v12, %v250_v11 }
 0x151   :  { %553 = vrot.lane.b32.xlu0 %v13820_v53, %s13419_s27  ;;  %1217 = vmatprep.subr.mxu1 %v275_v13 }
 0x152   :  { %555 = vrot.lane.b32.xlu1 %v13828_v56, %s13419_s27  ;;  %1218 = vmatpush1.msra.mxu1 %v274_v14 }
 0x153   :  { %v13880_v15 = vpop.permute.xlu1 %447  ;;  %v446_v16 = vpop.permute.xlu0 %445 }
 0x154   :  { %v469_v17 = vsel %vm463_vm7, %v446_v16, %v13880_v15  ;;  %v468_v18 = vsel %vm463_vm7, %v444_v23, %v446_v16 }
 0x155   :  { %749 = vrot.lane.b32.xlu0 %v900_v3, %s13417_s25  ;;  %1284 = vmatprep.subr.mxu0 %v469_v17 }
 0x156   :  { %457 = vrot.lane.b32.xlu1 %v13820_v53, %s13420_s28  ;;  %1285 = vmatpush1.msra.mxu0 %v468_v18 }
 0x157   :  { %v156_v12 = vpop.permute.xlu1 %155  ;;  %v154_v21 = vpop.permute.xlu0 %153 }
 0x158   :  { %v179_v22 = vsel %vm19348_vm10, %v154_v21, %v156_v12  ;;  %v178_v25 = vsel %vm19348_vm10, %v13755_v19, %v154_v21 }
 0x159   :  { %459 = vrot.lane.b32.xlu0 %v13828_v56, %s13420_s28  ;;  %1219 = vmatprep.subr.mxu1 %v179_v22 }
 0x15a   :  { %653 = vrot.lane.b32.xlu1 %v900_v3, %s13418_s26  ;;  %1220 = vmatpush1.msra.mxu1 %v178_v25 }
 0x15b   :  { %v13894_v26 = vpop.permute.xlu1 %351  ;;  %v350_v27 = vpop.permute.xlu0 %349  ;;  %13024 = vmatmul.mubr.msk.f32.vlgmr.msra.gmra.mxu1 %vm1114_vm11, %v13766_v24 }
 0x15c   :  { %v373_v28 = vsel %vm19363_vm8, %v350_v27, %v13894_v26  ;;  %v372_v30 = vsel %vm19363_vm8, %v348_v0, %v350_v27  ;;  %1395 = vmatprep.mubr.f32.mxu1 %v13410_v2 }
 0x15d   :  { %361 = vrot.lane.b32.xlu0 %v13676_v50, %s13412_s20  ;;  %1286 = vmatprep.subr.mxu0 %v373_v28 }
 0x15e   :  { %363 = vrot.lane.b32.xlu1 %v13820_v53, %s13412_s20  ;;  %1287 = vmatpush1.msra.mxu0 %v372_v30 }
 0x15f   :  { %v13906_v19 = vpop.permute.xlu1 %255  ;;  %v254_v31 = vpop.permute.xlu0 %253 }
 0x160   :  { %v277_v32 = vsel %vm19349_vm9, %v254_v31, %v13906_v19  ;;  %v276_v34 = vsel %vm19349_vm9, %v252_v9, %v254_v31 }
 0x161   :  { %557 = vrot.lane.b32.xlu0 %v900_v3, %s13419_s27  ;;  %1288 = vmatprep.subr.mxu0 %v277_v32 }
 0x162   :  { %265 = vrot.lane.b32.xlu1 %v13676_v50, %s13414_s23  ;;  %1289 = vmatpush1.msra.mxu0 %v276_v34 }
 0x163   :  { %v932_v35 = vpop.permute.xlu1 %931  ;;  %v930_v36 = vpop.permute.xlu0 %929 }
 0x164   :  { %v951_v38 = vsel %vm943_vm2, %v930_v36, %v932_v35  ;;  %v950_v41 = vsel %vm943_vm2, %v13792_v37, %v930_v36 }
 0x165   :  { %267 = vrot.lane.b32.xlu0 %v13820_v53, %s13414_s23  ;;  %1345 = vmatprep.subr.mxu1 %v951_v38 }
 0x166   :  { %461 = vrot.lane.b32.xlu1 %v900_v3, %s13420_s28  ;;  %1346 = vmatpush1.msra.mxu1 %v950_v41 }
 0x167   :  { %v13920_v42 = vpop.permute.xlu1 %159  ;;  %v158_v43 = vpop.permute.xlu0 %157 }
 0x168   :  { %v181_v45 = vsel %vm19348_vm10, %v158_v43, %v13920_v42  ;;  %v180_v46 = vsel %vm19348_vm10, %v156_v12, %v158_v43 }
 0x169   :  { %169 = vrot.lane.b32.xlu0 %v13676_v50, %s13413_s21  ;;  %1290 = vmatprep.subr.mxu0 %v181_v45 }
 0x16a   :  { %171 = vrot.lane.b32.xlu1 %v13820_v53, %s13413_s21  ;;  %1291 = vmatpush1.msra.mxu0 %v180_v46 }
 0x16b   :  { %v836_v37 = vpop.permute.xlu1 %835  ;;  %v834_v47 = vpop.permute.xlu0 %833  ;;  %13025 = vmatmul.mubr.msk.f32.vlgmr.msra.gmra.mxu0 %vm1114_vm11, %v13766_v24 }
 0x16c   :  { %v855_v39 = vsel %vm847_vm3, %v834_v47, %v836_v37  ;;  %v854_v48 = vsel %vm847_vm3, %v13808_v29, %v834_v47  ;;  %1466 = vmatprep.mubr.f32.mxu0 %v13410_v2 }
 0x16d   :  { %365 = vrot.lane.b32.xlu0 %v13828_v56, %s13412_s20  ;;  %1347 = vmatprep.subr.mxu1 %v855_v39 }
 0x16e   :  { %269 = vrot.lane.b32.xlu1 %v13828_v56, %s13414_s23  ;;  %1348 = vmatpush1.msra.mxu1 %v854_v48 }
 0x16f   :  { %v740_v50 = vpop.permute.xlu1 %739  ;;  %v738_v51 = vpop.permute.xlu0 %737 }
 0x170   :  { %v759_v53 = vsel %vm751_vm4, %v738_v51, %v740_v50  ;;  %v758_v29 = vsel %vm751_vm4, %v13834_v20, %v738_v51 }
 0x171   :  { %173 = vrot.lane.b32.xlu0 %v13828_v56, %s13413_s21  ;;  %1349 = vmatprep.subr.mxu1 %v759_v53 }
 0x172   :  { %1350 = vmatpush1.msra.mxu1 %v758_v29  ;;  %1111 = vperm.xlu1 %13364, %v13942_v52  }
 0x173   :  { %v13950_v54 = vpop.permute.xlu1 %935  ;;  %v934_v55 = vpop.permute.xlu0 %933 }
 0x174   :  { %v953_v57 = vsel %vm943_vm2, %v934_v55, %v13950_v54  ;;  %v952_v58 = vsel %vm943_vm2, %v932_v35, %v934_v55 }
 0x175   :  { %1416 = vmatprep.subr.mxu0 %v953_v57 }
 0x176   :  { %1417 = vmatpush1.msra.mxu0 %v952_v58 }
 0x177   :  { %v644_v59 = vpop.permute.xlu1 %643  ;;  %v642_v23 = vpop.permute.xlu0 %641 }
 0x178   :  { %v663_v20 = vsel %vm655_vm5, %v642_v23, %v644_v59  ;;  %v662_v56 = vsel %vm655_vm5, %v13850_v40, %v642_v23 }
 0x179   :  { %1351 = vmatprep.subr.mxu1 %v663_v20 }
 0x17a   :  { %1352 = vmatpush1.msra.mxu1 %v662_v56 }
 0x17b   :  { %v13958_v33 = vpop.permute.xlu1 %839  ;;  %v838_v60 = vpop.permute.xlu0 %837 }
 0x17c   :  { %v857_v61 = vsel %vm847_vm3, %v838_v60, %v13958_v33  ;;  %v856_v62 = vsel %vm847_vm3, %v836_v37, %v838_v60 }
 0x17d   :  { %1418 = vmatprep.subr.mxu0 %v857_v61 }
 0x17e   :  { %1419 = vmatpush1.msra.mxu0 %v856_v62 }
 0x17f   :  { %v548_v49 = vpop.permute.xlu1 %547  ;;  %v546_v63 = vpop.permute.xlu0 %545 }
 0x180   :  { %v567_v0 = vsel %vm559_vm6, %v546_v63, %v548_v49  ;;  %v566_v1 = vsel %vm559_vm6, %v13865_v6, %v546_v63 }
 0x181   :  { %1353 = vmatprep.subr.mxu1 %v567_v0  ;;  %v14031_v0 = vld [vmem:[#allocation2] sm:$0xff] }
 0x182   :  { %1354 = vmatpush1.msra.mxu1 %v566_v1 }
 0x183   :  { %v13966_v40 = vpop.permute.xlu1 %743  ;;  %v742_v3 = vpop.permute.xlu0 %741 }
 0x184   :  { %v761_v4 = vsel %vm751_vm4, %v742_v3, %v13966_v40  ;;  %v760_v5 = vsel %vm751_vm4, %v740_v50, %v742_v3 }
 0x185   :  { %1420 = vmatprep.subr.mxu0 %v761_v4 }
 0x186   :  { %1421 = vmatpush1.msra.mxu0 %v760_v5 }
 0x187   :  { %v452_v7 = vpop.permute.xlu1 %451  ;;  %v450_v8 = vpop.permute.xlu0 %449 }
 0x188   :  { %v471_v10 = vsel %vm463_vm7, %v450_v8, %v452_v7  ;;  %v470_v9 = vsel %vm463_vm7, %v13880_v15, %v450_v8 }
 0x189   :  { %1355 = vmatprep.subr.mxu1 %v471_v10 }
 0x18a   :  { %1356 = vmatpush1.msra.mxu1 %v470_v9 }
 0x18b   :  { %v13974_v6 = vpop.permute.xlu1 %647  ;;  %v646_v11 = vpop.permute.xlu0 %645 }
 0x18c   :  { %v665_v13 = vsel %vm655_vm5, %v646_v11, %v13974_v6  ;;  %v664_v14 = vsel %vm655_vm5, %v644_v59, %v646_v11 }
 0x18d   :  { %1422 = vmatprep.subr.mxu0 %v665_v13 }
 0x18e   :  { %1423 = vmatpush1.msra.mxu0 %v664_v14 }
 0x18f   :  { %v354_v16 = vpop.permute.xlu0 %353 }
 0x190   :  { %v356_v17 = vpop.permute.xlu1 %355  ;;  %v374_v18 = vsel %vm19363_vm8, %v13894_v26, %v354_v16 }
 0x191   :  { %v375_v12 = vsel %vm19363_vm8, %v354_v16, %v356_v17 }
 0x192   :  { %1357 = vmatprep.subr.mxu1 %v375_v12 }
 0x193   :  { %1358 = vmatpush1.msra.mxu1 %v374_v18  ;;  %v550_v15 = vpop.permute.xlu0 %549 }
 0x194   :  { %v13982_v21 = vpop.permute.xlu1 %551  ;;  %v568_v22 = vsel %vm559_vm6, %v548_v49, %v550_v15 }
 0x195   :  { %v569_v25 = vsel %vm559_vm6, %v550_v15, %v13982_v21 }
 0x196   :  { %1424 = vmatprep.subr.mxu0 %v569_v25 }
 0x197   :  { %1425 = vmatpush1.msra.mxu0 %v568_v22  ;;  %v258_v27 = vpop.permute.xlu0 %257 }
 0x198   :  { %v260_v28 = vpop.permute.xlu1 %259  ;;  %v278_v30 = vsel %vm19349_vm9, %v13906_v19, %v258_v27 }
 0x199   :  { %v279_v26 = vsel %vm19349_vm9, %v258_v27, %v260_v28 }
 0x19a   :  { %1359 = vmatprep.subr.mxu1 %v279_v26 }
 0x19b   :  { %1360 = vmatpush1.msra.mxu1 %v278_v30  ;;  %v454_v31 = vpop.permute.xlu0 %453 }
 0x19c   :  { %v13990_v32 = vpop.permute.xlu1 %455  ;;  %v472_v34 = vsel %vm463_vm7, %v452_v7, %v454_v31 }
 0x19d   :  { %v473_v35 = vsel %vm463_vm7, %v454_v31, %v13990_v32 }
 0x19e   :  { %1426 = vmatprep.subr.mxu0 %v473_v35 }
 0x19f   :  { %1427 = vmatpush1.msra.mxu0 %v472_v34  ;;  %v162_v36 = vpop.permute.xlu0 %161 }
 0x1a0   :  { %v164_v38 = vpop.permute.xlu1 %163  ;;  %v182_v41 = vsel %vm19348_vm10, %v13920_v42, %v162_v36 }
 0x1a1   :  { %v183_v19 = vsel %vm19348_vm10, %v162_v36, %v164_v38 }
 0x1a2   :  { %1361 = vmatprep.subr.mxu1 %v183_v19 }
 0x1a3   :  { %1362 = vmatpush1.msra.mxu1 %v182_v41  ;;  %v358_v43 = vpop.permute.xlu0 %357 }
 0x1a4   :  { %v13998_v44 = vpop.permute.xlu1 %359  ;;  %v376_v45 = vsel %vm19363_vm8, %v356_v17, %v358_v43  ;;  %13026 = vmatmul.mubr.msk.f32.vlgmr.msra.gmra.mxu1 %vm1114_vm11, %v13766_v24 }
 0x1a5   :  { %v377_v46 = vsel %vm19363_vm8, %v358_v43, %v13998_v44  ;;  %1537 = vmatprep.mubr.f32.mxu1 %v13410_v2 }
 0x1a6   :  { %1428 = vmatprep.subr.mxu0 %v377_v46 }
 0x1a7   :  { %1429 = vmatpush1.msra.mxu0 %v376_v45  ;;  %v262_v42 = vpop.permute.xlu0 %261 }
 0x1a8   :  { %v14006_v37 = vpop.permute.xlu1 %263  ;;  %v280_v47 = vsel %vm19349_vm9, %v260_v28, %v262_v42 }
 0x1a9   :  { %v281_v39 = vsel %vm19349_vm9, %v262_v42, %v14006_v37 }
 0x1aa   :  { %1430 = vmatprep.subr.mxu0 %v281_v39  ;;  %v1629_v39 = vlaneseq }
 0x1ab   :  { %1431 = vmatpush1.msra.mxu0 %v280_v47  ;;  %v938_v48 = vpop.permute.xlu0 %937  ;;  %v13424_v47 = vmov 1  }
 0x1ac   :  { %v940_v50 = vpop.permute.xlu1 %939  ;;  %v954_v51 = vsel %vm943_vm2, %v13950_v54, %v938_v48  ;;  %13365 = vset.pattern.permute.xlu0 %v13424_v47 }
 0x1ad   :  { %v955_v53 = vsel %vm943_vm2, %v938_v48, %v940_v50 }
 0x1ae   :  { %1487 = vmatprep.subr.mxu1 %v955_v53  ;;  %v1630_v53 = vshrl.u32 %v1629_v39, 7  ;;  %v13022_v39 = vld [vmem:[%s19342_s4 + $0x40] ss:$8 sm:$0x10] }
 0x1af   :  { %1488 = vmatpush1.msra.mxu1 %v954_v51  ;;  %v166_v29 = vpop.permute.xlu0 %165  ;;  %v1102_v51 = vld [vmem:[%s19342_s4] ss:$8 sm:$0xf0] }
 0x1b0   :  { %v14014_v55 = vpop.permute.xlu1 %167  ;;  %v184_v57 = vsel %vm19348_vm10, %v164_v38, %v166_v29  ;;  %v14178_v47 = vsub.s32 7, %v1630_v53 }
 0x1b1   :  { %v185_v58 = vsel %vm19348_vm10, %v166_v29, %v14014_v55 }
 0x1b2   :  { %1432 = vmatprep.subr.mxu0 %v185_v58 }
 0x1b3   :  { %1433 = vmatpush1.msra.mxu0 %v184_v57  ;;  %v842_v59 = vpop.permute.xlu0 %841 }
 0x1b4   :  { %v844_v23 = vpop.permute.xlu1 %843  ;;  %v858_v20 = vsel %vm847_vm3, %v13958_v33, %v842_v59  ;;  %13187 = vmatprep.subr.mxu0 %v13410_v2  ;;  %13027 = vmatmul.mubr.msk.f32.vlgmr.msra.gmra.mxu0 %vm1114_vm11, %v13766_v24 }
 0x1b5   :  { %v859_v54 = vsel %vm847_vm3, %v842_v59, %v844_v23  ;;  %13205 = vmatprep.mubr.msk.f32.mxu0 %vm13422_vm12, %v13410_v2  ;;  %v14090_v59 = vsub.s32 0, %v1630_v53 }
 0x1b6   :  { %1489 = vmatprep.subr.mxu1 %v859_v54 }
 0x1b7   :  { %1490 = vmatpush1.msra.mxu1 %v858_v20  ;;  %v746_v56 = vpop.permute.xlu0 %745 }
 0x1b8   :  { %v748_v60 = vpop.permute.xlu1 %747  ;;  %v762_v61 = vsel %vm751_vm4, %v13966_v40, %v746_v56 }
 0x1b9   :  { %v763_v33 = vsel %vm751_vm4, %v746_v56, %v748_v60 }
 0x1ba   :  { %1491 = vmatprep.subr.mxu1 %v763_v33 }
 0x1bb   :  { %1492 = vmatpush1.msra.mxu1 %v762_v61  ;;  %v942_v62 = vpop.permute.xlu0 %941 }
 0x1bc   :  { %v650_v49 = vpop.permute.xlu1 %649  ;;  %v956_v63 = vsel %vm943_vm2, %v940_v50, %v942_v62  ;;  %v1101_v50 = vld [vmem:[%s19342_s4] ss:$8 sm:$0xf]  ;;  %v14107_v62 = vsub.s32 2, %v1630_v53 }
 0x1bd   :  { %13188 = vmatpush3.msra.mxu0 %v956_v63  ;;  %v666_v40 = vsel %vm655_vm5, %v13974_v6, %v650_v49 }
 0x1be   :  { %13189 = vmatprep.subr.mxu0 %v14031_v0 }
 0x1bf   :  { %v652_v2 = vpop.permute.xlu0 %651 }
 0x1c0   :  { %v846_v1 = vpop.permute.xlu1 %845  ;;  %v667_v3 = vsel %vm655_vm5, %v650_v49, %v652_v2 }
 0x1c1   :  { %v860_v4 = vsel %vm847_vm3, %v844_v23, %v846_v1  ;;  %1493 = vmatprep.subr.mxu1 %v667_v3  ;;  %v14092_v23 = vsub.s32 1, %v1630_v53 }
 0x1c2   :  { %13190 = vmatpush3.msra.mxu0 %v860_v4  ;;  %1494 = vmatpush1.msra.mxu1 %v666_v40  ;;  %v14123_v40 = vsub.s32 3, %v1630_v53 }
 0x1c3   :  { %v554_v5 = vpop.permute.xlu0 %553  ;;  %13191 = vmatprep.subr.mxu0 %v14031_v0 }
 0x1c4   :  { %v556_v7 = vpop.permute.xlu1 %555  ;;  %v570_v8 = vsel %vm559_vm6, %v13982_v21, %v554_v5 }
 0x1c5   :  { %v571_v10 = vsel %vm559_vm6, %v554_v5, %v556_v7 }
 0x1c6   :  { %1495 = vmatprep.subr.mxu1 %v571_v10  ;;  %v14125_v10 = vsub.s32 4, %v1630_v53 }
 0x1c7   :  { %1496 = vmatpush1.msra.mxu1 %v570_v8  ;;  %v750_v9 = vpop.permute.xlu0 %749 }
 0x1c8   :  { %v458_v11 = vpop.permute.xlu1 %457  ;;  %v764_v13 = vsel %vm751_vm4, %v748_v60, %v750_v9 }
 0x1c9   :  { %13192 = vmatpush3.msra.mxu0 %v764_v13  ;;  %v474_v18 = vsel %vm463_vm7, %v13990_v32, %v458_v11 }
 0x1ca   :  { %13193 = vmatprep.subr.mxu0 %v14031_v0 }
 0x1cb   :  { %v460_v6 = vpop.permute.xlu0 %459 }
 0x1cc   :  { %v654_v14 = vpop.permute.xlu1 %653  ;;  %v475_v16 = vsel %vm463_vm7, %v458_v11, %v460_v6 }
 0x1cd   :  { %v668_v17 = vsel %vm655_vm5, %v652_v2, %v654_v14  ;;  %1497 = vmatprep.subr.mxu1 %v475_v16 }
 0x1ce   :  { %13194 = vmatpush3.msra.mxu0 %v668_v17  ;;  %1498 = vmatpush1.msra.mxu1 %v474_v18 }
 0x1cf   :  { %v362_v12 = vpop.permute.xlu0 %361  ;;  %13195 = vmatprep.subr.mxu0 %v14031_v0 }
 0x1d0   :  { %v364_v15 = vpop.permute.xlu1 %363  ;;  %v378_v21 = vsel %vm19363_vm8, %v13998_v44, %v362_v12 }
 0x1d1   :  { %v379_v22 = vsel %vm19363_vm8, %v362_v12, %v364_v15  ;;  %v14142_v12 = vsub.s32 5, %v1630_v53 }
 0x1d2   :  { %1499 = vmatprep.subr.mxu1 %v379_v22 }
 0x1d3   :  { %1500 = vmatpush1.msra.mxu1 %v378_v21  ;;  %v558_v25 = vpop.permute.xlu0 %557 }
 0x1d4   :  { %v266_v27 = vpop.permute.xlu1 %265  ;;  %v572_v28 = vsel %vm559_vm6, %v556_v7, %v558_v25 }
 0x1d5   :  { %13196 = vmatpush3.msra.mxu0 %v572_v28  ;;  %v282_v34 = vsel %vm19349_vm9, %v14006_v37, %v266_v27  ;;  %v13423_v37 = vmov 2  }
 0x1d6   :  { %13197 = vmatprep.subr.mxu0 %v14031_v0  ;;  %13366 = vset.pattern.permute.xlu1 %v13423_v37 }
 0x1d7   :  { %v268_v30 = vpop.permute.xlu0 %267  ;;  %1798 = vperm.xlu1 %13366, %v13942_v52  }
 0x1d8   :  { %v462_v26 = vpop.permute.xlu1 %461  ;;  %v283_v31 = vsel %vm19349_vm9, %v266_v27, %v268_v30 }
 0x1d9   :  { %v476_v32 = vsel %vm463_vm7, %v460_v6, %v462_v26  ;;  %1501 = vmatprep.subr.mxu1 %v283_v31 }
 0x1da   :  { %13198 = vmatpush3.msra.mxu0 %v476_v32  ;;  %1502 = vmatpush1.msra.mxu1 %v282_v34 }
 0x1db   :  { %v170_v35 = vpop.permute.xlu0 %169  ;;  %13199 = vmatprep.subr.mxu0 %v14031_v0 }
 0x1dc   :  { %v172_v36 = vpop.permute.xlu1 %171  ;;  %v186_v38 = vsel %vm19348_vm10, %v14014_v55, %v170_v35  ;;  %v14082_v55 = vor.u32 %v1102_v51, %v1101_v50 }
 0x1dd   :  { %v187_v41 = vsel %vm19348_vm10, %v170_v35, %v172_v36 }
 0x1de   :  { %1503 = vmatprep.subr.mxu1 %v187_v41  ;;  %v14098_v60 = vrot.slane %v14082_v55, %v14090_v59  ;;  %v14102_v61 = vrot.slane %v14082_v55, %v14092_v23  ;;  %v14118_v3 = vrot.slane %v14082_v55, %v14107_v62  ;;  %v14133_v13 = vrot.slane %v14082_v55, %v14123_v40 }
 0x1df   :  { %1504 = vmatpush1.msra.mxu1 %v186_v38  ;;  %v366_v19 = vpop.permute.xlu0 %365  ;;  %v14140_v18 = vrot.slane %v14082_v55, %v14125_v10 }
 0x1e0   :  { %v270_v43 = vpop.permute.xlu1 %269  ;;  %13028 = vmatmul.mubr.msk.f32.vlgmr.msra.gmra.mxu1 %vm1114_vm11, %v13766_v24  ;;  %v380_v44 = vsel %vm19363_vm8, %v364_v15, %v366_v19  ;;  %vm19367_vm8 = vcmask 64512  }
 0x1e1   :  { %13200 = vmatpush3.msra.mxu0 %v380_v44  ;;  %3474 = vmatprep.mubr.f32.mxu1 %v14031_v0  ;;  %v284_v45 = vsel %vm19349_vm9, %v268_v30, %v270_v43  ;;  %v14153_v30 = vrot.slane %v14082_v55, %v14142_v12  ;;  %vm2760_vm9 = vcmask 1031168  }
 0x1e2   :  { %13201 = vmatprep.subr.mxu0 %v14031_v0 }
 0x1e3   :  { %13202 = vmatpush3.msra.mxu0 %v284_v45  ;;  %v174_v46 = vpop.permute.xlu0 %173  ;;  %v13021_v45 = vld [vmem:[%s19342_s4 + $0x40] ss:$8 sm:$0xf] }
 0x1e4   :  { %v188_v42 = vsel %vm19348_vm10, %v172_v36, %v174_v46  ;;  %13203 = vmatprep.subr.mxu0 %v14031_v0  ;;  %v1184_v48 = vpop.f32.mrf.mxu0  ;;  %v14162_v36 = vsub.s32 6, %v1630_v53  ;;  %v14191_v53 = vrot.slane %v14082_v55, %v14178_v47  ;;  %vm2951_vm10 = vcmask 998400  }
 0x1e5   :  { %13204 = vmatpush3.msra.mxu0 %v188_v42 }
 0x1e6   :  { %13206 = vmatmul.mubr.msk.f32.vlgmr.msra.gmra.mxu0 %vm1114_vm11, %v13766_v24  ;;  %v1186_v29 = vpop.f32.mrf.mxu0  ;;  %v14173_v42 = vrot.slane %v14082_v55, %v14162_v36 }
 0x1e7   :  { %3545 = vmatprep.mubr.f32.mxu0 %v14031_v0 }
 0x1ed   :  { %v14080_v24 = vpop.permute.xlu1 %1111 }
 0x1ee   :  { %v14085_v57 = vadd.f32 %v1184_v48, %v14080_v24  ;;  %v14088_v58 = vadd.f32 %v1186_v29, %v14080_v24 }
 0x1f0   :  { %v1614_v54 = vmax.f32 %v14085_v57, 0.0  ;;  %v1615_v56 = vmax.f32 %v14088_v58, 0.0 }
 0x1f2   :  { %v1694_v63 = vmul.f32 %v14098_v60, %v1614_v54  ;;  %v1695_v2 = vmul.f32 %v14102_v61, %v1615_v56 }
 0x1f4   :  { %v1721_v7 = vmul.f32 %v1694_v63, %v1694_v63  ;;  %v1722_v8 = vmul.f32 %v1695_v2, %v1695_v2  ;;  %v1707_v16 = vadd.f32 %v1695_v2, %v1694_v63 }
 0x1f6   :  { %v1734_v17 = vadd.f32 %v1722_v8, %v1721_v7 }
 0x21b   :  { %v1255_v20 = vpop.f32.mrf.mxu1 }
 0x21c   :  { %v14105_v33 = vadd.f32 %v1255_v20, %v14080_v24  ;;  %v14183_v20 = vor.u32 %v13022_v39, %v13021_v45 }
 0x21d   :  { %v1257_v49 = vpop.f32.mrf.mxu1 }
 0x21e   :  { %v1616_v1 = vmax.f32 %v14105_v33, 0.0  ;;  %v14121_v4 = vadd.f32 %v1257_v49, %v14080_v24 }
 0x220   :  { %v1696_v9 = vmul.f32 %v14118_v3, %v1616_v1  ;;  %v1617_v11 = vmax.f32 %v14121_v4, 0.0 }
 0x222   :  { %v1723_v15 = vmul.f32 %v1696_v9, %v1696_v9  ;;  %v1697_v21 = vmul.f32 %v14133_v13, %v1617_v11  ;;  %v1708_v28 = vadd.f32 %v1707_v16, %v1696_v9  ;;  %v14198_v9 = vrot.slane %v14183_v20, %v14090_v59 }
 0x224   :  { %v1735_v26 = vadd.f32 %v1734_v17, %v1723_v15  ;;  %v1724_v31 = vmul.f32 %v1697_v21, %v1697_v21  ;;  %v1709_v41 = vadd.f32 %v1708_v28, %v1697_v21 }
 0x226   :  { %v1736_v19 = vadd.f32 %v1735_v26, %v1724_v31 }
 0x22b   :  { %v1326_v5 = vpop.f32.mrf.mxu0 }
 0x22c   :  { %v14136_v6 = vadd.f32 %v1326_v5, %v14080_v24 }
 0x22d   :  { %v1328_v14 = vpop.f32.mrf.mxu0 }
 0x22e   :  { %v1618_v22 = vmax.f32 %v14136_v6, 0.0  ;;  %v14149_v25 = vadd.f32 %v1328_v14, %v14080_v24 }
 0x230   :  { %v1698_v32 = vmul.f32 %v14140_v18, %v1618_v22  ;;  %v19347_v34 = vmax.f32 %v14149_v25, 0.0 }
 0x232   :  { %v1725_v43 = vmul.f32 %v1698_v32, %v1698_v32  ;;  %v1699_v44 = vmul.f32 %v14153_v30, %v19347_v34  ;;  %v1710_v50 = vadd.f32 %v1709_v41, %v1698_v32 }
 0x234   :  { %v1737_v51 = vadd.f32 %v1736_v19, %v1725_v43  ;;  %v1726_v29 = vmul.f32 %v1699_v44, %v1699_v44  ;;  %v1711_v7 = vadd.f32 %v1710_v50, %v1699_v44 }
 0x236   :  { %v1738_v8 = vadd.f32 %v1737_v51, %v1726_v29 }
 0x264   :  { %v1397_v27 = vpop.f32.mrf.mxu1 }
 0x265   :  { %v14160_v35 = vadd.f32 %v1397_v27, %v14080_v24  ;;  %v14209_v27 = vrot.slane %v14183_v20, %v14092_v23 }
 0x266   :  { %v1399_v38 = vpop.f32.mrf.mxu1 }
 0x267   :  { %v1620_v46 = vmax.f32 %v14160_v35, 0.0  ;;  %v14176_v37 = vadd.f32 %v1399_v38, %v14080_v24 }
 0x269   :  { %v1700_v49 = vmul.f32 %v14173_v42, %v1620_v46  ;;  %v19346_v63 = vmax.f32 %v14176_v37, 0.0 }
 0x26b   :  { %v1727_v14 = vmul.f32 %v1700_v49, %v1700_v49  ;;  %v1701_v16 = vmul.f32 %v14191_v53, %v19346_v63  ;;  %v1712_v21 = vadd.f32 %v1711_v7, %v1700_v49  ;;  %v14228_v7 = vrot.slane %v14183_v20, %v14123_v40 }
 0x26d   :  { %v1739_v28 = vadd.f32 %v1738_v8, %v1727_v14  ;;  %v1728_v26 = vmul.f32 %v1701_v16, %v1701_v16  ;;  %v1713_v38 = vadd.f32 %v1712_v21, %v1701_v16 }
 0x26f   :  { %v1740_v41 = vadd.f32 %v1739_v28, %v1728_v26  ;;  %v14234_v26 = vrot.slane %v14183_v20, %v14125_v10 }
 0x274   :  { %v1468_v48 = vpop.f32.mrf.mxu0 }
 0x275   :  { %v14194_v2 = vadd.f32 %v1468_v48, %v14080_v24  ;;  %v14221_v48 = vrot.slane %v14183_v20, %v14107_v62 }
 0x276   :  { %v1470_v5 = vpop.f32.mrf.mxu0 }
 0x277   :  { %v1622_v17 = vmax.f32 %v14194_v2, 0.0  ;;  %v14205_v15 = vadd.f32 %v1470_v5, %v14080_v24 }
 0x279   :  { %v1702_v31 = vmul.f32 %v14198_v9, %v1622_v17  ;;  %v19345_v32 = vmax.f32 %v14205_v15, 0.0 }
 0x27b   :  { %v1729_v19 = vmul.f32 %v1702_v31, %v1702_v31  ;;  %v1703_v43 = vmul.f32 %v14209_v27, %v19345_v32  ;;  %v1714_v45 = vadd.f32 %v1713_v38, %v1702_v31 }
 0x27d   :  { %v1741_v50 = vadd.f32 %v1740_v41, %v1729_v19  ;;  %v1730_v51 = vmul.f32 %v1703_v43, %v1703_v43  ;;  %v1715_v8 = vadd.f32 %v1714_v45, %v1703_v43 }
 0x27f   :  { %v1742_v21 = vadd.f32 %v1741_v50, %v1730_v51 }
 0x2a0   :  { %v1539_v44 = vpop.f32.mrf.mxu1 }
 0x2a1   :  { %v1540_v39 = vadd.f32 %v1539_v44, %v14080_v24 }
 0x2a2   :  { %v1541_v29 = vpop.f32.mrf.mxu1 }
 0x2a3   :  { %v1624_v49 = vmax.f32 %v1540_v39, 0.0  ;;  %v14224_v5 = vadd.f32 %v1541_v29, %v14080_v24 }
 0x2a5   :  { %v1704_v14 = vmul.f32 %v14221_v48, %v1624_v49  ;;  %v1625_v16 = vmax.f32 %v14224_v5, 0.0 }
 0x2a6   :  { %v1610_v28 = vpop.f32.mrf.mxu0 }
 0x2a7   :  { %v1716_v31 = vadd.f32 %v1715_v8, %v1704_v14  ;;  %v1731_v38 = vmul.f32 %v1704_v14, %v1704_v14  ;;  %v1705_v41 = vmul.f32 %v14228_v7, %v1625_v16  ;;  %v1611_v19 = vadd.f32 %v1610_v28, %v14080_v24  ;;  %v14248_v24 = vpop.permute.xlu1 %1798 }
 0x2a8   :  { %v13207_v44 = vpop.f32.mrf.mxu0  ;;  %v13034_v28 = vadd.f32 -1.0, %v14082_v55 }
 0x2a9   :  { %v1743_v43 = vadd.f32 %v1742_v21, %v1731_v38  ;;  %v1732_v45 = vmul.f32 %v1705_v41, %v1705_v41  ;;  %v1626_v39 = vmax.f32 %v1611_v19, 0.0  ;;  %v1717_v29 = vadd.f32 %v1716_v31, %v1705_v41 }
 0x2aa   :  { %v13035_v31 = vadd.f32 -1.0, %v14183_v20  ;;  %v14256_v38 = vmul.f32 1e+30, %v13034_v28 }
 0x2ab   :  { %v1706_v50 = vmul.f32 %v14234_v26, %v1626_v39  ;;  %v1744_v63 = vadd.f32 %v1743_v43, %v1732_v45 }
 0x2ac   :  { %v1868_v35 = vrot.slane %v14256_v38, %v14162_v36 }
 0x2ad   :  { %v1733_v51 = vmul.f32 %v1706_v50, %v1706_v50  ;;  %v1718_v32 = vadd.f32 %v1717_v29, %v1706_v50 }
 0x2af   :  { %1719 = vadd.xlane.f32.xlu0 %v1718_v32  ;;  %v1745_v34 = vadd.f32 %v1744_v63, %v1733_v51 }
 0x2b1   :  { %1746 = vadd.xlane.f32.xlu1 %v1745_v34 }
 0x2c2   :  { %2540 = vrot.lane.b32.xlu1 %v14031_v0, %s13425_s16 }
 0x2c5   :  { %1781 = vperm.xlu0 %13365, %v13942_v52  }
 0x2c9   :  { %2636 = vrot.lane.b32.xlu0 %v14031_v0, %s13426_s17 }
 0x2cd   :  { %2444 = vrot.lane.b32.xlu0 %v14031_v0, %s13427_s18  ;;  %v14258_v0 = vmul.f32 1e+30, %v13035_v31 }
 0x2cf   :  { %v1876_v28 = vrot.slane %v14258_v0, %v14090_v59  ;;  %v1884_v6 = vrot.slane %v14258_v0, %v14107_v62 }
 0x338   :  { %v1720_v8 = vpop.xlane.xlu0 %1719 }
 0x339   :  { %v14250_v32 = vmul.f32 0.0015432099, %v1720_v8 }
 0x33a   :  { %v1747_v34 = vpop.xlane.xlu1 %1746 }
 0x33b   :  { %v1749_v63 = vmul.f32 0.0015432099, %v1747_v34  ;;  %v1750_v14 = vmul.f32 %v14250_v32, %v14250_v32  ;;  %v1758_v41 = vsub.f32 %v1620_v46, %v14250_v32  ;;  %v1752_v19 = vsub.f32 %v1614_v54, %v14250_v32 }
 0x33c   :  { %v1760_v44 = vsub.f32 %v1622_v17, %v14250_v32  ;;  %v1753_v55 = vsub.f32 %v1615_v56, %v14250_v32  ;;  %v1844_v46 = vrot.slane %v14256_v38, %v14090_v59  ;;  %v1762_v57 = vsub.f32 %v1624_v49, %v14250_v32 }
 0x33d   :  { %v1751_v21 = vsub.f32 %v1749_v63, %v1750_v14  ;;  %v1754_v54 = vsub.f32 %v1616_v1, %v14250_v32  ;;  %v1764_v50 = vsub.f32 %v1626_v39, %v14250_v32  ;;  %v1755_v49 = vsub.f32 %v1617_v11, %v14250_v32 }
 0x33f   :  { %v1765_v52 = vadd.f32 1e-05, %v1751_v21 }
 0x340   :  { %v14274_v43 = vpop.permute.xlu0 %1781 }
 0x341   :  { %13387 = vrsqrt.f32 %v1765_v52 }
 0x34e   :  { %v14272_v20 = vpop.eup %13387 }
 0x34f   :  { %v1773_v2 = vmul.f32 %v14272_v20, %v1758_v41  ;;  %v1767_v58 = vmul.f32 %v14272_v20, %v1752_v19  ;;  %v1775_v56 = vmul.f32 %v14272_v20, %v1760_v44  ;;  %v1768_v17 = vmul.f32 %v14272_v20, %v1753_v55 }
 0x350   :  { %v1777_v45 = vmul.f32 %v14272_v20, %v1762_v57  ;;  %v1769_v29 = vmul.f32 %v14272_v20, %v1754_v54  ;;  %v1779_v14 = vmul.f32 %v14272_v20, %v1764_v50  ;;  %v1770_v39 = vmul.f32 %v14272_v20, %v1755_v49 }
 0x351   :  { %v1790_v33 = vmul.f32 %v14274_v43, %v1773_v2  ;;  %v1784_v1 = vmul.f32 %v14274_v43, %v1767_v58  ;;  %v1792_v51 = vmul.f32 %v14274_v43, %v1775_v56  ;;  %v1785_v8 = vmul.f32 %v14274_v43, %v1768_v17 }
 0x352   :  { %v1794_v34 = vmul.f32 %v14274_v43, %v1777_v45  ;;  %v1786_v63 = vmul.f32 %v14274_v43, %v1769_v29  ;;  %v1848_v19 = vrot.slane %v14256_v38, %v14092_v23  ;;  %v1756_v44 = vsub.f32 %v1618_v22, %v14250_v32 }
 0x353   :  { %v1807_v21 = vadd.f32 %v14248_v24, %v1790_v33  ;;  %v1801_v4 = vadd.f32 %v14248_v24, %v1784_v1  ;;  %v1809_v11 = vadd.f32 %v14248_v24, %v1792_v51  ;;  %v1802_v52 = vadd.f32 %v14248_v24, %v1785_v8 }
 0x354   :  { %v1811_v55 = vadd.f32 %v14248_v24, %v1794_v34  ;;  %v1803_v57 = vadd.f32 %v14248_v24, %v1786_v63  ;;  %v1796_v54 = vmul.f32 %v14274_v43, %v1779_v14  ;;  %v1787_v2 = vmul.f32 %v14274_v43, %v1770_v39 }
 0x355   :  { %v1828_v31 = vmul.f32 %v1807_v21, %v14173_v42  ;;  %v1822_v41 = vmul.f32 %v1801_v4, %v14098_v60  ;;  %v1830_v60 = vmul.f32 %v1809_v11, %v14198_v9  ;;  %v1823_v56 = vmul.f32 %v1802_v52, %v14102_v61 }
 0x356   :  { %v1852_v22 = vrot.slane %v14256_v38, %v14107_v62  ;;  %v1832_v61 = vmul.f32 %v1811_v55, %v14221_v48  ;;  %v1824_v17 = vmul.f32 %v1803_v57, %v14118_v3  ;;  %v1813_v45 = vadd.f32 %v14248_v24, %v1796_v54 }
 0x357   :  { %v14319_v58 = vadd.f32 %v1868_v35, %v1828_v31  ;;  %v14321_v42 = vadd.f32 %v1844_v46, %v1822_v41  ;;  %v1771_v35 = vmul.f32 %v14272_v20, %v1756_v44  ;;  %v19397_v46 = vmax.f32 %v14149_v25, 0.0 }
 0x358   :  { %v1804_v29 = vadd.f32 %v14248_v24, %v1787_v2  ;;  %v14341_v50 = vadd.f32 %v1876_v28, %v1830_v60  ;;  %v14343_v49 = vadd.f32 %v1848_v19, %v1823_v56  ;;  %v1892_v3 = vrot.slane %v14258_v0, %v14125_v10 }
 0x359   :  { %1944 = vrot.lane.b32.xlu0 %v14319_v58, %s13411_s22  ;;  %1932 = vrot.lane.b32.xlu1 %v14321_v42, %s13411_s22  ;;  %v1757_v9 = vsub.f32 %v19397_v46, %v14250_v32  ;;  %v1788_v33 = vmul.f32 %v14274_v43, %v1771_v35  ;;  %v19398_v25 = vmax.f32 %v14176_v37, 0.0  ;;  %v14356_v51 = vadd.f32 %v1884_v6, %v1832_v61 }
 0x35a   :  { %v1834_v8 = vmul.f32 %v1813_v45, %v14234_v26  ;;  %v1825_v34 = vmul.f32 %v1804_v29, %v14133_v13  ;;  %v1856_v63 = vrot.slane %v14256_v38, %v14123_v40  ;;  %v14362_v14 = vadd.f32 %v1852_v22, %v1824_v17 }
 0x35b   :  { %v1772_v1 = vmul.f32 %v14272_v20, %v1757_v9  ;;  %v1759_v48 = vsub.f32 %v19398_v25, %v14250_v32  ;;  %v1805_v39 = vadd.f32 %v14248_v24, %v1788_v33  ;;  %v19399_v13 = vmax.f32 %v14205_v15, 0.0 }
 0x35c   :  { %v14374_v26 = vadd.f32 %v1892_v3, %v1834_v8  ;;  %v14376_v11 = vadd.f32 %v1856_v63, %v1825_v34  ;;  %v1860_v52 = vrot.slane %v14256_v38, %v14125_v10  ;;  %v1763_v15 = vsub.f32 %v1625_v16, %v14250_v32 }
 0x35d   :  { %1948 = vrot.lane.b32.xlu0 %v14341_v50, %s13411_s22  ;;  %1934 = vrot.lane.b32.xlu1 %v14343_v49, %s13411_s22  ;;  %v1789_v21 = vmul.f32 %v14274_v43, %v1772_v1  ;;  %v1774_v4 = vmul.f32 %v14272_v20, %v1759_v48  ;;  %v1761_v37 = vsub.f32 %v19399_v13, %v14250_v32 }
 0x35e   :  { %v1826_v28 = vmul.f32 %v1805_v39, %v14140_v18  ;;  %v1864_v44 = vrot.slane %v14256_v38, %v14142_v12  ;;  %v1778_v18 = vmul.f32 %v14272_v20, %v1763_v15  ;;  %v1872_v16 = vrot.slane %v14256_v38, %v14178_v47 }
 0x35f   :  { %v1806_v31 = vadd.f32 %v14248_v24, %v1789_v21  ;;  %v1791_v41 = vmul.f32 %v14274_v43, %v1774_v4  ;;  %v1776_v19 = vmul.f32 %v14272_v20, %v1761_v37  ;;  %v1880_v6 = vrot.slane %v14258_v0, %v14092_v23 }
 0x360   :  { %v14394_v55 = vadd.f32 %v1860_v52, %v1826_v28  ;;  %v1795_v60 = vmul.f32 %v14274_v43, %v1778_v18 }
 0x361   :  { %1952 = vrot.lane.b32.xlu0 %v14356_v51, %s13411_s22  ;;  %1936 = vrot.lane.b32.xlu1 %v14362_v14, %s13411_s22  ;;  %v1827_v57 = vmul.f32 %v1806_v31, %v14153_v30  ;;  %v1808_v54 = vadd.f32 %v14248_v24, %v1791_v41  ;;  %v1793_v5 = vmul.f32 %v14274_v43, %v1776_v19 }
 0x362   :  { %v1812_v38 = vadd.f32 %v14248_v24, %v1795_v60  ;;  %v1888_v43 = vrot.slane %v14258_v0, %v14123_v40 }
 0x363   :  { %v14403_v32 = vadd.f32 %v1864_v44, %v1827_v57  ;;  %v1829_v2 = vmul.f32 %v1808_v54, %v14191_v53  ;;  %v1810_v20 = vadd.f32 %v14248_v24, %v1793_v5  ;;  %v14431_v24 = vpop.permute.xlu1 %2540 }
 0x364   :  { %v1833_v22 = vmul.f32 %v1812_v38, %v14228_v7 }
 0x365   :  { %1956 = vrot.lane.b32.xlu0 %v14374_v26, %s13411_s22  ;;  %1938 = vrot.lane.b32.xlu1 %v14376_v11, %s13411_s22  ;;  %v14410_v30 = vadd.f32 %v1872_v16, %v1829_v2  ;;  %v1831_v56 = vmul.f32 %v1810_v20, %v14209_v27  ;;  %v14429_v27 = vpop.permute.xlu0 %2636 }
 0x366   :  { %v14425_v35 = vadd.f32 %v1888_v43, %v1833_v22 }
 0x367   :  { %v14418_v53 = vadd.f32 %v1880_v6, %v1831_v56 }
 0x369   :  { %1940 = vrot.lane.b32.xlu1 %v14394_v55, %s13411_s22  ;;  %v14433_v46 = vpop.permute.xlu0 %2444 }
 0x36d   :  { %1942 = vrot.lane.b32.xlu1 %v14403_v32, %s13411_s22 }
 0x371   :  { %1946 = vrot.lane.b32.xlu1 %v14410_v30, %s13411_s22 }
 0x375   :  { %1950 = vrot.lane.b32.xlu1 %v14418_v53, %s13411_s22 }
 0x379   :  { %1954 = vrot.lane.b32.xlu1 %v14425_v35, %s13411_s22 }
 0x3cb   :  { %v1933_v9 = vpop.permute.xlu1 %1932  ;;  %v1945_v61 = vpop.permute.xlu0 %1944 }
 0x3cc   :  { %1984 = vst.msk [vmem:[#allocation2 + $0x8] sm:$0xff] %vm23_vm1, %v1933_v9 }
 0x3cf   :  { %v1935_v7 = vpop.permute.xlu1 %1934  ;;  %v1949_v0 = vpop.permute.xlu0 %1948 }
 0x3d0   :  { %v1958_v21 = vsel %vm21_vm0, %v1933_v9, %v1935_v7 }
 0x3d3   :  { %v1937_v17 = vpop.permute.xlu1 %1936  ;;  %v1953_v45 = vpop.permute.xlu0 %1952  ;;  %v14436_v29 = vld [vmem:[#allocation2 + $0x8] sm:$0xff] }
 0x3d4   :  { %2093 = vrot.lane.b32.xlu1 %v14436_v29, %s13428_s19  ;;  %v14444_v3 = vsel %vm21_vm0, %v1935_v7, %v1937_v17 }
 0x3d7   :  { %v1939_v33 = vpop.permute.xlu1 %1938  ;;  %v1957_v1 = vpop.permute.xlu0 %1956 }
 0x3d8   :  { %1997 = vst.msk [vmem:[#allocation2 + $0x70] sm:$0xff] %vm21_vm0, %v1957_v1  ;;  %2026 = vrot.lane.b32.xlu1 %v14436_v29, %s13418_s26  ;;  %v1960_v37 = vsel %vm21_vm0, %v1937_v17, %v1939_v33 }
 0x3db   :  { %v1941_v25 = vpop.permute.xlu1 %1940 }
 0x3dc   :  { %2097 = vrot.lane.b32.xlu1 %v14444_v3, %s13428_s19  ;;  %v14449_v48 = vsel %vm21_vm0, %v1939_v33, %v1941_v25 }
 0x3df   :  { %v1943_v8 = vpop.permute.xlu1 %1942  ;;  %v2011_v34 = vld [vmem:[#allocation2 + $0x70] sm:$0xff] }
 0x3e0   :  { %2119 = vrot.lane.b32.xlu0 %v2011_v34, %s13428_s19  ;;  %2101 = vrot.lane.b32.xlu1 %v14449_v48, %s13428_s19  ;;  %v14455_v63 = vsel %vm21_vm0, %v1943_v8, %v1945_v61  ;;  %v1962_v31 = vsel %vm21_vm0, %v1941_v25, %v1943_v8 }
 0x3e3   :  { %v1947_v39 = vpop.permute.xlu1 %1946 }
 0x3e4   :  { %2052 = vrot.lane.b32.xlu0 %v2011_v34, %s13418_s26  ;;  %2105 = vrot.lane.b32.xlu1 %v14455_v63, %s13428_s19  ;;  %v14462_v4 = vsel %vm21_vm0, %v1947_v39, %v1949_v0  ;;  %v1964_v19 = vsel %vm21_vm0, %v1945_v61, %v1947_v39 }
 0x3e7   :  { %v1951_v13 = vpop.permute.xlu1 %1950 }
 0x3e8   :  { %2095 = vrot.lane.b32.xlu0 %v1958_v21, %s13428_s19  ;;  %2109 = vrot.lane.b32.xlu1 %v14462_v4, %s13428_s19  ;;  %v14469_v52 = vsel %vm21_vm0, %v1951_v13, %v1953_v45  ;;  %v1966_v15 = vsel %vm21_vm0, %v1949_v0, %v1951_v13 }
 0x3eb   :  { %v1955_v28 = vpop.permute.xlu1 %1954 }
 0x3ec   :  { %2099 = vrot.lane.b32.xlu0 %v1960_v37, %s13428_s19  ;;  %2113 = vrot.lane.b32.xlu1 %v14469_v52, %s13428_s19  ;;  %v14476_v41 = vsel %vm21_vm0, %v1955_v28, %v1957_v1  ;;  %v14490_v44 = vsel %vm21_vm0, %v1953_v45, %v1955_v28 }
 0x3f0   :  { %2103 = vrot.lane.b32.xlu0 %v1962_v31, %s13428_s19  ;;  %2117 = vrot.lane.b32.xlu1 %v14476_v41, %s13428_s19 }
 0x3f4   :  { %2107 = vrot.lane.b32.xlu0 %v1964_v19, %s13428_s19  ;;  %2030 = vrot.lane.b32.xlu1 %v14444_v3, %s13418_s26 }
 0x3f8   :  { %2111 = vrot.lane.b32.xlu0 %v1966_v15, %s13428_s19  ;;  %2034 = vrot.lane.b32.xlu1 %v14449_v48, %s13418_s26 }
 0x3fc   :  { %2115 = vrot.lane.b32.xlu0 %v14490_v44, %s13428_s19  ;;  %2038 = vrot.lane.b32.xlu1 %v14455_v63, %s13418_s26 }
 0x400   :  { %2028 = vrot.lane.b32.xlu0 %v1958_v21, %s13418_s26  ;;  %2042 = vrot.lane.b32.xlu1 %v14462_v4, %s13418_s26 }
 0x404   :  { %2032 = vrot.lane.b32.xlu0 %v1960_v37, %s13418_s26  ;;  %2046 = vrot.lane.b32.xlu1 %v14469_v52, %s13418_s26 }
 0x408   :  { %2036 = vrot.lane.b32.xlu0 %v1962_v31, %s13418_s26  ;;  %2050 = vrot.lane.b32.xlu1 %v14476_v41, %s13418_s26 }
 0x40c   :  { %2040 = vrot.lane.b32.xlu0 %v1964_v19, %s13418_s26 }
 0x410   :  { %2044 = vrot.lane.b32.xlu0 %v1966_v15, %s13418_s26 }
 0x414   :  { %2048 = vrot.lane.b32.xlu0 %v14490_v44, %s13418_s26 }
 0x446   :  { %v2094_v18 = vpop.permute.xlu1 %2093 }
 0x44a   :  { %v14509_v57 = vpop.permute.xlu1 %2026 }
 0x44e   :  { %v2098_v54 = vpop.permute.xlu1 %2097 }
 0x452   :  { %v2120_v5 = vpop.permute.xlu0 %2119  ;;  %v2102_v20 = vpop.permute.xlu1 %2101 }
 0x453   :  { %v2162_v16 = vmax.f32 %v2011_v34, %v2120_v5 }
 0x455   :  { %2203 = vrot.lane.b32.xlu0 %v2162_v16, %s13416_s24 }
 0x456   :  { %v14512_v2 = vpop.permute.xlu0 %2052  ;;  %v2106_v43 = vpop.permute.xlu1 %2105 }
 0x45a   :  { %v2096_v60 = vpop.permute.xlu0 %2095  ;;  %v2110_v45 = vpop.permute.xlu1 %2109 }
 0x45b   :  { %v2122_v56 = vsel %vm2121_vm13, %v2094_v18, %v2096_v60  ;;  %v2123_v6 = vsel %vm2121_vm13, %v2096_v60, %v2098_v54 }
 0x45c   :  { %v2149_v38 = vmax.f32 %v14436_v29, %v2122_v56  ;;  %v2150_v22 = vmax.f32 %v1958_v21, %v2123_v6 }
 0x45e   :  { %2179 = vrot.lane.b32.xlu0 %v2150_v22, %s13416_s24  ;;  %v2100_v9 = vpop.permute.xlu0 %2099  ;;  %2177 = vrot.lane.b32.xlu1 %v2149_v38, %s13416_s24  ;;  %v2114_v21 = vpop.permute.xlu1 %2113 }
 0x45f   :  { %v2124_v61 = vsel %vm2121_vm13, %v2098_v54, %v2100_v9  ;;  %v2125_v7 = vsel %vm2121_vm13, %v2100_v9, %v2102_v20 }
 0x460   :  { %v2151_v0 = vmax.f32 %v14444_v3, %v2124_v61  ;;  %v2152_v17 = vmax.f32 %v1960_v37, %v2125_v7 }
 0x462   :  { %2183 = vrot.lane.b32.xlu0 %v2152_v17, %s13416_s24  ;;  %v2104_v33 = vpop.permute.xlu0 %2103  ;;  %2181 = vrot.lane.b32.xlu1 %v2151_v0, %s13416_s24  ;;  %v2118_v16 = vpop.permute.xlu1 %2117  ;;  %v13031_v17 = vld [vmem:[%s19342_s4 + $0x1] ss:$8 sm:$0xf0] }
 0x463   :  { %v2126_v29 = vsel %vm2121_vm13, %v2102_v20, %v2104_v33  ;;  %v2127_v1 = vsel %vm2121_vm13, %v2104_v33, %v2106_v43  ;;  %v2134_v6 = vsel %vm2121_vm13, %v2118_v16, %v2120_v5 }
 0x464   :  { %v2153_v25 = vmax.f32 %v14449_v48, %v2126_v29  ;;  %v2154_v8 = vmax.f32 %v1962_v31, %v2127_v1 }
 0x466   :  { %2187 = vrot.lane.b32.xlu0 %v2154_v8, %s13416_s24  ;;  %v2108_v34 = vpop.permute.xlu0 %2107  ;;  %2185 = vrot.lane.b32.xlu1 %v2153_v25, %s13416_s24  ;;  %v2031_v38 = vpop.permute.xlu1 %2030 }
 0x467   :  { %v2128_v3 = vsel %vm2121_vm13, %v2106_v43, %v2108_v34  ;;  %v2129_v39 = vsel %vm2121_vm13, %v2108_v34, %v2110_v45 }
 0x468   :  { %v2155_v13 = vmax.f32 %v14455_v63, %v2128_v3  ;;  %v2156_v37 = vmax.f32 %v1964_v19, %v2129_v39 }
 0x46a   :  { %2191 = vrot.lane.b32.xlu0 %v2156_v37, %s13416_s24  ;;  %v2112_v28 = vpop.permute.xlu0 %2111  ;;  %2189 = vrot.lane.b32.xlu1 %v2155_v13, %s13416_s24  ;;  %v2035_v43 = vpop.permute.xlu1 %2034 }
 0x46b   :  { %v2130_v48 = vsel %vm2121_vm13, %v2110_v45, %v2112_v28  ;;  %v2131_v31 = vsel %vm2121_vm13, %v2112_v28, %v2114_v21 }
 0x46c   :  { %v2157_v18 = vmax.f32 %v14462_v4, %v2130_v48  ;;  %v2158_v54 = vmax.f32 %v1966_v15, %v2131_v31  ;;  %v2161_v4 = vmax.f32 %v14476_v41, %v2134_v6  ;;  %v13030_v41 = vld [vmem:[%s19342_s4 + $0x1] ss:$8 sm:$0xf] }
 0x46d   :  { %v14564_v29 = vor.u32 %v13031_v17, %v13030_v41  ;;  %v13032_v41 = vld [vmem:[%s19342_s4 + $0x41] ss:$8 sm:$0xf] }
 0x46e   :  { %2195 = vrot.lane.b32.xlu0 %v2158_v54, %s13416_s24  ;;  %v2116_v20 = vpop.permute.xlu0 %2115  ;;  %2193 = vrot.lane.b32.xlu1 %v2157_v18, %s13416_s24  ;;  %v2039_v61 = vpop.permute.xlu1 %2038  ;;  %v13033_v17 = vld [vmem:[%s19342_s4 + $0x41] ss:$8 sm:$0x10] }
 0x46f   :  { %v2132_v63 = vsel %vm2121_vm13, %v2114_v21, %v2116_v20  ;;  %v2133_v19 = vsel %vm2121_vm13, %v2116_v20, %v2118_v16  ;;  %v2249_v34 = vrot.slane %v14564_v29, %v14090_v59  ;;  %v2253_v28 = vrot.slane %v14564_v29, %v14092_v23 }
 0x470   :  { %v2159_v60 = vmax.f32 %v14469_v52, %v2132_v63  ;;  %v2160_v56 = vmax.f32 %v14490_v44, %v2133_v19  ;;  %v2257_v18 = vrot.slane %v14564_v29, %v14107_v62  ;;  %vm2472_vm13 = vcmask 506880  }
 0x472   :  { %2197 = vrot.lane.b32.xlu1 %v2159_v60, %s13416_s24  ;;  %2199 = vrot.lane.b32.xlu0 %v2160_v56, %s13416_s24  ;;  %v2029_v15 = vpop.permute.xlu0 %2028  ;;  %v2043_v52 = vpop.permute.xlu1 %2042 }
 0x473   :  { %v2054_v1 = vsel %vm655_vm5, %v14509_v57, %v2029_v15  ;;  %v2055_v39 = vsel %vm655_vm5, %v2029_v15, %v2031_v38 }
 0x474   :  { %v2080_v25 = vmax.f32 %v14321_v42, %v2054_v1  ;;  %v2081_v48 = vmax.f32 %v14343_v49, %v2055_v39  ;;  %v2261_v49 = vrot.slane %v14564_v29, %v14123_v40  ;;  %v1821_v39 = vor.u32 %v13033_v17, %v13032_v41 }
 0x476   :  { %2201 = vrot.lane.b32.xlu1 %v2161_v4, %s13416_s24  ;;  %v2033_v22 = vpop.permute.xlu0 %2032  ;;  %v14550_v44 = vpop.permute.xlu1 %2046 }
 0x477   :  { %v2056_v21 = vsel %vm655_vm5, %v2031_v38, %v2033_v22  ;;  %v2057_v16 = vsel %vm655_vm5, %v2033_v22, %v2035_v43 }
 0x478   :  { %v2082_v57 = vmax.f32 %v14362_v14, %v2056_v21  ;;  %v2265_v14 = vrot.slane %v14564_v29, %v14125_v10  ;;  %v2083_v6 = vmax.f32 %v14376_v11, %v2057_v16 }
 0x47a   :  { %v2037_v9 = vpop.permute.xlu0 %2036  ;;  %v14560_v45 = vpop.permute.xlu1 %2050 }
 0x47b   :  { %v2058_v20 = vsel %vm655_vm5, %v2035_v43, %v2037_v9  ;;  %v2059_v1 = vsel %vm655_vm5, %v2037_v9, %v2039_v61  ;;  %v2273_v9 = vrot.slane %v14564_v29, %v14162_v36 }
 0x47c   :  { %v2084_v4 = vmax.f32 %v14394_v55, %v2058_v20 }
 0x47e   :  { %v2041_v7 = vpop.permute.xlu0 %2040 }
 0x47f   :  { %v2060_v11 = vsel %vm655_vm5, %v2039_v61, %v2041_v7  ;;  %v2085_v61 = vmax.f32 %v14403_v32, %v2059_v1  ;;  %v2281_v32 = vrot.slane %v1821_v39, %v14090_v59 }
 0x480   :  { %v2086_v21 = vmax.f32 %v14319_v58, %v2060_v11  ;;  %v2277_v58 = vrot.slane %v14564_v29, %v14178_v47  ;;  %v2066_v11 = vsel %vm655_vm5, %v14560_v45, %v14512_v2  ;;  %v2297_v2 = vrot.slane %v1821_v39, %v14125_v10 }
 0x482   :  { %v14548_v0 = vpop.permute.xlu0 %2044 }
 0x486   :  { %v14552_v5 = vpop.permute.xlu0 %2048 }
 0x4c7   :  { %v14562_v33 = vpop.permute.xlu0 %2203 }
 0x4d0   :  { %v2180_v8 = vpop.permute.xlu0 %2179  ;;  %v2178_v3 = vpop.permute.xlu1 %2177 }
 0x4d1   :  { %v2205_v13 = vsel %vm847_vm3, %v2178_v3, %v2180_v8  ;;  %v2269_v3 = vrot.slane %v14564_v29, %v14142_v12  ;;  %v2064_v29 = vsel %vm655_vm5, %v14550_v44, %v14552_v5 }
 0x4d2   :  { %v2231_v37 = vmax.f32 %v2080_v25, %v2205_v13 }
 0x4d4   :  { %v14578_v42 = vmul.f32 %v2249_v34, %v2231_v37  ;;  %v2184_v31 = vpop.permute.xlu0 %2183  ;;  %v2182_v54 = vpop.permute.xlu1 %2181 }
 0x4d5   :  { %v2206_v63 = vsel %vm847_vm3, %v2180_v8, %v2182_v54  ;;  %v2207_v19 = vsel %vm847_vm3, %v2182_v54, %v2184_v31 }
 0x4d6   :  { %19400 = vst [vmem:[#allocation6_spill] sm:$0xff] %v14578_v42  ;;  %v2232_v60 = vmax.f32 %v2081_v48, %v2206_v63  ;;  %v2233_v56 = vmax.f32 %v2082_v57, %v2207_v19  ;;  %2350 = vrot.lane.b32.xlu1 %v14578_v42, %s13411_s22  ;;  %v2061_v57 = vsel %vm655_vm5, %v2041_v7, %v2043_v52 }
 0x4d7   :  { %v2087_v7 = vmax.f32 %v14410_v30, %v2061_v57 }
 0x4d8   :  { %v14594_v15 = vmul.f32 %v2253_v28, %v2232_v60  ;;  %v14596_v38 = vmul.f32 %v2257_v18, %v2233_v56  ;;  %v2188_v22 = vpop.permute.xlu0 %2187  ;;  %v2186_v43 = vpop.permute.xlu1 %2185 }
 0x4d9   :  { %v2208_v55 = vsel %vm847_vm3, %v2184_v31, %v2186_v43  ;;  %v2209_v25 = vsel %vm847_vm3, %v2186_v43, %v2188_v22  ;;  %v2062_v31 = vsel %vm655_vm5, %v2043_v52, %v14548_v0 }
 0x4da   :  { %19401 = vst [vmem:[#allocation7_spill] sm:$0xff] %v14594_v15  ;;  %19402 = vst [vmem:[#allocation8_spill] sm:$0xff] %v14596_v38  ;;  %v2234_v8 = vmax.f32 %v2083_v6, %v2208_v55  ;;  %v2235_v34 = vmax.f32 %v2084_v4, %v2209_v25  ;;  %2354 = vrot.lane.b32.xlu1 %v14596_v38, %s13411_s22  ;;  %2352 = vrot.lane.b32.xlu0 %v14594_v15, %s13411_s22 }
 0x4db   :  { %v2088_v52 = vmax.f32 %v14341_v50, %v2062_v31  ;;  %v2285_v4 = vrot.slane %v1821_v39, %v14092_v23  ;;  %v2065_v55 = vsel %vm655_vm5, %v14552_v5, %v14560_v45 }
 0x4dc   :  { %v14618_v13 = vmul.f32 %v2261_v49, %v2234_v8  ;;  %v14620_v37 = vmul.f32 %v2265_v14, %v2235_v34  ;;  %v2192_v28 = vpop.permute.xlu0 %2191  ;;  %v2190_v48 = vpop.permute.xlu1 %2189  ;;  %v2063_v49 = vsel %vm655_vm5, %v14548_v0, %v14550_v44  ;;  %v2289_v0 = vrot.slane %v1821_v39, %v14107_v62 }
 0x4dd   :  { %v2210_v18 = vsel %vm847_vm3, %v2188_v22, %v2190_v48  ;;  %v2211_v54 = vsel %vm847_vm3, %v2190_v48, %v2192_v28  ;;  %v2089_v22 = vmax.f32 %v14418_v53, %v2063_v49  ;;  %v2090_v44 = vmax.f32 %v14356_v51, %v2064_v29 }
 0x4de   :  { %19403 = vst [vmem:[#allocation9_spill] sm:$0xff] %v14618_v13  ;;  %19404 = vst [vmem:[#allocation10_spill] sm:$0xff] %v14620_v37  ;;  %v2236_v16 = vmax.f32 %v2085_v61, %v2210_v18  ;;  %v2237_v20 = vmax.f32 %v2086_v21, %v2211_v54  ;;  %2358 = vrot.lane.b32.xlu1 %v14620_v37, %s13411_s22  ;;  %2356 = vrot.lane.b32.xlu0 %v14618_v13, %s13411_s22 }
 0x4df   :  { %v2293_v34 = vrot.slane %v1821_v39, %v14123_v40  ;;  %v2091_v5 = vmax.f32 %v14425_v35, %v2065_v55 }
 0x4e0   :  { %v14636_v63 = vmul.f32 %v2269_v3, %v2236_v16  ;;  %v14638_v19 = vmul.f32 %v2273_v9, %v2237_v20  ;;  %v2196_v60 = vpop.permute.xlu0 %2195  ;;  %v2194_v56 = vpop.permute.xlu1 %2193  ;;  %v2092_v3 = vmax.f32 %v14374_v26, %v2066_v11 }
 0x4e1   :  { %v2212_v14 = vsel %vm847_vm3, %v2192_v28, %v2194_v56  ;;  %v2213_v30 = vsel %vm847_vm3, %v2194_v56, %v2196_v60 }
 0x4e2   :  { %19405 = vst [vmem:[#allocation11_spill] sm:$0xff] %v14636_v63  ;;  %19406 = vst [vmem:[#allocation12_spill] sm:$0xff] %v14638_v19  ;;  %v2238_v6 = vmax.f32 %v2087_v7, %v2212_v14  ;;  %v2239_v50 = vmax.f32 %v2088_v52, %v2213_v30  ;;  %2362 = vrot.lane.b32.xlu1 %v14638_v19, %s13411_s22  ;;  %2360 = vrot.lane.b32.xlu0 %v14636_v63, %s13411_s22 }
 0x4e4   :  { %v14656_v43 = vmul.f32 %v2277_v58, %v2238_v6  ;;  %v14658_v41 = vmul.f32 %v2281_v32, %v2239_v50  ;;  %v2200_v17 = vpop.permute.xlu0 %2199  ;;  %v2198_v1 = vpop.permute.xlu1 %2197 }
 0x4e5   :  { %v2214_v25 = vsel %vm847_vm3, %v2196_v60, %v2198_v1  ;;  %v2215_v53 = vsel %vm847_vm3, %v2198_v1, %v2200_v17 }
 0x4e6   :  { %19407 = vst [vmem:[#allocation13_spill] sm:$0xff] %v14656_v43  ;;  %19408 = vst [vmem:[#allocation14_spill] sm:$0xff] %v14658_v41  ;;  %v2240_v8 = vmax.f32 %v2089_v22, %v2214_v25  ;;  %v2241_v51 = vmax.f32 %v2090_v44, %v2215_v53  ;;  %2366 = vrot.lane.b32.xlu1 %v14658_v41, %s13411_s22  ;;  %2364 = vrot.lane.b32.xlu0 %v14656_v43, %s13411_s22 }
 0x4e8   :  { %v14676_v45 = vmul.f32 %v2285_v4, %v2240_v8  ;;  %v14678_v9 = vmul.f32 %v2289_v0, %v2241_v51  ;;  %v2202_v61 = vpop.permute.xlu1 %2201 }
 0x4e9   :  { %v2216_v21 = vsel %vm847_vm3, %v2200_v17, %v2202_v61  ;;  %v2217_v28 = vsel %vm847_vm3, %v2202_v61, %v14562_v33 }
 0x4ea   :  { %19409 = vst [vmem:[#allocation15_spill] sm:$0xff] %v14676_v45  ;;  %19410 = vst [vmem:[#allocation16_spill] sm:$0xff] %v14678_v9  ;;  %v2242_v48 = vmax.f32 %v2091_v5, %v2216_v21  ;;  %v2243_v57 = vmax.f32 %v2092_v3, %v2217_v28  ;;  %2370 = vrot.lane.b32.xlu1 %v14678_v9, %s13411_s22  ;;  %2368 = vrot.lane.b32.xlu0 %v14676_v45, %s13411_s22 }
 0x4ec   :  { %v14687_v26 = vmul.f32 %v2293_v34, %v2242_v48  ;;  %v14689_v35 = vmul.f32 %v2297_v2, %v2243_v57 }
 0x4ee   :  { %19411 = vst [vmem:[#allocation17_spill] sm:$0xff] %v14687_v26  ;;  %19412 = vst [vmem:[#allocation18_spill] sm:$0xff] %v14689_v35  ;;  %2374 = vrot.lane.b32.xlu1 %v14689_v35, %s13411_s22  ;;  %2372 = vrot.lane.b32.xlu0 %v14687_v26, %s13411_s22 }
 0x548   :  { %v2351_v39 = vpop.permute.xlu1 %2350 }
 0x549   :  { %2402 = vst.msk [vmem:[#allocation2 + $0x8] sm:$0xff] %vm23_vm1, %v2351_v39 }
 0x54c   :  { %v2355_v33 = vpop.permute.xlu1 %2354  ;;  %v2353_v7 = vpop.permute.xlu0 %2352 }
 0x54d   :  { %v2376_v52 = vsel %vm21_vm0, %v2351_v39, %v2353_v7  ;;  %v2377_v60 = vsel %vm21_vm0, %v2353_v7, %v2355_v33 }
 0x550   :  { %v2359_v31 = vpop.permute.xlu1 %2358  ;;  %v3181_v18 = vld [vmem:[#allocation2 + $0x8] sm:$0xff]  ;;  %v2357_v56 = vpop.permute.xlu0 %2356 }
 0x551   :  { %3209 = vrot.lane.b32.xlu0 %v3181_v18, %s13426_s17  ;;  %3114 = vrot.lane.b32.xlu1 %v3181_v18, %s13425_s16  ;;  %v2378_v49 = vsel %vm21_vm0, %v2355_v33, %v2357_v56  ;;  %v2379_v29 = vsel %vm21_vm0, %v2357_v56, %v2359_v31 }
 0x554   :  { %v14698_v54 = vpop.permute.xlu1 %2362  ;;  %v2361_v14 = vpop.permute.xlu0 %2360 }
 0x555   :  { %3019 = vrot.lane.b32.xlu0 %v3181_v18, %s13427_s18  ;;  %2923 = vrot.lane.b32.xlu1 %v3181_v18, %s13429_s12  ;;  %v14747_v30 = vsel %vm21_vm0, %v2361_v14, %v14698_v54  ;;  %v2380_v6 = vsel %vm21_vm0, %v2359_v31, %v2361_v14 }
 0x558   :  { %v14702_v16 = vpop.permute.xlu1 %2366  ;;  %v2365_v50 = vpop.permute.xlu0 %2364 }
 0x559   :  { %2828 = vrot.lane.b32.xlu0 %v3181_v18, %s13419_s27  ;;  %2732 = vrot.lane.b32.xlu1 %v3181_v18, %s13430_s13  ;;  %v14794_v53 = vsel %vm21_vm0, %v2365_v50, %v14702_v16  ;;  %v14805_v34 = vsel %vm21_vm0, %v14698_v54, %v2365_v50 }
 0x55c   :  { %v14706_v20 = vpop.permute.xlu1 %2370  ;;  %v2369_v4 = vpop.permute.xlu0 %2368 }
 0x55d   :  { %2638 = vrot.lane.b32.xlu0 %v3181_v18, %s13426_s17  ;;  %2542 = vrot.lane.b32.xlu1 %v3181_v18, %s13425_s16  ;;  %v14831_v48 = vsel %vm21_vm0, %v2369_v4, %v14706_v20  ;;  %v14841_v33 = vsel %vm21_vm0, %v14702_v16, %v2369_v4 }
 0x560   :  { %v14710_v58 = vpop.permute.xlu1 %2374  ;;  %v14773_v0 = vpop.permute.xlu0 %2372 }
 0x561   :  { %2415 = vst.msk [vmem:[#allocation2 + $0x70] sm:$0xff] %vm21_vm0, %v14710_v58  ;;  %2446 = vrot.lane.b32.xlu0 %v3181_v18, %s13427_s18 }
 0x568   :  { %v3194_v32 = vld [vmem:[#allocation2 + $0x70] sm:$0xff] }
 0x569   :  { %3235 = vrot.lane.b32.xlu1 %v3194_v32, %s13426_s17  ;;  %3140 = vrot.lane.b32.xlu0 %v3194_v32, %s13425_s16 }
 0x56d   :  { %3045 = vrot.lane.b32.xlu1 %v3194_v32, %s13427_s18  ;;  %2949 = vrot.lane.b32.xlu0 %v3194_v32, %s13429_s12 }
 0x571   :  { %2854 = vrot.lane.b32.xlu1 %v3194_v32, %s13419_s27  ;;  %2758 = vrot.lane.b32.xlu0 %v3194_v32, %s13430_s13 }
 0x575   :  { %3213 = vrot.lane.b32.xlu1 %v2377_v60, %s13426_s17  ;;  %3211 = vrot.lane.b32.xlu0 %v2376_v52, %s13426_s17 }
 0x579   :  { %3116 = vrot.lane.b32.xlu1 %v2376_v52, %s13425_s16  ;;  %3118 = vrot.lane.b32.xlu0 %v2377_v60, %s13425_s16 }
 0x57d   :  { %3023 = vrot.lane.b32.xlu1 %v2377_v60, %s13427_s18  ;;  %3021 = vrot.lane.b32.xlu0 %v2376_v52, %s13427_s18 }
 0x581   :  { %2925 = vrot.lane.b32.xlu1 %v2376_v52, %s13429_s12  ;;  %2927 = vrot.lane.b32.xlu0 %v2377_v60, %s13429_s12 }
 0x585   :  { %2832 = vrot.lane.b32.xlu1 %v2377_v60, %s13419_s27  ;;  %2830 = vrot.lane.b32.xlu0 %v2376_v52, %s13419_s27 }
 0x589   :  { %2734 = vrot.lane.b32.xlu1 %v2376_v52, %s13430_s13  ;;  %2736 = vrot.lane.b32.xlu0 %v2377_v60, %s13430_s13 }
 0x58d   :  { %2640 = vrot.lane.b32.xlu1 %v2376_v52, %s13426_s17  ;;  %2544 = vrot.lane.b32.xlu0 %v2376_v52, %s13425_s16 }
 0x591   :  { %3215 = vrot.lane.b32.xlu1 %v2378_v49, %s13426_s17  ;;  %3217 = vrot.lane.b32.xlu0 %v2379_v29, %s13426_s17 }
 0x595   :  { %2448 = vrot.lane.b32.xlu1 %v2376_v52, %s13427_s18  ;;  %3120 = vrot.lane.b32.xlu0 %v2378_v49, %s13425_s16 }
 0x599   :  { %3122 = vrot.lane.b32.xlu1 %v2379_v29, %s13425_s16  ;;  %3027 = vrot.lane.b32.xlu0 %v2379_v29, %s13427_s18 }
 0x59d   :  { %3025 = vrot.lane.b32.xlu1 %v2378_v49, %s13427_s18  ;;  %3221 = vrot.lane.b32.xlu0 %v14747_v30, %s13426_s17 }
 0x5a1   :  { %3219 = vrot.lane.b32.xlu1 %v2380_v6, %s13426_s17  ;;  %2931 = vrot.lane.b32.xlu0 %v2379_v29, %s13429_s12 }
 0x5a5   :  { %2929 = vrot.lane.b32.xlu1 %v2378_v49, %s13429_s12  ;;  %3126 = vrot.lane.b32.xlu0 %v14747_v30, %s13425_s16 }
 0x5a9   :  { %3124 = vrot.lane.b32.xlu1 %v2380_v6, %s13425_s16  ;;  %2836 = vrot.lane.b32.xlu0 %v2379_v29, %s13419_s27 }
 0x5ad   :  { %2834 = vrot.lane.b32.xlu1 %v2378_v49, %s13419_s27  ;;  %3031 = vrot.lane.b32.xlu0 %v14747_v30, %s13427_s18 }
 0x5b1   :  { %3029 = vrot.lane.b32.xlu1 %v2380_v6, %s13427_s18  ;;  %2740 = vrot.lane.b32.xlu0 %v2379_v29, %s13430_s13 }
 0x5b5   :  { %2738 = vrot.lane.b32.xlu1 %v2378_v49, %s13430_s13  ;;  %2935 = vrot.lane.b32.xlu0 %v14747_v30, %s13429_s12 }
 0x5b9   :  { %2933 = vrot.lane.b32.xlu1 %v2380_v6, %s13429_s12  ;;  %2644 = vrot.lane.b32.xlu0 %v2378_v49, %s13426_s17 }
 0x5bd   :  { %2642 = vrot.lane.b32.xlu1 %v2377_v60, %s13426_s17  ;;  %2840 = vrot.lane.b32.xlu0 %v14747_v30, %s13419_s27 }
 0x5c1   :  { %2838 = vrot.lane.b32.xlu1 %v2380_v6, %s13419_s27  ;;  %2548 = vrot.lane.b32.xlu0 %v2378_v49, %s13425_s16 }
 0x5c3   :  { %v3210_v22 = vpop.permute.xlu0 %3209  ;;  %v3115_v44 = vpop.permute.xlu1 %3114 }
 0x5c5   :  { %2546 = vrot.lane.b32.xlu1 %v2377_v60, %s13425_s16  ;;  %2744 = vrot.lane.b32.xlu0 %v14747_v30, %s13430_s13 }
 0x5c7   :  { %v3020_v17 = vpop.permute.xlu0 %3019  ;;  %v2924_v1 = vpop.permute.xlu1 %2923 }
 0x5c9   :  { %2742 = vrot.lane.b32.xlu1 %v2380_v6, %s13430_s13  ;;  %2452 = vrot.lane.b32.xlu0 %v2378_v49, %s13427_s18 }
 0x5cb   :  { %v14782_v11 = vpop.permute.xlu0 %2828  ;;  %v14786_v55 = vpop.permute.xlu1 %2732 }
 0x5cd   :  { %2450 = vrot.lane.b32.xlu1 %v2377_v60, %s13427_s18  ;;  %2648 = vrot.lane.b32.xlu0 %v2380_v6, %s13426_s17 }
 0x5cf   :  { %v14788_v25 = vpop.permute.xlu0 %2638  ;;  %v14799_v8 = vpop.permute.xlu1 %2542 }
 0x5d1   :  { %2646 = vrot.lane.b32.xlu1 %v2379_v29, %s13426_s17  ;;  %2552 = vrot.lane.b32.xlu0 %v2380_v6, %s13425_s16 }
 0x5d3   :  { %v14801_v51 = vpop.permute.xlu0 %2446 }
 0x5d5   :  { %2550 = vrot.lane.b32.xlu1 %v2379_v29, %s13425_s16  ;;  %3225 = vrot.lane.b32.xlu0 %v14794_v53, %s13426_s17 }
 0x5d9   :  { %3223 = vrot.lane.b32.xlu1 %v14805_v34, %s13426_s17  ;;  %2456 = vrot.lane.b32.xlu0 %v2380_v6, %s13427_s18 }
 0x5db   :  { %v14810_v2 = vpop.permute.xlu0 %3140  ;;  %v14812_v3 = vpop.permute.xlu1 %3235 }
 0x5dd   :  { %2454 = vrot.lane.b32.xlu1 %v2379_v29, %s13427_s18  ;;  %3130 = vrot.lane.b32.xlu0 %v14794_v53, %s13425_s16 }
 0x5df   :  { %v14817_v5 = vpop.permute.xlu0 %2949  ;;  %v14819_v61 = vpop.permute.xlu1 %3045 }
 0x5e1   :  { %3128 = vrot.lane.b32.xlu1 %v14805_v34, %s13425_s16  ;;  %3035 = vrot.lane.b32.xlu0 %v14794_v53, %s13427_s18 }
 0x5e3   :  { %v14825_v21 = vpop.permute.xlu0 %2758  ;;  %v14827_v28 = vpop.permute.xlu1 %2854 }
 0x5e5   :  { %3033 = vrot.lane.b32.xlu1 %v14805_v34, %s13427_s18  ;;  %3229 = vrot.lane.b32.xlu0 %v14831_v48, %s13426_s17 }
 0x5e7   :  { %v3212_v57 = vpop.permute.xlu0 %3211  ;;  %v14837_v39 = vpop.permute.xlu1 %3213 }
 0x5e8   :  { %v3238_v31 = vsel %vm2664_vm14, %v3212_v57, %v14837_v39  ;;  %v3237_v18 = vsel %vm2664_vm14, %v3210_v22, %v3212_v57 }
 0x5e9   :  { %3227 = vrot.lane.b32.xlu1 %v14841_v33, %s13426_s17  ;;  %2939 = vrot.lane.b32.xlu0 %v14794_v53, %s13429_s12 }
 0x5ea   :  { %3424 = vmatprep.subr.mxu1 %v3238_v31 }
 0x5eb   :  { %3425 = vmatpush1.msra.mxu1 %v3237_v18  ;;  %v14850_v54 = vpop.permute.xlu0 %3118  ;;  %v3117_v32 = vpop.permute.xlu1 %3116 }
 0x5ec   :  { %v3143_v16 = vsel %vm2568_vm15, %v3117_v32, %v14850_v54  ;;  %v3142_v7 = vsel %vm2568_vm15, %v3115_v44, %v3117_v32 }
 0x5ed   :  { %2937 = vrot.lane.b32.xlu1 %v14805_v34, %s13429_s12  ;;  %3134 = vrot.lane.b32.xlu0 %v14831_v48, %s13425_s16 }
 0x5ee   :  { %3426 = vmatprep.subr.mxu1 %v3143_v16 }
 0x5ef   :  { %3427 = vmatpush1.msra.mxu1 %v3142_v7  ;;  %v3022_v52 = vpop.permute.xlu0 %3021  ;;  %v14859_v60 = vpop.permute.xlu1 %3023 }
 0x5f0   :  { %v3048_v56 = vsel %vm2472_vm13, %v3022_v52, %v14859_v60  ;;  %v3047_v49 = vsel %vm2472_vm13, %v3020_v17, %v3022_v52 }
 0x5f1   :  { %3132 = vrot.lane.b32.xlu1 %v14841_v33, %s13425_s16  ;;  %2844 = vrot.lane.b32.xlu0 %v14794_v53, %s13419_s27 }
 0x5f2   :  { %3428 = vmatprep.subr.mxu1 %v3048_v56 }
 0x5f3   :  { %3429 = vmatpush1.msra.mxu1 %v3047_v49  ;;  %v14868_v29 = vpop.permute.xlu0 %2927  ;;  %v2926_v14 = vpop.permute.xlu1 %2925  ;;  %v2569_v49 = vsel %vm2568_vm15, %v14431_v24, %v14799_v8 }
 0x5f4   :  { %v2953_v6 = vsel %vm2951_vm10, %v2926_v14, %v14868_v29  ;;  %v2952_v50 = vsel %vm2951_vm10, %v2924_v1, %v2926_v14 }
 0x5f5   :  { %2842 = vrot.lane.b32.xlu1 %v14805_v34, %s13419_s27  ;;  %3039 = vrot.lane.b32.xlu0 %v14831_v48, %s13427_s18 }
 0x5f6   :  { %3430 = vmatprep.subr.mxu1 %v2953_v6 }
 0x5f7   :  { %3431 = vmatpush1.msra.mxu1 %v2952_v50  ;;  %v2831_v4 = vpop.permute.xlu0 %2830  ;;  %v14877_v22 = vpop.permute.xlu1 %2832 }
 0x5f8   :  { %v2857_v44 = vsel %vm559_vm6, %v2831_v4, %v14877_v22  ;;  %v2856_v17 = vsel %vm559_vm6, %v14782_v11, %v2831_v4 }
 0x5f9   :  { %3037 = vrot.lane.b32.xlu1 %v14841_v33, %s13427_s18  ;;  %2748 = vrot.lane.b32.xlu0 %v14794_v53, %s13430_s13 }
 0x5fa   :  { %3432 = vmatprep.subr.mxu1 %v2857_v44 }
 0x5fb   :  { %3433 = vmatpush1.msra.mxu1 %v2856_v17  ;;  %v14887_v1 = vpop.permute.xlu0 %2736  ;;  %v2735_v57 = vpop.permute.xlu1 %2734  ;;  %v14944_v17 = vld [vmem:[#allocation2] sm:$0xff] }
 0x5fc   :  { %v2762_v31 = vsel %vm2760_vm9, %v2735_v57, %v14887_v1  ;;  %v2761_v18 = vsel %vm2760_vm9, %v14786_v55, %v2735_v57  ;;  %v2665_v55 = vsel %vm2664_vm14, %v14429_v27, %v14788_v25 }
 0x5fd   :  { %2746 = vrot.lane.b32.xlu1 %v14805_v34, %s13430_s13  ;;  %2943 = vrot.lane.b32.xlu0 %v14831_v48, %s13429_s12 }
 0x5fe   :  { %3434 = vmatprep.subr.mxu1 %v2762_v31 }
 0x5ff   :  { %3435 = vmatpush1.msra.mxu1 %v2761_v18  ;;  %v14897_v11 = vpop.permute.xlu0 %2544  ;;  %v14899_v32 = vpop.permute.xlu1 %2640 }
 0x600   :  { %v2666_v16 = vsel %vm2664_vm14, %v14788_v25, %v14899_v32  ;;  %v2570_v52 = vsel %vm2568_vm15, %v14799_v8, %v14897_v11  ;;  %v14932_v8 = vld [vmem:[%s19340_s1 + $0x8] sm:$0xff] }
 0x601   :  { %2941 = vrot.lane.b32.xlu1 %v14841_v33, %s13429_s12  ;;  %2652 = vrot.lane.b32.xlu0 %v14805_v34, %s13426_s17 }
 0x602   :  { %3436 = vmatprep.subr.mxu1 %v2666_v16 }
 0x603   :  { %3437 = vmatpush1.msra.mxu1 %v2665_v55  ;;  %v3218_v7 = vpop.permute.xlu0 %3217  ;;  %v3216_v56 = vpop.permute.xlu1 %3215 }
 0x604   :  { %3438 = vmatprep.subr.mxu1 %v2570_v52  ;;  %v3240_v14 = vsel %vm2664_vm14, %v3216_v56, %v3218_v7  ;;  %v3239_v6 = vsel %vm2664_vm14, %v14837_v39, %v3216_v56  ;;  %v2473_v39 = vsel %vm2472_vm13, %v14433_v46, %v14801_v51 }
 0x605   :  { %3439 = vmatpush1.msra.mxu1 %v2569_v49  ;;  %2650 = vrot.lane.b32.xlu1 %v14747_v30, %s13426_s17 }
 0x606   :  { %2848 = vrot.lane.b32.xlu0 %v14831_v48, %s13419_s27  ;;  %3495 = vmatprep.subr.mxu0 %v3240_v14 }
 0x607   :  { %3496 = vmatpush1.msra.mxu0 %v3239_v6  ;;  %v3121_v27 = vpop.permute.xlu0 %3120  ;;  %v14924_v25 = vpop.permute.xlu1 %2448 }
 0x608   :  { %v2474_v24 = vsel %vm2472_vm13, %v14801_v51, %v14924_v25  ;;  %v3144_v46 = vsel %vm2568_vm15, %v14850_v54, %v3121_v27 }
 0x609   :  { %2846 = vrot.lane.b32.xlu1 %v14841_v33, %s13419_s27  ;;  %3440 = vmatprep.subr.mxu1 %v2474_v24 }
 0x60a   :  { %2556 = vrot.lane.b32.xlu0 %v14805_v34, %s13425_s16  ;;  %3441 = vmatpush1.msra.mxu1 %v2473_v39  ;;  %v14995_v39 = vsel %vm21_vm0, %v14706_v20, %v14773_v0 }
 0x60b   :  { %v3028_v50 = vpop.permute.xlu0 %3027  ;;  %v3123_v4 = vpop.permute.xlu1 %3122  ;;  %13041 = vmatmul.mubr.msk.f32.vlgmr.msra.gmra.mxu1 %vm1114_vm11, %v14932_v8 }
 0x60c   :  { %v3145_v44 = vsel %vm2568_vm15, %v3121_v27, %v3123_v4  ;;  %3616 = vmatprep.mubr.f32.mxu1 %v14944_v17  ;;  %v14984_v27 = vsel %vm21_vm0, %v14773_v0, %v14710_v58 }
 0x60d   :  { %2554 = vrot.lane.b32.xlu1 %v14747_v30, %s13425_s16  ;;  %3497 = vmatprep.subr.mxu0 %v3145_v44 }
 0x60e   :  { %2752 = vrot.lane.b32.xlu0 %v14831_v48, %s13430_s13  ;;  %3498 = vmatpush1.msra.mxu0 %v3144_v46 }
 0x60f   :  { %v14953_v51 = vpop.permute.xlu0 %3221  ;;  %v3026_v57 = vpop.permute.xlu1 %3025 }
 0x610   :  { %v3050_v31 = vsel %vm2472_vm13, %v3026_v57, %v3028_v50  ;;  %v3049_v18 = vsel %vm2472_vm13, %v14859_v60, %v3026_v57 }
 0x611   :  { %2750 = vrot.lane.b32.xlu1 %v14841_v33, %s13430_s13  ;;  %3499 = vmatprep.subr.mxu0 %v3050_v31 }
 0x612   :  { %2460 = vrot.lane.b32.xlu0 %v14805_v34, %s13427_s18  ;;  %3500 = vmatpush1.msra.mxu0 %v3049_v18 }
 0x613   :  { %v2932_v54 = vpop.permute.xlu0 %2931  ;;  %v3220_v16 = vpop.permute.xlu1 %3219 }
 0x614   :  { %v3242_v55 = vsel %vm2664_vm14, %v3220_v16, %v14953_v51  ;;  %v3241_v52 = vsel %vm2664_vm14, %v3218_v7, %v3220_v16 }
 0x615   :  { %2458 = vrot.lane.b32.xlu1 %v14747_v30, %s13427_s18  ;;  %3566 = vmatprep.subr.mxu1 %v3242_v55 }
 0x616   :  { %2656 = vrot.lane.b32.xlu0 %v14841_v33, %s13426_s17  ;;  %3567 = vmatpush1.msra.mxu1 %v3241_v52 }
 0x617   :  { %v14969_v60 = vpop.permute.xlu0 %3126  ;;  %v2930_v56 = vpop.permute.xlu1 %2929 }
 0x618   :  { %v2955_v34 = vsel %vm2951_vm10, %v2930_v56, %v2932_v54  ;;  %v2954_v49 = vsel %vm2951_vm10, %v14868_v29, %v2930_v56 }
 0x619   :  { %2654 = vrot.lane.b32.xlu1 %v14794_v53, %s13426_s17  ;;  %3501 = vmatprep.subr.mxu0 %v2955_v34 }
 0x61a   :  { %2560 = vrot.lane.b32.xlu0 %v14841_v33, %s13425_s16  ;;  %3502 = vmatpush1.msra.mxu0 %v2954_v49 }
 0x61b   :  { %v2837_v30 = vpop.permute.xlu0 %2836  ;;  %v3125_v7 = vpop.permute.xlu1 %3124 }
 0x61c   :  { %v3147_v14 = vsel %vm2568_vm15, %v3125_v7, %v14969_v60  ;;  %v3146_v6 = vsel %vm2568_vm15, %v3123_v4, %v3125_v7 }
 0x61d   :  { %2558 = vrot.lane.b32.xlu1 %v14794_v53, %s13425_s16  ;;  %3568 = vmatprep.subr.mxu1 %v3147_v14 }
 0x61e   :  { %3233 = vrot.lane.b32.xlu0 %v14984_v27, %s13426_s17  ;;  %3569 = vmatpush1.msra.mxu1 %v3146_v6 }
 0x61f   :  { %v14990_v29 = vpop.permute.xlu0 %3031  ;;  %v2835_v24 = vpop.permute.xlu1 %2834 }
 0x620   :  { %v2859_v4 = vsel %vm559_vm6, %v2835_v24, %v2837_v30  ;;  %v2858_v58 = vsel %vm559_vm6, %v14877_v22, %v2835_v24 }
 0x621   :  { %3231 = vrot.lane.b32.xlu1 %v14995_v39, %s13426_s17  ;;  %3503 = vmatprep.subr.mxu0 %v2859_v4 }
 0x622   :  { %2464 = vrot.lane.b32.xlu0 %v14841_v33, %s13427_s18  ;;  %3504 = vmatpush1.msra.mxu0 %v2858_v58 }
 0x623   :  { %v2741_v44 = vpop.permute.xlu0 %2740  ;;  %v3030_v46 = vpop.permute.xlu1 %3029 }
 0x624   :  { %v3052_v57 = vsel %vm2472_vm13, %v3030_v46, %v14990_v29  ;;  %v3051_v20 = vsel %vm2472_vm13, %v3028_v50, %v3030_v46 }
 0x625   :  { %2462 = vrot.lane.b32.xlu1 %v14794_v53, %s13427_s18  ;;  %3570 = vmatprep.subr.mxu1 %v3052_v57 }
 0x626   :  { %3138 = vrot.lane.b32.xlu0 %v14984_v27, %s13425_s16  ;;  %3571 = vmatpush1.msra.mxu1 %v3051_v20 }
 0x627   :  { %v15011_v0 = vpop.permute.xlu0 %2935  ;;  %v2739_v22 = vpop.permute.xlu1 %2738 }
 0x628   :  { %v2764_v33 = vsel %vm2760_vm9, %v2739_v22, %v2741_v44  ;;  %v2763_v31 = vsel %vm2760_vm9, %v14887_v1, %v2739_v22 }
 0x629   :  { %3136 = vrot.lane.b32.xlu1 %v14995_v39, %s13425_s16  ;;  %3505 = vmatprep.subr.mxu0 %v2764_v33 }
 0x62a   :  { %3043 = vrot.lane.b32.xlu0 %v14984_v27, %s13427_s18  ;;  %3506 = vmatpush1.msra.mxu0 %v2763_v31  ;;  %v13431_v31 = vmov 3  }
 0x62b   :  { %v2645_v53 = vpop.permute.xlu0 %2644  ;;  %v2934_v50 = vpop.permute.xlu1 %2933  ;;  %13367 = vset.pattern.permute.xlu0 %v13431_v31 }
 0x62c   :  { %v2957_v18 = vsel %vm2951_vm10, %v2934_v50, %v15011_v0  ;;  %v2956_v16 = vsel %vm2951_vm10, %v2932_v54, %v2934_v50 }
 0x62d   :  { %3041 = vrot.lane.b32.xlu1 %v14995_v39, %s13427_s18  ;;  %3572 = vmatprep.subr.mxu1 %v2957_v18 }
 0x62e   :  { %2945 = vrot.lane.b32.xlu0 %v14995_v39, %s13429_s12  ;;  %3573 = vmatpush1.msra.mxu1 %v2956_v16  ;;  %v15083_v16 = vld [vmem:[%s19341_s3] sm:$0xff] }
 0x62f   :  { %v15027_v1 = vpop.permute.xlu0 %2840  ;;  %v2643_v55 = vpop.permute.xlu1 %2642 }
 0x630   :  { %v2668_v52 = vsel %vm2664_vm14, %v2643_v55, %v2645_v53  ;;  %v2667_v56 = vsel %vm2664_vm14, %v14899_v32, %v2643_v55 }
 0x631   :  { %2947 = vrot.lane.b32.xlu1 %v14984_v27, %s13429_s12  ;;  %3507 = vmatprep.subr.mxu0 %v2668_v52 }
 0x632   :  { %2852 = vrot.lane.b32.xlu0 %v14984_v27, %s13419_s27  ;;  %3508 = vmatpush1.msra.mxu0 %v2667_v56 }
 0x633   :  { %v2549_v54 = vpop.permute.xlu0 %2548  ;;  %v2839_v34 = vpop.permute.xlu1 %2838 }
 0x634   :  { %v2861_v49 = vsel %vm559_vm6, %v2839_v34, %v15027_v1  ;;  %v2860_v7 = vsel %vm559_vm6, %v2837_v30, %v2839_v34 }
 0x635   :  { %2850 = vrot.lane.b32.xlu1 %v14995_v39, %s13419_s27  ;;  %3574 = vmatprep.subr.mxu1 %v2861_v49 }
 0x636   :  { %2754 = vrot.lane.b32.xlu0 %v14995_v39, %s13430_s13  ;;  %3575 = vmatpush1.msra.mxu1 %v2860_v7 }
 0x637   :  { %v15043_v32 = vpop.permute.xlu0 %2744  ;;  %v2547_v14 = vpop.permute.xlu1 %2546 }
 0x638   :  { %v2572_v6 = vsel %vm2568_vm15, %v2547_v14, %v2549_v54  ;;  %v2571_v24 = vsel %vm2568_vm15, %v14897_v11, %v2547_v14 }
 0x639   :  { %2756 = vrot.lane.b32.xlu1 %v14984_v27, %s13430_s13  ;;  %3509 = vmatprep.subr.mxu0 %v2572_v6 }
 0x63a   :  { %2660 = vrot.lane.b32.xlu0 %v14995_v39, %s13426_s17  ;;  %3510 = vmatpush1.msra.mxu0 %v2571_v24 }
 0x63b   :  { %v2453_v30 = vpop.permute.xlu0 %2452  ;;  %v2743_v4 = vpop.permute.xlu1 %2742 }
 0x63c   :  { %v2766_v58 = vsel %vm2760_vm9, %v2743_v4, %v15043_v32  ;;  %v2765_v46 = vsel %vm2760_vm9, %v2741_v44, %v2743_v4 }
 0x63d   :  { %2658 = vrot.lane.b32.xlu1 %v14831_v48, %s13426_s17  ;;  %3576 = vmatprep.subr.mxu1 %v2766_v58 }
 0x63e   :  { %2562 = vrot.lane.b32.xlu0 %v14831_v48, %s13425_s16  ;;  %3577 = vmatpush1.msra.mxu1 %v2765_v46 }
 0x63f   :  { %v15059_v11 = vpop.permute.xlu0 %2648  ;;  %v2451_v57 = vpop.permute.xlu1 %2450 }
 0x640   :  { %v2476_v20 = vsel %vm2472_vm13, %v2451_v57, %v2453_v30  ;;  %v2475_v22 = vsel %vm2472_vm13, %v14924_v25, %v2451_v57 }
 0x641   :  { %2564 = vrot.lane.b32.xlu1 %v14995_v39, %s13425_s16  ;;  %3511 = vmatprep.subr.mxu0 %v2476_v20 }
 0x642   :  { %2468 = vrot.lane.b32.xlu0 %v14995_v39, %s13427_s18  ;;  %3512 = vmatpush1.msra.mxu0 %v2475_v22 }
 0x643   :  { %v15068_v44 = vpop.permute.xlu0 %2552  ;;  %v2647_v33 = vpop.permute.xlu1 %2646  ;;  %13042 = vmatmul.mubr.msk.f32.vlgmr.msra.gmra.mxu0 %vm1114_vm11, %v14932_v8 }
 0x644   :  { %v2670_v50 = vsel %vm2664_vm14, %v2647_v33, %v15059_v11  ;;  %v2669_v25 = vsel %vm2664_vm14, %v2645_v53, %v2647_v33  ;;  %3687 = vmatprep.mubr.f32.mxu0 %v14944_v17 }
 0x645   :  { %2466 = vrot.lane.b32.xlu1 %v14831_v48, %s13427_s18  ;;  %3578 = vmatprep.subr.mxu1 %v2670_v50 }
 0x646   :  { %2566 = vrot.lane.b32.xlu0 %v14984_v27, %s13425_s16  ;;  %3579 = vmatpush1.msra.mxu1 %v2669_v25 }
 0x647   :  { %v3226_v39 = vpop.permute.xlu0 %3225  ;;  %v2551_v18 = vpop.permute.xlu1 %2550 }
 0x648   :  { %v2574_v53 = vsel %vm2568_vm15, %v2551_v18, %v15068_v44  ;;  %v2573_v55 = vsel %vm2568_vm15, %v2549_v54, %v2551_v18 }
 0x649   :  { %2662 = vrot.lane.b32.xlu1 %v14984_v27, %s13426_s17  ;;  %3580 = vmatprep.subr.mxu1 %v2574_v53 }
 0x64a   :  { %3581 = vmatpush1.msra.mxu1 %v2573_v55  ;;  %3404 = vperm.xlu0 %13367, %v15083_v16  }
 0x64b   :  { %v15091_v48 = vpop.permute.xlu0 %2456  ;;  %v3224_v52 = vpop.permute.xlu1 %3223 }
 0x64c   :  { %v3244_v56 = vsel %vm2664_vm14, %v3224_v52, %v3226_v39  ;;  %v3243_v34 = vsel %vm2664_vm14, %v14953_v51, %v3224_v52 }
 0x64d   :  { %2470 = vrot.lane.b32.xlu1 %v14984_v27, %s13427_s18  ;;  %3637 = vmatprep.subr.mxu0 %v3244_v56 }
 0x64e   :  { %3638 = vmatpush1.msra.mxu0 %v3243_v34 }
 0x64f   :  { %v3131_v54 = vpop.permute.xlu0 %3130  ;;  %v2455_v49 = vpop.permute.xlu1 %2454 }
 0x650   :  { %v2478_v7 = vsel %vm2472_vm13, %v2455_v49, %v15091_v48  ;;  %v2477_v14 = vsel %vm2472_vm13, %v2453_v30, %v2455_v49 }
 0x651   :  { %3582 = vmatprep.subr.mxu1 %v2478_v7 }
 0x652   :  { %3583 = vmatpush1.msra.mxu1 %v2477_v14 }
 0x653   :  { %v3036_v6 = vpop.permute.xlu0 %3035  ;;  %v3129_v24 = vpop.permute.xlu1 %3128  ;;  %13043 = vmatmul.mubr.msk.f32.vlgmr.msra.gmra.mxu1 %vm1114_vm11, %v14932_v8 }
 0x654   :  { %v3149_v51 = vsel %vm2568_vm15, %v3129_v24, %v3131_v54  ;;  %v3148_v27 = vsel %vm2568_vm15, %v14969_v60, %v3129_v24  ;;  %3758 = vmatprep.mubr.f32.mxu1 %v14944_v17 }
 0x655   :  { %3639 = vmatprep.subr.mxu0 %v3149_v51 }
 0x656   :  { %3640 = vmatpush1.msra.mxu0 %v3148_v27 }
 0x657   :  { %v15107_v4 = vpop.permute.xlu0 %3229  ;;  %v3034_v58 = vpop.permute.xlu1 %3033 }
 0x658   :  { %v3054_v30 = vsel %vm2472_vm13, %v3034_v58, %v3036_v6  ;;  %v3053_v46 = vsel %vm2472_vm13, %v14990_v29, %v3034_v58 }
 0x659   :  { %3641 = vmatprep.subr.mxu0 %v3054_v30 }
 0x65a   :  { %3642 = vmatpush1.msra.mxu0 %v3053_v46 }
 0x65b   :  { %v2940_v57 = vpop.permute.xlu0 %2939  ;;  %v3228_v20 = vpop.permute.xlu1 %3227 }
 0x65c   :  { %v3246_v22 = vsel %vm2664_vm14, %v3228_v20, %v15107_v4  ;;  %v3245_v60 = vsel %vm2664_vm14, %v3226_v39, %v3228_v20 }
 0x65d   :  { %3708 = vmatprep.subr.mxu1 %v3246_v22 }
 0x65e   :  { %3709 = vmatpush1.msra.mxu1 %v3245_v60 }
 0x65f   :  { %v15115_v33 = vpop.permute.xlu0 %3134  ;;  %v2938_v31 = vpop.permute.xlu1 %2937 }
 0x660   :  { %v2959_v50 = vsel %vm2951_vm10, %v2938_v31, %v2940_v57  ;;  %v2958_v25 = vsel %vm2951_vm10, %v15011_v0, %v2938_v31 }
 0x661   :  { %3643 = vmatprep.subr.mxu0 %v2959_v50 }
 0x662   :  { %3644 = vmatpush1.msra.mxu0 %v2958_v25 }
 0x663   :  { %v2845_v29 = vpop.permute.xlu0 %2844  ;;  %v3133_v18 = vpop.permute.xlu1 %3132 }
 0x664   :  { %v3151_v53 = vsel %vm2568_vm15, %v3133_v18, %v15115_v33  ;;  %v3150_v55 = vsel %vm2568_vm15, %v3131_v54, %v3133_v18 }
 0x665   :  { %3710 = vmatprep.subr.mxu1 %v3151_v53 }
 0x666   :  { %3711 = vmatpush1.msra.mxu1 %v3150_v55 }
 0x667   :  { %v15123_v39 = vpop.permute.xlu0 %3039  ;;  %v2843_v52 = vpop.permute.xlu1 %2842 }
 0x668   :  { %v2863_v56 = vsel %vm559_vm6, %v2843_v52, %v2845_v29  ;;  %v2862_v34 = vsel %vm559_vm6, %v15027_v1, %v2843_v52 }
 0x669   :  { %3645 = vmatprep.subr.mxu0 %v2863_v56 }
 0x66a   :  { %3646 = vmatpush1.msra.mxu0 %v2862_v34 }
 0x66b   :  { %v2749_v0 = vpop.permute.xlu0 %2748  ;;  %v3038_v49 = vpop.permute.xlu1 %3037 }
 0x66c   :  { %v3056_v7 = vsel %vm2472_vm13, %v3038_v49, %v15123_v39  ;;  %v3055_v14 = vsel %vm2472_vm13, %v3036_v6, %v3038_v49 }
 0x66d   :  { %3712 = vmatprep.subr.mxu1 %v3056_v7 }
 0x66e   :  { %3713 = vmatpush1.msra.mxu1 %v3055_v14 }
 0x66f   :  { %v15131_v54 = vpop.permute.xlu0 %2943  ;;  %v2747_v24 = vpop.permute.xlu1 %2746 }
 0x670   :  { %v2768_v51 = vsel %vm2760_vm9, %v2747_v24, %v2749_v0  ;;  %v2767_v27 = vsel %vm2760_vm9, %v15043_v32, %v2747_v24 }
 0x671   :  { %3647 = vmatprep.subr.mxu0 %v2768_v51 }
 0x672   :  { %3648 = vmatpush1.msra.mxu0 %v2767_v27 }
 0x673   :  { %v2653_v1 = vpop.permute.xlu0 %2652  ;;  %v2942_v58 = vpop.permute.xlu1 %2941 }
 0x674   :  { %v2961_v30 = vsel %vm2951_vm10, %v2942_v58, %v15131_v54  ;;  %v2960_v46 = vsel %vm2951_vm10, %v2940_v57, %v2942_v58 }
 0x675   :  { %3714 = vmatprep.subr.mxu1 %v2961_v30 }
 0x676   :  { %3715 = vmatpush1.msra.mxu1 %v2960_v46 }
 0x677   :  { %v2651_v6 = vpop.permute.xlu1 %2650 }
 0x678   :  { %v15139_v20 = vpop.permute.xlu0 %2848  ;;  %v2672_v22 = vsel %vm2664_vm14, %v2651_v6, %v2653_v1  ;;  %v2671_v60 = vsel %vm2664_vm14, %v15059_v11, %v2651_v6 }
 0x679   :  { %3649 = vmatprep.subr.mxu0 %v2672_v22 }
 0x67a   :  { %3650 = vmatpush1.msra.mxu0 %v2671_v60 }
 0x67b   :  { %v2847_v32 = vpop.permute.xlu1 %2846 }
 0x67c   :  { %v2557_v31 = vpop.permute.xlu0 %2556  ;;  %v2865_v50 = vsel %vm559_vm6, %v2847_v32, %v15139_v20  ;;  %v2864_v25 = vsel %vm559_vm6, %v2845_v29, %v2847_v32 }
 0x67d   :  { %3716 = vmatprep.subr.mxu1 %v2865_v50 }
 0x67e   :  { %3717 = vmatpush1.msra.mxu1 %v2864_v25 }
 0x67f   :  { %v2555_v57 = vpop.permute.xlu1 %2554 }
 0x680   :  { %v15147_v18 = vpop.permute.xlu0 %2752  ;;  %v2576_v53 = vsel %vm2568_vm15, %v2555_v57, %v2557_v31  ;;  %v2575_v55 = vsel %vm2568_vm15, %v15068_v44, %v2555_v57 }
 0x681   :  { %3651 = vmatprep.subr.mxu0 %v2576_v53 }
 0x682   :  { %3652 = vmatpush1.msra.mxu0 %v2575_v55 }
 0x683   :  { %v2751_v11 = vpop.permute.xlu1 %2750 }
 0x684   :  { %v2461_v52 = vpop.permute.xlu0 %2460  ;;  %v2770_v56 = vsel %vm2760_vm9, %v2751_v11, %v15147_v18  ;;  %v2769_v34 = vsel %vm2760_vm9, %v2749_v0, %v2751_v11 }
 0x685   :  { %3718 = vmatprep.subr.mxu1 %v2770_v56 }
 0x686   :  { %3719 = vmatpush1.msra.mxu1 %v2769_v34 }
 0x687   :  { %v2459_v29 = vpop.permute.xlu1 %2458 }
 0x688   :  { %v15155_v49 = vpop.permute.xlu0 %2656  ;;  %v2480_v7 = vsel %vm2472_vm13, %v2459_v29, %v2461_v52  ;;  %v2479_v14 = vsel %vm2472_vm13, %v15091_v48, %v2459_v29 }
 0x689   :  { %3653 = vmatprep.subr.mxu0 %v2480_v7 }
 0x68a   :  { %3654 = vmatpush1.msra.mxu0 %v2479_v14 }
 0x68b   :  { %v2655_v44 = vpop.permute.xlu1 %2654  ;;  %13044 = vmatmul.mubr.msk.f32.vlgmr.msra.gmra.mxu0 %vm1114_vm11, %v14932_v8 }
 0x68c   :  { %v15162_v24 = vpop.permute.xlu0 %2560  ;;  %v2674_v0 = vsel %vm2664_vm14, %v2655_v44, %v15155_v49  ;;  %v2673_v51 = vsel %vm2664_vm14, %v2653_v1, %v2655_v44  ;;  %3829 = vmatprep.mubr.f32.mxu0 %v14944_v17 }
 0x68d   :  { %3720 = vmatprep.subr.mxu1 %v2674_v0 }
 0x68e   :  { %3721 = vmatpush1.msra.mxu1 %v2673_v51 }
 0x68f   :  { %v2559_v27 = vpop.permute.xlu1 %2558 }
 0x690   :  { %v3234_v58 = vpop.permute.xlu0 %3233  ;;  %v2578_v48 = vsel %vm2568_vm15, %v2559_v27, %v15162_v24  ;;  %v2577_v30 = vsel %vm2568_vm15, %v2557_v31, %v2559_v27 }
 0x691   :  { %3722 = vmatprep.subr.mxu1 %v2578_v48 }
 0x692   :  { %3723 = vmatpush1.msra.mxu1 %v2577_v30 }
 0x693   :  { %v3232_v46 = vpop.permute.xlu1 %3231 }
 0x694   :  { %v15171_v6 = vpop.permute.xlu0 %2464  ;;  %v3248_v22 = vsel %vm2664_vm14, %v3232_v46, %v3234_v58  ;;  %v3247_v1 = vsel %vm2664_vm14, %v15107_v4, %v3232_v46  ;;  %v3249_v4 = vsel %vm2664_vm14, %v3234_v58, %v14812_v3 }
 0x695   :  { %3779 = vmatprep.subr.mxu0 %v3248_v22 }
 0x696   :  { %3780 = vmatpush1.msra.mxu0 %v3247_v1 }
 0x697   :  { %v2463_v60 = vpop.permute.xlu1 %2462 }
 0x698   :  { %v3139_v32 = vpop.permute.xlu0 %3138  ;;  %v2482_v50 = vsel %vm2472_vm13, %v2463_v60, %v15171_v6  ;;  %v2481_v25 = vsel %vm2472_vm13, %v2461_v52, %v2463_v60 }
 0x699   :  { %3724 = vmatprep.subr.mxu1 %v2482_v50  ;;  %v3154_v11 = vsel %vm2568_vm15, %v3139_v32, %v14810_v2 }
 0x69a   :  { %3725 = vmatpush1.msra.mxu1 %v2481_v25 }
 0x69b   :  { %13045 = vmatmul.mubr.msk.f32.vlgmr.msra.gmra.mxu1 %vm1114_vm11, %v14932_v8  ;;  %13208 = vmatprep.subr.mxu1 %v14944_v17  ;;  %v3137_v31 = vpop.permute.xlu1 %3136 }
 0x69c   :  { %v3044_v57 = vpop.permute.xlu0 %3043  ;;  %13209 = vmatpush3.msra.mxu1 %v3249_v4  ;;  %v3153_v53 = vsel %vm2568_vm15, %v3137_v31, %v3139_v32  ;;  %v3152_v55 = vsel %vm2568_vm15, %v15115_v33, %v3137_v31  ;;  %13226 = vmatprep.mubr.msk.f32.mxu1 %vm13422_vm12, %v14944_v17 }
 0x69d   :  { %3781 = vmatprep.subr.mxu0 %v3153_v53  ;;  %13210 = vmatprep.subr.mxu1 %v14944_v17  ;;  %v3059_v52 = vsel %vm2472_vm13, %v3044_v57, %v14819_v61  ;;  %v13432_v53 = vmov 4  }
 0x69e   :  { %3782 = vmatpush1.msra.mxu0 %v3152_v55  ;;  %13211 = vmatpush3.msra.mxu1 %v3154_v11  ;;  %v13433_v55 = vmov 5  }
 0x69f   :  { %13212 = vmatprep.subr.mxu1 %v14944_v17  ;;  %v3042_v3 = vpop.permute.xlu1 %3041  ;;  %13368 = vset.pattern.permute.xlu1 %v13432_v53 }
 0x6a0   :  { %v2946_v56 = vpop.permute.xlu0 %2945  ;;  %13213 = vmatpush3.msra.mxu1 %v3059_v52  ;;  %v3058_v33 = vsel %vm2472_vm13, %v3042_v3, %v3044_v57  ;;  %v3057_v34 = vsel %vm2472_vm13, %v15123_v39, %v3042_v3  ;;  %13369 = vset.pattern.permute.xlu0 %v13433_v55  ;;  %v13037_v52 = vld [vmem:[%s19342_s4 + $0x1] ss:$8 sm:$0xf] }
 0x6a1   :  { %3783 = vmatprep.subr.mxu0 %v3058_v33  ;;  %13214 = vmatprep.subr.mxu1 %v14944_v17  ;;  %v2962_v61 = vsel %vm2951_vm10, %v15131_v54, %v2946_v56 }
 0x6a2   :  { %3784 = vmatpush1.msra.mxu0 %v3057_v34 }
 0x6a3   :  { %v2948_v2 = vpop.permute.xlu1 %2947 }
 0x6a4   :  { %v2853_v29 = vpop.permute.xlu0 %2852  ;;  %v2963_v7 = vsel %vm2951_vm10, %v2946_v56, %v2948_v2  ;;  %v2964_v14 = vsel %vm2951_vm10, %v2948_v2, %v14817_v5  ;;  %v13038_v56 = vld [vmem:[%s19342_s4 + $0x1] ss:$8 sm:$0xf0] }
 0x6a5   :  { %3785 = vmatprep.subr.mxu0 %v2963_v7  ;;  %13215 = vmatpush3.msra.mxu1 %v2964_v14  ;;  %v2868_v39 = vsel %vm559_vm6, %v2853_v29, %v14827_v28  ;;  %v15245_v34 = vor.u32 %v13038_v56, %v13037_v52 }
 0x6a6   :  { %3786 = vmatpush1.msra.mxu0 %v2962_v61  ;;  %13216 = vmatprep.subr.mxu1 %v14944_v17 }
 0x6a7   :  { %13217 = vmatpush3.msra.mxu1 %v2868_v39  ;;  %v2851_v44 = vpop.permute.xlu1 %2850  ;;  %v15257_v14 = vrot.slane %v15245_v34, %v14090_v59  ;;  %v15261_v61 = vrot.slane %v15245_v34, %v14092_v23 }
 0x6a8   :  { %v2755_v0 = vpop.permute.xlu0 %2754  ;;  %v2867_v51 = vsel %vm559_vm6, %v2851_v44, %v2853_v29  ;;  %v2866_v27 = vsel %vm559_vm6, %v15139_v20, %v2851_v44  ;;  %13218 = vmatprep.subr.mxu1 %v14944_v17 }
 0x6a9   :  { %3787 = vmatprep.subr.mxu0 %v2867_v51  ;;  %v2771_v28 = vsel %vm2760_vm9, %v15147_v18, %v2755_v0 }
 0x6aa   :  { %3788 = vmatpush1.msra.mxu0 %v2866_v27 }
 0x6ab   :  { %v2757_v5 = vpop.permute.xlu1 %2756 }
 0x6ac   :  { %v2661_v54 = vpop.permute.xlu0 %2660  ;;  %v2772_v58 = vsel %vm2760_vm9, %v2755_v0, %v2757_v5  ;;  %v2773_v48 = vsel %vm2760_vm9, %v2757_v5, %v14825_v21  ;;  %v15275_v5 = vrot.slane %v15245_v34, %v14107_v62 }
 0x6ad   :  { %3789 = vmatprep.subr.mxu0 %v2772_v58  ;;  %13219 = vmatpush3.msra.mxu1 %v2773_v48 }
 0x6ae   :  { %3790 = vmatpush1.msra.mxu0 %v2771_v28  ;;  %13220 = vmatprep.subr.mxu1 %v14944_v17 }
 0x6af   :  { %v2659_v20 = vpop.permute.xlu1 %2658 }
 0x6b0   :  { %v2563_v30 = vpop.permute.xlu0 %2562  ;;  %v2676_v46 = vsel %vm2664_vm14, %v2659_v20, %v2661_v54  ;;  %v2675_v22 = vsel %vm2664_vm14, %v15155_v49, %v2659_v20 }
 0x6b1   :  { %3791 = vmatprep.subr.mxu0 %v2676_v46  ;;  %v2579_v18 = vsel %vm2568_vm15, %v15162_v24, %v2563_v30  ;;  %v15286_v46 = vrot.slane %v15245_v34, %v14123_v40 }
 0x6b2   :  { %3792 = vmatpush1.msra.mxu0 %v2675_v22 }
 0x6b3   :  { %v2565_v1 = vpop.permute.xlu1 %2564 }
 0x6b4   :  { %v2580_v21 = vsel %vm2568_vm15, %v2563_v30, %v2565_v1  ;;  %v2469_v60 = vpop.permute.xlu0 %2468 }
 0x6b5   :  { %3793 = vmatprep.subr.mxu0 %v2580_v21 }
 0x6b6   :  { %3794 = vmatpush1.msra.mxu0 %v2579_v18  ;;  %v15293_v18 = vrot.slane %v15245_v34, %v14125_v10 }
 0x6b7   :  { %v2467_v32 = vpop.permute.xlu1 %2466 }
 0x6b8   :  { %v2484_v50 = vsel %vm2472_vm13, %v2467_v32, %v2469_v60  ;;  %v2483_v25 = vsel %vm2472_vm13, %v15171_v6, %v2467_v32  ;;  %v2567_v49 = vpop.permute.xlu0 %2566 }
 0x6b9   :  { %3795 = vmatprep.subr.mxu0 %v2484_v50  ;;  %v2581_v24 = vsel %vm2568_vm15, %v2565_v1, %v2567_v49 }
 0x6ba   :  { %3796 = vmatpush1.msra.mxu0 %v2483_v25 }
 0x6bb   :  { %13046 = vmatmul.mubr.msk.f32.vlgmr.msra.gmra.mxu0 %vm1114_vm11, %v14932_v8  ;;  %v2663_v31 = vpop.permute.xlu1 %2662 }
 0x6bc   :  { %v2677_v4 = vsel %vm2664_vm14, %v2661_v54, %v2663_v31  ;;  %5554 = vmatprep.mubr.f32.mxu0 %v14944_v17 }
 0x6bd   :  { %13221 = vmatpush3.msra.mxu1 %v2677_v4 }
 0x6be   :  { %13222 = vmatprep.subr.mxu1 %v14944_v17 }
 0x6bf   :  { %13223 = vmatpush3.msra.mxu1 %v2581_v24  ;;  %v2471_v57 = vpop.permute.xlu1 %2470  ;;  %v15304_v24 = vrot.slane %v15245_v34, %v14142_v12 }
 0x6c0   :  { %v2485_v6 = vsel %vm2472_vm13, %v2469_v60, %v2471_v57  ;;  %13224 = vmatprep.subr.mxu1 %v14944_v17 }
 0x6c1   :  { %13225 = vmatpush3.msra.mxu1 %v2485_v6 }
 0x6c2   :  { %13227 = vmatmul.mubr.msk.f32.vlgmr.msra.gmra.mxu1 %vm1114_vm11, %v14932_v8 }
 0x6c3   :  { %5625 = vmatprep.mubr.f32.mxu1 %v14944_v17 }
 0x6c5   :  { %v15237_v3 = vpop.permute.xlu0 %3404 }
 0x6cb   :  { %v3476_v11 = vpop.f32.mrf.mxu1 }
 0x6cc   :  { %v15248_v8 = vadd.f32 %v3476_v11, %v15237_v3 }
 0x6cd   :  { %v3478_v33 = vpop.f32.mrf.mxu1 }
 0x6ce   :  { %v15251_v17 = vadd.f32 %v3478_v33, %v15237_v3  ;;  %v19357_v29 = vmax.f32 %v15248_v8, 0.0 }
 0x6d0   :  { %v19355_v7 = vmax.f32 %v15251_v17, 0.0  ;;  %v3986_v0 = vmul.f32 %v15257_v14, %v19357_v29 }
 0x6d2   :  { %v3987_v51 = vmul.f32 %v15261_v61, %v19355_v7  ;;  %v4013_v48 = vmul.f32 %v3986_v0, %v3986_v0 }
 0x6d4   :  { %v4014_v28 = vmul.f32 %v3987_v51, %v3987_v51  ;;  %v3999_v21 = vadd.f32 %v3987_v51, %v3986_v0  ;;  %v13039_v0 = vld [vmem:[%s19342_s4 + $0x41] ss:$8 sm:$0xf] }
 0x6d6   :  { %v4026_v60 = vadd.f32 %v4014_v28, %v4013_v48  ;;  %v13040_v28 = vld [vmem:[%s19342_s4 + $0x41] ss:$8 sm:$0x10] }
 0x703   :  { %v3547_v2 = vpop.f32.mrf.mxu0 }
 0x704   :  { %v15264_v39 = vadd.f32 %v3547_v2, %v15237_v3 }
 0x705   :  { %v3549_v44 = vpop.f32.mrf.mxu0 }
 0x706   :  { %v19354_v27 = vmax.f32 %v15264_v39, 0.0  ;;  %v15278_v54 = vadd.f32 %v3549_v44, %v15237_v3 }
 0x708   :  { %v3988_v20 = vmul.f32 %v15275_v5, %v19354_v27  ;;  %v19353_v30 = vmax.f32 %v15278_v54, 0.0 }
 0x70a   :  { %v4015_v32 = vmul.f32 %v3988_v20, %v3988_v20  ;;  %v3989_v50 = vmul.f32 %v15286_v46, %v19353_v30  ;;  %v4000_v4 = vadd.f32 %v3999_v21, %v3988_v20 }
 0x70c   :  { %v4027_v57 = vadd.f32 %v4026_v60, %v4015_v32  ;;  %v4016_v6 = vmul.f32 %v3989_v50, %v3989_v50  ;;  %v4001_v56 = vadd.f32 %v4000_v4, %v3989_v50  ;;  %v15330_v32 = vor.u32 %v13040_v28, %v13039_v0 }
 0x70d   :  { %v15338_v4 = vrot.slane %v15245_v34, %v14178_v47 }
 0x70e   :  { %v4028_v33 = vadd.f32 %v4027_v57, %v4016_v6  ;;  %v15382_v45 = vrot.slane %v15330_v32, %v14125_v10 }
 0x713   :  { %v3618_v58 = vpop.f32.mrf.mxu1 }
 0x714   :  { %v15289_v22 = vadd.f32 %v3618_v58, %v15237_v3  ;;  %v15322_v58 = vrot.slane %v15245_v34, %v14162_v36 }
 0x715   :  { %v3620_v1 = vpop.f32.mrf.mxu1 }
 0x716   :  { %v19352_v25 = vmax.f32 %v15289_v22, 0.0  ;;  %v15300_v49 = vadd.f32 %v3620_v1, %v15237_v3 }
 0x718   :  { %v3990_v53 = vmul.f32 %v15293_v18, %v19352_v25  ;;  %v19351_v55 = vmax.f32 %v15300_v49, 0.0 }
 0x71a   :  { %v4017_v2 = vmul.f32 %v3990_v53, %v3990_v53  ;;  %v3991_v44 = vmul.f32 %v15304_v24, %v19351_v55  ;;  %v4002_v1 = vadd.f32 %v4001_v56, %v3990_v53  ;;  %v15345_v56 = vrot.slane %v15330_v32, %v14090_v59 }
 0x71c   :  { %v4029_v21 = vadd.f32 %v4028_v33, %v4017_v2  ;;  %v4018_v60 = vmul.f32 %v3991_v44, %v3991_v44 }
 0x71e   :  { %v4030_v53 = vadd.f32 %v4029_v21, %v4018_v60 }
 0x74b   :  { %v3689_v31 = vpop.f32.mrf.mxu0 }
 0x74c   :  { %v15311_v11 = vadd.f32 %v3689_v31, %v15237_v3 }
 0x74d   :  { %v3691_v52 = vpop.f32.mrf.mxu0 }
 0x74e   :  { %v19350_v51 = vmax.f32 %v15311_v11, 0.0  ;;  %v15325_v48 = vadd.f32 %v3691_v52, %v15237_v3  ;;  %v4003_v52 = vadd.f32 %v4002_v1, %v3991_v44 }
 0x750   :  { %v3992_v50 = vmul.f32 %v15322_v58, %v19350_v51  ;;  %v19358_v31 = vmax.f32 %v15325_v48, 0.0 }
 0x752   :  { %v4019_v33 = vmul.f32 %v3992_v50, %v3992_v50  ;;  %v3993_v2 = vmul.f32 %v15338_v4, %v19358_v31  ;;  %v4004_v51 = vadd.f32 %v4003_v52, %v3992_v50  ;;  %v15365_v50 = vrot.slane %v15330_v32, %v14107_v62 }
 0x754   :  { %v4031_v44 = vadd.f32 %v4030_v53, %v4019_v33  ;;  %v4020_v1 = vmul.f32 %v3993_v2, %v3993_v2  ;;  %v4005_v55 = vadd.f32 %v4004_v51, %v3993_v2  ;;  %v15371_v51 = vrot.slane %v15330_v32, %v14123_v40 }
 0x756   :  { %v4032_v25 = vadd.f32 %v4031_v44, %v4020_v1 }
 0x75b   :  { %v3760_v20 = vpop.f32.mrf.mxu1 }
 0x75c   :  { %v15341_v57 = vadd.f32 %v3760_v20, %v15237_v3  ;;  %v15354_v20 = vrot.slane %v15330_v32, %v14092_v23 }
 0x75d   :  { %v3762_v6 = vpop.f32.mrf.mxu1 }
 0x75e   :  { %v19356_v0 = vmax.f32 %v15341_v57, 0.0  ;;  %v3763_v28 = vadd.f32 %v3762_v6, %v15237_v3 }
 0x760   :  { %v3994_v21 = vmul.f32 %v15345_v56, %v19356_v0  ;;  %v3915_v60 = vmax.f32 %v3763_v28, 0.0 }
 0x762   :  { %v4021_v30 = vmul.f32 %v3994_v21, %v3994_v21  ;;  %v3995_v27 = vmul.f32 %v15354_v20, %v3915_v60  ;;  %v4006_v52 = vadd.f32 %v4005_v55, %v3994_v21 }
 0x764   :  { %v4033_v2 = vadd.f32 %v4032_v25, %v4021_v30  ;;  %v4022_v28 = vmul.f32 %v3995_v27, %v3995_v27  ;;  %v4007_v1 = vadd.f32 %v4006_v52, %v3995_v27 }
 0x766   :  { %v4034_v31 = vadd.f32 %v4033_v2, %v4022_v28 }
 0x77b   :  { %v3831_v7 = vpop.f32.mrf.mxu0 }
 0x77c   :  { %v15361_v6 = vadd.f32 %v3831_v7, %v15237_v3 }
 0x77d   :  { %v3833_v53 = vpop.f32.mrf.mxu0 }
 0x77e   :  { %v19362_v33 = vmax.f32 %v15361_v6, 0.0  ;;  %v3834_v0 = vadd.f32 %v3833_v53, %v15237_v3 }
 0x780   :  { %v3996_v7 = vmul.f32 %v15365_v50, %v19362_v33  ;;  %v3917_v44 = vmax.f32 %v3834_v0, 0.0 }
 0x782   :  { %v4023_v29 = vmul.f32 %v3996_v7, %v3996_v7  ;;  %v3997_v55 = vmul.f32 %v15371_v51, %v3917_v44  ;;  %v3902_v21 = vpop.f32.mrf.mxu1  ;;  %v4008_v26 = vadd.f32 %v4007_v1, %v3996_v7 }
 0x783   :  { %v15378_v53 = vadd.f32 %v3902_v21, %v15237_v3 }
 0x784   :  { %v13228_v30 = vpop.f32.mrf.mxu1  ;;  %v4035_v25 = vadd.f32 %v4034_v31, %v4023_v29  ;;  %v4024_v43 = vmul.f32 %v3997_v55, %v3997_v55  ;;  %v4009_v0 = vadd.f32 %v4008_v26, %v3997_v55 }
 0x785   :  { %v3918_v33 = vmax.f32 %v15378_v53, 0.0 }
 0x786   :  { %v4036_v28 = vadd.f32 %v4035_v25, %v4024_v43  ;;  %v13052_v43 = vadd.f32 -1.0, %v15245_v34  ;;  %v13053_v25 = vadd.f32 -1.0, %v15330_v32 }
 0x787   :  { %v3998_v27 = vmul.f32 %v15382_v45, %v3918_v33 }
 0x788   :  { %v15395_v30 = vmul.f32 1e+30, %v13052_v43 }
 0x789   :  { %v4025_v52 = vmul.f32 %v3998_v27, %v3998_v27  ;;  %v4010_v2 = vadd.f32 %v4009_v0, %v3998_v27  ;;  %v19414_v27 = vmax.f32 %v15248_v8, 0.0 }
 0x78a   :  { %v4164_v32 = vrot.slane %v15395_v30, %v14178_v47 }
 0x78b   :  { %4011 = vadd.xlane.f32.xlu1 %v4010_v2  ;;  %v4037_v3 = vadd.f32 %v4036_v28, %v4025_v52  ;;  %v19415_v28 = vmax.f32 %v15251_v17, 0.0 }
 0x78d   :  { %4038 = vadd.xlane.f32.xlu0 %v4037_v3 }
 0x79c   :  { %4073 = vperm.xlu1 %13368, %v15083_v16  }
 0x7a3   :  { %4090 = vperm.xlu0 %13369, %v15083_v16   ;;  %v19413_v16 = vmax.f32 %v15325_v48, 0.0 }
 0x814   :  { %v4012_v7 = vpop.xlane.xlu1 %4011 }
 0x815   :  { %v15390_v29 = vmul.f32 0.0061728396, %v4012_v7 }
 0x816   :  { %v4039_v31 = vpop.xlane.xlu0 %4038 }
 0x817   :  { %v4041_v1 = vmul.f32 0.0061728396, %v4039_v31  ;;  %v4042_v26 = vmul.f32 %v15390_v29, %v15390_v29  ;;  %v4051_v0 = vsub.f32 %v19413_v16, %v15390_v29  ;;  %v4044_v52 = vsub.f32 %v19414_v27, %v15390_v29 }
 0x818   :  { %v4053_v2 = vsub.f32 %v3915_v60, %v15390_v29  ;;  %v4045_v3 = vsub.f32 %v19415_v28, %v15390_v29  ;;  %v15410_v34 = vpop.permute.xlu1 %4073  ;;  %v4055_v48 = vsub.f32 %v3917_v44, %v15390_v29  ;;  %v19416_v31 = vmax.f32 %v15264_v39, 0.0 }
 0x819   :  { %v4043_v55 = vsub.f32 %v4041_v1, %v4042_v26  ;;  %v19417_v39 = vmax.f32 %v15278_v54, 0.0 }
 0x81a   :  { %v4046_v8 = vsub.f32 %v19416_v31, %v15390_v29 }
 0x81b   :  { %v4057_v21 = vadd.f32 1e-05, %v4043_v55  ;;  %v4047_v16 = vsub.f32 %v19417_v39, %v15390_v29  ;;  %v4140_v39 = vrot.slane %v15395_v30, %v14092_v23 }
 0x81d   :  { %13389 = vrsqrt.f32 %v4057_v21  ;;  %v15424_v21 = vmul.f32 1e+30, %v13053_v25  ;;  %v4136_v25 = vrot.slane %v15395_v30, %v14090_v59 }
 0x81e   :  { %v15422_v55 = vpop.permute.xlu0 %4090 }
 0x82a   :  { %v15408_v7 = vpop.eup %13389 }
 0x82b   :  { %v4066_v1 = vmul.f32 %v15408_v7, %v4051_v0  ;;  %v4059_v60 = vmul.f32 %v15408_v7, %v4044_v52  ;;  %v4068_v17 = vmul.f32 %v15408_v7, %v4053_v2  ;;  %v4060_v26 = vmul.f32 %v15408_v7, %v4045_v3 }
 0x82c   :  { %v4070_v43 = vmul.f32 %v15408_v7, %v4055_v48  ;;  %v4061_v44 = vmul.f32 %v15408_v7, %v4046_v8  ;;  %v4062_v48 = vmul.f32 %v15408_v7, %v4047_v16 }
 0x82d   :  { %v4083_v0 = vmul.f32 %v15410_v34, %v4066_v1  ;;  %v4076_v27 = vmul.f32 %v15410_v34, %v4059_v60  ;;  %v4085_v52 = vmul.f32 %v15410_v34, %v4068_v17  ;;  %v4077_v2 = vmul.f32 %v15410_v34, %v4060_v26 }
 0x82e   :  { %v4087_v28 = vmul.f32 %v15410_v34, %v4070_v43  ;;  %v4078_v3 = vmul.f32 %v15410_v34, %v4061_v44  ;;  %v19418_v60 = vmax.f32 %v15289_v22, 0.0  ;;  %v4172_v44 = vrot.slane %v15424_v21, %v14092_v23 }
 0x82f   :  { %v4100_v54 = vadd.f32 %v15422_v55, %v4083_v0  ;;  %v4093_v31 = vadd.f32 %v15422_v55, %v4076_v27  ;;  %v4102_v8 = vadd.f32 %v15422_v55, %v4085_v52  ;;  %v4094_v1 = vadd.f32 %v15422_v55, %v4077_v2 }
 0x830   :  { %v4048_v17 = vsub.f32 %v19418_v60, %v15390_v29  ;;  %v4104_v16 = vadd.f32 %v15422_v55, %v4087_v28  ;;  %v4095_v0 = vadd.f32 %v15422_v55, %v4078_v3  ;;  %v4079_v27 = vmul.f32 %v15410_v34, %v4062_v48 }
 0x831   :  { %v4121_v26 = vmul.f32 %v4100_v54, %v15338_v4  ;;  %v4114_v43 = vmul.f32 %v4093_v31, %v15257_v14  ;;  %v4123_v14 = vmul.f32 %v4102_v8, %v15354_v20  ;;  %v4115_v4 = vmul.f32 %v4094_v1, %v15261_v61 }
 0x832   :  { %v4063_v52 = vmul.f32 %v15408_v7, %v4048_v17  ;;  %v4180_v28 = vrot.slane %v15424_v21, %v14123_v40  ;;  %v19419_v3 = vmax.f32 %v15300_v49, 0.0  ;;  %v4144_v20 = vrot.slane %v15395_v30, %v14107_v62 }
 0x833   :  { %v15457_v22 = vadd.f32 %v4164_v32, %v4121_v26  ;;  %v15459_v2 = vadd.f32 %v4136_v25, %v4114_v43  ;;  %v4125_v25 = vmul.f32 %v4104_v16, %v15371_v51  ;;  %v4096_v61 = vadd.f32 %v15422_v55, %v4079_v27 }
 0x834   :  { %v4049_v32 = vsub.f32 %v19419_v3, %v15390_v29  ;;  %v4080_v48 = vmul.f32 %v15410_v34, %v4063_v52  ;;  %v15477_v54 = vadd.f32 %v4172_v44, %v4123_v14  ;;  %v15479_v31 = vadd.f32 %v4140_v39, %v4115_v4 }
 0x835   :  { %4238 = vrot.lane.b32.xlu0 %v15457_v22, %s13411_s22  ;;  %4224 = vrot.lane.b32.xlu1 %v15459_v2, %s13411_s22  ;;  %v4116_v8 = vmul.f32 %v4095_v0, %v15275_v5  ;;  %v19420_v49 = vmax.f32 %v15311_v11, 0.0  ;;  %v4117_v60 = vmul.f32 %v4096_v61, %v15286_v46  ;;  %v4148_v17 = vrot.slane %v15395_v30, %v14123_v40 }
 0x836   :  { %v4064_v1 = vmul.f32 %v15408_v7, %v4049_v32  ;;  %v4097_v26 = vadd.f32 %v15422_v55, %v4080_v48  ;;  %v15494_v5 = vadd.f32 %v4180_v28, %v4125_v25  ;;  %v19421_v46 = vmax.f32 %v15341_v57, 0.0 }
 0x837   :  { %v4050_v51 = vsub.f32 %v19420_v49, %v15390_v29  ;;  %v15496_v43 = vadd.f32 %v4144_v20, %v4116_v8  ;;  %v4152_v0 = vrot.slane %v15395_v30, %v14125_v10  ;;  %v15510_v27 = vadd.f32 %v4148_v17, %v4117_v60 }
 0x838   :  { %v4081_v44 = vmul.f32 %v15410_v34, %v4064_v1  ;;  %v4052_v11 = vsub.f32 %v19421_v46, %v15390_v29  ;;  %v4118_v16 = vmul.f32 %v4097_v26, %v15293_v18  ;;  %v19422_v57 = vmax.f32 %v15361_v6, 0.0 }
 0x839   :  { %4242 = vrot.lane.b32.xlu0 %v15477_v54, %s13411_s22  ;;  %4226 = vrot.lane.b32.xlu1 %v15479_v31, %s13411_s22  ;;  %v4065_v39 = vmul.f32 %v15408_v7, %v4050_v51  ;;  %v4156_v18 = vrot.slane %v15395_v30, %v14142_v12  ;;  %v4056_v48 = vsub.f32 %v3918_v33, %v15390_v29 }
 0x83a   :  { %v4098_v52 = vadd.f32 %v15422_v55, %v4081_v44  ;;  %v4067_v4 = vmul.f32 %v15408_v7, %v4052_v11  ;;  %v4054_v28 = vsub.f32 %v19422_v57, %v15390_v29  ;;  %v15520_v3 = vadd.f32 %v4152_v0, %v4118_v16 }
 0x83b   :  { %v4082_v14 = vmul.f32 %v15410_v34, %v4065_v39  ;;  %v4160_v6 = vrot.slane %v15395_v30, %v14162_v36  ;;  %v4071_v8 = vmul.f32 %v15408_v7, %v4056_v48  ;;  %v4168_v33 = vrot.slane %v15424_v21, %v14090_v59 }
 0x83c   :  { %v4119_v32 = vmul.f32 %v4098_v52, %v15304_v24  ;;  %v4084_v20 = vmul.f32 %v15410_v34, %v4067_v4  ;;  %v4069_v61 = vmul.f32 %v15408_v7, %v4054_v28  ;;  %v4176_v17 = vrot.slane %v15424_v21, %v14107_v62 }
 0x83d   :  { %4246 = vrot.lane.b32.xlu0 %v15494_v5, %s13411_s22  ;;  %4228 = vrot.lane.b32.xlu1 %v15496_v43, %s13411_s22  ;;  %v4099_v25 = vadd.f32 %v15422_v55, %v4082_v14  ;;  %v4088_v7 = vmul.f32 %v15410_v34, %v4071_v8 }
 0x83e   :  { %v15536_v1 = vadd.f32 %v4156_v18, %v4119_v32  ;;  %v4101_v49 = vadd.f32 %v15422_v55, %v4084_v20  ;;  %v4086_v51 = vmul.f32 %v15410_v34, %v4069_v61  ;;  %v4184_v34 = vrot.slane %v15424_v21, %v14125_v10 }
 0x83f   :  { %v4120_v24 = vmul.f32 %v4099_v25, %v15322_v58  ;;  %v4105_v26 = vadd.f32 %v15422_v55, %v4088_v7 }
 0x840   :  { %v4122_v29 = vmul.f32 %v4101_v49, %v15345_v56  ;;  %v4103_v30 = vadd.f32 %v15422_v55, %v4086_v51 }
 0x841   :  { %4230 = vrot.lane.b32.xlu1 %v15510_v27, %s13411_s22  ;;  %v15545_v53 = vadd.f32 %v4160_v6, %v4120_v24  ;;  %v4126_v44 = vmul.f32 %v4105_v26, %v15382_v45 }
 0x842   :  { %v15552_v58 = vadd.f32 %v4168_v33, %v4122_v29  ;;  %v4124_v60 = vmul.f32 %v4103_v30, %v15365_v50  ;;  %v15571_v50 = vld [vmem:[#allocation2] sm:$0xff] }
 0x843   :  { %v15567_v39 = vadd.f32 %v4184_v34, %v4126_v44  ;;  %26 = vst.msk [vmem:[#allocation2 + $0x78] sm:$0xff] %vm19367_vm8, %v15571_v50  ;;  %vm4884_vm8 = vcmask 982016  }
 0x844   :  { %v15560_v56 = vadd.f32 %v4176_v17, %v4124_v60 }
 0x845   :  { %4232 = vrot.lane.b32.xlu1 %v15520_v3, %s13411_s22 }
 0x849   :  { %4234 = vrot.lane.b32.xlu1 %v15536_v1, %s13411_s22 }
 0x84a   :  { %v5274_v48 = vld [vmem:[#allocation2 + $0x78] sm:$0xff] }
 0x84d   :  { %4236 = vrot.lane.b32.xlu1 %v15545_v53, %s13411_s22 }
 0x851   :  { %4240 = vrot.lane.b32.xlu1 %v15552_v58, %s13411_s22 }
 0x855   :  { %4244 = vrot.lane.b32.xlu1 %v15560_v56, %s13411_s22 }
 0x859   :  { %4248 = vrot.lane.b32.xlu1 %v15567_v39, %s13411_s22 }
 0x8a7   :  { %v4225_v55 = vpop.permute.xlu1 %4224  ;;  %v4239_v6 = vpop.permute.xlu0 %4238 }
 0x8a8   :  { %4276 = vst.msk [vmem:[#allocation2 + $0x8] sm:$0xff] %vm23_vm1, %v4225_v55 }
 0x8ab   :  { %v4227_v45 = vpop.permute.xlu1 %4226  ;;  %v4243_v24 = vpop.permute.xlu0 %4242 }
 0x8ac   :  { %v4250_v18 = vsel %vm21_vm0, %v4225_v55, %v4227_v45 }
 0x8af   :  { %v4229_v46 = vpop.permute.xlu1 %4228  ;;  %v15576_v21 = vld [vmem:[#allocation2 + $0x8] sm:$0xff]  ;;  %v4247_v33 = vpop.permute.xlu0 %4246 }
 0x8b0   :  { %4318 = vrot.lane.b32.xlu0 %v15576_v21, %s13429_s12  ;;  %4385 = vrot.lane.b32.xlu1 %v15576_v21, %s13430_s13  ;;  %v15587_v32 = vsel %vm21_vm0, %v4227_v45, %v4229_v46 }
 0x8b3   :  { %v4231_v11 = vpop.permute.xlu1 %4230 }
 0x8b4   :  { %v4252_v25 = vsel %vm21_vm0, %v4229_v46, %v4231_v11 }
 0x8b7   :  { %v4233_v16 = vpop.permute.xlu1 %4232 }
 0x8b8   :  { %v15594_v20 = vsel %vm21_vm0, %v4231_v11, %v4233_v16 }
 0x8bb   :  { %v4235_v0 = vpop.permute.xlu1 %4234 }
 0x8bc   :  { %v15600_v61 = vsel %vm21_vm0, %v4233_v16, %v4235_v0 }
 0x8bf   :  { %v4237_v52 = vpop.permute.xlu1 %4236 }
 0x8c0   :  { %v15610_v8 = vsel %vm21_vm0, %v4237_v52, %v4239_v6  ;;  %v15616_v49 = vsel %vm21_vm0, %v4235_v0, %v4237_v52 }
 0x8c3   :  { %v4241_v14 = vpop.permute.xlu1 %4240 }
 0x8c4   :  { %v15619_v51 = vsel %vm21_vm0, %v4241_v14, %v4243_v24  ;;  %v15626_v29 = vsel %vm21_vm0, %v4239_v6, %v4241_v14 }
 0x8c7   :  { %v4245_v4 = vpop.permute.xlu1 %4244 }
 0x8c8   :  { %v15629_v30 = vsel %vm21_vm0, %v4245_v4, %v4247_v33  ;;  %v15636_v7 = vsel %vm21_vm0, %v4243_v24, %v4245_v4 }
 0x8cb   :  { %v4249_v57 = vpop.permute.xlu1 %4248 }
 0x8cc   :  { %4289 = vst.msk [vmem:[#allocation2 + $0x70] sm:$0xff] %vm21_vm0, %v4249_v57  ;;  %v15643_v60 = vsel %vm21_vm0, %v4247_v33, %v4249_v57 }
 0x8d3   :  { %v4303_v28 = vld [vmem:[#allocation2 + $0x70] sm:$0xff] }
 0x8d4   :  { %4344 = vrot.lane.b32.xlu0 %v4303_v28, %s13429_s12  ;;  %4411 = vrot.lane.b32.xlu1 %v4303_v28, %s13430_s13 }
 0x8d8   :  { %4387 = vrot.lane.b32.xlu0 %v4250_v18, %s13430_s13  ;;  %4389 = vrot.lane.b32.xlu1 %v15587_v32, %s13430_s13 }
 0x8dc   :  { %4391 = vrot.lane.b32.xlu0 %v4252_v25, %s13430_s13  ;;  %4393 = vrot.lane.b32.xlu1 %v15594_v20, %s13430_s13 }
 0x8e0   :  { %4395 = vrot.lane.b32.xlu0 %v15600_v61, %s13430_s13  ;;  %4856 = vrot.lane.b32.xlu1 %v15571_v50, %s13434_s15 }
 0x8e4   :  { %4761 = vrot.lane.b32.xlu0 %v15571_v50, %s13419_s27  ;;  %5315 = vrot.lane.b32.xlu1 %v5274_v48, %s13434_s15 }
 0x8e8   :  { %5220 = vrot.lane.b32.xlu0 %v5274_v48, %s13419_s27  ;;  %4399 = vrot.lane.b32.xlu1 %v15610_v8, %s13430_s13 }
 0x8ec   :  { %4397 = vrot.lane.b32.xlu0 %v15616_v49, %s13430_s13  ;;  %4403 = vrot.lane.b32.xlu1 %v15619_v51, %s13430_s13 }
 0x8f0   :  { %4401 = vrot.lane.b32.xlu0 %v15626_v29, %s13430_s13  ;;  %4407 = vrot.lane.b32.xlu1 %v15629_v30, %s13430_s13 }
 0x8f4   :  { %4405 = vrot.lane.b32.xlu0 %v15636_v7, %s13430_s13  ;;  %4322 = vrot.lane.b32.xlu1 %v15587_v32, %s13429_s12 }
 0x8f8   :  { %4326 = vrot.lane.b32.xlu1 %v15594_v20, %s13429_s12  ;;  %4409 = vrot.lane.b32.xlu0 %v15643_v60, %s13430_s13 }
 0x8fc   :  { %4330 = vrot.lane.b32.xlu1 %v15616_v49, %s13429_s12  ;;  %4320 = vrot.lane.b32.xlu0 %v4250_v18, %s13429_s12 }
 0x900   :  { %4334 = vrot.lane.b32.xlu1 %v15626_v29, %s13429_s12  ;;  %4324 = vrot.lane.b32.xlu0 %v4252_v25, %s13429_s12 }
 0x904   :  { %4338 = vrot.lane.b32.xlu1 %v15636_v7, %s13429_s12  ;;  %4328 = vrot.lane.b32.xlu0 %v15600_v61, %s13429_s12 }
 0x908   :  { %4342 = vrot.lane.b32.xlu1 %v15643_v60, %s13429_s12  ;;  %4332 = vrot.lane.b32.xlu0 %v15610_v8, %s13429_s12 }
 0x90c   :  { %4336 = vrot.lane.b32.xlu0 %v15619_v51, %s13429_s12 }
 0x910   :  { %4340 = vrot.lane.b32.xlu0 %v15629_v30, %s13429_s12 }
 0x922   :  { %v15667_v17 = vpop.permute.xlu0 %4318  ;;  %v4386_v26 = vpop.permute.xlu1 %4385 }
 0x946   :  { %v15669_v44 = vpop.permute.xlu0 %4344  ;;  %v4412_v34 = vpop.permute.xlu1 %4411 }
 0x947   :  { %v4453_v55 = vmax.f32 %v4303_v28, %v4412_v34 }
 0x949   :  { %4494 = vrot.lane.b32.xlu1 %v4453_v55, %s13425_s16 }
 0x94a   :  { %v4388_v45 = vpop.permute.xlu0 %4387  ;;  %v4390_v46 = vpop.permute.xlu1 %4389 }
 0x94b   :  { %v4414_v11 = vsel %vm2760_vm9, %v4388_v45, %v4390_v46  ;;  %v4413_v28 = vsel %vm2760_vm9, %v4386_v26, %v4388_v45 }
 0x94c   :  { %v4441_v16 = vmax.f32 %v4250_v18, %v4414_v11  ;;  %v4440_v33 = vmax.f32 %v15576_v21, %v4413_v28 }
 0x94e   :  { %v4392_v0 = vpop.permute.xlu0 %4391  ;;  %4470 = vrot.lane.b32.xlu1 %v4441_v16, %s13425_s16  ;;  %v4394_v52 = vpop.permute.xlu1 %4393 }
 0x94f   :  { %v4415_v14 = vsel %vm2760_vm9, %v4390_v46, %v4392_v0  ;;  %v4416_v4 = vsel %vm2760_vm9, %v4392_v0, %v4394_v52 }
 0x950   :  { %v4442_v57 = vmax.f32 %v15587_v32, %v4415_v14  ;;  %v4443_v48 = vmax.f32 %v4252_v25, %v4416_v4 }
 0x952   :  { %v4396_v6 = vpop.permute.xlu0 %4395  ;;  %4472 = vrot.lane.b32.xlu0 %v4442_v57, %s13425_s16  ;;  %4474 = vrot.lane.b32.xlu1 %v4443_v48, %s13425_s16  ;;  %v15680_v24 = vpop.permute.xlu1 %4856 }
 0x953   :  { %v4417_v18 = vsel %vm2760_vm9, %v4394_v52, %v4396_v6 }
 0x954   :  { %v4444_v55 = vmax.f32 %v15594_v20, %v4417_v18 }
 0x956   :  { %v15685_v46 = vpop.permute.xlu0 %4761  ;;  %4476 = vrot.lane.b32.xlu0 %v4444_v55, %s13425_s16  ;;  %4468 = vrot.lane.b32.xlu1 %v4440_v33, %s13425_s16  ;;  %v15689_v32 = vpop.permute.xlu1 %5315 }
 0x95a   :  { %v15691_v25 = vpop.permute.xlu0 %5220  ;;  %v4400_v26 = vpop.permute.xlu1 %4399 }
 0x95e   :  { %v4398_v45 = vpop.permute.xlu0 %4397  ;;  %v4404_v0 = vpop.permute.xlu1 %4403 }
 0x95f   :  { %v4418_v11 = vsel %vm2760_vm9, %v4396_v6, %v4398_v45  ;;  %v4419_v16 = vsel %vm2760_vm9, %v4398_v45, %v4400_v26 }
 0x960   :  { %v4445_v21 = vmax.f32 %v15600_v61, %v4418_v11  ;;  %v4446_v20 = vmax.f32 %v15616_v49, %v4419_v16 }
 0x962   :  { %v4402_v52 = vpop.permute.xlu0 %4401  ;;  %4478 = vrot.lane.b32.xlu0 %v4445_v21, %s13425_s16  ;;  %4480 = vrot.lane.b32.xlu1 %v4446_v20, %s13425_s16  ;;  %v4408_v28 = vpop.permute.xlu1 %4407 }
 0x963   :  { %v4420_v14 = vsel %vm2760_vm9, %v4400_v26, %v4402_v52  ;;  %v4421_v4 = vsel %vm2760_vm9, %v4402_v52, %v4404_v0 }
 0x964   :  { %v4447_v57 = vmax.f32 %v15610_v8, %v4420_v14  ;;  %v4448_v48 = vmax.f32 %v15626_v29, %v4421_v4  ;;  %v13048_v4 = vld [vmem:[%s19342_s4 + $0x2] ss:$8 sm:$0xf] }
 0x966   :  { %v4406_v6 = vpop.permute.xlu0 %4405  ;;  %4482 = vrot.lane.b32.xlu0 %v4447_v57, %s13425_s16  ;;  %4484 = vrot.lane.b32.xlu1 %v4448_v48, %s13425_s16  ;;  %v13049_v57 = vld [vmem:[%s19342_s4 + $0x2] ss:$8 sm:$0xf0] }
 0x967   :  { %v4422_v61 = vsel %vm2760_vm9, %v4404_v0, %v4406_v6  ;;  %v4423_v49 = vsel %vm2760_vm9, %v4406_v6, %v4408_v28  ;;  %v15735_v6 = vor.u32 %v13049_v57, %v13048_v4 }
 0x968   :  { %v4449_v18 = vmax.f32 %v15619_v51, %v4422_v61  ;;  %v4450_v33 = vmax.f32 %v15636_v7, %v4423_v49  ;;  %v4323_v51 = vpop.permute.xlu1 %4322 }
 0x96a   :  { %v4410_v55 = vpop.permute.xlu0 %4409  ;;  %4486 = vrot.lane.b32.xlu0 %v4449_v18, %s13425_s16  ;;  %4488 = vrot.lane.b32.xlu1 %v4450_v33, %s13425_s16 }
 0x96b   :  { %v4424_v8 = vsel %vm2760_vm9, %v4408_v28, %v4410_v55  ;;  %v4425_v29 = vsel %vm2760_vm9, %v4410_v55, %v4412_v34  ;;  %v4544_v55 = vrot.slane %v15735_v6, %v14092_v23 }
 0x96c   :  { %v4451_v26 = vmax.f32 %v15629_v30, %v4424_v8  ;;  %v4452_v45 = vmax.f32 %v15643_v60, %v4425_v29  ;;  %v4327_v11 = vpop.permute.xlu1 %4326  ;;  %v4548_v29 = vrot.slane %v15735_v6, %v14107_v62 }
 0x96e   :  { %4490 = vrot.lane.b32.xlu0 %v4451_v26, %s13425_s16  ;;  %4492 = vrot.lane.b32.xlu1 %v4452_v45, %s13425_s16  ;;  %v4321_v7 = vpop.permute.xlu0 %4320 }
 0x96f   :  { %v4347_v61 = vsel %vm2951_vm10, %v4321_v7, %v4323_v51  ;;  %v4346_v45 = vsel %vm2951_vm10, %v15667_v17, %v4321_v7 }
 0x970   :  { %v4331_v16 = vpop.permute.xlu1 %4330  ;;  %v4373_v18 = vmax.f32 %v15479_v31, %v4347_v61  ;;  %v4372_v19 = vmax.f32 %v15459_v2, %v4346_v45  ;;  %v4560_v45 = vrot.slane %v15735_v6, %v14142_v12 }
 0x972   :  { %v4325_v21 = vpop.permute.xlu0 %4324 }
 0x973   :  { %v4348_v49 = vsel %vm2951_vm10, %v4323_v51, %v4325_v21  ;;  %v4349_v4 = vsel %vm2951_vm10, %v4325_v21, %v4327_v11 }
 0x974   :  { %v15717_v20 = vpop.permute.xlu1 %4334  ;;  %v4374_v33 = vmax.f32 %v15496_v43, %v4348_v49  ;;  %v4552_v43 = vrot.slane %v15735_v6, %v14123_v40  ;;  %v4540_v49 = vrot.slane %v15735_v6, %v14090_v59  ;;  %v4375_v63 = vmax.f32 %v15510_v27, %v4349_v4 }
 0x976   :  { %v4329_v0 = vpop.permute.xlu0 %4328 }
 0x978   :  { %v15719_v52 = vpop.permute.xlu1 %4338 }
 0x97a   :  { %v4333_v14 = vpop.permute.xlu0 %4332 }
 0x97c   :  { %v15721_v34 = vpop.permute.xlu1 %4342 }
 0x97e   :  { %v15723_v30 = vpop.permute.xlu0 %4336 }
 0x982   :  { %v15733_v48 = vpop.permute.xlu0 %4340 }
 0x9bb   :  { %v15725_v60 = vpop.permute.xlu1 %4494 }
 0x9c0   :  { %v4471_v28 = vpop.permute.xlu1 %4470 }
 0x9c4   :  { %v4473_v8 = vpop.permute.xlu0 %4472  ;;  %v4475_v26 = vpop.permute.xlu1 %4474 }
 0x9c5   :  { %v4497_v57 = vsel %vm2568_vm15, %v4471_v28, %v4473_v8  ;;  %v4498_v51 = vsel %vm2568_vm15, %v4473_v8, %v4475_v26 }
 0x9c6   :  { %v4523_v31 = vmax.f32 %v4373_v18, %v4497_v57  ;;  %v4524_v61 = vmax.f32 %v4374_v33, %v4498_v51  ;;  %v13050_v51 = vld [vmem:[%s19342_s4 + $0x42] ss:$8 sm:$0xf] }
 0x9c8   :  { %v15756_v37 = vmul.f32 %v4544_v55, %v4523_v31  ;;  %v15758_v17 = vmul.f32 %v4548_v29, %v4524_v61  ;;  %v4477_v7 = vpop.permute.xlu0 %4476  ;;  %v4469_v21 = vpop.permute.xlu1 %4468  ;;  %v4556_v29 = vrot.slane %v15735_v6, %v14125_v10 }
 0x9c9   :  { %v4499_v8 = vsel %vm2568_vm15, %v4475_v26, %v4477_v7  ;;  %v4496_v18 = vsel %vm2568_vm15, %v4469_v21, %v4471_v28  ;;  %v4350_v28 = vsel %vm2951_vm10, %v4327_v11, %v4329_v0  ;;  %v13051_v11 = vld [vmem:[%s19342_s4 + $0x42] ss:$8 sm:$0x10]  ;;  %v4568_v21 = vrot.slane %v15735_v6, %v14178_v47 }
 0x9ca   :  { %v4525_v33 = vmax.f32 %v4375_v63, %v4499_v8  ;;  %v4522_v57 = vmax.f32 %v4372_v19, %v4496_v18  ;;  %4643 = vrot.lane.b32.xlu0 %v15756_v37, %s13411_s22  ;;  %4645 = vrot.lane.b32.xlu1 %v15758_v17, %s13411_s22  ;;  %v4351_v63 = vsel %vm2951_vm10, %v4329_v0, %v4331_v16 }
 0x9cb   :  { %v4376_v19 = vmax.f32 %v15520_v3, %v4350_v28  ;;  %v4377_v55 = vmax.f32 %v15536_v1, %v4351_v63  ;;  %v4352_v3 = vsel %vm2951_vm10, %v4331_v16, %v4333_v14  ;;  %v4353_v1 = vsel %vm2951_vm10, %v4333_v14, %v15717_v20 }
 0x9cc   :  { %v15766_v2 = vmul.f32 %v4552_v43, %v4525_v33  ;;  %v15768_v27 = vmul.f32 %v4540_v49, %v4522_v57  ;;  %v4564_v49 = vrot.slane %v15735_v6, %v14162_v36  ;;  %v4113_v8 = vor.u32 %v13051_v11, %v13050_v51 }
 0x9cd   :  { %v4378_v18 = vmax.f32 %v15545_v53, %v4352_v3  ;;  %v4379_v16 = vmax.f32 %v15457_v22, %v4353_v1  ;;  %v4354_v28 = vsel %vm2951_vm10, %v15717_v20, %v15723_v30  ;;  %v4355_v63 = vsel %vm2951_vm10, %v15723_v30, %v15719_v52 }
 0x9ce   :  { %4647 = vrot.lane.b32.xlu0 %v15766_v2, %s13411_s22  ;;  %4641 = vrot.lane.b32.xlu1 %v15768_v27, %s13411_s22  ;;  %v4576_v20 = vrot.slane %v4113_v8, %v14092_v23  ;;  %v4381_v30 = vmax.f32 %v15477_v54, %v4355_v63  ;;  %v4356_v11 = vsel %vm2951_vm10, %v15719_v52, %v15733_v48 }
 0x9cf   :  { %v4357_v3 = vsel %vm2951_vm10, %v15733_v48, %v15721_v34  ;;  %v4358_v52 = vsel %vm2951_vm10, %v15721_v34, %v15669_v44  ;;  %v4584_v48 = vrot.slane %v4113_v8, %v14123_v40 }
 0x9d0   :  { %v4384_v34 = vmax.f32 %v15567_v39, %v4358_v52 }
 0x9d4   :  { %v4479_v26 = vpop.permute.xlu0 %4478  ;;  %v4481_v4 = vpop.permute.xlu1 %4480 }
 0x9d5   :  { %v4500_v0 = vsel %vm2568_vm15, %v4477_v7, %v4479_v26  ;;  %v4501_v31 = vsel %vm2568_vm15, %v4479_v26, %v4481_v4 }
 0x9d6   :  { %v4526_v61 = vmax.f32 %v4376_v19, %v4500_v0  ;;  %v4527_v43 = vmax.f32 %v4377_v55, %v4501_v31  ;;  %v4572_v55 = vrot.slane %v4113_v8, %v14090_v59  ;;  %v4580_v31 = vrot.slane %v4113_v8, %v14107_v62 }
 0x9d8   :  { %v15799_v33 = vmul.f32 %v4556_v29, %v4526_v61  ;;  %v15801_v14 = vmul.f32 %v4560_v45, %v4527_v43  ;;  %v4483_v7 = vpop.permute.xlu0 %4482  ;;  %v4485_v57 = vpop.permute.xlu1 %4484  ;;  %v4380_v29 = vmax.f32 %v15552_v58, %v4354_v28  ;;  %v4382_v61 = vmax.f32 %v15560_v56, %v4356_v11 }
 0x9d9   :  { %v4502_v6 = vsel %vm2568_vm15, %v4481_v4, %v4483_v7  ;;  %v4503_v53 = vsel %vm2568_vm15, %v4483_v7, %v4485_v57  ;;  %v4383_v43 = vmax.f32 %v15494_v5, %v4357_v3  ;;  %v4588_v56 = vrot.slane %v4113_v8, %v14125_v10 }
 0x9da   :  { %19423 = vst [vmem:[#allocation19_spill] sm:$0xff] %v15799_v33  ;;  %19424 = vst [vmem:[#allocation20_spill] sm:$0xff] %v15801_v14  ;;  %v4528_v19 = vmax.f32 %v4378_v18, %v4502_v6  ;;  %v4529_v22 = vmax.f32 %v4379_v16, %v4503_v53  ;;  %4649 = vrot.lane.b32.xlu0 %v15799_v33, %s13411_s22  ;;  %4651 = vrot.lane.b32.xlu1 %v15801_v14, %s13411_s22 }
 0x9dc   :  { %v15819_v26 = vmul.f32 %v4564_v49, %v4528_v19  ;;  %v15821_v45 = vmul.f32 %v4568_v21, %v4529_v22  ;;  %v4487_v4 = vpop.permute.xlu0 %4486  ;;  %v4489_v51 = vpop.permute.xlu1 %4488 }
 0x9dd   :  { %v4504_v1 = vsel %vm2568_vm15, %v4485_v57, %v4487_v4  ;;  %v4505_v58 = vsel %vm2568_vm15, %v4487_v4, %v4489_v51 }
 0x9de   :  { %19425 = vst [vmem:[#allocation21_spill] sm:$0xff] %v15819_v26  ;;  %v4530_v0 = vmax.f32 %v4380_v29, %v4504_v1  ;;  %v4531_v54 = vmax.f32 %v4381_v30, %v4505_v58  ;;  %4653 = vrot.lane.b32.xlu0 %v15819_v26, %s13411_s22  ;;  %4655 = vrot.lane.b32.xlu1 %v15821_v45, %s13411_s22 }
 0x9e0   :  { %v15842_v49 = vmul.f32 %v4572_v55, %v4530_v0  ;;  %v15844_v21 = vmul.f32 %v4576_v20, %v4531_v54  ;;  %v4491_v18 = vpop.permute.xlu0 %4490  ;;  %v4493_v16 = vpop.permute.xlu1 %4492 }
 0x9e1   :  { %v4506_v7 = vsel %vm2568_vm15, %v4489_v51, %v4491_v18  ;;  %v4507_v57 = vsel %vm2568_vm15, %v4491_v18, %v4493_v16  ;;  %v4508_v44 = vsel %vm2568_vm15, %v4493_v16, %v15725_v60 }
 0x9e2   :  { %19426 = vst [vmem:[#allocation22_spill] sm:$0xff] %v15842_v49  ;;  %v4532_v28 = vmax.f32 %v4382_v61, %v4506_v7  ;;  %v4533_v63 = vmax.f32 %v4383_v43, %v4507_v57  ;;  %4657 = vrot.lane.b32.xlu0 %v15842_v49, %s13411_s22  ;;  %4659 = vrot.lane.b32.xlu1 %v15844_v21, %s13411_s22 }
 0x9e3   :  { %v4534_v6 = vmax.f32 %v4384_v34, %v4508_v44 }
 0x9e4   :  { %v15855_v5 = vmul.f32 %v4580_v31, %v4532_v28  ;;  %v15858_v53 = vmul.f32 %v4584_v48, %v4533_v63 }
 0x9e5   :  { %v15864_v39 = vmul.f32 %v4588_v56, %v4534_v6 }
 0x9e6   :  { %19427 = vst [vmem:[#allocation23_spill] sm:$0xff] %v15855_v5  ;;  %4661 = vrot.lane.b32.xlu0 %v15855_v5, %s13411_s22  ;;  %4663 = vrot.lane.b32.xlu1 %v15858_v53, %s13411_s22 }
 0x9e7   :  { %19428 = vst [vmem:[#allocation24_spill] sm:$0xff] %v15864_v39 }
 0x9ea   :  { %4665 = vrot.lane.b32.xlu0 %v15864_v39, %s13411_s22 }
 0xa3c   :  { %v4646_v60 = vpop.permute.xlu1 %4645  ;;  %v4644_v22 = vpop.permute.xlu0 %4643 }
 0xa3d   :  { %v15892_v3 = vsel %vm21_vm0, %v4644_v22, %v4646_v60 }
 0xa40   :  { %v4642_v19 = vpop.permute.xlu1 %4641  ;;  %v4648_v8 = vpop.permute.xlu0 %4647 }
 0xa41   :  { %4693 = vst.msk [vmem:[#allocation2 + $0x8] sm:$0xff] %vm23_vm1, %v4642_v19  ;;  %v15899_v1 = vsel %vm21_vm0, %v4642_v19, %v4644_v22  ;;  %v15906_v58 = vsel %vm21_vm0, %v4646_v60, %v4648_v8 }
 0xa48   :  { %v15869_v55 = vld [vmem:[#allocation2 + $0x8] sm:$0xff] }
 0xa49   :  { %5073 = vrot.lane.b32.xlu1 %v15869_v55, %s13434_s15  ;;  %4978 = vrot.lane.b32.xlu0 %v15869_v55, %s13419_s27 }
 0xa4c   :  { %v4650_v20 = vpop.permute.xlu0 %4649  ;;  %v4652_v0 = vpop.permute.xlu1 %4651 }
 0xa4d   :  { %4858 = vrot.lane.b32.xlu1 %v15869_v55, %s13434_s15  ;;  %4763 = vrot.lane.b32.xlu0 %v15869_v55, %s13419_s27  ;;  %v15925_v54 = vsel %vm21_vm0, %v4650_v20, %v4652_v0  ;;  %v15932_v52 = vsel %vm21_vm0, %v4648_v8, %v4650_v20 }
 0xa50   :  { %v4654_v29 = vpop.permute.xlu0 %4653  ;;  %v4656_v48 = vpop.permute.xlu1 %4655 }
 0xa51   :  { %v15939_v31 = vsel %vm21_vm0, %v4652_v0, %v4654_v29  ;;  %v15950_v61 = vsel %vm21_vm0, %v4654_v29, %v4656_v48 }
 0xa54   :  { %v4658_v30 = vpop.permute.xlu0 %4657  ;;  %v4660_v18 = vpop.permute.xlu1 %4659 }
 0xa55   :  { %v15985_v43 = vsel %vm21_vm0, %v4656_v48, %v4658_v30  ;;  %v15996_v16 = vsel %vm21_vm0, %v4658_v30, %v4660_v18 }
 0xa58   :  { %v15879_v4 = vpop.permute.xlu0 %4661  ;;  %v4664_v57 = vpop.permute.xlu1 %4663 }
 0xa59   :  { %v16000_v7 = vsel %vm21_vm0, %v4660_v18, %v15879_v4  ;;  %v16012_v44 = vsel %vm21_vm0, %v15879_v4, %v4664_v57 }
 0xa5c   :  { %v15881_v51 = vpop.permute.xlu0 %4665 }
 0xa5d   :  { %4706 = vst.msk [vmem:[#allocation2 + $0x70] sm:$0xff] %vm21_vm0, %v15881_v51  ;;  %v16060_v29 = vsel %vm21_vm0, %v4664_v57, %v15881_v51 }
 0xa64   :  { %v15885_v11 = vld [vmem:[#allocation2 + $0x70] sm:$0xff] }
 0xa65   :  { %5099 = vrot.lane.b32.xlu1 %v15885_v11, %s13434_s15  ;;  %5313 = vrot.lane.b32.xlu0 %v15885_v11, %s13434_s15 }
 0xa69   :  { %5291 = vrot.lane.b32.xlu1 %v15892_v3, %s13434_s15  ;;  %5218 = vrot.lane.b32.xlu0 %v15885_v11, %s13419_s27 }
 0xa6d   :  { %5004 = vrot.lane.b32.xlu0 %v15885_v11, %s13419_s27  ;;  %5289 = vrot.lane.b32.xlu1 %v15899_v1, %s13434_s15 }
 0xa71   :  { %5293 = vrot.lane.b32.xlu0 %v15906_v58, %s13434_s15  ;;  %5198 = vrot.lane.b32.xlu1 %v15906_v58, %s13419_s27 }
 0xa75   :  { %5196 = vrot.lane.b32.xlu0 %v15892_v3, %s13419_s27  ;;  %5075 = vrot.lane.b32.xlu1 %v15899_v1, %s13434_s15 }
 0xa79   :  { %5194 = vrot.lane.b32.xlu0 %v15899_v1, %s13419_s27  ;;  %4982 = vrot.lane.b32.xlu1 %v15892_v3, %s13419_s27 }
 0xa7d   :  { %5077 = vrot.lane.b32.xlu0 %v15892_v3, %s13434_s15  ;;  %4765 = vrot.lane.b32.xlu1 %v15899_v1, %s13419_s27 }
 0xa81   :  { %4980 = vrot.lane.b32.xlu0 %v15899_v1, %s13419_s27  ;;  %5297 = vrot.lane.b32.xlu1 %v15925_v54, %s13434_s15 }
 0xa85   :  { %4860 = vrot.lane.b32.xlu0 %v15899_v1, %s13434_s15  ;;  %5200 = vrot.lane.b32.xlu1 %v15932_v52, %s13419_s27 }
 0xa89   :  { %5295 = vrot.lane.b32.xlu0 %v15932_v52, %s13434_s15  ;;  %5299 = vrot.lane.b32.xlu1 %v15939_v31, %s13434_s15 }
 0xa8d   :  { %5079 = vrot.lane.b32.xlu1 %v15906_v58, %s13434_s15  ;;  %5202 = vrot.lane.b32.xlu0 %v15925_v54, %s13419_s27 }
 0xa91   :  { %5204 = vrot.lane.b32.xlu1 %v15939_v31, %s13419_s27  ;;  %5301 = vrot.lane.b32.xlu0 %v15950_v61, %s13434_s15 }
 0xa95   :  { %4984 = vrot.lane.b32.xlu1 %v15906_v58, %s13419_s27  ;;  %5081 = vrot.lane.b32.xlu0 %v15932_v52, %s13434_s15 }
 0xa99   :  { %5083 = vrot.lane.b32.xlu1 %v15925_v54, %s13434_s15  ;;  %5206 = vrot.lane.b32.xlu0 %v15950_v61, %s13419_s27 }
 0xa9d   :  { %4862 = vrot.lane.b32.xlu1 %v15892_v3, %s13434_s15  ;;  %4986 = vrot.lane.b32.xlu0 %v15932_v52, %s13419_s27 }
 0xaa1   :  { %4988 = vrot.lane.b32.xlu1 %v15925_v54, %s13419_s27  ;;  %5085 = vrot.lane.b32.xlu0 %v15939_v31, %s13434_s15 }
 0xaa5   :  { %4767 = vrot.lane.b32.xlu1 %v15892_v3, %s13419_s27  ;;  %4864 = vrot.lane.b32.xlu0 %v15906_v58, %s13434_s15 }
 0xaa9   :  { %4866 = vrot.lane.b32.xlu1 %v15932_v52, %s13434_s15  ;;  %4990 = vrot.lane.b32.xlu0 %v15939_v31, %s13419_s27 }
 0xaad   :  { %4771 = vrot.lane.b32.xlu1 %v15932_v52, %s13419_s27  ;;  %4769 = vrot.lane.b32.xlu0 %v15906_v58, %s13419_s27 }
 0xab1   :  { %5303 = vrot.lane.b32.xlu1 %v15985_v43, %s13434_s15  ;;  %4868 = vrot.lane.b32.xlu0 %v15925_v54, %s13434_s15 }
 0xab5   :  { %5208 = vrot.lane.b32.xlu1 %v15985_v43, %s13419_s27  ;;  %4773 = vrot.lane.b32.xlu0 %v15925_v54, %s13419_s27 }
 0xab9   :  { %5307 = vrot.lane.b32.xlu1 %v16000_v7, %s13434_s15  ;;  %5305 = vrot.lane.b32.xlu0 %v15996_v16, %s13434_s15 }
 0xabb   :  { %v4979_v34 = vpop.permute.xlu0 %4978  ;;  %v5074_v28 = vpop.permute.xlu1 %5073 }
 0xabd   :  { %5087 = vrot.lane.b32.xlu1 %v15950_v61, %s13434_s15  ;;  %5210 = vrot.lane.b32.xlu0 %v15996_v16, %s13419_s27 }
 0xabf   :  { %v16034_v63 = vpop.permute.xlu0 %4763  ;;  %v16036_v56 = vpop.permute.xlu1 %4858 }
 0xac1   :  { %5212 = vrot.lane.b32.xlu1 %v16000_v7, %s13419_s27  ;;  %5309 = vrot.lane.b32.xlu0 %v16012_v44, %s13434_s15 }
 0xac5   :  { %4992 = vrot.lane.b32.xlu1 %v15950_v61, %s13419_s27  ;;  %5089 = vrot.lane.b32.xlu0 %v15985_v43, %s13434_s15 }
 0xac9   :  { %5091 = vrot.lane.b32.xlu1 %v15996_v16, %s13434_s15  ;;  %5214 = vrot.lane.b32.xlu0 %v16012_v44, %s13419_s27 }
 0xacd   :  { %4870 = vrot.lane.b32.xlu1 %v15939_v31, %s13434_s15  ;;  %4994 = vrot.lane.b32.xlu0 %v15985_v43, %s13419_s27 }
 0xad1   :  { %4996 = vrot.lane.b32.xlu1 %v15996_v16, %s13419_s27  ;;  %5093 = vrot.lane.b32.xlu0 %v16000_v7, %s13434_s15 }
 0xad5   :  { %4775 = vrot.lane.b32.xlu1 %v15939_v31, %s13419_s27  ;;  %4872 = vrot.lane.b32.xlu0 %v15950_v61, %s13434_s15 }
 0xad7   :  { %v16042_v6 = vpop.permute.xlu0 %5313  ;;  %v16044_v60 = vpop.permute.xlu1 %5099 }
 0xad9   :  { %4874 = vrot.lane.b32.xlu1 %v15985_v43, %s13434_s15  ;;  %4998 = vrot.lane.b32.xlu0 %v16000_v7, %s13419_s27 }
 0xadb   :  { %v16050_v19 = vpop.permute.xlu0 %5218  ;;  %v5292_v22 = vpop.permute.xlu1 %5291 }
 0xadd   :  { %4779 = vrot.lane.b32.xlu1 %v15985_v43, %s13419_s27  ;;  %4777 = vrot.lane.b32.xlu0 %v15950_v61, %s13419_s27 }
 0xadf   :  { %v16056_v8 = vpop.permute.xlu0 %5004  ;;  %v5290_v20 = vpop.permute.xlu1 %5289 }
 0xae0   :  { %v5317_v51 = vsel %vm4884_vm8, %v5290_v20, %v5292_v22 }
 0xae1   :  { %5311 = vrot.lane.b32.xlu1 %v16060_v29, %s13434_s15  ;;  %4876 = vrot.lane.b32.xlu0 %v15996_v16, %s13434_s15 }
 0xae3   :  { %v5294_v30 = vpop.permute.xlu0 %5293  ;;  %v16066_v4 = vpop.permute.xlu1 %5198 }
 0xae4   :  { %v5318_v0 = vsel %vm4884_vm8, %v5292_v22, %v5294_v30 }
 0xae5   :  { %5216 = vrot.lane.b32.xlu1 %v16060_v29, %s13419_s27  ;;  %4781 = vrot.lane.b32.xlu0 %v15996_v16, %s13419_s27 }
 0xae6   :  { %5504 = vmatprep.subr.mxu0 %v5318_v0 }
 0xae7   :  { %5505 = vmatpush1.msra.mxu0 %v5317_v51  ;;  %v5197_v48 = vpop.permute.xlu0 %5196  ;;  %v5076_v18 = vpop.permute.xlu1 %5075 }
 0xae8   :  { %v5223_v57 = vsel %vm559_vm6, %v5197_v48, %v16066_v4 }
 0xae9   :  { %5097 = vrot.lane.b32.xlu1 %v16060_v29, %s13434_s15  ;;  %5095 = vrot.lane.b32.xlu0 %v16012_v44, %s13434_s15 }
 0xaea   :  { %5506 = vmatprep.subr.mxu0 %v5223_v57 }
 0xaeb   :  { %v5195_v13 = vpop.permute.xlu0 %5194  ;;  %v16080_v38 = vpop.permute.xlu1 %4982 }
 0xaec   :  { %v5222_v35 = vsel %vm559_vm6, %v5195_v13, %v5197_v48  ;;  %v5101_v13 = vsel %vm4884_vm8, %v5074_v28, %v5076_v18  ;;  %v13435_v48 = vmov 6  }
 0xaed   :  { %5002 = vrot.lane.b32.xlu0 %v16060_v29, %s13419_s27  ;;  %5000 = vrot.lane.b32.xlu1 %v16012_v44, %s13419_s27 }
 0xaee   :  { %5507 = vmatpush1.msra.mxu0 %v5222_v35  ;;  %13370 = vset.pattern.permute.xlu1 %v13435_v48  ;;  %v4789_v48 = vsel %vm559_vm6, %v15685_v46, %v16034_v63 }
 0xaef   :  { %5508 = vmatprep.subr.mxu0 %v15892_v3  ;;  %v16088_v22 = vpop.permute.xlu0 %5077  ;;  %v16090_v20 = vpop.permute.xlu1 %4765 }
 0xaf0   :  { %5509 = vmatpush1.msra.mxu0 %v15899_v1  ;;  %v5102_v0 = vsel %vm4884_vm8, %v5076_v18, %v16088_v22 }
 0xaf1   :  { %4878 = vrot.lane.b32.xlu0 %v16000_v7, %s13434_s15  ;;  %4880 = vrot.lane.b32.xlu1 %v16012_v44, %s13434_s15 }
 0xaf2   :  { %5510 = vmatprep.subr.mxu0 %v5102_v0 }
 0xaf3   :  { %5511 = vmatpush1.msra.mxu0 %v5101_v13  ;;  %v4981_v35 = vpop.permute.xlu0 %4980  ;;  %v5298_v51 = vpop.permute.xlu1 %5297  ;;  %v4790_v13 = vsel %vm559_vm6, %v16034_v63, %v16090_v20 }
 0xaf4   :  { %v5007_v57 = vsel %vm559_vm6, %v4981_v35, %v16080_v38  ;;  %v5006_v15 = vsel %vm559_vm6, %v4979_v34, %v4981_v35 }
 0xaf5   :  { %4783 = vrot.lane.b32.xlu1 %v16000_v7, %s13419_s27  ;;  %4785 = vrot.lane.b32.xlu0 %v16012_v44, %s13419_s27 }
 0xaf6   :  { %5512 = vmatprep.subr.mxu0 %v5007_v57 }
 0xaf7   :  { %5513 = vmatpush1.msra.mxu0 %v5006_v15  ;;  %v16107_v0 = vpop.permute.xlu0 %4860  ;;  %v5201_v28 = vpop.permute.xlu1 %5200  ;;  %v4885_v15 = vsel %vm4884_vm8, %v15680_v24, %v16036_v56  ;;  %v16132_v24 = vld [vmem:[%s19341_s3] sm:$0xff] }
 0xaf8   :  { %5514 = vmatprep.subr.mxu0 %v15899_v1  ;;  %v4886_v18 = vsel %vm4884_vm8, %v16036_v56, %v16107_v0  ;;  %v16137_v56 = vld [vmem:[%s19340_s1 + $0x10] sm:$0xff] }
 0xaf9   :  { %5515 = vmatpush1.msra.mxu0 %v15869_v55  ;;  %4882 = vrot.lane.b32.xlu1 %v16060_v29, %s13434_s15 }
 0xafa   :  { %4787 = vrot.lane.b32.xlu0 %v16060_v29, %s13419_s27  ;;  %5516 = vmatprep.subr.mxu0 %v4886_v18 }
 0xafb   :  { %5517 = vmatpush1.msra.mxu0 %v4885_v15  ;;  %v5296_v34 = vpop.permute.xlu0 %5295  ;;  %v5300_v35 = vpop.permute.xlu1 %5299  ;;  %v5224_v15 = vsel %vm559_vm6, %v16066_v4, %v5201_v28 }
 0xafc   :  { %5518 = vmatprep.subr.mxu0 %v4790_v13  ;;  %v5320_v57 = vsel %vm4884_vm8, %v5296_v34, %v5298_v51  ;;  %v5319_v18 = vsel %vm4884_vm8, %v5294_v30, %v5296_v34 }
 0xafd   :  { %5519 = vmatpush1.msra.mxu0 %v4789_v48  ;;  %5575 = vmatprep.subr.mxu1 %v5320_v57  ;;  %v5321_v48 = vsel %vm4884_vm8, %v5298_v51, %v5300_v35 }
 0xafe   :  { %5520 = vmatprep.subr.mxu0 %v15869_v55  ;;  %5576 = vmatpush1.msra.mxu1 %v5319_v18 }
 0xaff   :  { %v5203_v46 = vpop.permute.xlu0 %5202  ;;  %v5080_v63 = vpop.permute.xlu1 %5079  ;;  %5521 = vmatpush1.msra.mxu0 %v15571_v50  ;;  %5484 = vperm.xlu1 %13370, %v16132_v24  }
 0xb00   :  { %v5225_v30 = vsel %vm559_vm6, %v5201_v28, %v5203_v46  ;;  %13059 = vmatmul.mubr.msk.f32.vlgmr.msra.gmra.mxu0 %vm1114_vm11, %v16137_v56  ;;  %v5103_v28 = vsel %vm4884_vm8, %v16088_v22, %v5080_v63 }
 0xb01   :  { %5577 = vmatprep.subr.mxu1 %v5225_v30  ;;  %5696 = vmatprep.mubr.f32.mxu0 %v15571_v50 }
 0xb02   :  { %5578 = vmatpush1.msra.mxu1 %v5224_v15 }
 0xb03   :  { %v16148_v55 = vpop.permute.xlu0 %5301  ;;  %5579 = vmatprep.subr.mxu1 %v15932_v52  ;;  %v5205_v34 = vpop.permute.xlu1 %5204 }
 0xb04   :  { %5580 = vmatpush1.msra.mxu1 %v15906_v58  ;;  %v5322_v13 = vsel %vm4884_vm8, %v5300_v35, %v16148_v55 }
 0xb05   :  { %5646 = vmatprep.subr.mxu0 %v5322_v13  ;;  %v5226_v13 = vsel %vm559_vm6, %v5203_v46, %v5205_v34 }
 0xb06   :  { %5647 = vmatpush1.msra.mxu0 %v5321_v48 }
 0xb07   :  { %v5082_v57 = vpop.permute.xlu0 %5081  ;;  %v4985_v18 = vpop.permute.xlu1 %4984 }
 0xb08   :  { %v5104_v4 = vsel %vm4884_vm8, %v5080_v63, %v5082_v57  ;;  %v5008_v22 = vsel %vm559_vm6, %v16080_v38, %v4985_v18 }
 0xb09   :  { %5581 = vmatprep.subr.mxu1 %v5104_v4 }
 0xb0a   :  { %5582 = vmatpush1.msra.mxu1 %v5103_v28 }
 0xb0b   :  { %v16158_v30 = vpop.permute.xlu0 %5206  ;;  %v5084_v15 = vpop.permute.xlu1 %5083 }
 0xb0c   :  { %v5227_v9 = vsel %vm559_vm6, %v5205_v34, %v16158_v30  ;;  %v5105_v34 = vsel %vm4884_vm8, %v5082_v57, %v5084_v15 }
 0xb0d   :  { %5648 = vmatprep.subr.mxu0 %v5227_v9 }
 0xb0e   :  { %5649 = vmatpush1.msra.mxu0 %v5226_v13 }
 0xb0f   :  { %v4987_v51 = vpop.permute.xlu0 %4986  ;;  %5650 = vmatprep.subr.mxu0 %v15939_v31  ;;  %v4863_v35 = vpop.permute.xlu1 %4862 }
 0xb10   :  { %5651 = vmatpush1.msra.mxu0 %v15925_v54  ;;  %v5009_v48 = vsel %vm559_vm6, %v4985_v18, %v4987_v51  ;;  %v4887_v38 = vsel %vm4884_vm8, %v16107_v0, %v4863_v35 }
 0xb11   :  { %5583 = vmatprep.subr.mxu1 %v5009_v48 }
 0xb12   :  { %5584 = vmatpush1.msra.mxu1 %v5008_v22 }
 0xb13   :  { %v16168_v63 = vpop.permute.xlu0 %5085  ;;  %5585 = vmatprep.subr.mxu1 %v15906_v58  ;;  %v4989_v9 = vpop.permute.xlu1 %4988 }
 0xb14   :  { %5586 = vmatpush1.msra.mxu1 %v15892_v3  ;;  %v5106_v46 = vsel %vm4884_vm8, %v5084_v15, %v16168_v63 }
 0xb15   :  { %5652 = vmatprep.subr.mxu0 %v5106_v46  ;;  %v5010_v46 = vsel %vm559_vm6, %v4987_v51, %v4989_v9 }
 0xb16   :  { %5653 = vmatpush1.msra.mxu0 %v5105_v34 }
 0xb17   :  { %v4865_v4 = vpop.permute.xlu0 %4864  ;;  %v4768_v28 = vpop.permute.xlu1 %4767 }
 0xb18   :  { %v4888_v13 = vsel %vm4884_vm8, %v4863_v35, %v4865_v4  ;;  %v4791_v0 = vsel %vm559_vm6, %v16090_v20, %v4768_v28 }
 0xb19   :  { %5587 = vmatprep.subr.mxu1 %v4888_v13 }
 0xb1a   :  { %5588 = vmatpush1.msra.mxu1 %v4887_v38 }
 0xb1b   :  { %v16178_v18 = vpop.permute.xlu0 %4990  ;;  %v4867_v48 = vpop.permute.xlu1 %4866 }
 0xb1c   :  { %v5011_v22 = vsel %vm559_vm6, %v4989_v9, %v16178_v18  ;;  %v4889_v9 = vsel %vm4884_vm8, %v4865_v4, %v4867_v48 }
 0xb1d   :  { %5654 = vmatprep.subr.mxu0 %v5011_v22 }
 0xb1e   :  { %5655 = vmatpush1.msra.mxu0 %v5010_v46 }
 0xb1f   :  { %v4770_v57 = vpop.permute.xlu0 %4769  ;;  %5656 = vmatprep.subr.mxu0 %v15925_v54  ;;  %v4772_v15 = vpop.permute.xlu1 %4771 }
 0xb20   :  { %5657 = vmatpush1.msra.mxu0 %v15932_v52  ;;  %v4792_v34 = vsel %vm559_vm6, %v4768_v28, %v4770_v57 }
 0xb21   :  { %5589 = vmatprep.subr.mxu1 %v4792_v34 }
 0xb22   :  { %5590 = vmatpush1.msra.mxu1 %v4791_v0 }
 0xb23   :  { %v16188_v35 = vpop.permute.xlu0 %4868  ;;  %5591 = vmatprep.subr.mxu1 %v15892_v3  ;;  %v5304_v13 = vpop.permute.xlu1 %5303 }
 0xb24   :  { %5592 = vmatpush1.msra.mxu1 %v15899_v1  ;;  %v4890_v51 = vsel %vm4884_vm8, %v4867_v48, %v16188_v35  ;;  %v4793_v1 = vsel %vm559_vm6, %v4770_v57, %v4772_v15  ;;  %v5323_v22 = vsel %vm4884_vm8, %v16148_v55, %v5304_v13 }
 0xb25   :  { %5658 = vmatprep.subr.mxu0 %v4890_v51  ;;  %13060 = vmatmul.mubr.msk.f32.vlgmr.msra.gmra.mxu1 %vm1114_vm11, %v16137_v56 }
 0xb26   :  { %5659 = vmatpush1.msra.mxu0 %v4889_v9  ;;  %5767 = vmatprep.mubr.f32.mxu1 %v15571_v50 }
 0xb27   :  { %v16198_v20 = vpop.permute.xlu0 %4773  ;;  %v5209_v28 = vpop.permute.xlu1 %5208 }
 0xb28   :  { %v4794_v3 = vsel %vm559_vm6, %v4772_v15, %v16198_v20 }
 0xb29   :  { %5660 = vmatprep.subr.mxu0 %v4794_v3 }
 0xb2a   :  { %5661 = vmatpush1.msra.mxu0 %v4793_v1 }
 0xb2b   :  { %v5306_v38 = vpop.permute.xlu0 %5305  ;;  %5662 = vmatprep.subr.mxu0 %v15932_v52  ;;  %v5308_v4 = vpop.permute.xlu1 %5307 }
 0xb2c   :  { %5663 = vmatpush1.msra.mxu0 %v15906_v58  ;;  %v5324_v48 = vsel %vm4884_vm8, %v5304_v13, %v5306_v38  ;;  %v5228_v58 = vsel %vm559_vm6, %v16158_v30, %v5209_v28 }
 0xb2d   :  { %5717 = vmatprep.subr.mxu1 %v5324_v48  ;;  %13061 = vmatmul.mubr.msk.f32.vlgmr.msra.gmra.mxu0 %vm1114_vm11, %v16137_v56 }
 0xb2e   :  { %5718 = vmatpush1.msra.mxu1 %v5323_v22  ;;  %5838 = vmatprep.mubr.f32.mxu0 %v15571_v50  ;;  %v5325_v50 = vsel %vm4884_vm8, %v5306_v38, %v5308_v4 }
 0xb2f   :  { %v5211_v46 = vpop.permute.xlu0 %5210  ;;  %v5088_v57 = vpop.permute.xlu1 %5087 }
 0xb30   :  { %v5229_v15 = vsel %vm559_vm6, %v5209_v28, %v5211_v46  ;;  %v5107_v30 = vsel %vm4884_vm8, %v16168_v63, %v5088_v57 }
 0xb31   :  { %5719 = vmatprep.subr.mxu1 %v5229_v15 }
 0xb32   :  { %5720 = vmatpush1.msra.mxu1 %v5228_v58 }
 0xb33   :  { %v16214_v52 = vpop.permute.xlu0 %5309  ;;  %5721 = vmatprep.subr.mxu1 %v15985_v43  ;;  %v5213_v55 = vpop.permute.xlu1 %5212 }
 0xb34   :  { %5722 = vmatpush1.msra.mxu1 %v15950_v61  ;;  %v5326_v34 = vsel %vm4884_vm8, %v5308_v4, %v16214_v52  ;;  %v5230_v1 = vsel %vm559_vm6, %v5211_v46, %v5213_v55 }
 0xb35   :  { %5788 = vmatprep.subr.mxu0 %v5326_v34 }
 0xb36   :  { %5789 = vmatpush1.msra.mxu0 %v5325_v50 }
 0xb37   :  { %v5090_v0 = vpop.permute.xlu0 %5089  ;;  %v4993_v13 = vpop.permute.xlu1 %4992 }
 0xb38   :  { %v5108_v51 = vsel %vm4884_vm8, %v5088_v57, %v5090_v0  ;;  %v5012_v63 = vsel %vm559_vm6, %v16178_v18, %v4993_v13 }
 0xb39   :  { %5723 = vmatprep.subr.mxu1 %v5108_v51 }
 0xb3a   :  { %5724 = vmatpush1.msra.mxu1 %v5107_v30 }
 0xb3b   :  { %v5215_v9 = vpop.permute.xlu0 %5214  ;;  %v5092_v28 = vpop.permute.xlu1 %5091 }
 0xb3c   :  { %v5231_v3 = vsel %vm559_vm6, %v5213_v55, %v5215_v9  ;;  %v5109_v15 = vsel %vm4884_vm8, %v5090_v0, %v5092_v28 }
 0xb3d   :  { %5790 = vmatprep.subr.mxu0 %v5231_v3 }
 0xb3e   :  { %5791 = vmatpush1.msra.mxu0 %v5230_v1 }
 0xb3f   :  { %v4995_v48 = vpop.permute.xlu0 %4994  ;;  %5792 = vmatprep.subr.mxu0 %v16000_v7  ;;  %v4871_v38 = vpop.permute.xlu1 %4870 }
 0xb40   :  { %5793 = vmatpush1.msra.mxu0 %v15996_v16  ;;  %v5013_v4 = vsel %vm559_vm6, %v4993_v13, %v4995_v48  ;;  %v4891_v18 = vsel %vm4884_vm8, %v16188_v35, %v4871_v38 }
 0xb41   :  { %5725 = vmatprep.subr.mxu1 %v5013_v4 }
 0xb42   :  { %5726 = vmatpush1.msra.mxu1 %v5012_v63 }
 0xb43   :  { %v5094_v22 = vpop.permute.xlu0 %5093  ;;  %5727 = vmatprep.subr.mxu1 %v15950_v61  ;;  %v4997_v57 = vpop.permute.xlu1 %4996 }
 0xb44   :  { %5728 = vmatpush1.msra.mxu1 %v15939_v31  ;;  %v5110_v46 = vsel %vm4884_vm8, %v5092_v28, %v5094_v22  ;;  %v5014_v30 = vsel %vm559_vm6, %v4995_v48, %v4997_v57 }
 0xb45   :  { %5794 = vmatprep.subr.mxu0 %v5110_v46 }
 0xb46   :  { %5795 = vmatpush1.msra.mxu0 %v5109_v15 }
 0xb47   :  { %v4873_v58 = vpop.permute.xlu0 %4872  ;;  %v4776_v55 = vpop.permute.xlu1 %4775 }
 0xb48   :  { %v4892_v34 = vsel %vm4884_vm8, %v4871_v38, %v4873_v58  ;;  %v4795_v35 = vsel %vm559_vm6, %v16198_v20, %v4776_v55 }
 0xb49   :  { %5729 = vmatprep.subr.mxu1 %v4892_v34 }
 0xb4a   :  { %5730 = vmatpush1.msra.mxu1 %v4891_v18 }
 0xb4b   :  { %v4999_v50 = vpop.permute.xlu0 %4998  ;;  %v4875_v13 = vpop.permute.xlu1 %4874 }
 0xb4c   :  { %v5015_v51 = vsel %vm559_vm6, %v4997_v57, %v4999_v50  ;;  %v4893_v20 = vsel %vm4884_vm8, %v4873_v58, %v4875_v13 }
 0xb4d   :  { %5796 = vmatprep.subr.mxu0 %v5015_v51 }
 0xb4e   :  { %5797 = vmatpush1.msra.mxu0 %v5014_v30 }
 0xb4f   :  { %v4778_v3 = vpop.permute.xlu0 %4777  ;;  %5798 = vmatprep.subr.mxu0 %v15996_v16  ;;  %v4780_v0 = vpop.permute.xlu1 %4779 }
 0xb50   :  { %5799 = vmatpush1.msra.mxu0 %v15985_v43  ;;  %v4796_v28 = vsel %vm559_vm6, %v4776_v55, %v4778_v3  ;;  %v4797_v58 = vsel %vm559_vm6, %v4778_v3, %v4780_v0 }
 0xb51   :  { %5731 = vmatprep.subr.mxu1 %v4796_v28 }
 0xb52   :  { %5732 = vmatpush1.msra.mxu1 %v4795_v35 }
 0xb53   :  { %v4877_v1 = vpop.permute.xlu0 %4876  ;;  %5733 = vmatprep.subr.mxu1 %v15939_v31  ;;  %v5312_v38 = vpop.permute.xlu1 %5311 }
 0xb54   :  { %5734 = vmatpush1.msra.mxu1 %v15925_v54  ;;  %v4894_v48 = vsel %vm4884_vm8, %v4875_v13, %v4877_v1  ;;  %v5328_v4 = vsel %vm4884_vm8, %v5312_v38, %v16042_v6  ;;  %v5327_v63 = vsel %vm4884_vm8, %v16214_v52, %v5312_v38  ;;  %v16255_v54 = vld [vmem:[#allocation2] sm:$0xff] }
 0xb55   :  { %13062 = vmatmul.mubr.msk.f32.vlgmr.msra.gmra.mxu1 %vm1114_vm11, %v16137_v56  ;;  %5800 = vmatprep.subr.mxu0 %v4894_v48 }
 0xb56   :  { %5859 = vmatprep.subr.mxu1 %v5328_v4  ;;  %5801 = vmatpush1.msra.mxu0 %v4893_v20 }
 0xb57   :  { %5860 = vmatpush1.msra.mxu1 %v5327_v63  ;;  %v4782_v31 = vpop.permute.xlu0 %4781  ;;  %v5217_v57 = vpop.permute.xlu1 %5216  ;;  %5909 = vmatprep.mubr.f32.mxu1 %v16255_v54  ;;  %v13055_v63 = vld [vmem:[%s19342_s4 + $0x2] ss:$8 sm:$0xf] }
 0xb58   :  { %v4798_v46 = vsel %vm559_vm6, %v4780_v0, %v4782_v31  ;;  %v5233_v52 = vsel %vm559_vm6, %v5217_v57, %v16050_v19  ;;  %v5232_v15 = vsel %vm559_vm6, %v5215_v9, %v5217_v57 }
 0xb59   :  { %5802 = vmatprep.subr.mxu0 %v4798_v46  ;;  %5861 = vmatprep.subr.mxu1 %v5233_v52 }
 0xb5a   :  { %5803 = vmatpush1.msra.mxu0 %v4797_v58  ;;  %5862 = vmatpush1.msra.mxu1 %v5232_v15 }
 0xb5b   :  { %v5096_v55 = vpop.permute.xlu0 %5095  ;;  %5804 = vmatprep.subr.mxu0 %v15985_v43  ;;  %5863 = vmatprep.subr.mxu1 %v16060_v29  ;;  %v5098_v34 = vpop.permute.xlu1 %5097  ;;  %v5329_v43 = vsel %vm4884_vm8, %v16042_v6, %v15689_v32 }
 0xb5c   :  { %5805 = vmatpush1.msra.mxu0 %v15950_v61  ;;  %5864 = vmatpush1.msra.mxu1 %v16012_v44  ;;  %v5112_v18 = vsel %vm4884_vm8, %v5096_v55, %v5098_v34  ;;  %v5111_v9 = vsel %vm4884_vm8, %v5094_v22, %v5096_v55  ;;  %v5234_v22 = vsel %vm559_vm6, %v16050_v19, %v15691_v25 }
 0xb5d   :  { %13063 = vmatmul.mubr.msk.f32.vlgmr.msra.gmra.mxu0 %vm1114_vm11, %v16137_v56  ;;  %5865 = vmatprep.subr.mxu1 %v5112_v18  ;;  %v5113_v25 = vsel %vm4884_vm8, %v5098_v34, %v16044_v60 }
 0xb5e   :  { %13229 = vmatprep.subr.mxu0 %v16255_v54  ;;  %5866 = vmatpush1.msra.mxu1 %v5111_v9 }
 0xb5f   :  { %13230 = vmatpush3.msra.mxu0 %v5329_v43  ;;  %v5003_v13 = vpop.permute.xlu0 %5002  ;;  %v5001_v61 = vpop.permute.xlu1 %5000  ;;  %13247 = vmatprep.mubr.msk.f32.mxu0 %vm13422_vm12, %v16255_v54 }
 0xb60   :  { %13231 = vmatprep.subr.mxu0 %v16255_v54  ;;  %v5017_v51 = vsel %vm559_vm6, %v5001_v61, %v5003_v13  ;;  %v5016_v30 = vsel %vm559_vm6, %v4999_v50, %v5001_v61 }
 0xb61   :  { %13232 = vmatpush3.msra.mxu0 %v5234_v22  ;;  %5867 = vmatprep.subr.mxu1 %v5017_v51 }
 0xb62   :  { %13233 = vmatprep.subr.mxu0 %v16255_v54  ;;  %5868 = vmatpush1.msra.mxu1 %v5016_v30 }
 0xb63   :  { %13234 = vmatpush3.msra.mxu0 %v15885_v11  ;;  %v4879_v32 = vpop.permute.xlu0 %4878  ;;  %5869 = vmatprep.subr.mxu1 %v16012_v44  ;;  %v4881_v6 = vpop.permute.xlu1 %4880  ;;  %v5018_v11 = vsel %vm559_vm6, %v5003_v13, %v16056_v8 }
 0xb64   :  { %13235 = vmatprep.subr.mxu0 %v16255_v54  ;;  %5870 = vmatpush1.msra.mxu1 %v16000_v7  ;;  %v4896_v19 = vsel %vm4884_vm8, %v4879_v32, %v4881_v6  ;;  %v4895_v50 = vsel %vm4884_vm8, %v4877_v1, %v4879_v32 }
 0xb65   :  { %13236 = vmatpush3.msra.mxu0 %v5113_v25  ;;  %5871 = vmatprep.subr.mxu1 %v4896_v19 }
 0xb66   :  { %13237 = vmatprep.subr.mxu0 %v16255_v54  ;;  %5872 = vmatpush1.msra.mxu1 %v4895_v50 }
 0xb67   :  { %13238 = vmatpush3.msra.mxu0 %v5018_v11  ;;  %v4786_v3 = vpop.permute.xlu0 %4785  ;;  %v4784_v0 = vpop.permute.xlu1 %4783 }
 0xb68   :  { %13239 = vmatprep.subr.mxu0 %v16255_v54  ;;  %v4800_v28 = vsel %vm559_vm6, %v4784_v0, %v4786_v3  ;;  %v4799_v60 = vsel %vm559_vm6, %v4782_v31, %v4784_v0 }
 0xb69   :  { %13240 = vmatpush3.msra.mxu0 %v16060_v29  ;;  %5873 = vmatprep.subr.mxu1 %v4800_v28 }
 0xb6a   :  { %5874 = vmatpush1.msra.mxu1 %v4799_v60  ;;  %13241 = vmatprep.subr.mxu0 %v16255_v54 }
 0xb6b   :  { %5875 = vmatprep.subr.mxu1 %v16000_v7  ;;  %v4883_v35 = vpop.permute.xlu1 %4882  ;;  %v13437_v7 = vmov 8  }
 0xb6c   :  { %v4788_v1 = vpop.permute.xlu0 %4787  ;;  %v4897_v8 = vsel %vm4884_vm8, %v4881_v6, %v4883_v35  ;;  %5876 = vmatpush1.msra.mxu1 %v15996_v16  ;;  %v13436_v16 = vmov 7   ;;  %13372 = vset.pattern.permute.xlu1 %v13437_v7 }
 0xb6d   :  { %13064 = vmatmul.mubr.msk.f32.vlgmr.msra.gmra.mxu1 %vm1114_vm11, %v16137_v56  ;;  %13242 = vmatpush3.msra.mxu0 %v4897_v8  ;;  %v4801_v38 = vsel %vm559_vm6, %v4786_v3, %v4788_v1 }
 0xb6e   :  { %13243 = vmatprep.subr.mxu0 %v16255_v54  ;;  %7622 = vmatprep.mubr.f32.mxu1 %v16255_v54 }
 0xb6f   :  { %13244 = vmatpush3.msra.mxu0 %v4801_v38  ;;  %13371 = vset.pattern.permute.xlu0 %v13436_v16 }
 0xb70   :  { %13245 = vmatprep.subr.mxu0 %v16255_v54 }
 0xb71   :  { %13246 = vmatpush3.msra.mxu0 %v16012_v44  ;;  %v13056_v44 = vld [vmem:[%s19342_s4 + $0x2] ss:$8 sm:$0xf0] }
 0xb72   :  { %13248 = vmatmul.mubr.msk.f32.vlgmr.msra.gmra.mxu0 %vm1114_vm11, %v16137_v56  ;;  %v16321_v20 = vor.u32 %v13056_v44, %v13055_v63 }
 0xb73   :  { %7693 = vmatprep.mubr.f32.mxu0 %v16255_v54 }
 0xb74   :  { %v16333_v15 = vrot.slane %v16321_v20, %v14090_v59  ;;  %v16337_v58 = vrot.slane %v16321_v20, %v14092_v23  ;;  %v16351_v13 = vrot.slane %v16321_v20, %v14107_v62  ;;  %v16362_v25 = vrot.slane %v16321_v20, %v14123_v40 }
 0xb75   :  { %v16369_v0 = vrot.slane %v16321_v20, %v14125_v10  ;;  %v16383_v7 = vrot.slane %v16321_v20, %v14142_v12 }
 0xb7a   :  { %v16313_v4 = vpop.permute.xlu1 %5484 }
 0xbc0   :  { %v5556_v29 = vpop.f32.mrf.mxu0 }
 0xbc1   :  { %v16324_v56 = vadd.f32 %v5556_v29, %v16313_v4 }
 0xbc2   :  { %v5558_v48 = vpop.f32.mrf.mxu0 }
 0xbc3   :  { %v16327_v31 = vadd.f32 %v5558_v48, %v16313_v4  ;;  %v19378_v46 = vmax.f32 %v16324_v56, 0.0  ;;  %v13057_v48 = vld [vmem:[%s19342_s4 + $0x42] ss:$8 sm:$0xf] }
 0xbc5   :  { %v19379_v52 = vmax.f32 %v16327_v31, 0.0  ;;  %v6066_v18 = vmul.f32 %v16333_v15, %v19378_v46 }
 0xbc7   :  { %v6067_v9 = vmul.f32 %v16337_v58, %v19379_v52  ;;  %v6093_v51 = vmul.f32 %v6066_v18, %v6066_v18 }
 0xbc9   :  { %v6094_v30 = vmul.f32 %v6067_v9, %v6067_v9  ;;  %v6079_v11 = vadd.f32 %v6067_v9, %v6066_v18  ;;  %v13058_v18 = vld [vmem:[%s19342_s4 + $0x42] ss:$8 sm:$0x10] }
 0xbcb   :  { %v6106_v3 = vadd.f32 %v6094_v30, %v6093_v51  ;;  %v16398_v30 = vrot.slane %v16321_v20, %v14162_v36 }
 0xbe5   :  { %v5627_v57 = vpop.f32.mrf.mxu1 }
 0xbe6   :  { %v16340_v55 = vadd.f32 %v5627_v57, %v16313_v4 }
 0xbe7   :  { %v5629_v34 = vpop.f32.mrf.mxu1 }
 0xbe8   :  { %v19377_v43 = vmax.f32 %v16340_v55, 0.0  ;;  %v16354_v61 = vadd.f32 %v5629_v34, %v16313_v4 }
 0xbea   :  { %v6068_v32 = vmul.f32 %v16351_v13, %v19377_v43  ;;  %v19376_v6 = vmax.f32 %v16354_v61, 0.0 }
 0xbec   :  { %v6095_v60 = vmul.f32 %v6068_v32, %v6068_v32  ;;  %v6069_v35 = vmul.f32 %v16362_v25, %v19376_v6  ;;  %v6080_v38 = vadd.f32 %v6079_v11, %v6068_v32 }
 0xbed   :  { %v5698_v22 = vpop.f32.mrf.mxu0 }
 0xbee   :  { %v16365_v19 = vadd.f32 %v5698_v22, %v16313_v4  ;;  %v6107_v63 = vadd.f32 %v6106_v3, %v6095_v60  ;;  %v6096_v44 = vmul.f32 %v6069_v35, %v6069_v35  ;;  %v6081_v22 = vadd.f32 %v6080_v38, %v6069_v35 }
 0xbef   :  { %v5700_v50 = vpop.f32.mrf.mxu0 }
 0xbf0   :  { %v19373_v1 = vmax.f32 %v16365_v19, 0.0  ;;  %v16376_v8 = vadd.f32 %v5700_v50, %v16313_v4  ;;  %v16403_v50 = vor.u32 %v13058_v18, %v13057_v48  ;;  %v6108_v11 = vadd.f32 %v6107_v63, %v6096_v44 }
 0xbf1   :  { %v16417_v48 = vrot.slane %v16321_v20, %v14178_v47 }
 0xbf2   :  { %v6070_v57 = vmul.f32 %v16369_v0, %v19373_v1  ;;  %v19374_v34 = vmax.f32 %v16376_v8, 0.0  ;;  %v16421_v63 = vrot.slane %v16403_v50, %v14090_v59  ;;  %v16432_v6 = vrot.slane %v16403_v50, %v14092_v23 }
 0xbf4   :  { %v6097_v3 = vmul.f32 %v6070_v57, %v6070_v57  ;;  %v6082_v38 = vadd.f32 %v6081_v22, %v6070_v57 }
 0xbf6   :  { %v6109_v44 = vadd.f32 %v6108_v11, %v6097_v3 }
 0xc15   :  { %v5769_v28 = vpop.f32.mrf.mxu1 }
 0xc16   :  { %v16379_v16 = vadd.f32 %v5769_v28, %v16313_v4  ;;  %v6071_v28 = vmul.f32 %v16383_v7, %v19374_v34 }
 0xc17   :  { %v5771_v29 = vpop.f32.mrf.mxu1 }
 0xc18   :  { %v19375_v51 = vmax.f32 %v16379_v16, 0.0  ;;  %v16401_v32 = vadd.f32 %v5771_v29, %v16313_v4  ;;  %v6098_v18 = vmul.f32 %v6071_v28, %v6071_v28  ;;  %v6083_v22 = vadd.f32 %v6082_v38, %v6071_v28 }
 0xc1a   :  { %v6072_v1 = vmul.f32 %v16398_v30, %v19375_v51  ;;  %v19380_v29 = vmax.f32 %v16401_v32, 0.0  ;;  %v6110_v43 = vadd.f32 %v6109_v44, %v6098_v18 }
 0xc1c   :  { %v6099_v34 = vmul.f32 %v6072_v1, %v6072_v1  ;;  %v6073_v51 = vmul.f32 %v16417_v48, %v19380_v29  ;;  %v6084_v46 = vadd.f32 %v6083_v22, %v6072_v1  ;;  %v16444_v1 = vrot.slane %v16403_v50, %v14107_v62 }
 0xc1d   :  { %v5840_v9 = vpop.f32.mrf.mxu0 }
 0xc1e   :  { %v16409_v60 = vadd.f32 %v5840_v9, %v16313_v4  ;;  %v6100_v52 = vmul.f32 %v6073_v51, %v6073_v51  ;;  %v6085_v28 = vadd.f32 %v6084_v46, %v6073_v51 }
 0xc1f   :  { %v5842_v35 = vpop.f32.mrf.mxu0 }
 0xc20   :  { %v19385_v9 = vmax.f32 %v16409_v60, 0.0  ;;  %v16425_v57 = vadd.f32 %v5842_v35, %v16313_v4  ;;  %v6111_v35 = vadd.f32 %v6110_v43, %v6099_v34  ;;  %v16448_v43 = vrot.slane %v16403_v50, %v14123_v40 }
 0xc22   :  { %v6074_v11 = vmul.f32 %v16421_v63, %v19385_v9  ;;  %v19384_v3 = vmax.f32 %v16425_v57, 0.0  ;;  %v6112_v41 = vadd.f32 %v6111_v35, %v6100_v52 }
 0xc24   :  { %v6101_v38 = vmul.f32 %v6074_v11, %v6074_v11  ;;  %v6075_v29 = vmul.f32 %v16432_v6, %v19384_v3  ;;  %v6086_v39 = vadd.f32 %v6085_v28, %v6074_v11  ;;  %v16458_v28 = vrot.slane %v16403_v50, %v14125_v10 }
 0xc26   :  { %v6113_v46 = vadd.f32 %v6112_v41, %v6101_v38  ;;  %v6102_v34 = vmul.f32 %v6075_v29, %v6075_v29  ;;  %v6087_v3 = vadd.f32 %v6086_v39, %v6075_v29 }
 0xc28   :  { %v6114_v9 = vadd.f32 %v6113_v46, %v6102_v34 }
 0xc2d   :  { %v5911_v42 = vpop.f32.mrf.mxu1 }
 0xc2e   :  { %v5912_v44 = vadd.f32 %v5911_v42, %v16313_v4 }
 0xc2f   :  { %v5913_v18 = vpop.f32.mrf.mxu1 }
 0xc30   :  { %v5996_v51 = vmax.f32 %v5912_v44, 0.0  ;;  %v16451_v22 = vadd.f32 %v5913_v18, %v16313_v4 }
 0xc32   :  { %v6076_v52 = vmul.f32 %v16444_v1, %v5996_v51  ;;  %v5997_v42 = vmax.f32 %v16451_v22, 0.0  ;;  %v5982_v11 = vpop.f32.mrf.mxu0 }
 0xc33   :  { %v5983_v35 = vadd.f32 %v5982_v11, %v16313_v4 }
 0xc34   :  { %v6088_v5 = vadd.f32 %v6087_v3, %v6076_v52  ;;  %v6103_v41 = vmul.f32 %v6076_v52, %v6076_v52  ;;  %v6077_v38 = vmul.f32 %v16448_v43, %v5997_v42  ;;  %v13249_v44 = vpop.f32.mrf.mxu0 }
 0xc35   :  { %v5998_v39 = vmax.f32 %v5983_v35, 0.0 }
 0xc36   :  { %v6115_v29 = vadd.f32 %v6114_v9, %v6103_v41  ;;  %v6089_v18 = vadd.f32 %v6088_v5, %v6077_v38  ;;  %v6104_v49 = vmul.f32 %v6077_v38, %v6077_v38  ;;  %v19430_v38 = vmax.f32 %v16324_v56, 0.0 }
 0xc37   :  { %v6078_v26 = vmul.f32 %v16458_v28, %v5998_v39  ;;  %v19433_v56 = vmax.f32 %v16354_v61, 0.0  ;;  %v19434_v61 = vmax.f32 %v16365_v19, 0.0 }
 0xc38   :  { %v6116_v14 = vadd.f32 %v6115_v29, %v6104_v49  ;;  %v19431_v29 = vmax.f32 %v16340_v55, 0.0 }
 0xc39   :  { %v6105_v4 = vmul.f32 %v6078_v26, %v6078_v26  ;;  %v6090_v11 = vadd.f32 %v6089_v18, %v6078_v26  ;;  %v13070_v26 = vadd.f32 -1.0, %v16321_v20  ;;  %v19432_v20 = vmax.f32 %v16409_v60, 0.0 }
 0xc3b   :  { %6091 = vadd.xlane.f32.xlu0 %v6090_v11  ;;  %v6117_v33 = vadd.f32 %v6116_v14, %v6105_v4  ;;  %v16471_v49 = vmul.f32 1e+30, %v13070_v26 }
 0xc3d   :  { %6118 = vadd.xlane.f32.xlu1 %v6117_v33  ;;  %v13071_v33 = vadd.f32 -1.0, %v16403_v50  ;;  %v6220_v14 = vrot.slane %v16471_v49, %v14092_v23 }
 0xc4e   :  { %6170 = vperm.xlu1 %13372, %v16132_v24  }
 0xc51   :  { %6153 = vperm.xlu0 %13371, %v16132_v24   ;;  %v19429_v24 = vmax.f32 %v16327_v31, 0.0  ;;  %v6216_v31 = vrot.slane %v16471_v49, %v14090_v59 }
 0xcc4   :  { %v6092_v3 = vpop.xlane.xlu0 %6091 }
 0xcc5   :  { %v16466_v46 = vmul.f32 0.02, %v6092_v3  ;;  %v16494_v3 = vmul.f32 1e+30, %v13071_v33 }
 0xcc6   :  { %v6119_v34 = vpop.xlane.xlu1 %6118 }
 0xcc7   :  { %v6121_v52 = vmul.f32 0.02, %v6119_v34  ;;  %v6122_v5 = vmul.f32 %v16466_v46, %v16466_v46  ;;  %v6125_v41 = vsub.f32 %v19429_v24, %v16466_v46  ;;  %v6124_v44 = vsub.f32 %v19430_v38, %v16466_v46 }
 0xcc8   :  { %v6126_v18 = vsub.f32 %v19431_v29, %v16466_v46  ;;  %v6132_v4 = vsub.f32 %v19432_v20, %v16466_v46  ;;  %v6127_v34 = vsub.f32 %v19433_v56, %v16466_v46  ;;  %v6134_v55 = vsub.f32 %v5996_v51, %v16466_v46 }
 0xcc9   :  { %v6123_v9 = vsub.f32 %v6121_v52, %v6122_v5  ;;  %v6128_v24 = vsub.f32 %v19434_v61, %v16466_v46  ;;  %v6136_v51 = vsub.f32 %v5998_v39, %v16466_v46 }
 0xccb   :  { %v6137_v35 = vadd.f32 1e-05, %v6123_v9 }
 0xccc   :  { %v16490_v11 = vpop.permute.xlu0 %6153 }
 0xccd   :  { %13391 = vrsqrt.f32 %v6137_v35  ;;  %v16504_v35 = vpop.permute.xlu1 %6170 }
 0xcda   :  { %v16488_v50 = vpop.eup %13391 }
 0xcdb   :  { %v6140_v52 = vmul.f32 %v16488_v50, %v6125_v41  ;;  %v6139_v60 = vmul.f32 %v16488_v50, %v6124_v44  ;;  %v6141_v5 = vmul.f32 %v16488_v50, %v6126_v18  ;;  %v6147_v9 = vmul.f32 %v16488_v50, %v6132_v4 }
 0xcdc   :  { %v6142_v26 = vmul.f32 %v16488_v50, %v6127_v34  ;;  %v6149_v33 = vmul.f32 %v16488_v50, %v6134_v55  ;;  %v6143_v4 = vmul.f32 %v16488_v50, %v6128_v24  ;;  %v6151_v56 = vmul.f32 %v16488_v50, %v6136_v51 }
 0xcdd   :  { %v6157_v41 = vmul.f32 %v16490_v11, %v6140_v52  ;;  %v6156_v38 = vmul.f32 %v16490_v11, %v6139_v60  ;;  %v6158_v44 = vmul.f32 %v16490_v11, %v6141_v5  ;;  %v6164_v29 = vmul.f32 %v16490_v11, %v6147_v9 }
 0xcde   :  { %v6159_v18 = vmul.f32 %v16490_v11, %v6142_v26  ;;  %v6166_v20 = vmul.f32 %v16490_v11, %v6149_v33  ;;  %v6224_v52 = vrot.slane %v16471_v49, %v14107_v62  ;;  %v6248_v9 = vrot.slane %v16494_v3, %v14090_v59 }
 0xcdf   :  { %v6174_v19 = vadd.f32 %v16504_v35, %v6157_v41  ;;  %v6173_v39 = vadd.f32 %v16504_v35, %v6156_v38  ;;  %v6175_v34 = vadd.f32 %v16504_v35, %v6158_v44  ;;  %v6181_v55 = vadd.f32 %v16504_v35, %v6164_v29 }
 0xce0   :  { %v19435_v26 = vmax.f32 %v16376_v8, 0.0  ;;  %v6176_v61 = vadd.f32 %v16504_v35, %v6159_v18  ;;  %v6183_v24 = vadd.f32 %v16504_v35, %v6166_v20  ;;  %v6160_v51 = vmul.f32 %v16490_v11, %v6143_v4 }
 0xce1   :  { %v6195_v60 = vmul.f32 %v6174_v19, %v16337_v58  ;;  %v6194_v5 = vmul.f32 %v6173_v39, %v16333_v15  ;;  %v6168_v41 = vmul.f32 %v16490_v11, %v6151_v56  ;;  %v6196_v15 = vmul.f32 %v6175_v34, %v16351_v13 }
 0xce2   :  { %v6129_v33 = vsub.f32 %v19435_v26, %v16466_v46  ;;  %v6202_v44 = vmul.f32 %v6181_v55, %v16421_v63  ;;  %v6228_v8 = vrot.slane %v16471_v49, %v14123_v40  ;;  %v6256_v29 = vrot.slane %v16494_v3, %v14107_v62 }
 0xce3   :  { %v16537_v38 = vadd.f32 %v6220_v14, %v6195_v60  ;;  %v16539_v58 = vadd.f32 %v6216_v31, %v6194_v5  ;;  %v19436_v31 = vmax.f32 %v16379_v16, 0.0  ;;  %v6197_v63 = vmul.f32 %v6176_v61, %v16362_v25 }
 0xce4   :  { %v6144_v14 = vmul.f32 %v16488_v50, %v6129_v33  ;;  %v6204_v18 = vmul.f32 %v6183_v24, %v16444_v1  ;;  %v6177_v20 = vadd.f32 %v16504_v35, %v6160_v51  ;;  %v6185_v4 = vadd.f32 %v16504_v35, %v6168_v41 }
 0xce5   :  { %6306 = vrot.lane.b32.xlu1 %v16537_v38, %s13411_s22  ;;  %6304 = vrot.lane.b32.xlu0 %v16539_v58, %s13411_s22  ;;  %v6130_v13 = vsub.f32 %v19436_v31, %v16466_v46  ;;  %v16559_v56 = vadd.f32 %v6224_v52, %v6196_v15  ;;  %v16561_v19 = vadd.f32 %v6248_v9, %v6202_v44  ;;  %v19437_v16 = vmax.f32 %v16401_v32, 0.0 }
 0xce6   :  { %v6161_v39 = vmul.f32 %v16490_v11, %v6144_v14  ;;  %v6232_v25 = vrot.slane %v16471_v49, %v14125_v10  ;;  %v16574_v55 = vadd.f32 %v6228_v8, %v6197_v63  ;;  %v6198_v52 = vmul.f32 %v6177_v20, %v16369_v0 }
 0xce7   :  { %v6145_v34 = vmul.f32 %v16488_v50, %v6130_v13  ;;  %v6131_v1 = vsub.f32 %v19437_v16, %v16466_v46  ;;  %v6206_v60 = vmul.f32 %v6185_v4, %v16458_v28  ;;  %v6264_v5 = vrot.slane %v16494_v3, %v14125_v10 }
 0xce8   :  { %v16580_v9 = vadd.f32 %v6256_v29, %v6204_v18  ;;  %v6178_v26 = vadd.f32 %v16504_v35, %v6161_v39  ;;  %v19438_v0 = vmax.f32 %v16425_v57, 0.0  ;;  %v16592_v28 = vadd.f32 %v6232_v25, %v6198_v52 }
 0xce9   :  { %6308 = vrot.lane.b32.xlu1 %v16559_v56, %s13411_s22  ;;  %6320 = vrot.lane.b32.xlu0 %v16561_v19, %s13411_s22  ;;  %v6162_v33 = vmul.f32 %v16490_v11, %v6145_v34  ;;  %v6146_v61 = vmul.f32 %v16488_v50, %v6131_v1  ;;  %v16594_v24 = vadd.f32 %v6264_v5, %v6206_v60 }
 0xcea   :  { %v6133_v32 = vsub.f32 %v19438_v0, %v16466_v46  ;;  %v6236_v51 = vrot.slane %v16471_v49, %v14142_v12  ;;  %v6199_v41 = vmul.f32 %v6178_v26, %v16383_v7  ;;  %v6135_v57 = vsub.f32 %v5997_v42, %v16466_v46  ;;  %v16611_v7 = vld [vmem:[#allocation2 + $0x78] sm:$0xff] }
 0xceb   :  { %v6179_v15 = vadd.f32 %v16504_v35, %v6162_v33  ;;  %v6163_v44 = vmul.f32 %v16490_v11, %v6146_v61  ;;  %v6240_v29 = vrot.slane %v16471_v49, %v14162_v36  ;;  %v6244_v46 = vrot.slane %v16471_v49, %v14178_v47 }
 0xcec   :  { %v6148_v8 = vmul.f32 %v16488_v50, %v6133_v32  ;;  %v6150_v14 = vmul.f32 %v16488_v50, %v6135_v57  ;;  %v16614_v31 = vadd.f32 %v6236_v51, %v6199_v41  ;;  %v6252_v39 = vrot.slane %v16494_v3, %v14092_v23 }
 0xced   :  { %6310 = vrot.lane.b32.xlu1 %v16574_v55, %s13411_s22  ;;  %6324 = vrot.lane.b32.xlu0 %v16580_v9, %s13411_s22  ;;  %v6200_v13 = vmul.f32 %v6179_v15, %v16398_v30  ;;  %v6180_v22 = vadd.f32 %v16504_v35, %v6163_v44 }
 0xcee   :  { %v6165_v42 = vmul.f32 %v16490_v11, %v6148_v8  ;;  %v6167_v30 = vmul.f32 %v16490_v11, %v6150_v14  ;;  %v6260_v11 = vrot.slane %v16494_v3, %v14123_v40 }
 0xcef   :  { %v16625_v63 = vadd.f32 %v6240_v29, %v6200_v13  ;;  %v6201_v50 = vmul.f32 %v6180_v22, %v16417_v48 }
 0xcf0   :  { %v6182_v18 = vadd.f32 %v16504_v35, %v6165_v42  ;;  %v6184_v49 = vadd.f32 %v16504_v35, %v6167_v30 }
 0xcf1   :  { %6312 = vrot.lane.b32.xlu1 %v16592_v28, %s13411_s22  ;;  %6328 = vrot.lane.b32.xlu0 %v16594_v24, %s13411_s22  ;;  %v16632_v20 = vadd.f32 %v6244_v46, %v6201_v50 }
 0xcf2   :  { %v6203_v4 = vmul.f32 %v6182_v18, %v16432_v6  ;;  %v6205_v34 = vmul.f32 %v6184_v49, %v16448_v43 }
 0xcf4   :  { %v16640_v48 = vadd.f32 %v6252_v39, %v6203_v4  ;;  %v16647_v25 = vadd.f32 %v6260_v11, %v6205_v34 }
 0xcf5   :  { %6314 = vrot.lane.b32.xlu1 %v16614_v31, %s13411_s22  ;;  %6493 = vrot.lane.b32.xlu0 %v16611_v7, %s13419_s27 }
 0xcf9   :  { %6316 = vrot.lane.b32.xlu1 %v16625_v63, %s13411_s22 }
 0xcfd   :  { %6318 = vrot.lane.b32.xlu1 %v16632_v20, %s13411_s22 }
 0xd01   :  { %6322 = vrot.lane.b32.xlu1 %v16640_v48, %s13411_s22 }
 0xd05   :  { %6326 = vrot.lane.b32.xlu1 %v16647_v25, %s13411_s22 }
 0xd57   :  { %v6307_v6 = vpop.permute.xlu1 %6306  ;;  %v6305_v35 = vpop.permute.xlu0 %6304 }
 0xd58   :  { %6356 = vst.msk [vmem:[#allocation2 + $0x8] sm:$0xff] %vm23_vm1, %v6305_v35  ;;  %v16664_v32 = vsel %vm21_vm0, %v6305_v35, %v6307_v6 }
 0xd5b   :  { %v6309_v16 = vpop.permute.xlu1 %6308  ;;  %v6321_v1 = vpop.permute.xlu0 %6320 }
 0xd5c   :  { %v6331_v44 = vsel %vm21_vm0, %v6307_v6, %v6309_v16 }
 0xd5f   :  { %v6311_v52 = vpop.permute.xlu1 %6310  ;;  %v6325_v60 = vpop.permute.xlu0 %6324  ;;  %v6370_v15 = vld [vmem:[#allocation2 + $0x8] sm:$0xff] }
 0xd60   :  { %v16653_v43 = vsel %vm21_vm0, %v6309_v16, %v6311_v52 }
 0xd61   :  { %6471 = vrot.lane.b32.xlu0 %v16653_v43, %s13419_s27 }
 0xd63   :  { %v6313_v3 = vpop.permute.xlu1 %6312  ;;  %v6329_v5 = vpop.permute.xlu0 %6328 }
 0xd64   :  { %6369 = vst.msk [vmem:[#allocation2 + $0x70] sm:$0xff] %vm21_vm0, %v6329_v5  ;;  %v6333_v57 = vsel %vm21_vm0, %v6311_v52, %v6313_v3 }
 0xd67   :  { %v6315_v26 = vpop.permute.xlu1 %6314  ;;  %v6494_v61 = vpop.permute.xlu0 %6493 }
 0xd68   :  { %v16659_v33 = vsel %vm21_vm0, %v6313_v3, %v6315_v26  ;;  %v6535_v51 = vmax.f32 %v16611_v7, %v6494_v61 }
 0xd69   :  { %6475 = vrot.lane.b32.xlu0 %v16659_v33, %s13419_s27 }
 0xd6b   :  { %v6383_v0 = vld [vmem:[#allocation2 + $0x70] sm:$0xff]  ;;  %v6317_v41 = vpop.permute.xlu1 %6316 }
 0xd6c   :  { %6491 = vrot.lane.b32.xlu1 %v6383_v0, %s13419_s27  ;;  %v16681_v29 = vsel %vm21_vm0, %v6315_v26, %v6317_v41 }
 0xd6d   :  { %6467 = vrot.lane.b32.xlu0 %v16664_v32, %s13419_s27 }
 0xd6f   :  { %v6319_v8 = vpop.permute.xlu1 %6318 }
 0xd70   :  { %6399 = vrot.lane.b32.xlu1 %v6370_v15, %s13434_s15  ;;  %v16684_v13 = vsel %vm21_vm0, %v6319_v8, %v6321_v1  ;;  %v6336_v50 = vsel %vm21_vm0, %v6317_v41, %v6319_v8 }
 0xd71   :  { %6576 = vrot.lane.b32.xlu0 %v6535_v51, %s13419_s27 }
 0xd73   :  { %v6323_v14 = vpop.permute.xlu1 %6322 }
 0xd74   :  { %6469 = vrot.lane.b32.xlu1 %v6331_v44, %s13419_s27  ;;  %v16691_v22 = vsel %vm21_vm0, %v6323_v14, %v6325_v60  ;;  %v16707_v18 = vsel %vm21_vm0, %v6321_v1, %v6323_v14 }
 0xd75   :  { %6925 = vrot.lane.b32.xlu0 %v16255_v54, %s13434_s15 }
 0xd77   :  { %v6327_v42 = vpop.permute.xlu1 %6326 }
 0xd78   :  { %6473 = vrot.lane.b32.xlu1 %v6333_v57, %s13419_s27  ;;  %v16697_v46 = vsel %vm21_vm0, %v6327_v42, %v6329_v5 }
 0xd79   :  { %7383 = vrot.lane.b32.xlu0 %v16611_v7, %s13434_s15 }
 0xd7c   :  { %6477 = vrot.lane.b32.xlu1 %v16681_v29, %s13419_s27 }
 0xd7d   :  { %6481 = vrot.lane.b32.xlu0 %v16684_v13, %s13419_s27 }
 0xd80   :  { %6425 = vrot.lane.b32.xlu1 %v6383_v0, %s13434_s15 }
 0xd81   :  { %6485 = vrot.lane.b32.xlu0 %v16691_v22, %s13419_s27 }
 0xd84   :  { %6830 = vrot.lane.b32.xlu1 %v16255_v54, %s13419_s27  ;;  %v16717_v54 = vsel %vm21_vm0, %v6325_v60, %v6327_v42 }
 0xd85   :  { %6489 = vrot.lane.b32.xlu0 %v16697_v46, %s13419_s27 }
 0xd88   :  { %6479 = vrot.lane.b32.xlu1 %v6336_v50, %s13419_s27 }
 0xd89   :  { %6403 = vrot.lane.b32.xlu0 %v6331_v44, %s13434_s15 }
 0xd8c   :  { %6483 = vrot.lane.b32.xlu1 %v16707_v18, %s13419_s27 }
 0xd8d   :  { %6407 = vrot.lane.b32.xlu0 %v6333_v57, %s13434_s15 }
 0xd90   :  { %7288 = vrot.lane.b32.xlu1 %v16611_v7, %s13419_s27 }
 0xd91   :  { %6411 = vrot.lane.b32.xlu0 %v16681_v29, %s13434_s15 }
 0xd94   :  { %6487 = vrot.lane.b32.xlu1 %v16717_v54, %s13419_s27 }
 0xd95   :  { %6415 = vrot.lane.b32.xlu0 %v16684_v13, %s13434_s15 }
 0xd98   :  { %6401 = vrot.lane.b32.xlu1 %v16664_v32, %s13434_s15 }
 0xd99   :  { %6419 = vrot.lane.b32.xlu0 %v16691_v22, %s13434_s15 }
 0xd9c   :  { %6405 = vrot.lane.b32.xlu1 %v16653_v43, %s13434_s15 }
 0xd9d   :  { %6423 = vrot.lane.b32.xlu0 %v16697_v46, %s13434_s15 }
 0xda0   :  { %6409 = vrot.lane.b32.xlu1 %v16659_v33, %s13434_s15 }
 0xda4   :  { %6413 = vrot.lane.b32.xlu1 %v6336_v50, %s13434_s15 }
 0xda8   :  { %6417 = vrot.lane.b32.xlu1 %v16707_v18, %s13434_s15 }
 0xdac   :  { %6421 = vrot.lane.b32.xlu1 %v16717_v54, %s13434_s15 }
 0xdd3   :  { %v6472_v7 = vpop.permute.xlu0 %6471 }
 0xddb   :  { %v6476_v30 = vpop.permute.xlu0 %6475 }
 0xdde   :  { %v6492_v4 = vpop.permute.xlu1 %6491 }
 0xddf   :  { %v6507_v39 = vsel %vm559_vm6, %v6492_v4, %v6494_v61  ;;  %v6468_v34 = vpop.permute.xlu0 %6467 }
 0xde0   :  { %v6534_v49 = vmax.f32 %v6383_v0, %v6507_v39 }
 0xde2   :  { %v16739_v11 = vpop.permute.xlu1 %6399  ;;  %6574 = vrot.lane.b32.xlu0 %v6534_v49, %s13419_s27 }
 0xde3   :  { %v16742_v35 = vpop.permute.xlu0 %6576 }
 0xde6   :  { %v6470_v6 = vpop.permute.xlu1 %6469 }
 0xde7   :  { %v6496_v16 = vsel %vm559_vm6, %v6470_v6, %v6472_v7  ;;  %v16749_v61 = vpop.permute.xlu0 %6925  ;;  %v6495_v0 = vsel %vm559_vm6, %v6468_v34, %v6470_v6 }
 0xde8   :  { %v6523_v1 = vmax.f32 %v6331_v44, %v6496_v16  ;;  %v6522_v15 = vmax.f32 %v16664_v32, %v6495_v0 }
 0xdea   :  { %v6474_v52 = vpop.permute.xlu1 %6473  ;;  %6552 = vrot.lane.b32.xlu0 %v6523_v1, %s13419_s27 }
 0xdeb   :  { %v6497_v60 = vsel %vm559_vm6, %v6472_v7, %v6474_v52  ;;  %v6498_v3 = vsel %vm559_vm6, %v6474_v52, %v6476_v30 }
 0xdec   :  { %v6524_v5 = vmax.f32 %v16653_v43, %v6497_v60  ;;  %v6525_v26 = vmax.f32 %v6333_v57, %v6498_v3  ;;  %v16759_v43 = vpop.permute.xlu0 %7383 }
 0xdee   :  { %v6478_v51 = vpop.permute.xlu1 %6477  ;;  %6554 = vrot.lane.b32.xlu1 %v6524_v5, %s13419_s27  ;;  %6556 = vrot.lane.b32.xlu0 %v6525_v26, %s13419_s27 }
 0xdef   :  { %v6499_v41 = vsel %vm559_vm6, %v6476_v30, %v6478_v51 }
 0xdf0   :  { %v6526_v44 = vmax.f32 %v16659_v33, %v6499_v41  ;;  %v6482_v14 = vpop.permute.xlu0 %6481 }
 0xdf2   :  { %v6426_v8 = vpop.permute.xlu1 %6425  ;;  %6558 = vrot.lane.b32.xlu1 %v6526_v44, %s13419_s27  ;;  %6550 = vrot.lane.b32.xlu0 %v6522_v15, %s13419_s27 }
 0xdf4   :  { %v6486_v49 = vpop.permute.xlu0 %6485 }
 0xdf6   :  { %v16761_v57 = vpop.permute.xlu1 %6830 }
 0xdfa   :  { %v6480_v42 = vpop.permute.xlu1 %6479 }
 0xdfb   :  { %v6500_v7 = vsel %vm559_vm6, %v6478_v51, %v6480_v42  ;;  %v6501_v39 = vsel %vm559_vm6, %v6480_v42, %v6482_v14 }
 0xdfc   :  { %v6527_v30 = vmax.f32 %v16681_v29, %v6500_v7  ;;  %v6528_v32 = vmax.f32 %v6336_v50, %v6501_v39  ;;  %v6490_v29 = vpop.permute.xlu0 %6489 }
 0xdfe   :  { %v6484_v33 = vpop.permute.xlu1 %6483  ;;  %6560 = vrot.lane.b32.xlu1 %v6527_v30, %s13419_s27  ;;  %6562 = vrot.lane.b32.xlu0 %v6528_v32, %s13419_s27 }
 0xdff   :  { %v6502_v34 = vsel %vm559_vm6, %v6482_v14, %v6484_v33  ;;  %v6503_v6 = vsel %vm559_vm6, %v6484_v33, %v6486_v49 }
 0xe00   :  { %v6529_v16 = vmax.f32 %v16684_v13, %v6502_v34  ;;  %v6530_v1 = vmax.f32 %v16707_v18, %v6503_v6  ;;  %v6506_v13 = vsel %vm559_vm6, %v6490_v29, %v6492_v4  ;;  %v6404_v0 = vpop.permute.xlu0 %6403  ;;  %v13068_v4 = vld [vmem:[%s19342_s4 + $0x43] ss:$8 sm:$0xf] }
 0xe01   :  { %v6533_v18 = vmax.f32 %v16697_v46, %v6506_v13  ;;  %v13069_v46 = vld [vmem:[%s19342_s4 + $0x43] ss:$8 sm:$0x10] }
 0xe02   :  { %v16772_v52 = vpop.permute.xlu1 %7288  ;;  %6564 = vrot.lane.b32.xlu1 %v6529_v16, %s13419_s27  ;;  %6566 = vrot.lane.b32.xlu0 %v6530_v1, %s13419_s27  ;;  %v16799_v39 = vor.u32 %v13069_v46, %v13068_v4 }
 0xe04   :  { %v6408_v51 = vpop.permute.xlu0 %6407 }
 0xe06   :  { %v6488_v50 = vpop.permute.xlu1 %6487 }
 0xe07   :  { %v6504_v60 = vsel %vm559_vm6, %v6486_v49, %v6488_v50  ;;  %v6505_v3 = vsel %vm559_vm6, %v6488_v50, %v6490_v29  ;;  %v6670_v49 = vrot.slane %v16799_v39, %v14125_v10  ;;  %v13066_v29 = vld [vmem:[%s19342_s4 + $0x3] ss:$8 sm:$0xf] }
 0xe08   :  { %v6531_v5 = vmax.f32 %v16691_v22, %v6504_v60  ;;  %v6532_v26 = vmax.f32 %v16717_v54, %v6505_v3  ;;  %v16785_v41 = vpop.permute.xlu0 %6411 }
 0xe0a   :  { %6568 = vrot.lane.b32.xlu1 %v6531_v5, %s13419_s27  ;;  %6570 = vrot.lane.b32.xlu0 %v6532_v26, %s13419_s27  ;;  %v6402_v15 = vpop.permute.xlu1 %6401 }
 0xe0c   :  { %v16787_v44 = vpop.permute.xlu0 %6415 }
 0xe0e   :  { %6572 = vrot.lane.b32.xlu1 %v6533_v18, %s13419_s27  ;;  %v6406_v22 = vpop.permute.xlu1 %6405 }
 0xe0f   :  { %v6429_v3 = vsel %vm4884_vm8, %v6404_v0, %v6406_v22 }
 0xe10   :  { %v16789_v14 = vpop.permute.xlu0 %6419  ;;  %v6455_v26 = vmax.f32 %v16559_v56, %v6429_v3 }
 0xe12   :  { %v6410_v54 = vpop.permute.xlu1 %6409 }
 0xe14   :  { %v16797_v42 = vpop.permute.xlu0 %6423 }
 0xe15   :  { %v6439_v30 = vsel %vm4884_vm8, %v16797_v42, %v6426_v8 }
 0xe16   :  { %v6414_v7 = vpop.permute.xlu1 %6413  ;;  %v6465_v32 = vmax.f32 %v16594_v24, %v6439_v30  ;;  %v13067_v24 = vld [vmem:[%s19342_s4 + $0x3] ss:$8 sm:$0xf0]  ;;  %v6427_v30 = vsel %vm4884_vm8, %v16739_v11, %v6402_v15 }
 0xe17   :  { %v16822_v60 = vor.u32 %v13067_v24, %v13066_v29 }
 0xe19   :  { %v6626_v13 = vrot.slane %v16822_v60, %v14092_v23  ;;  %v6630_v4 = vrot.slane %v16822_v60, %v14107_v62  ;;  %v6634_v56 = vrot.slane %v16822_v60, %v14123_v40 }
 0xe1a   :  { %v16811_v6 = vpop.permute.xlu1 %6417 }
 0xe1e   :  { %v16820_v8 = vpop.permute.xlu1 %6421 }
 0xe54   :  { %v16806_v33 = vpop.permute.xlu0 %6574 }
 0xe55   :  { %v6590_v34 = vsel %vm559_vm6, %v16806_v33, %v16742_v35  ;;  %v6428_v35 = vsel %vm4884_vm8, %v6402_v15, %v6404_v0 }
 0xe56   :  { %v6616_v16 = vmax.f32 %v6465_v32, %v6590_v34  ;;  %v6454_v5 = vmax.f32 %v16537_v38, %v6428_v35  ;;  %v6430_v32 = vsel %vm4884_vm8, %v6406_v22, %v6408_v51 }
 0xe57   :  { %v6456_v29 = vmax.f32 %v16574_v55, %v6430_v32  ;;  %v6432_v55 = vsel %vm4884_vm8, %v6410_v54, %v16785_v41 }
 0xe58   :  { %v6696_v1 = vmul.f32 %v6670_v49, %v6616_v16  ;;  %v6622_v16 = vrot.slane %v16822_v60, %v14090_v59 }
 0xe5a   :  { %6734 = vrot.lane.b32.xlu1 %v6696_v1, %s13411_s22  ;;  %v6453_v1 = vmax.f32 %v16539_v58, %v6427_v30  ;;  %v6431_v58 = vsel %vm4884_vm8, %v6408_v51, %v6410_v54  ;;  %v6642_v30 = vrot.slane %v16822_v60, %v14142_v12  ;;  %v6434_v51 = vsel %vm4884_vm8, %v6414_v7, %v16787_v44 }
 0xe5c   :  { %v6553_v50 = vpop.permute.xlu0 %6552 }
 0xe60   :  { %v6555_v18 = vpop.permute.xlu1 %6554  ;;  %v6557_v46 = vpop.permute.xlu0 %6556 }
 0xe61   :  { %v6579_v49 = vsel %vm559_vm6, %v6553_v50, %v6555_v18  ;;  %v6580_v0 = vsel %vm559_vm6, %v6555_v18, %v6557_v46 }
 0xe62   :  { %v6605_v38 = vmax.f32 %v6454_v5, %v6579_v49  ;;  %v6606_v34 = vmax.f32 %v6455_v26, %v6580_v0  ;;  %v6433_v0 = vsel %vm4884_vm8, %v16785_v41, %v6414_v7 }
 0xe64   :  { %v6685_v24 = vmul.f32 %v6626_v13, %v6605_v38  ;;  %v6686_v11 = vmul.f32 %v6630_v4, %v6606_v34  ;;  %v6559_v15 = vpop.permute.xlu1 %6558  ;;  %v6551_v22 = vpop.permute.xlu0 %6550  ;;  %v6457_v13 = vmax.f32 %v16592_v28, %v6431_v58  ;;  %v6638_v4 = vrot.slane %v16822_v60, %v14125_v10 }
 0xe65   :  { %v6581_v35 = vsel %vm559_vm6, %v6557_v46, %v6559_v15  ;;  %v6578_v3 = vsel %vm559_vm6, %v6551_v22, %v6553_v50  ;;  %v6458_v50 = vmax.f32 %v16614_v31, %v6432_v55  ;;  %v6646_v34 = vrot.slane %v16822_v60, %v14162_v36 }
 0xe66   :  { %v6607_v5 = vmax.f32 %v6456_v29, %v6581_v35  ;;  %v6604_v26 = vmax.f32 %v6453_v1, %v6578_v3  ;;  %6712 = vrot.lane.b32.xlu1 %v6685_v24, %s13411_s22  ;;  %6714 = vrot.lane.b32.xlu0 %v6686_v11, %s13411_s22  ;;  %v6460_v1 = vmax.f32 %v16632_v20, %v6434_v51 }
 0xe67   :  { %v6436_v20 = vsel %vm4884_vm8, %v16811_v6, %v16789_v14  ;;  %v6658_v58 = vrot.slane %v16799_v39, %v14092_v23  ;;  %v6438_v55 = vsel %vm4884_vm8, %v16820_v8, %v16797_v42 }
 0xe68   :  { %v6687_v18 = vmul.f32 %v6634_v56, %v6607_v5  ;;  %v6684_v49 = vmul.f32 %v6622_v16, %v6604_v26  ;;  %v6650_v56 = vrot.slane %v16822_v60, %v14178_v47  ;;  %v6459_v16 = vmax.f32 %v16625_v63, %v6433_v0 }
 0xe69   :  { %v6435_v63 = vsel %vm4884_vm8, %v16787_v44, %v16811_v6  ;;  %v6462_v26 = vmax.f32 %v16640_v48, %v6436_v20  ;;  %v6437_v6 = vsel %vm4884_vm8, %v16789_v14, %v16820_v8  ;;  %v6464_v14 = vmax.f32 %v16647_v25, %v6438_v55 }
 0xe6a   :  { %6716 = vrot.lane.b32.xlu1 %v6687_v18, %s13411_s22  ;;  %6710 = vrot.lane.b32.xlu0 %v6684_v49, %s13411_s22  ;;  %v6461_v5 = vmax.f32 %v16561_v19, %v6435_v63  ;;  %v6654_v18 = vrot.slane %v16799_v39, %v14090_v59 }
 0xe70   :  { %v6561_v46 = vpop.permute.xlu1 %6560  ;;  %v6563_v32 = vpop.permute.xlu0 %6562 }
 0xe71   :  { %v6582_v54 = vsel %vm559_vm6, %v6559_v15, %v6561_v46  ;;  %v6583_v28 = vsel %vm559_vm6, %v6561_v46, %v6563_v32  ;;  %v6666_v46 = vrot.slane %v16799_v39, %v14123_v40 }
 0xe72   :  { %v6608_v38 = vmax.f32 %v6457_v13, %v6582_v54  ;;  %v6609_v31 = vmax.f32 %v6458_v50, %v6583_v28 }
 0xe74   :  { %v6688_v41 = vmul.f32 %v6638_v4, %v6608_v38  ;;  %v6689_v29 = vmul.f32 %v6642_v30, %v6609_v31  ;;  %v6565_v24 = vpop.permute.xlu1 %6564  ;;  %v6567_v7 = vpop.permute.xlu0 %6566  ;;  %v6662_v4 = vrot.slane %v16799_v39, %v14107_v62  ;;  %v6463_v30 = vmax.f32 %v16580_v9, %v6437_v6 }
 0xe75   :  { %v6584_v11 = vsel %vm559_vm6, %v6563_v32, %v6565_v24  ;;  %v6585_v15 = vsel %vm559_vm6, %v6565_v24, %v6567_v7 }
 0xe76   :  { %v6610_v22 = vmax.f32 %v6459_v16, %v6584_v11  ;;  %v6611_v35 = vmax.f32 %v6460_v1, %v6585_v15  ;;  %6718 = vrot.lane.b32.xlu1 %v6688_v41, %s13411_s22  ;;  %6720 = vrot.lane.b32.xlu0 %v6689_v29, %s13411_s22 }
 0xe78   :  { %v6690_v3 = vmul.f32 %v6646_v34, %v6610_v22  ;;  %v6691_v60 = vmul.f32 %v6650_v56, %v6611_v35 }
 0xe7a   :  { %6722 = vrot.lane.b32.xlu1 %v6690_v3, %s13411_s22  ;;  %6724 = vrot.lane.b32.xlu0 %v6691_v60, %s13411_s22 }
 0xe7c   :  { %v6569_v49 = vpop.permute.xlu1 %6568  ;;  %v6571_v44 = vpop.permute.xlu0 %6570 }
 0xe7d   :  { %v6586_v19 = vsel %vm559_vm6, %v6567_v7, %v6569_v49  ;;  %v6587_v48 = vsel %vm559_vm6, %v6569_v49, %v6571_v44 }
 0xe7e   :  { %v6612_v13 = vmax.f32 %v6461_v5, %v6586_v19  ;;  %v6613_v50 = vmax.f32 %v6462_v26, %v6587_v48 }
 0xe80   :  { %v6692_v32 = vmul.f32 %v6654_v18, %v6612_v13  ;;  %v6693_v0 = vmul.f32 %v6658_v58, %v6613_v50  ;;  %v6573_v51 = vpop.permute.xlu1 %6572 }
 0xe81   :  { %v6588_v42 = vsel %vm559_vm6, %v6571_v44, %v6573_v51  ;;  %v6589_v8 = vsel %vm559_vm6, %v6573_v51, %v16806_v33 }
 0xe82   :  { %v6614_v54 = vmax.f32 %v6463_v30, %v6588_v42  ;;  %v6615_v28 = vmax.f32 %v6464_v14, %v6589_v8  ;;  %6726 = vrot.lane.b32.xlu1 %v6692_v32, %s13411_s22  ;;  %6728 = vrot.lane.b32.xlu0 %v6693_v0, %s13411_s22 }
 0xe84   :  { %v6694_v38 = vmul.f32 %v6662_v4, %v6614_v54  ;;  %v6695_v39 = vmul.f32 %v6666_v46, %v6615_v28 }
 0xe86   :  { %6730 = vrot.lane.b32.xlu1 %v6694_v38, %s13411_s22  ;;  %6732 = vrot.lane.b32.xlu0 %v6695_v39, %s13411_s22 }
 0xecc   :  { %v16909_v9 = vpop.permute.xlu1 %6734 }
 0xecd   :  { %6775 = vst.msk [vmem:[#allocation2 + $0x70] sm:$0xff] %vm21_vm0, %v16909_v9 }
 0xed4   :  { %v16913_v25 = vld [vmem:[#allocation2 + $0x70] sm:$0xff] }
 0xed5   :  { %7381 = vrot.lane.b32.xlu1 %v16913_v25, %s13434_s15  ;;  %7167 = vrot.lane.b32.xlu0 %v16913_v25, %s13434_s15 }
 0xed8   :  { %v6715_v33 = vpop.permute.xlu0 %6714  ;;  %v6713_v34 = vpop.permute.xlu1 %6712 }
 0xed9   :  { %7286 = vrot.lane.b32.xlu1 %v16913_v25, %s13419_s27  ;;  %v16935_v1 = vsel %vm21_vm0, %v6713_v34, %v6715_v33 }
 0xedc   :  { %v6711_v31 = vpop.permute.xlu0 %6710  ;;  %v6717_v16 = vpop.permute.xlu1 %6716 }
 0xedd   :  { %6762 = vst.msk [vmem:[#allocation2 + $0x8] sm:$0xff] %vm23_vm1, %v6711_v31  ;;  %7072 = vrot.lane.b32.xlu1 %v16913_v25, %s13419_s27  ;;  %v16938_v41 = vsel %vm21_vm0, %v6715_v33, %v6717_v16  ;;  %v16945_v29 = vsel %vm21_vm0, %v6711_v31, %v6713_v34 }
 0xee4   :  { %v16924_v56 = vld [vmem:[#allocation2 + $0x8] sm:$0xff] }
 0xee5   :  { %7141 = vrot.lane.b32.xlu0 %v16924_v56, %s13434_s15  ;;  %7046 = vrot.lane.b32.xlu1 %v16924_v56, %s13419_s27 }
 0xee8   :  { %v6719_v24 = vpop.permute.xlu1 %6718  ;;  %v6721_v7 = vpop.permute.xlu0 %6720 }
 0xee9   :  { %6927 = vrot.lane.b32.xlu0 %v16924_v56, %s13434_s15  ;;  %6832 = vrot.lane.b32.xlu1 %v16924_v56, %s13419_s27  ;;  %v16968_v11 = vsel %vm21_vm0, %v6717_v16, %v6719_v24  ;;  %v16971_v15 = vsel %vm21_vm0, %v6719_v24, %v6721_v7 }
 0xeec   :  { %v6723_v22 = vpop.permute.xlu1 %6722  ;;  %v6725_v35 = vpop.permute.xlu0 %6724 }
 0xeed   :  { %7359 = vrot.lane.b32.xlu0 %v16935_v1, %s13434_s15  ;;  %7361 = vrot.lane.b32.xlu1 %v16938_v41, %s13434_s15  ;;  %v16982_v3 = vsel %vm21_vm0, %v6721_v7, %v6723_v22  ;;  %v16985_v60 = vsel %vm21_vm0, %v6723_v22, %v6725_v35 }
 0xef1   :  { %7264 = vrot.lane.b32.xlu1 %v16935_v1, %s13419_s27  ;;  %7357 = vrot.lane.b32.xlu0 %v16945_v29, %s13434_s15 }
 0xef4   :  { %v6727_v63 = vpop.permute.xlu1 %6726  ;;  %v6729_v20 = vpop.permute.xlu0 %6728 }
 0xef5   :  { %7266 = vrot.lane.b32.xlu0 %v16938_v41, %s13419_s27  ;;  %7262 = vrot.lane.b32.xlu1 %v16945_v29, %s13419_s27  ;;  %v17028_v5 = vsel %vm21_vm0, %v6725_v35, %v6727_v63  ;;  %v17031_v26 = vsel %vm21_vm0, %v6727_v63, %v6729_v20 }
 0xef8   :  { %v6731_v18 = vpop.permute.xlu1 %6730  ;;  %v6733_v49 = vpop.permute.xlu0 %6732 }
 0xef9   :  { %7145 = vrot.lane.b32.xlu1 %v16935_v1, %s13434_s15  ;;  %7143 = vrot.lane.b32.xlu0 %v16945_v29, %s13434_s15  ;;  %v17042_v58 = vsel %vm21_vm0, %v6729_v20, %v6731_v18  ;;  %v17045_v44 = vsel %vm21_vm0, %v6731_v18, %v6733_v49  ;;  %v17098_v42 = vsel %vm21_vm0, %v6733_v49, %v16909_v9 }
 0xefd   :  { %7050 = vrot.lane.b32.xlu0 %v16935_v1, %s13419_s27  ;;  %7048 = vrot.lane.b32.xlu1 %v16945_v29, %s13419_s27 }
 0xf01   :  { %6929 = vrot.lane.b32.xlu1 %v16945_v29, %s13434_s15  ;;  %6834 = vrot.lane.b32.xlu0 %v16945_v29, %s13419_s27 }
 0xf05   :  { %7363 = vrot.lane.b32.xlu1 %v16968_v11, %s13434_s15  ;;  %7365 = vrot.lane.b32.xlu0 %v16971_v15, %s13434_s15 }
 0xf09   :  { %7268 = vrot.lane.b32.xlu0 %v16968_v11, %s13419_s27  ;;  %7270 = vrot.lane.b32.xlu1 %v16971_v15, %s13419_s27 }
 0xf0d   :  { %7367 = vrot.lane.b32.xlu0 %v16982_v3, %s13434_s15  ;;  %7369 = vrot.lane.b32.xlu1 %v16985_v60, %s13434_s15 }
 0xf11   :  { %7147 = vrot.lane.b32.xlu0 %v16938_v41, %s13434_s15  ;;  %7149 = vrot.lane.b32.xlu1 %v16968_v11, %s13434_s15 }
 0xf15   :  { %7272 = vrot.lane.b32.xlu0 %v16982_v3, %s13419_s27  ;;  %7274 = vrot.lane.b32.xlu1 %v16985_v60, %s13419_s27 }
 0xf19   :  { %7052 = vrot.lane.b32.xlu0 %v16938_v41, %s13419_s27  ;;  %7054 = vrot.lane.b32.xlu1 %v16968_v11, %s13419_s27 }
 0xf1d   :  { %7151 = vrot.lane.b32.xlu0 %v16971_v15, %s13434_s15  ;;  %7153 = vrot.lane.b32.xlu1 %v16982_v3, %s13434_s15 }
 0xf21   :  { %6931 = vrot.lane.b32.xlu0 %v16935_v1, %s13434_s15  ;;  %6933 = vrot.lane.b32.xlu1 %v16938_v41, %s13434_s15 }
 0xf25   :  { %7056 = vrot.lane.b32.xlu0 %v16971_v15, %s13419_s27  ;;  %7058 = vrot.lane.b32.xlu1 %v16982_v3, %s13419_s27 }
 0xf29   :  { %6836 = vrot.lane.b32.xlu0 %v16935_v1, %s13419_s27  ;;  %6838 = vrot.lane.b32.xlu1 %v16938_v41, %s13419_s27 }
 0xf2d   :  { %6935 = vrot.lane.b32.xlu0 %v16968_v11, %s13434_s15  ;;  %6937 = vrot.lane.b32.xlu1 %v16971_v15, %s13434_s15 }
 0xf31   :  { %6840 = vrot.lane.b32.xlu0 %v16968_v11, %s13419_s27  ;;  %6842 = vrot.lane.b32.xlu1 %v16971_v15, %s13419_s27 }
 0xf35   :  { %7371 = vrot.lane.b32.xlu0 %v17028_v5, %s13434_s15  ;;  %7373 = vrot.lane.b32.xlu1 %v17031_v26, %s13434_s15 }
 0xf39   :  { %7276 = vrot.lane.b32.xlu0 %v17028_v5, %s13419_s27  ;;  %7278 = vrot.lane.b32.xlu1 %v17031_v26, %s13419_s27 }
 0xf3d   :  { %7375 = vrot.lane.b32.xlu0 %v17042_v58, %s13434_s15  ;;  %7377 = vrot.lane.b32.xlu1 %v17045_v44, %s13434_s15 }
 0xf41   :  { %7155 = vrot.lane.b32.xlu0 %v16985_v60, %s13434_s15  ;;  %7157 = vrot.lane.b32.xlu1 %v17028_v5, %s13434_s15 }
 0xf45   :  { %7280 = vrot.lane.b32.xlu0 %v17042_v58, %s13419_s27  ;;  %7282 = vrot.lane.b32.xlu1 %v17045_v44, %s13419_s27 }
 0xf47   :  { %v17059_v6 = vpop.permute.xlu1 %7381  ;;  %v17075_v19 = vpop.permute.xlu0 %7167 }
 0xf49   :  { %7060 = vrot.lane.b32.xlu0 %v16985_v60, %s13419_s27  ;;  %7062 = vrot.lane.b32.xlu1 %v17028_v5, %s13419_s27 }
 0xf4b   :  { %v17065_v55 = vpop.permute.xlu1 %7286 }
 0xf4d   :  { %7159 = vrot.lane.b32.xlu0 %v17031_v26, %s13434_s15  ;;  %7161 = vrot.lane.b32.xlu1 %v17042_v58, %s13434_s15 }
 0xf4f   :  { %v17077_v48 = vpop.permute.xlu1 %7072 }
 0xf51   :  { %6939 = vrot.lane.b32.xlu0 %v16982_v3, %s13434_s15  ;;  %6941 = vrot.lane.b32.xlu1 %v16985_v60, %s13434_s15 }
 0xf55   :  { %7064 = vrot.lane.b32.xlu0 %v17031_v26, %s13419_s27  ;;  %7066 = vrot.lane.b32.xlu1 %v17042_v58, %s13419_s27 }
 0xf57   :  { %v7047_v13 = vpop.permute.xlu1 %7046  ;;  %v7142_v50 = vpop.permute.xlu0 %7141 }
 0xf59   :  { %6844 = vrot.lane.b32.xlu0 %v16982_v3, %s13419_s27  ;;  %6846 = vrot.lane.b32.xlu1 %v16985_v60, %s13419_s27 }
 0xf5b   :  { %v6833_v4 = vpop.permute.xlu1 %6832  ;;  %v6928_v46 = vpop.permute.xlu0 %6927 }
 0xf5c   :  { %v6953_v18 = vsel %vm4884_vm8, %v16749_v61, %v6928_v46 }
 0xf5d   :  { %6943 = vrot.lane.b32.xlu0 %v17028_v5, %s13434_s15  ;;  %6945 = vrot.lane.b32.xlu1 %v17031_v26, %s13434_s15 }
 0xf5f   :  { %v7362_v30 = vpop.permute.xlu1 %7361  ;;  %v7360_v14 = vpop.permute.xlu0 %7359 }
 0xf60   :  { %v7386_v32 = vsel %vm4884_vm8, %v7360_v14, %v7362_v30 }
 0xf61   :  { %6848 = vrot.lane.b32.xlu0 %v17028_v5, %s13419_s27  ;;  %6850 = vrot.lane.b32.xlu1 %v17031_v26, %s13419_s27 }
 0xf62   :  { %7572 = vmatprep.subr.mxu1 %v7386_v32  ;;  %v13438_v32 = vmov 9  }
 0xf63   :  { %v7265_v0 = vpop.permute.xlu1 %7264  ;;  %v7358_v51 = vpop.permute.xlu0 %7357  ;;  %13373 = vset.pattern.permute.xlu0 %v13438_v32 }
 0xf64   :  { %v7385_v8 = vsel %vm4884_vm8, %v7358_v51, %v7360_v14  ;;  %v6858_v14 = vsel %vm559_vm6, %v16761_v57, %v6833_v4  ;;  %v17159_v51 = vld [vmem:[#allocation2] sm:$0xff] }
 0xf65   :  { %7379 = vrot.lane.b32.xlu0 %v17098_v42, %s13434_s15  ;;  %7163 = vrot.lane.b32.xlu1 %v17045_v44, %s13434_s15 }
 0xf66   :  { %7573 = vmatpush1.msra.mxu1 %v7385_v8 }
 0xf67   :  { %v7263_v54 = vpop.permute.xlu1 %7262  ;;  %v7267_v28 = vpop.permute.xlu0 %7266 }
 0xf68   :  { %v7290_v38 = vsel %vm559_vm6, %v7263_v54, %v7265_v0  ;;  %v7291_v39 = vsel %vm559_vm6, %v7265_v0, %v7267_v28 }
 0xf69   :  { %7284 = vrot.lane.b32.xlu0 %v17098_v42, %s13419_s27  ;;  %7070 = vrot.lane.b32.xlu1 %v17098_v42, %s13419_s27 }
 0xf6a   :  { %7574 = vmatprep.subr.mxu1 %v7291_v39 }
 0xf6b   :  { %7575 = vmatpush1.msra.mxu1 %v7290_v38  ;;  %v17111_v9 = vpop.permute.xlu1 %7145  ;;  %v7144_v33 = vpop.permute.xlu0 %7143 }
 0xf6c   :  { %7576 = vmatprep.subr.mxu1 %v16935_v1  ;;  %v7170_v31 = vsel %vm4884_vm8, %v7144_v33, %v17111_v9  ;;  %v7169_v34 = vsel %vm4884_vm8, %v7142_v50, %v7144_v33 }
 0xf6d   :  { %7577 = vmatpush1.msra.mxu1 %v16945_v29  ;;  %7165 = vrot.lane.b32.xlu0 %v17098_v42, %s13434_s15 }
 0xf6e   :  { %6947 = vrot.lane.b32.xlu1 %v17042_v58, %s13434_s15  ;;  %7578 = vmatprep.subr.mxu1 %v7170_v31 }
 0xf6f   :  { %7579 = vmatpush1.msra.mxu1 %v7169_v34  ;;  %v7049_v16 = vpop.permute.xlu1 %7048  ;;  %v17122_v24 = vpop.permute.xlu0 %7050 }
 0xf70   :  { %v7075_v7 = vsel %vm559_vm6, %v7049_v16, %v17122_v24  ;;  %v7074_v22 = vsel %vm559_vm6, %v7047_v13, %v7049_v16 }
 0xf71   :  { %7068 = vrot.lane.b32.xlu0 %v17045_v44, %s13419_s27  ;;  %7580 = vmatprep.subr.mxu1 %v7075_v7 }
 0xf72   :  { %6854 = vrot.lane.b32.xlu1 %v17045_v44, %s13419_s27  ;;  %7581 = vmatpush1.msra.mxu1 %v7074_v22 }
 0xf73   :  { %v17131_v35 = vpop.permute.xlu1 %6929  ;;  %7582 = vmatprep.subr.mxu1 %v16945_v29  ;;  %v17134_v63 = vpop.permute.xlu0 %6834 }
 0xf74   :  { %7583 = vmatpush1.msra.mxu1 %v16924_v56  ;;  %v6954_v20 = vsel %vm4884_vm8, %v6928_v46, %v17131_v35  ;;  %v6859_v49 = vsel %vm559_vm6, %v6833_v4, %v17134_v63  ;;  %v17154_v46 = vld [vmem:[%s19340_s1 + $0x18] sm:$0xff] }
 0xf75   :  { %6949 = vrot.lane.b32.xlu0 %v17045_v44, %s13434_s15  ;;  %7584 = vmatprep.subr.mxu1 %v6954_v20 }
 0xf76   :  { %6856 = vrot.lane.b32.xlu1 %v17098_v42, %s13419_s27  ;;  %7585 = vmatpush1.msra.mxu1 %v6953_v18 }
 0xf77   :  { %v7364_v13 = vpop.permute.xlu1 %7363  ;;  %7586 = vmatprep.subr.mxu1 %v6859_v49  ;;  %v7366_v50 = vpop.permute.xlu0 %7365 }
 0xf78   :  { %7587 = vmatpush1.msra.mxu1 %v6858_v14  ;;  %v7388_v0 = vsel %vm4884_vm8, %v7364_v13, %v7366_v50  ;;  %v7387_v61 = vsel %vm4884_vm8, %v7362_v30, %v7364_v13 }
 0xf79   :  { %6852 = vrot.lane.b32.xlu0 %v17042_v58, %s13419_s27  ;;  %7588 = vmatprep.subr.mxu1 %v16924_v56  ;;  %v17172_v56 = vld [vmem:[%s19341_s3] sm:$0xff] }
 0xf7a   :  { %7643 = vmatprep.subr.mxu0 %v7388_v0  ;;  %7589 = vmatpush1.msra.mxu1 %v17159_v51 }
 0xf7b   :  { %7644 = vmatpush1.msra.mxu0 %v7387_v61  ;;  %v7271_v57 = vpop.permute.xlu1 %7270  ;;  %v7269_v4 = vpop.permute.xlu0 %7268  ;;  %13077 = vmatmul.mubr.msk.f32.vlgmr.msra.gmra.mxu1 %vm1114_vm11, %v17154_v46 }
 0xf7c   :  { %v7293_v30 = vsel %vm559_vm6, %v7269_v4, %v7271_v57  ;;  %v7292_v8 = vsel %vm559_vm6, %v7267_v28, %v7269_v4  ;;  %7764 = vmatprep.mubr.f32.mxu1 %v17159_v51 }
 0xf7d   :  { %6951 = vrot.lane.b32.xlu0 %v17098_v42, %s13434_s15  ;;  %7645 = vmatprep.subr.mxu0 %v7293_v30 }
 0xf7e   :  { %7646 = vmatpush1.msra.mxu0 %v7292_v8 }
 0xf7f   :  { %v17174_v54 = vpop.permute.xlu1 %7369  ;;  %7647 = vmatprep.subr.mxu0 %v16968_v11  ;;  %v7368_v38 = vpop.permute.xlu0 %7367 }
 0xf80   :  { %7648 = vmatpush1.msra.mxu0 %v16938_v41  ;;  %v7390_v28 = vsel %vm4884_vm8, %v7368_v38, %v17174_v54  ;;  %v7389_v39 = vsel %vm4884_vm8, %v7366_v50, %v7368_v38 }
 0xf81   :  { %7714 = vmatprep.subr.mxu1 %v7390_v28  ;;  %7552 = vperm.xlu0 %13373, %v17172_v56  }
 0xf82   :  { %7715 = vmatpush1.msra.mxu1 %v7389_v39 }
 0xf83   :  { %v7150_v33 = vpop.permute.xlu1 %7149  ;;  %v7148_v31 = vpop.permute.xlu0 %7147 }
 0xf84   :  { %v7172_v34 = vsel %vm4884_vm8, %v7148_v31, %v7150_v33  ;;  %v7171_v16 = vsel %vm4884_vm8, %v17111_v9, %v7148_v31 }
 0xf85   :  { %7649 = vmatprep.subr.mxu0 %v7172_v34 }
 0xf86   :  { %7650 = vmatpush1.msra.mxu0 %v7171_v16 }
 0xf87   :  { %v17185_v7 = vpop.permute.xlu1 %7274  ;;  %v7273_v22 = vpop.permute.xlu0 %7272 }
 0xf88   :  { %v7295_v20 = vsel %vm559_vm6, %v7273_v22, %v17185_v7  ;;  %v7294_v18 = vsel %vm559_vm6, %v7271_v57, %v7273_v22 }
 0xf89   :  { %7716 = vmatprep.subr.mxu1 %v7295_v20 }
 0xf8a   :  { %7717 = vmatpush1.msra.mxu1 %v7294_v18 }
 0xf8b   :  { %v7055_v49 = vpop.permute.xlu1 %7054  ;;  %7718 = vmatprep.subr.mxu1 %v16982_v3  ;;  %v7053_v13 = vpop.permute.xlu0 %7052 }
 0xf8c   :  { %7719 = vmatpush1.msra.mxu1 %v16971_v15  ;;  %v7077_v9 = vsel %vm559_vm6, %v7053_v13, %v7055_v49  ;;  %v7076_v50 = vsel %vm559_vm6, %v17122_v24, %v7053_v13 }
 0xf8d   :  { %7651 = vmatprep.subr.mxu0 %v7077_v9 }
 0xf8e   :  { %7652 = vmatpush1.msra.mxu0 %v7076_v50 }
 0xf8f   :  { %v17195_v14 = vpop.permute.xlu1 %7153  ;;  %7653 = vmatprep.subr.mxu0 %v16938_v41  ;;  %v7152_v32 = vpop.permute.xlu0 %7151 }
 0xf90   :  { %7654 = vmatpush1.msra.mxu0 %v16935_v1  ;;  %v7174_v0 = vsel %vm4884_vm8, %v7152_v32, %v17195_v14  ;;  %v7173_v61 = vsel %vm4884_vm8, %v7150_v33, %v7152_v32 }
 0xf91   :  { %7720 = vmatprep.subr.mxu1 %v7174_v0 }
 0xf92   :  { %7721 = vmatpush1.msra.mxu1 %v7173_v61 }
 0xf93   :  { %v6934_v57 = vpop.permute.xlu1 %6933  ;;  %v6932_v4 = vpop.permute.xlu0 %6931 }
 0xf94   :  { %v6956_v24 = vsel %vm4884_vm8, %v6932_v4, %v6934_v57  ;;  %v6955_v30 = vsel %vm4884_vm8, %v17131_v35, %v6932_v4 }
 0xf95   :  { %7655 = vmatprep.subr.mxu0 %v6956_v24 }
 0xf96   :  { %7656 = vmatpush1.msra.mxu0 %v6955_v30 }
 0xf97   :  { %v17205_v8 = vpop.permute.xlu1 %7058  ;;  %v7057_v38 = vpop.permute.xlu0 %7056 }
 0xf98   :  { %v7079_v28 = vsel %vm559_vm6, %v7057_v38, %v17205_v8  ;;  %v7078_v39 = vsel %vm559_vm6, %v7055_v49, %v7057_v38 }
 0xf99   :  { %7722 = vmatprep.subr.mxu1 %v7079_v28 }
 0xf9a   :  { %7723 = vmatpush1.msra.mxu1 %v7078_v39 }
 0xf9b   :  { %v6839_v33 = vpop.permute.xlu1 %6838  ;;  %7724 = vmatprep.subr.mxu1 %v16971_v15  ;;  %v6837_v31 = vpop.permute.xlu0 %6836 }
 0xf9c   :  { %7725 = vmatpush1.msra.mxu1 %v16968_v11  ;;  %v6861_v35 = vsel %vm559_vm6, %v6837_v31, %v6839_v33  ;;  %v6860_v34 = vsel %vm559_vm6, %v17134_v63, %v6837_v31 }
 0xf9d   :  { %7657 = vmatprep.subr.mxu0 %v6861_v35 }
 0xf9e   :  { %7658 = vmatpush1.msra.mxu0 %v6860_v34 }
 0xf9f   :  { %v17215_v16 = vpop.permute.xlu1 %6937  ;;  %7659 = vmatprep.subr.mxu0 %v16935_v1  ;;  %v6936_v22 = vpop.permute.xlu0 %6935 }
 0xfa0   :  { %7660 = vmatpush1.msra.mxu0 %v16945_v29  ;;  %v6958_v20 = vsel %vm4884_vm8, %v6936_v22, %v17215_v16  ;;  %v6957_v18 = vsel %vm4884_vm8, %v6934_v57, %v6936_v22 }
 0xfa1   :  { %7726 = vmatprep.subr.mxu1 %v6958_v20  ;;  %13078 = vmatmul.mubr.msk.f32.vlgmr.msra.gmra.mxu0 %vm1114_vm11, %v17154_v46 }
 0xfa2   :  { %7727 = vmatpush1.msra.mxu1 %v6957_v18  ;;  %7835 = vmatprep.mubr.f32.mxu0 %v17159_v51 }
 0xfa3   :  { %v17225_v63 = vpop.permute.xlu1 %6842  ;;  %v6841_v49 = vpop.permute.xlu0 %6840 }
 0xfa4   :  { %v6863_v1 = vsel %vm559_vm6, %v6841_v49, %v17225_v63  ;;  %v6862_v29 = vsel %vm559_vm6, %v6839_v33, %v6841_v49 }
 0xfa5   :  { %7728 = vmatprep.subr.mxu1 %v6863_v1 }
 0xfa6   :  { %7729 = vmatpush1.msra.mxu1 %v6862_v29 }
 0xfa7   :  { %v7374_v13 = vpop.permute.xlu1 %7373  ;;  %7730 = vmatprep.subr.mxu1 %v16968_v11  ;;  %v7372_v9 = vpop.permute.xlu0 %7371 }
 0xfa8   :  { %7731 = vmatpush1.msra.mxu1 %v16938_v41  ;;  %v7392_v50 = vsel %vm4884_vm8, %v7372_v9, %v7374_v13  ;;  %v7391_v32 = vsel %vm4884_vm8, %v17174_v54, %v7372_v9 }
 0xfa9   :  { %7785 = vmatprep.subr.mxu0 %v7392_v50  ;;  %13079 = vmatmul.mubr.msk.f32.vlgmr.msra.gmra.mxu1 %vm1114_vm11, %v17154_v46 }
 0xfaa   :  { %7786 = vmatpush1.msra.mxu0 %v7391_v32  ;;  %7906 = vmatprep.mubr.f32.mxu1 %v17159_v51 }
 0xfab   :  { %v7279_v0 = vpop.permute.xlu1 %7278  ;;  %v7277_v61 = vpop.permute.xlu0 %7276 }
 0xfac   :  { %v7297_v57 = vsel %vm559_vm6, %v7277_v61, %v7279_v0  ;;  %v7296_v11 = vsel %vm559_vm6, %v17185_v7, %v7277_v61 }
 0xfad   :  { %7787 = vmatprep.subr.mxu0 %v7297_v57 }
 0xfae   :  { %7788 = vmatpush1.msra.mxu0 %v7296_v11 }
 0xfaf   :  { %v17241_v41 = vpop.permute.xlu1 %7377  ;;  %7789 = vmatprep.subr.mxu0 %v17028_v5  ;;  %v7376_v54 = vpop.permute.xlu0 %7375 }
 0xfb0   :  { %7790 = vmatpush1.msra.mxu0 %v16985_v60  ;;  %v7394_v4 = vsel %vm4884_vm8, %v7376_v54, %v17241_v41  ;;  %v7393_v24 = vsel %vm4884_vm8, %v7374_v13, %v7376_v54 }
 0xfb1   :  { %7856 = vmatprep.subr.mxu1 %v7394_v4 }
 0xfb2   :  { %7857 = vmatpush1.msra.mxu1 %v7393_v24 }
 0xfb3   :  { %v7158_v30 = vpop.permute.xlu1 %7157  ;;  %v7156_v38 = vpop.permute.xlu0 %7155 }
 0xfb4   :  { %v7176_v7 = vsel %vm4884_vm8, %v7156_v38, %v7158_v30  ;;  %v7175_v28 = vsel %vm4884_vm8, %v17195_v14, %v7156_v38 }
 0xfb5   :  { %7791 = vmatprep.subr.mxu0 %v7176_v7 }
 0xfb6   :  { %7792 = vmatpush1.msra.mxu0 %v7175_v28 }
 0xfb7   :  { %v17251_v39 = vpop.permute.xlu1 %7282  ;;  %v7281_v33 = vpop.permute.xlu0 %7280 }
 0xfb8   :  { %v7299_v31 = vsel %vm559_vm6, %v7281_v33, %v17251_v39  ;;  %v7298_v35 = vsel %vm559_vm6, %v7279_v0, %v7281_v33 }
 0xfb9   :  { %7858 = vmatprep.subr.mxu1 %v7299_v31 }
 0xfba   :  { %7859 = vmatpush1.msra.mxu1 %v7298_v35 }
 0xfbb   :  { %v7063_v34 = vpop.permute.xlu1 %7062  ;;  %7860 = vmatprep.subr.mxu1 %v17042_v58  ;;  %v7061_v22 = vpop.permute.xlu0 %7060 }
 0xfbc   :  { %7861 = vmatpush1.msra.mxu1 %v17031_v26  ;;  %v7081_v14 = vsel %vm559_vm6, %v7061_v22, %v7063_v34  ;;  %v7080_v20 = vsel %vm559_vm6, %v17205_v8, %v7061_v22 }
 0xfbd   :  { %7793 = vmatprep.subr.mxu0 %v7081_v14 }
 0xfbe   :  { %7794 = vmatpush1.msra.mxu0 %v7080_v20 }
 0xfbf   :  { %v17261_v18 = vpop.permute.xlu1 %7161  ;;  %7795 = vmatprep.subr.mxu0 %v16985_v60  ;;  %v7160_v49 = vpop.permute.xlu0 %7159 }
 0xfc0   :  { %7796 = vmatpush1.msra.mxu0 %v16982_v3  ;;  %v7178_v1 = vsel %vm4884_vm8, %v7160_v49, %v17261_v18  ;;  %v7177_v29 = vsel %vm4884_vm8, %v7158_v30, %v7160_v49 }
 0xfc1   :  { %7862 = vmatprep.subr.mxu1 %v7178_v1 }
 0xfc2   :  { %7863 = vmatpush1.msra.mxu1 %v7177_v29 }
 0xfc3   :  { %v6942_v13 = vpop.permute.xlu1 %6941  ;;  %v6940_v9 = vpop.permute.xlu0 %6939 }
 0xfc4   :  { %v6960_v8 = vsel %vm4884_vm8, %v6940_v9, %v6942_v13  ;;  %v6959_v50 = vsel %vm4884_vm8, %v17215_v16, %v6940_v9 }
 0xfc5   :  { %7797 = vmatprep.subr.mxu0 %v6960_v8 }
 0xfc6   :  { %7798 = vmatpush1.msra.mxu0 %v6959_v50 }
 0xfc7   :  { %v17271_v32 = vpop.permute.xlu1 %7066  ;;  %v7065_v0 = vpop.permute.xlu0 %7064 }
 0xfc8   :  { %v7083_v61 = vsel %vm559_vm6, %v7065_v0, %v17271_v32  ;;  %v7082_v57 = vsel %vm559_vm6, %v7063_v34, %v7065_v0 }
 0xfc9   :  { %7864 = vmatprep.subr.mxu1 %v7083_v61 }
 0xfca   :  { %7865 = vmatpush1.msra.mxu1 %v7082_v57 }
 0xfcb   :  { %v6847_v11 = vpop.permute.xlu1 %6846  ;;  %7866 = vmatprep.subr.mxu1 %v17031_v26  ;;  %v6845_v54 = vpop.permute.xlu0 %6844 }
 0xfcc   :  { %7867 = vmatpush1.msra.mxu1 %v17028_v5  ;;  %v6865_v16 = vsel %vm559_vm6, %v6845_v54, %v6847_v11  ;;  %v6864_v4 = vsel %vm559_vm6, %v17225_v63, %v6845_v54 }
 0xfcd   :  { %7799 = vmatprep.subr.mxu0 %v6865_v16 }
 0xfce   :  { %7800 = vmatpush1.msra.mxu0 %v6864_v4 }
 0xfcf   :  { %v17281_v24 = vpop.permute.xlu1 %6945  ;;  %7801 = vmatprep.subr.mxu0 %v16982_v3  ;;  %v6944_v30 = vpop.permute.xlu0 %6943 }
 0xfd0   :  { %7802 = vmatpush1.msra.mxu0 %v16971_v15  ;;  %v6962_v38 = vsel %vm4884_vm8, %v6944_v30, %v17281_v24  ;;  %v6961_v7 = vsel %vm4884_vm8, %v6942_v13, %v6944_v30 }
 0xfd1   :  { %13080 = vmatmul.mubr.msk.f32.vlgmr.msra.gmra.mxu0 %vm1114_vm11, %v17154_v46  ;;  %7868 = vmatprep.subr.mxu1 %v6962_v38 }
 0xfd2   :  { %7869 = vmatpush1.msra.mxu1 %v6961_v7  ;;  %7977 = vmatprep.mubr.f32.mxu0 %v17159_v51 }
 0xfd3   :  { %v17291_v63 = vpop.permute.xlu1 %6850  ;;  %v6849_v28 = vpop.permute.xlu0 %6848 }
 0xfd4   :  { %v6867_v3 = vsel %vm559_vm6, %v6849_v28, %v17291_v63  ;;  %v6866_v15 = vsel %vm559_vm6, %v6847_v11, %v6849_v28  ;;  %v13073_v11 = vld [vmem:[%s19342_s4 + $0x2] ss:$8 sm:$0xf] }
 0xfd5   :  { %7870 = vmatprep.subr.mxu1 %v6867_v3 }
 0xfd6   :  { %7871 = vmatpush1.msra.mxu1 %v6866_v15 }
 0xfd7   :  { %v7164_v33 = vpop.permute.xlu1 %7163  ;;  %7872 = vmatprep.subr.mxu1 %v17028_v5  ;;  %v7380_v31 = vpop.permute.xlu0 %7379  ;;  %v7397_v5 = vsel %vm4884_vm8, %v17059_v6, %v16759_v43 }
 0xfd8   :  { %7873 = vmatpush1.msra.mxu1 %v16985_v60  ;;  %v7396_v35 = vsel %vm4884_vm8, %v7380_v31, %v17059_v6  ;;  %v7395_v34 = vsel %vm4884_vm8, %v17241_v41, %v7380_v31  ;;  %v7302_v60 = vsel %vm559_vm6, %v17065_v55, %v16772_v52 }
 0xfd9   :  { %13081 = vmatmul.mubr.msk.f32.vlgmr.msra.gmra.mxu1 %vm1114_vm11, %v17154_v46  ;;  %7927 = vmatprep.subr.mxu0 %v7396_v35 }
 0xfda   :  { %13250 = vmatprep.subr.mxu1 %v17159_v51  ;;  %7928 = vmatpush1.msra.mxu0 %v7395_v34 }
 0xfdb   :  { %13251 = vmatpush3.msra.mxu1 %v7397_v5  ;;  %v7285_v22 = vpop.permute.xlu0 %7284  ;;  %13268 = vmatprep.mubr.msk.f32.mxu1 %vm13422_vm12, %v17159_v51  ;;  %v7071_v20 = vpop.permute.xlu1 %7070 }
 0xfdc   :  { %13252 = vmatprep.subr.mxu1 %v17159_v51  ;;  %v7301_v41 = vsel %vm559_vm6, %v7285_v22, %v17065_v55  ;;  %v7300_v14 = vsel %vm559_vm6, %v17251_v39, %v7285_v22  ;;  %v7179_v55 = vsel %vm4884_vm8, %v17261_v18, %v7164_v33 }
 0xfdd   :  { %13253 = vmatpush3.msra.mxu1 %v7302_v60  ;;  %7929 = vmatprep.subr.mxu0 %v7301_v41 }
 0xfde   :  { %13254 = vmatprep.subr.mxu1 %v17159_v51  ;;  %7930 = vmatpush1.msra.mxu0 %v7300_v14 }
 0xfdf   :  { %13255 = vmatpush3.msra.mxu1 %v16913_v25  ;;  %7931 = vmatprep.subr.mxu0 %v17098_v42  ;;  %v7166_v43 = vpop.permute.xlu0 %7165  ;;  %v7086_v25 = vsel %vm559_vm6, %v7071_v20, %v17077_v48 }
 0xfe0   :  { %7932 = vmatpush1.msra.mxu0 %v17045_v44  ;;  %13256 = vmatprep.subr.mxu1 %v17159_v51  ;;  %v7180_v52 = vsel %vm4884_vm8, %v7164_v33, %v7166_v43  ;;  %v7181_v6 = vsel %vm4884_vm8, %v7166_v43, %v17075_v19  ;;  %v6948_v39 = vpop.permute.xlu1 %6947 }
 0xfe1   :  { %7933 = vmatprep.subr.mxu0 %v7180_v52  ;;  %13257 = vmatpush3.msra.mxu1 %v7181_v6  ;;  %v6963_v13 = vsel %vm4884_vm8, %v17281_v24, %v6948_v39 }
 0xfe2   :  { %7934 = vmatpush1.msra.mxu0 %v7179_v55  ;;  %13258 = vmatprep.subr.mxu1 %v17159_v51 }
 0xfe3   :  { %13259 = vmatpush3.msra.mxu1 %v7086_v25  ;;  %v7069_v49 = vpop.permute.xlu0 %7068 }
 0xfe4   :  { %13260 = vmatprep.subr.mxu1 %v17159_v51  ;;  %v7085_v1 = vsel %vm559_vm6, %v7069_v49, %v7071_v20  ;;  %v7084_v19 = vsel %vm559_vm6, %v17271_v32, %v7069_v49  ;;  %v6855_v29 = vpop.permute.xlu1 %6854 }
 0xfe5   :  { %7935 = vmatprep.subr.mxu0 %v7085_v1  ;;  %13261 = vmatpush3.msra.mxu1 %v17098_v42 }
 0xfe6   :  { %7936 = vmatpush1.msra.mxu0 %v7084_v19  ;;  %13262 = vmatprep.subr.mxu1 %v17159_v51 }
 0xfe7   :  { %7937 = vmatprep.subr.mxu0 %v17045_v44  ;;  %v6950_v18 = vpop.permute.xlu0 %6949 }
 0xfe8   :  { %7938 = vmatpush1.msra.mxu0 %v17042_v58  ;;  %v6964_v48 = vsel %vm4884_vm8, %v6948_v39, %v6950_v18  ;;  %v6857_v50 = vpop.permute.xlu1 %6856 }
 0xfe9   :  { %7939 = vmatprep.subr.mxu0 %v6964_v48  ;;  %v6870_v61 = vsel %vm559_vm6, %v6855_v29, %v6857_v50 }
 0xfea   :  { %7940 = vmatpush1.msra.mxu0 %v6963_v13 }
 0xfeb   :  { %v6853_v9 = vpop.permute.xlu0 %6852 }
 0xfec   :  { %v6869_v8 = vsel %vm559_vm6, %v6853_v9, %v6855_v29  ;;  %v6868_v42 = vsel %vm559_vm6, %v17291_v63, %v6853_v9  ;;  %v13075_v9 = vld [vmem:[%s19342_s4 + $0x42] ss:$8 sm:$0xf] }
 0xfed   :  { %7941 = vmatprep.subr.mxu0 %v6869_v8 }
 0xfee   :  { %7942 = vmatpush1.msra.mxu0 %v6868_v42 }
 0xfef   :  { %7943 = vmatprep.subr.mxu0 %v17042_v58  ;;  %v6952_v32 = vpop.permute.xlu0 %6951  ;;  %v13439_v58 = vmov 10  }
 0xff0   :  { %v6965_v0 = vsel %vm4884_vm8, %v6950_v18, %v6952_v32  ;;  %7944 = vmatpush1.msra.mxu0 %v17031_v26  ;;  %13374 = vset.pattern.permute.xlu1 %v13439_v58  ;;  %v13440_v26 = vmov 11   ;;  %vm19466_vm8 = vcmask 228352  }
 0xff1   :  { %13082 = vmatmul.mubr.msk.f32.vlgmr.msra.gmra.mxu0 %vm1114_vm11, %v17154_v46  ;;  %13263 = vmatpush3.msra.mxu1 %v6965_v0  ;;  %v13076_v0 = vld [vmem:[%s19342_s4 + $0x42] ss:$8 sm:$0x10] }
 0xff2   :  { %13264 = vmatprep.subr.mxu1 %v17159_v51  ;;  %9425 = vmatprep.mubr.f32.mxu0 %v17159_v51 }
 0xff3   :  { %13265 = vmatpush3.msra.mxu1 %v6870_v61  ;;  %8221 = vperm.xlu1 %13374, %v17172_v56  }
 0xff4   :  { %13266 = vmatprep.subr.mxu1 %v17159_v51  ;;  %13375 = vset.pattern.permute.xlu0 %v13440_v26 }
 0xff5   :  { %13267 = vmatpush3.msra.mxu1 %v17045_v44  ;;  %8238 = vperm.xlu0 %13375, %v17172_v56   ;;  %v13074_v56 = vld [vmem:[%s19342_s4 + $0x2] ss:$8 sm:$0xf0] }
 0xff6   :  { %13269 = vmatmul.mubr.msk.f32.vlgmr.msra.gmra.mxu1 %vm1114_vm11, %v17154_v46  ;;  %v7545_v54 = vor.u32 %v13074_v56, %v13073_v11  ;;  %v7548_v11 = vor.u32 %v13076_v0, %v13075_v9 }
 0xff7   :  { %9496 = vmatprep.mubr.f32.mxu1 %v17159_v51  ;;  %8495 = vrot.lane.b32.xlu1 %v17159_v51, %s13425_s16 }
 0xff8   :  { %v17383_v38 = vrot.slane %v7545_v54, %v14090_v59  ;;  %v17386_v7 = vrot.slane %v7545_v54, %v14092_v23  ;;  %v17399_v31 = vrot.slane %v7545_v54, %v14107_v62  ;;  %v17409_v14 = vrot.slane %v7545_v54, %v14123_v40 }
 0xff9   :  { %8590 = vrot.lane.b32.xlu0 %v17159_v51, %s13426_s17  ;;  %v17415_v55 = vrot.slane %v7545_v54, %v14125_v10  ;;  %v17428_v29 = vrot.slane %v7545_v54, %v14142_v12  ;;  %v17471_v9 = vrot.slane %v7548_v11, %v14092_v23 }
 0xffc   :  { %v17366_v46 = vpop.permute.xlu0 %7552 }
 0xffd   :  { %8400 = vrot.lane.b32.xlu0 %v17159_v51, %s13427_s18 }
0x103b   :  { %v7624_v44 = vpop.f32.mrf.mxu1 }
0x103c   :  { %v17375_v16 = vadd.f32 %v7624_v44, %v17366_v46  ;;  %v17442_v44 = vrot.slane %v7545_v54, %v14162_v36 }
0x103d   :  { %v7626_v57 = vpop.f32.mrf.mxu1 }
0x103e   :  { %v17378_v4 = vadd.f32 %v7626_v57, %v17366_v46  ;;  %v8054_v24 = vmax.f32 %v17375_v16, 0.0 }
0x1040   :  { %v8055_v30 = vmax.f32 %v17378_v4, 0.0  ;;  %v8134_v3 = vmul.f32 %v17383_v38, %v8054_v24 }
0x1042   :  { %v8135_v15 = vmul.f32 %v17386_v7, %v8055_v30  ;;  %v8161_v5 = vmul.f32 %v8134_v3, %v8134_v3 }
0x1044   :  { %v8162_v22 = vmul.f32 %v8135_v15, %v8135_v15  ;;  %v8147_v52 = vadd.f32 %v8135_v15, %v8134_v3 }
0x1046   :  { %v8174_v6 = vadd.f32 %v8162_v22, %v8161_v5 }
0x1061   :  { %v7695_v51 = vpop.f32.mrf.mxu0 }
0x1062   :  { %v17389_v63 = vadd.f32 %v7695_v51, %v17366_v46 }
0x1063   :  { %v7697_v28 = vpop.f32.mrf.mxu0 }
0x1064   :  { %v8056_v33 = vmax.f32 %v17389_v63, 0.0  ;;  %v17402_v35 = vadd.f32 %v7697_v28, %v17366_v46 }
0x1066   :  { %v8136_v60 = vmul.f32 %v17399_v31, %v8056_v33  ;;  %v8057_v41 = vmax.f32 %v17402_v35, 0.0 }
0x1068   :  { %v8163_v39 = vmul.f32 %v8136_v60, %v8136_v60  ;;  %v8137_v49 = vmul.f32 %v17409_v14, %v8057_v41  ;;  %v8148_v18 = vadd.f32 %v8147_v52, %v8136_v60  ;;  %v17458_v60 = vrot.slane %v7545_v54, %v14178_v47 }
0x1069   :  { %v7766_v34 = vpop.f32.mrf.mxu1 }
0x106a   :  { %v17412_v20 = vadd.f32 %v7766_v34, %v17366_v46  ;;  %v8175_v8 = vadd.f32 %v8174_v6, %v8163_v39  ;;  %v8164_v42 = vmul.f32 %v8137_v49, %v8137_v49  ;;  %v8149_v58 = vadd.f32 %v8148_v18, %v8137_v49 }
0x106b   :  { %v7768_v43 = vpop.f32.mrf.mxu1 }
0x106c   :  { %v19394_v1 = vmax.f32 %v17412_v20, 0.0  ;;  %v17422_v19 = vadd.f32 %v7768_v43, %v17366_v46  ;;  %v8176_v56 = vadd.f32 %v8175_v8, %v8164_v42  ;;  %v17461_v43 = vrot.slane %v7548_v11, %v14090_v59 }
0x106e   :  { %v8138_v50 = vmul.f32 %v17415_v55, %v19394_v1  ;;  %v19393_v32 = vmax.f32 %v17422_v19, 0.0 }
0x1070   :  { %v8165_v51 = vmul.f32 %v8138_v50, %v8138_v50  ;;  %v8139_v28 = vmul.f32 %v17428_v29, %v19393_v32  ;;  %v8150_v34 = vadd.f32 %v8149_v58, %v8138_v50 }
0x1072   :  { %v8177_v52 = vadd.f32 %v8176_v56, %v8165_v51  ;;  %v8166_v6 = vmul.f32 %v8139_v28, %v8139_v28  ;;  %v8151_v49 = vadd.f32 %v8150_v34, %v8139_v28 }
0x1074   :  { %v8178_v54 = vadd.f32 %v8177_v52, %v8166_v6  ;;  %v17485_v6 = vrot.slane %v7548_v11, %v14123_v40 }
0x1091   :  { %v7837_v25 = vpop.f32.mrf.mxu0 }
0x1092   :  { %v17425_v48 = vadd.f32 %v7837_v25, %v17366_v46 }
0x1093   :  { %v7839_v13 = vpop.f32.mrf.mxu0 }
0x1094   :  { %v19391_v26 = vmax.f32 %v17425_v48, 0.0  ;;  %v17445_v57 = vadd.f32 %v7839_v13, %v17366_v46 }
0x1096   :  { %v8140_v5 = vmul.f32 %v17442_v44, %v19391_v26  ;;  %v8061_v22 = vmax.f32 %v17445_v57, 0.0 }
0x1098   :  { %v8167_v18 = vmul.f32 %v8140_v5, %v8140_v5  ;;  %v8141_v13 = vmul.f32 %v17458_v60, %v8061_v22  ;;  %v8152_v8 = vadd.f32 %v8151_v49, %v8140_v5  ;;  %v17482_v5 = vrot.slane %v7548_v11, %v14107_v62 }
0x1099   :  { %v7908_v61 = vpop.f32.mrf.mxu1 }
0x109a   :  { %v17451_v3 = vadd.f32 %v7908_v61, %v17366_v46  ;;  %v8179_v0 = vadd.f32 %v8178_v54, %v8167_v18  ;;  %v8168_v61 = vmul.f32 %v8141_v13, %v8141_v13  ;;  %v8153_v58 = vadd.f32 %v8152_v8, %v8141_v13 }
0x109b   :  { %v7910_v15 = vpop.f32.mrf.mxu1 }
0x109c   :  { %v19392_v25 = vmax.f32 %v17451_v3, 0.0  ;;  %v17465_v39 = vadd.f32 %v7910_v15, %v17366_v46  ;;  %v8180_v15 = vadd.f32 %v8179_v0, %v8168_v61 }
0x109e   :  { %v8142_v42 = vmul.f32 %v17461_v43, %v19392_v25  ;;  %v8063_v50 = vmax.f32 %v17465_v39, 0.0 }
0x10a0   :  { %v8169_v56 = vmul.f32 %v8142_v42, %v8142_v42  ;;  %v8143_v51 = vmul.f32 %v17471_v9, %v8063_v50  ;;  %v8154_v34 = vadd.f32 %v8153_v58, %v8142_v42  ;;  %v17496_v58 = vrot.slane %v7548_v11, %v14125_v10 }
0x10a2   :  { %v8181_v39 = vadd.f32 %v8180_v15, %v8169_v56  ;;  %v8170_v49 = vmul.f32 %v8143_v51, %v8143_v51  ;;  %v8155_v54 = vadd.f32 %v8154_v34, %v8143_v51 }
0x10b1   :  { %v7979_v28 = vpop.f32.mrf.mxu0 }
0x10b2   :  { %v17479_v26 = vadd.f32 %v7979_v28, %v17366_v46  ;;  %v8182_v28 = vadd.f32 %v8181_v39, %v8170_v49  ;;  %v17503_v39 = vpop.permute.xlu0 %8238  ;;  %v17505_v49 = vpop.permute.xlu1 %8221 }
0x10b3   :  { %v7981_v52 = vpop.f32.mrf.mxu0 }
0x10b4   :  { %v19395_v18 = vmax.f32 %v17479_v26, 0.0  ;;  %v7982_v13 = vadd.f32 %v7981_v52, %v17366_v46 }
0x10b6   :  { %v8144_v8 = vmul.f32 %v17482_v5, %v19395_v18  ;;  %v8065_v42 = vmax.f32 %v7982_v13, 0.0  ;;  %v8050_v0 = vpop.f32.mrf.mxu1 }
0x10b7   :  { %v17493_v61 = vadd.f32 %v8050_v0, %v17366_v46 }
0x10b8   :  { %v8156_v56 = vadd.f32 %v8155_v54, %v8144_v8  ;;  %v8171_v15 = vmul.f32 %v8144_v8, %v8144_v8  ;;  %v8145_v25 = vmul.f32 %v17485_v6, %v8065_v42  ;;  %v13270_v32 = vpop.f32.mrf.mxu1  ;;  %v17509_v54 = vpop.permute.xlu1 %8495 }
0x10b9   :  { %v8066_v51 = vmax.f32 %v17493_v61, 0.0  ;;  %v17507_v32 = vpop.permute.xlu0 %8590 }
0x10ba   :  { %v8183_v34 = vadd.f32 %v8182_v28, %v8171_v15  ;;  %v8157_v52 = vadd.f32 %v8156_v56, %v8145_v25  ;;  %v8172_v1 = vmul.f32 %v8145_v25, %v8145_v25 }
0x10bb   :  { %v8146_v13 = vmul.f32 %v17496_v58, %v8066_v51 }
0x10bc   :  { %v8184_v46 = vadd.f32 %v8183_v34, %v8172_v1 }
0x10bd   :  { %v8173_v0 = vmul.f32 %v8146_v13, %v8146_v13  ;;  %v8158_v18 = vadd.f32 %v8157_v52, %v8146_v13  ;;  %v17511_v8 = vpop.permute.xlu0 %8400 }
0x10bf   :  { %8159 = vadd.xlane.f32.xlu1 %v8158_v18  ;;  %v8185_v11 = vadd.f32 %v8184_v46, %v8173_v0 }
0x10c1   :  { %8186 = vadd.xlane.f32.xlu0 %v8185_v11 }
0x1148   :  { %v8160_v25 = vpop.xlane.xlu1 %8159 }
0x1149   :  { %v17513_v28 = vmul.f32 0.02, %v8160_v25 }
0x114a   :  { %v8187_v56 = vpop.xlane.xlu0 %8186 }
0x114b   :  { %v8190_v1 = vmul.f32 %v17513_v28, %v17513_v28  ;;  %v8189_v18 = vmul.f32 0.02, %v8187_v56  ;;  %v8199_v52 = vsub.f32 %v8061_v22, %v17513_v28  ;;  %v8192_v13 = vsub.f32 %v8054_v24, %v17513_v28 }
0x114c   :  { %v8201_v46 = vsub.f32 %v8063_v50, %v17513_v28  ;;  %v8193_v0 = vsub.f32 %v8055_v30, %v17513_v28  ;;  %v8203_v25 = vsub.f32 %v8065_v42, %v17513_v28  ;;  %v8194_v56 = vsub.f32 %v8056_v33, %v17513_v28 }
0x114d   :  { %v8191_v15 = vsub.f32 %v8189_v18, %v8190_v1  ;;  %v8195_v30 = vsub.f32 %v8057_v41, %v17513_v28 }
0x114f   :  { %v8205_v34 = vadd.f32 1e-05, %v8191_v15 }
0x1151   :  { %13393 = vrsqrt.f32 %v8205_v34 }
0x115e   :  { %v17527_v11 = vpop.eup %13393 }
0x115f   :  { %v8214_v57 = vmul.f32 %v17527_v11, %v8199_v52  ;;  %v8207_v22 = vmul.f32 %v17527_v11, %v8192_v13  ;;  %v8216_v16 = vmul.f32 %v17527_v11, %v8201_v46  ;;  %v8208_v24 = vmul.f32 %v17527_v11, %v8193_v0 }
0x1160   :  { %v8218_v50 = vmul.f32 %v17527_v11, %v8203_v25  ;;  %v8209_v4 = vmul.f32 %v17527_v11, %v8194_v56  ;;  %v8210_v34 = vmul.f32 %v17527_v11, %v8195_v30  ;;  %v19439_v46 = vmax.f32 %v17412_v20, 0.0 }
0x1161   :  { %v8231_v42 = vmul.f32 %v17505_v49, %v8214_v57  ;;  %v8224_v63 = vmul.f32 %v17505_v49, %v8207_v22  ;;  %v8233_v33 = vmul.f32 %v17505_v49, %v8216_v16  ;;  %v8225_v1 = vmul.f32 %v17505_v49, %v8208_v24 }
0x1162   :  { %v8235_v18 = vmul.f32 %v17505_v49, %v8218_v50  ;;  %v8226_v15 = vmul.f32 %v17505_v49, %v8209_v4  ;;  %v8196_v0 = vsub.f32 %v19439_v46, %v17513_v28  ;;  %v8227_v16 = vmul.f32 %v17505_v49, %v8210_v34 }
0x1163   :  { %v8248_v52 = vadd.f32 %v17503_v39, %v8231_v42  ;;  %v8241_v13 = vadd.f32 %v17503_v39, %v8224_v63  ;;  %v8250_v35 = vadd.f32 %v17503_v39, %v8233_v33  ;;  %v8242_v41 = vadd.f32 %v17503_v39, %v8225_v1 }
0x1164   :  { %v8252_v57 = vadd.f32 %v17503_v39, %v8235_v18  ;;  %v8243_v22 = vadd.f32 %v17503_v39, %v8226_v15  ;;  %v8211_v24 = vmul.f32 %v17527_v11, %v8196_v0  ;;  %v8244_v63 = vadd.f32 %v17503_v39, %v8227_v16 }
0x1165   :  { %v8274_v25 = vadd.f32 %v8248_v52, %v15821_v45  ;;  %v8267_v56 = vadd.f32 %v8241_v13, %v15768_v27  ;;  %v8276_v30 = vadd.f32 %v8250_v35, %v15844_v21  ;;  %v8268_v20 = vadd.f32 %v8242_v41, %v15756_v37  ;;  %v19443_v52 = vld [vmem:[#allocation19_spill] sm:$0xff] }
0x1166   :  { %v19440_v27 = vmax.f32 %v17422_v19, 0.0  ;;  %v8278_v42 = vadd.f32 %v8252_v57, %v15858_v53  ;;  %v8269_v37 = vadd.f32 %v8243_v22, %v15758_v17  ;;  %v19441_v19 = vmax.f32 %v17425_v48, 0.0 }
0x1167   :  { %v8287_v50 = vmul.f32 %v8274_v25, %v17458_v60  ;;  %v8280_v4 = vmul.f32 %v8267_v56, %v17383_v38  ;;  %v8228_v60 = vmul.f32 %v17505_v49, %v8211_v24  ;;  %v8289_v38 = vmul.f32 %v8276_v30, %v17471_v9  ;;  %v19446_v24 = vld [vmem:[#allocation21_spill] sm:$0xff] }
0x1168   :  { %v8197_v45 = vsub.f32 %v19440_v27, %v17513_v28  ;;  %v8281_v21 = vmul.f32 %v8268_v20, %v17386_v7  ;;  %v8198_v53 = vsub.f32 %v19441_v19, %v17513_v28  ;;  %v8270_v1 = vadd.f32 %v8244_v63, %v15766_v2  ;;  %v19447_v20 = vld [vmem:[#allocation22_spill] sm:$0xff]  ;;  %v19449_v63 = vld [vmem:[#allocation24_spill] sm:$0xff] }
0x1169   :  { %8320 = vrot.lane.b32.xlu0 %v8287_v50, %s13411_s22  ;;  %8306 = vrot.lane.b32.xlu1 %v8280_v4, %s13411_s22  ;;  %v8245_v18 = vadd.f32 %v17503_v39, %v8228_v60  ;;  %v8291_v9 = vmul.f32 %v8278_v42, %v17485_v6  ;;  %v8282_v7 = vmul.f32 %v8269_v37, %v17399_v31  ;;  %v19442_v48 = vmax.f32 %v17451_v3, 0.0  ;;  %v19445_v3 = vld [vmem:[#allocation20_spill] sm:$0xff] }
0x116a   :  { %v8212_v33 = vmul.f32 %v17527_v11, %v8197_v45  ;;  %v8213_v15 = vmul.f32 %v17527_v11, %v8198_v53  ;;  %v8283_v13 = vmul.f32 %v8270_v1, %v17409_v14  ;;  %v19444_v41 = vmax.f32 %v17479_v26, 0.0 }
0x116b   :  { %v8200_v34 = vsub.f32 %v19442_v48, %v17513_v28  ;;  %v8271_v2 = vadd.f32 %v8245_v18, %v19443_v52  ;;  %v8204_v22 = vsub.f32 %v8066_v51, %v17513_v28 }
0x116c   :  { %v8229_v17 = vmul.f32 %v17505_v49, %v8212_v33  ;;  %v8230_v31 = vmul.f32 %v17505_v49, %v8213_v15  ;;  %v8202_v46 = vsub.f32 %v19444_v41, %v17513_v28  ;;  %v19448_v28 = vld [vmem:[#allocation23_spill] sm:$0xff] }
0x116d   :  { %8324 = vrot.lane.b32.xlu0 %v8289_v38, %s13411_s22  ;;  %8308 = vrot.lane.b32.xlu1 %v8281_v21, %s13411_s22  ;;  %v8215_v35 = vmul.f32 %v17527_v11, %v8200_v34  ;;  %v8284_v0 = vmul.f32 %v8271_v2, %v17415_v55  ;;  %v8219_v16 = vmul.f32 %v17527_v11, %v8204_v22 }
0x116e   :  { %v8246_v6 = vadd.f32 %v17503_v39, %v8229_v17  ;;  %v8247_v56 = vadd.f32 %v17503_v39, %v8230_v31  ;;  %v8217_v57 = vmul.f32 %v17527_v11, %v8202_v46 }
0x116f   :  { %v8232_v14 = vmul.f32 %v17505_v49, %v8215_v35  ;;  %v8236_v51 = vmul.f32 %v17505_v49, %v8219_v16 }
0x1170   :  { %v8272_v25 = vadd.f32 %v8246_v6, %v19445_v3  ;;  %v8273_v55 = vadd.f32 %v8247_v56, %v19446_v24  ;;  %v8234_v4 = vmul.f32 %v17505_v49, %v8217_v57 }
0x1171   :  { %8328 = vrot.lane.b32.xlu0 %v8291_v9, %s13411_s22  ;;  %8310 = vrot.lane.b32.xlu1 %v8282_v7, %s13411_s22  ;;  %v8249_v50 = vadd.f32 %v17503_v39, %v8232_v14  ;;  %v8253_v45 = vadd.f32 %v17503_v39, %v8236_v51 }
0x1172   :  { %v8285_v26 = vmul.f32 %v8272_v25, %v17428_v29  ;;  %v8286_v30 = vmul.f32 %v8273_v55, %v17442_v44  ;;  %v8251_v61 = vadd.f32 %v17503_v39, %v8234_v4 }
0x1173   :  { %v8275_v27 = vadd.f32 %v8249_v50, %v19447_v20  ;;  %v8279_v44 = vadd.f32 %v8253_v45, %v19449_v63 }
0x1174   :  { %v8277_v11 = vadd.f32 %v8251_v61, %v19448_v28 }
0x1175   :  { %8312 = vrot.lane.b32.xlu1 %v8283_v13, %s13411_s22  ;;  %v8288_v29 = vmul.f32 %v8275_v27, %v17461_v43  ;;  %v8292_v60 = vmul.f32 %v8279_v44, %v17496_v58 }
0x1176   :  { %v8290_v42 = vmul.f32 %v8277_v11, %v17482_v5 }
0x1179   :  { %8314 = vrot.lane.b32.xlu1 %v8284_v0, %s13411_s22 }
0x117d   :  { %8316 = vrot.lane.b32.xlu1 %v8285_v26, %s13411_s22 }
0x1181   :  { %8318 = vrot.lane.b32.xlu1 %v8286_v30, %s13411_s22 }
0x1185   :  { %8322 = vrot.lane.b32.xlu1 %v8288_v29, %s13411_s22 }
0x1189   :  { %8326 = vrot.lane.b32.xlu1 %v8290_v42, %s13411_s22 }
0x118d   :  { %8330 = vrot.lane.b32.xlu1 %v8292_v60, %s13411_s22 }
0x11db   :  { %v8307_v49 = vpop.permute.xlu1 %8306  ;;  %v8321_v34 = vpop.permute.xlu0 %8320 }
0x11dc   :  { %8358 = vst.msk [vmem:[#allocation2 + $0x8] sm:$0xff] %vm23_vm1, %v8307_v49 }
0x11df   :  { %v8309_v43 = vpop.permute.xlu1 %8308  ;;  %v8325_v52 = vpop.permute.xlu0 %8324 }
0x11e0   :  { %v8332_v18 = vsel %vm21_vm0, %v8307_v49, %v8309_v43 }
0x11e3   :  { %v8311_v38 = vpop.permute.xlu1 %8310  ;;  %v9132_v21 = vld [vmem:[#allocation2 + $0x8] sm:$0xff]  ;;  %v17707_v2 = vpop.permute.xlu0 %8328 }
0x11e4   :  { %9160 = vrot.lane.b32.xlu0 %v9132_v21, %s13426_s17  ;;  %9065 = vrot.lane.b32.xlu1 %v9132_v21, %s13425_s16  ;;  %v8333_v9 = vsel %vm21_vm0, %v8309_v43, %v8311_v38 }
0x11e7   :  { %v8313_v39 = vpop.permute.xlu1 %8312 }
0x11e8   :  { %8970 = vrot.lane.b32.xlu0 %v9132_v21, %s13427_s18  ;;  %8875 = vrot.lane.b32.xlu1 %v9132_v21, %s13429_s12  ;;  %v8334_v7 = vsel %vm21_vm0, %v8311_v38, %v8313_v39 }
0x11eb   :  { %v8315_v5 = vpop.permute.xlu1 %8314 }
0x11ec   :  { %8780 = vrot.lane.b32.xlu0 %v9132_v21, %s13419_s27  ;;  %8685 = vrot.lane.b32.xlu1 %v9132_v21, %s13430_s13  ;;  %v8335_v17 = vsel %vm21_vm0, %v8313_v39, %v8315_v5 }
0x11ef   :  { %v8317_v58 = vpop.permute.xlu1 %8316 }
0x11f0   :  { %8592 = vrot.lane.b32.xlu0 %v9132_v21, %s13426_s17  ;;  %8497 = vrot.lane.b32.xlu1 %v9132_v21, %s13425_s16  ;;  %v8336_v48 = vsel %vm21_vm0, %v8315_v5, %v8317_v58 }
0x11f3   :  { %v17641_v37 = vpop.permute.xlu1 %8318 }
0x11f4   :  { %8402 = vrot.lane.b32.xlu0 %v9132_v21, %s13427_s18  ;;  %v17684_v15 = vsel %vm21_vm0, %v8317_v58, %v17641_v37  ;;  %v17742_v14 = vsel %vm21_vm0, %v17641_v37, %v8321_v34 }
0x11f7   :  { %v17644_v33 = vpop.permute.xlu1 %8322 }
0x11f8   :  { %v17731_v3 = vsel %vm21_vm0, %v8321_v34, %v17644_v33  ;;  %v17778_v20 = vsel %vm21_vm0, %v17644_v33, %v8325_v52 }
0x11fb   :  { %v17646_v19 = vpop.permute.xlu1 %8326 }
0x11fc   :  { %v17768_v50 = vsel %vm21_vm0, %v8325_v52, %v17646_v19 }
0x11ff   :  { %v17648_v53 = vpop.permute.xlu1 %8330 }
0x1200   :  { %8371 = vst.msk [vmem:[#allocation2 + $0x70] sm:$0xff] %vm21_vm0, %v17648_v53 }
0x1207   :  { %v9145_v1 = vld [vmem:[#allocation2 + $0x70] sm:$0xff] }
0x1208   :  { %9186 = vrot.lane.b32.xlu1 %v9145_v1, %s13426_s17  ;;  %9091 = vrot.lane.b32.xlu0 %v9145_v1, %s13425_s16 }
0x120c   :  { %8996 = vrot.lane.b32.xlu1 %v9145_v1, %s13427_s18  ;;  %8901 = vrot.lane.b32.xlu0 %v9145_v1, %s13429_s12 }
0x1210   :  { %8806 = vrot.lane.b32.xlu1 %v9145_v1, %s13419_s27  ;;  %8711 = vrot.lane.b32.xlu0 %v9145_v1, %s13430_s13 }
0x1214   :  { %9164 = vrot.lane.b32.xlu1 %v8333_v9, %s13426_s17  ;;  %9162 = vrot.lane.b32.xlu0 %v8332_v18, %s13426_s17 }
0x1218   :  { %9067 = vrot.lane.b32.xlu1 %v8332_v18, %s13425_s16  ;;  %9069 = vrot.lane.b32.xlu0 %v8333_v9, %s13425_s16 }
0x121c   :  { %8974 = vrot.lane.b32.xlu1 %v8333_v9, %s13427_s18  ;;  %8972 = vrot.lane.b32.xlu0 %v8332_v18, %s13427_s18 }
0x1220   :  { %8877 = vrot.lane.b32.xlu1 %v8332_v18, %s13429_s12  ;;  %8879 = vrot.lane.b32.xlu0 %v8333_v9, %s13429_s12 }
0x1224   :  { %8784 = vrot.lane.b32.xlu1 %v8333_v9, %s13419_s27  ;;  %8782 = vrot.lane.b32.xlu0 %v8332_v18, %s13419_s27 }
0x1228   :  { %8687 = vrot.lane.b32.xlu1 %v8332_v18, %s13430_s13  ;;  %8689 = vrot.lane.b32.xlu0 %v8333_v9, %s13430_s13 }
0x122c   :  { %8594 = vrot.lane.b32.xlu1 %v8332_v18, %s13426_s17  ;;  %8499 = vrot.lane.b32.xlu0 %v8332_v18, %s13425_s16 }
0x1230   :  { %9166 = vrot.lane.b32.xlu1 %v8334_v7, %s13426_s17  ;;  %9168 = vrot.lane.b32.xlu0 %v8335_v17, %s13426_s17 }
0x1234   :  { %8404 = vrot.lane.b32.xlu1 %v8332_v18, %s13427_s18  ;;  %9071 = vrot.lane.b32.xlu0 %v8334_v7, %s13425_s16 }
0x1238   :  { %9073 = vrot.lane.b32.xlu1 %v8335_v17, %s13425_s16  ;;  %8978 = vrot.lane.b32.xlu0 %v8335_v17, %s13427_s18 }
0x123c   :  { %8976 = vrot.lane.b32.xlu1 %v8334_v7, %s13427_s18  ;;  %9172 = vrot.lane.b32.xlu0 %v17684_v15, %s13426_s17 }
0x1240   :  { %9170 = vrot.lane.b32.xlu1 %v8336_v48, %s13426_s17  ;;  %8883 = vrot.lane.b32.xlu0 %v8335_v17, %s13429_s12 }
0x1244   :  { %8881 = vrot.lane.b32.xlu1 %v8334_v7, %s13429_s12  ;;  %9077 = vrot.lane.b32.xlu0 %v17684_v15, %s13425_s16 }
0x1248   :  { %9075 = vrot.lane.b32.xlu1 %v8336_v48, %s13425_s16  ;;  %8788 = vrot.lane.b32.xlu0 %v8335_v17, %s13419_s27 }
0x124c   :  { %8786 = vrot.lane.b32.xlu1 %v8334_v7, %s13419_s27  ;;  %8982 = vrot.lane.b32.xlu0 %v17684_v15, %s13427_s18 }
0x1250   :  { %8980 = vrot.lane.b32.xlu1 %v8336_v48, %s13427_s18  ;;  %8693 = vrot.lane.b32.xlu0 %v8335_v17, %s13430_s13 }
0x1254   :  { %8691 = vrot.lane.b32.xlu1 %v8334_v7, %s13430_s13  ;;  %8887 = vrot.lane.b32.xlu0 %v17684_v15, %s13429_s12 }
0x1256   :  { %v9161_v13 = vpop.permute.xlu0 %9160  ;;  %v9066_v6 = vpop.permute.xlu1 %9065 }
0x1258   :  { %8885 = vrot.lane.b32.xlu1 %v8336_v48, %s13429_s12  ;;  %8598 = vrot.lane.b32.xlu0 %v8334_v7, %s13426_s17 }
0x125a   :  { %v8971_v31 = vpop.permute.xlu0 %8970  ;;  %v8876_v35 = vpop.permute.xlu1 %8875 }
0x125c   :  { %8596 = vrot.lane.b32.xlu1 %v8333_v9, %s13426_s17  ;;  %8792 = vrot.lane.b32.xlu0 %v17684_v15, %s13419_s27 }
0x125e   :  { %v17719_v41 = vpop.permute.xlu0 %8780  ;;  %v17723_v46 = vpop.permute.xlu1 %8685 }
0x1260   :  { %8790 = vrot.lane.b32.xlu1 %v8336_v48, %s13419_s27  ;;  %8503 = vrot.lane.b32.xlu0 %v8334_v7, %s13425_s16 }
0x1262   :  { %v17725_v0 = vpop.permute.xlu0 %8592  ;;  %v17736_v25 = vpop.permute.xlu1 %8497 }
0x1264   :  { %8501 = vrot.lane.b32.xlu1 %v8333_v9, %s13425_s16  ;;  %8697 = vrot.lane.b32.xlu0 %v17684_v15, %s13430_s13 }
0x1266   :  { %v17738_v56 = vpop.permute.xlu0 %8402 }
0x1268   :  { %8695 = vrot.lane.b32.xlu1 %v8336_v48, %s13430_s13  ;;  %8408 = vrot.lane.b32.xlu0 %v8334_v7, %s13427_s18 }
0x126c   :  { %8406 = vrot.lane.b32.xlu1 %v8333_v9, %s13427_s18  ;;  %8602 = vrot.lane.b32.xlu0 %v8336_v48, %s13426_s17 }
0x1270   :  { %8600 = vrot.lane.b32.xlu1 %v8335_v17, %s13426_s17  ;;  %8507 = vrot.lane.b32.xlu0 %v8336_v48, %s13425_s16 }
0x1274   :  { %8505 = vrot.lane.b32.xlu1 %v8335_v17, %s13425_s16  ;;  %9176 = vrot.lane.b32.xlu0 %v17731_v3, %s13426_s17 }
0x1278   :  { %9174 = vrot.lane.b32.xlu1 %v17742_v14, %s13426_s17  ;;  %8412 = vrot.lane.b32.xlu0 %v8336_v48, %s13427_s18  ;;  %v8618_v48 = vsel %vm2664_vm14, %v17507_v32, %v17725_v0 }
0x127a   :  { %v17747_v57 = vpop.permute.xlu0 %9091  ;;  %v17749_v22 = vpop.permute.xlu1 %9186 }
0x127c   :  { %8410 = vrot.lane.b32.xlu1 %v8335_v17, %s13427_s18  ;;  %9081 = vrot.lane.b32.xlu0 %v17731_v3, %s13425_s16 }
0x127e   :  { %v17754_v16 = vpop.permute.xlu0 %8901  ;;  %v17756_v26 = vpop.permute.xlu1 %8996 }
0x1280   :  { %9079 = vrot.lane.b32.xlu1 %v17742_v14, %s13425_s16  ;;  %8986 = vrot.lane.b32.xlu0 %v17731_v3, %s13427_s18 }
0x1282   :  { %v17762_v24 = vpop.permute.xlu0 %8711  ;;  %v17764_v55 = vpop.permute.xlu1 %8806 }
0x1284   :  { %8984 = vrot.lane.b32.xlu1 %v17742_v14, %s13427_s18  ;;  %9180 = vrot.lane.b32.xlu0 %v17768_v50, %s13426_s17 }
0x1286   :  { %v9163_v4 = vpop.permute.xlu0 %9162  ;;  %v17774_v30 = vpop.permute.xlu1 %9164 }
0x1287   :  { %v9189_v27 = vsel %vm2664_vm14, %v9163_v4, %v17774_v30  ;;  %v9188_v61 = vsel %vm2664_vm14, %v9161_v13, %v9163_v4 }
0x1288   :  { %9178 = vrot.lane.b32.xlu1 %v17778_v20, %s13426_s17  ;;  %8891 = vrot.lane.b32.xlu0 %v17731_v3, %s13429_s12 }
0x1289   :  { %9375 = vmatprep.subr.mxu0 %v9189_v27  ;;  %v17881_v27 = vld [vmem:[#allocation2] sm:$0xff] }
0x128a   :  { %9376 = vmatpush1.msra.mxu0 %v9188_v61  ;;  %v17787_v51 = vpop.permute.xlu0 %9069  ;;  %v9068_v29 = vpop.permute.xlu1 %9067 }
0x128b   :  { %v9094_v28 = vsel %vm2568_vm15, %v9068_v29, %v17787_v51  ;;  %v9093_v11 = vsel %vm2568_vm15, %v9066_v6, %v9068_v29  ;;  %v8523_v6 = vsel %vm2568_vm15, %v17509_v54, %v17736_v25 }
0x128c   :  { %8889 = vrot.lane.b32.xlu1 %v17742_v14, %s13429_s12  ;;  %9085 = vrot.lane.b32.xlu0 %v17768_v50, %s13425_s16 }
0x128d   :  { %9377 = vmatprep.subr.mxu0 %v9094_v28 }
0x128e   :  { %9378 = vmatpush1.msra.mxu0 %v9093_v11  ;;  %v8973_v45 = vpop.permute.xlu0 %8972  ;;  %v17796_v42 = vpop.permute.xlu1 %8974 }
0x128f   :  { %v8999_v63 = vsel %vm2472_vm13, %v8973_v45, %v17796_v42  ;;  %v8998_v44 = vsel %vm2472_vm13, %v8971_v31, %v8973_v45 }
0x1290   :  { %9083 = vrot.lane.b32.xlu1 %v17778_v20, %s13425_s16  ;;  %8796 = vrot.lane.b32.xlu0 %v17731_v3, %s13419_s27 }
0x1291   :  { %9379 = vmatprep.subr.mxu0 %v8999_v63 }
0x1292   :  { %9380 = vmatpush1.msra.mxu0 %v8998_v44  ;;  %v17805_v60 = vpop.permute.xlu0 %8879  ;;  %v8878_v49 = vpop.permute.xlu1 %8877 }
0x1293   :  { %v8904_v43 = vsel %vm2951_vm10, %v8878_v49, %v17805_v60  ;;  %v8903_v38 = vsel %vm2951_vm10, %v8876_v35, %v8878_v49 }
0x1294   :  { %8794 = vrot.lane.b32.xlu1 %v17742_v14, %s13419_s27  ;;  %8990 = vrot.lane.b32.xlu0 %v17768_v50, %s13427_s18 }
0x1295   :  { %9381 = vmatprep.subr.mxu0 %v8904_v43 }
0x1296   :  { %9382 = vmatpush1.msra.mxu0 %v8903_v38  ;;  %v8783_v21 = vpop.permute.xlu0 %8782  ;;  %v17814_v39 = vpop.permute.xlu1 %8784 }
0x1297   :  { %v8809_v5 = vsel %vm559_vm6, %v8783_v21, %v17814_v39  ;;  %v8808_v58 = vsel %vm559_vm6, %v17719_v41, %v8783_v21 }
0x1298   :  { %8988 = vrot.lane.b32.xlu1 %v17778_v20, %s13427_s18  ;;  %8701 = vrot.lane.b32.xlu0 %v17731_v3, %s13430_s13 }
0x1299   :  { %9383 = vmatprep.subr.mxu0 %v8809_v5  ;;  %v17921_v5 = vsel %vm21_vm0, %v17707_v2, %v17648_v53 }
0x129a   :  { %9384 = vmatpush1.msra.mxu0 %v8808_v58  ;;  %v17824_v37 = vpop.permute.xlu0 %8689  ;;  %v8688_v33 = vpop.permute.xlu1 %8687 }
0x129b   :  { %v8714_v1 = vsel %vm2760_vm9, %v8688_v33, %v17824_v37  ;;  %v8713_v18 = vsel %vm2760_vm9, %v17723_v46, %v8688_v33  ;;  %v17869_v46 = vld [vmem:[%s19340_s1 + $0x20] sm:$0xff]  ;;  %v17932_v33 = vsel %vm21_vm0, %v17646_v19, %v17707_v2 }
0x129c   :  { %8699 = vrot.lane.b32.xlu1 %v17742_v14, %s13430_s13  ;;  %8895 = vrot.lane.b32.xlu0 %v17768_v50, %s13429_s12 }
0x129d   :  { %9385 = vmatprep.subr.mxu0 %v8714_v1 }
0x129e   :  { %9386 = vmatpush1.msra.mxu0 %v8713_v18  ;;  %v17834_v9 = vpop.permute.xlu0 %8499  ;;  %v17836_v7 = vpop.permute.xlu1 %8594 }
0x129f   :  { %v8619_v17 = vsel %vm2664_vm14, %v17725_v0, %v17836_v7  ;;  %v8524_v52 = vsel %vm2568_vm15, %v17736_v25, %v17834_v9  ;;  %v8428_v0 = vsel %vm2472_vm13, %v17511_v8, %v17738_v56 }
0x12a0   :  { %8893 = vrot.lane.b32.xlu1 %v17778_v20, %s13429_s12  ;;  %8606 = vrot.lane.b32.xlu0 %v17742_v14, %s13426_s17 }
0x12a1   :  { %9387 = vmatprep.subr.mxu0 %v8619_v17 }
0x12a2   :  { %9388 = vmatpush1.msra.mxu0 %v8618_v48  ;;  %v9169_v34 = vpop.permute.xlu0 %9168  ;;  %v9167_v13 = vpop.permute.xlu1 %9166 }
0x12a3   :  { %9389 = vmatprep.subr.mxu0 %v8524_v52  ;;  %v9191_v31 = vsel %vm2664_vm14, %v9167_v13, %v9169_v34  ;;  %v9190_v35 = vsel %vm2664_vm14, %v17774_v30, %v9167_v13 }
0x12a4   :  { %9390 = vmatpush1.msra.mxu0 %v8523_v6  ;;  %8604 = vrot.lane.b32.xlu1 %v17684_v15, %s13426_s17 }
0x12a5   :  { %8800 = vrot.lane.b32.xlu0 %v17768_v50, %s13419_s27  ;;  %9446 = vmatprep.subr.mxu1 %v9191_v31 }
0x12a6   :  { %9447 = vmatpush1.msra.mxu1 %v9190_v35  ;;  %v9072_v32 = vpop.permute.xlu0 %9071  ;;  %v17861_v41 = vpop.permute.xlu1 %8404 }
0x12a7   :  { %v8429_v54 = vsel %vm2472_vm13, %v17738_v56, %v17861_v41  ;;  %v9095_v8 = vsel %vm2568_vm15, %v17787_v51, %v9072_v32 }
0x12a8   :  { %8798 = vrot.lane.b32.xlu1 %v17778_v20, %s13419_s27  ;;  %9391 = vmatprep.subr.mxu0 %v8429_v54 }
0x12a9   :  { %8511 = vrot.lane.b32.xlu0 %v17742_v14, %s13425_s16  ;;  %9392 = vmatpush1.msra.mxu0 %v8428_v0 }
0x12aa   :  { %v8979_v25 = vpop.permute.xlu0 %8978  ;;  %v9074_v4 = vpop.permute.xlu1 %9073  ;;  %13089 = vmatmul.mubr.msk.f32.vlgmr.msra.gmra.mxu0 %vm1114_vm11, %v17869_v46 }
0x12ab   :  { %v9096_v30 = vsel %vm2568_vm15, %v9072_v32, %v9074_v4  ;;  %9567 = vmatprep.mubr.f32.mxu0 %v17881_v27 }
0x12ac   :  { %8509 = vrot.lane.b32.xlu1 %v17684_v15, %s13425_s16  ;;  %9448 = vmatprep.subr.mxu1 %v9096_v30 }
0x12ad   :  { %8705 = vrot.lane.b32.xlu0 %v17768_v50, %s13430_s13  ;;  %9449 = vmatpush1.msra.mxu1 %v9095_v8 }
0x12ae   :  { %v17890_v56 = vpop.permute.xlu0 %9172  ;;  %v8977_v61 = vpop.permute.xlu1 %8976 }
0x12af   :  { %v9001_v29 = vsel %vm2472_vm13, %v8977_v61, %v8979_v25  ;;  %v9000_v28 = vsel %vm2472_vm13, %v17796_v42, %v8977_v61 }
0x12b0   :  { %8703 = vrot.lane.b32.xlu1 %v17778_v20, %s13430_s13  ;;  %9450 = vmatprep.subr.mxu1 %v9001_v29 }
0x12b1   :  { %8416 = vrot.lane.b32.xlu0 %v17742_v14, %s13427_s18  ;;  %9451 = vmatpush1.msra.mxu1 %v9000_v28 }
0x12b2   :  { %v8884_v51 = vpop.permute.xlu0 %8883  ;;  %v9171_v11 = vpop.permute.xlu1 %9170 }
0x12b3   :  { %v9193_v45 = vsel %vm2664_vm14, %v9171_v11, %v17890_v56  ;;  %v9192_v63 = vsel %vm2664_vm14, %v9169_v34, %v9171_v11 }
0x12b4   :  { %8414 = vrot.lane.b32.xlu1 %v17684_v15, %s13427_s18  ;;  %9517 = vmatprep.subr.mxu0 %v9193_v45 }
0x12b5   :  { %8610 = vrot.lane.b32.xlu0 %v17778_v20, %s13426_s17  ;;  %9518 = vmatpush1.msra.mxu0 %v9192_v63 }
0x12b6   :  { %v17906_v42 = vpop.permute.xlu0 %9077  ;;  %v8882_v44 = vpop.permute.xlu1 %8881 }
0x12b7   :  { %v8906_v14 = vsel %vm2951_vm10, %v8882_v44, %v8884_v51  ;;  %v8905_v49 = vsel %vm2951_vm10, %v17805_v60, %v8882_v44 }
0x12b8   :  { %8608 = vrot.lane.b32.xlu1 %v17731_v3, %s13426_s17  ;;  %9452 = vmatprep.subr.mxu1 %v8906_v14 }
0x12b9   :  { %8515 = vrot.lane.b32.xlu0 %v17778_v20, %s13425_s16  ;;  %9453 = vmatpush1.msra.mxu1 %v8905_v49 }
0x12ba   :  { %v8789_v15 = vpop.permute.xlu0 %8788  ;;  %v9076_v43 = vpop.permute.xlu1 %9075 }
0x12bb   :  { %v9098_v38 = vsel %vm2568_vm15, %v9076_v43, %v17906_v42  ;;  %v9097_v21 = vsel %vm2568_vm15, %v9074_v4, %v9076_v43 }
0x12bc   :  { %8513 = vrot.lane.b32.xlu1 %v17731_v3, %s13425_s16  ;;  %9519 = vmatprep.subr.mxu0 %v9098_v38 }
0x12bd   :  { %9184 = vrot.lane.b32.xlu0 %v17921_v5, %s13426_s17  ;;  %9520 = vmatpush1.msra.mxu0 %v9097_v21 }
0x12be   :  { %v17927_v60 = vpop.permute.xlu0 %8982  ;;  %v8787_v58 = vpop.permute.xlu1 %8786 }
0x12bf   :  { %v8811_v1 = vsel %vm559_vm6, %v8787_v58, %v8789_v15  ;;  %v8810_v53 = vsel %vm559_vm6, %v17814_v39, %v8787_v58  ;;  %v18020_v58 = vld [vmem:[%s19341_s3] sm:$0xff] }
0x12c0   :  { %9182 = vrot.lane.b32.xlu1 %v17932_v33, %s13426_s17  ;;  %9454 = vmatprep.subr.mxu1 %v8811_v1 }
0x12c1   :  { %8420 = vrot.lane.b32.xlu0 %v17778_v20, %s13427_s18  ;;  %9455 = vmatpush1.msra.mxu1 %v8810_v53 }
0x12c2   :  { %v8694_v18 = vpop.permute.xlu0 %8693  ;;  %v8981_v17 = vpop.permute.xlu1 %8980 }
0x12c3   :  { %v9003_v48 = vsel %vm2472_vm13, %v8981_v17, %v17927_v60  ;;  %v9002_v19 = vsel %vm2472_vm13, %v8979_v25, %v8981_v17 }
0x12c4   :  { %8418 = vrot.lane.b32.xlu1 %v17731_v3, %s13427_s18  ;;  %9521 = vmatprep.subr.mxu0 %v9003_v48 }
0x12c5   :  { %9089 = vrot.lane.b32.xlu0 %v17921_v5, %s13425_s16  ;;  %9522 = vmatpush1.msra.mxu0 %v9002_v19 }
0x12c6   :  { %v17948_v2 = vpop.permute.xlu0 %8887  ;;  %v8692_v39 = vpop.permute.xlu1 %8691 }
0x12c7   :  { %v8716_v20 = vsel %vm2760_vm9, %v8692_v39, %v8694_v18  ;;  %v8715_v34 = vsel %vm2760_vm9, %v17824_v37, %v8692_v39 }
0x12c8   :  { %9087 = vrot.lane.b32.xlu1 %v17932_v33, %s13425_s16  ;;  %9456 = vmatprep.subr.mxu1 %v8716_v20 }
0x12c9   :  { %8994 = vrot.lane.b32.xlu0 %v17921_v5, %s13427_s18  ;;  %9457 = vmatpush1.msra.mxu1 %v8715_v34 }
0x12ca   :  { %v8599_v3 = vpop.permute.xlu0 %8598  ;;  %v8886_v52 = vpop.permute.xlu1 %8885 }
0x12cb   :  { %v8908_v13 = vsel %vm2951_vm10, %v8886_v52, %v17948_v2  ;;  %v8907_v6 = vsel %vm2951_vm10, %v8884_v51, %v8886_v52 }
0x12cc   :  { %8992 = vrot.lane.b32.xlu1 %v17932_v33, %s13427_s18  ;;  %9523 = vmatprep.subr.mxu0 %v8908_v13 }
0x12cd   :  { %8897 = vrot.lane.b32.xlu0 %v17932_v33, %s13429_s12  ;;  %9524 = vmatpush1.msra.mxu0 %v8907_v6 }
0x12ce   :  { %v17964_v37 = vpop.permute.xlu0 %8792  ;;  %v8597_v31 = vpop.permute.xlu1 %8596 }
0x12cf   :  { %v8621_v35 = vsel %vm2664_vm14, %v8597_v31, %v8599_v3  ;;  %v8620_v32 = vsel %vm2664_vm14, %v17836_v7, %v8597_v31 }
0x12d0   :  { %8899 = vrot.lane.b32.xlu1 %v17921_v5, %s13429_s12  ;;  %9458 = vmatprep.subr.mxu1 %v8621_v35 }
0x12d1   :  { %8804 = vrot.lane.b32.xlu0 %v17921_v5, %s13419_s27  ;;  %9459 = vmatpush1.msra.mxu1 %v8620_v32 }
0x12d2   :  { %v8504_v54 = vpop.permute.xlu0 %8503  ;;  %v8791_v0 = vpop.permute.xlu1 %8790 }
0x12d3   :  { %v8813_v25 = vsel %vm559_vm6, %v8791_v0, %v17964_v37  ;;  %v8812_v4 = vsel %vm559_vm6, %v8789_v15, %v8791_v0  ;;  %v13441_v15 = vmov 12  }
0x12d4   :  { %8802 = vrot.lane.b32.xlu1 %v17932_v33, %s13419_s27  ;;  %9525 = vmatprep.subr.mxu0 %v8813_v25 }
0x12d5   :  { %8707 = vrot.lane.b32.xlu0 %v17932_v33, %s13430_s13  ;;  %9526 = vmatpush1.msra.mxu0 %v8812_v4 }
0x12d6   :  { %v17980_v7 = vpop.permute.xlu0 %8697  ;;  %v8502_v30 = vpop.permute.xlu1 %8501  ;;  %13376 = vset.pattern.permute.xlu0 %v13441_v15 }
0x12d7   :  { %v8526_v8 = vsel %vm2568_vm15, %v8502_v30, %v8504_v54  ;;  %v8525_v61 = vsel %vm2568_vm15, %v17834_v9, %v8502_v30 }
0x12d8   :  { %8709 = vrot.lane.b32.xlu1 %v17921_v5, %s13430_s13  ;;  %9460 = vmatprep.subr.mxu1 %v8526_v8 }
0x12d9   :  { %8614 = vrot.lane.b32.xlu0 %v17932_v33, %s13426_s17  ;;  %9461 = vmatpush1.msra.mxu1 %v8525_v61 }
0x12da   :  { %v8409_v29 = vpop.permute.xlu0 %8408  ;;  %v8696_v28 = vpop.permute.xlu1 %8695 }
0x12db   :  { %v8718_v51 = vsel %vm2760_vm9, %v8696_v28, %v17980_v7  ;;  %v8717_v11 = vsel %vm2760_vm9, %v8694_v18, %v8696_v28 }
0x12dc   :  { %8612 = vrot.lane.b32.xlu1 %v17768_v50, %s13426_s17  ;;  %9527 = vmatprep.subr.mxu0 %v8718_v51 }
0x12dd   :  { %8517 = vrot.lane.b32.xlu0 %v17768_v50, %s13425_s16  ;;  %9528 = vmatpush1.msra.mxu0 %v8717_v11 }
0x12de   :  { %v17996_v9 = vpop.permute.xlu0 %8602  ;;  %v8407_v45 = vpop.permute.xlu1 %8406 }
0x12df   :  { %v8431_v63 = vsel %vm2472_vm13, %v8407_v45, %v8409_v29  ;;  %v8430_v44 = vsel %vm2472_vm13, %v17861_v41, %v8407_v45 }
0x12e0   :  { %8519 = vrot.lane.b32.xlu1 %v17932_v33, %s13425_s16  ;;  %9462 = vmatprep.subr.mxu1 %v8431_v63 }
0x12e1   :  { %8424 = vrot.lane.b32.xlu0 %v17932_v33, %s13427_s18  ;;  %9463 = vmatpush1.msra.mxu1 %v8430_v44 }
0x12e2   :  { %v18005_v14 = vpop.permute.xlu0 %8507  ;;  %v8601_v49 = vpop.permute.xlu1 %8600  ;;  %13090 = vmatmul.mubr.msk.f32.vlgmr.msra.gmra.mxu1 %vm1114_vm11, %v17869_v46 }
0x12e3   :  { %v8623_v43 = vsel %vm2664_vm14, %v8601_v49, %v17996_v9  ;;  %v8622_v41 = vsel %vm2664_vm14, %v8599_v3, %v8601_v49  ;;  %9638 = vmatprep.mubr.f32.mxu1 %v17881_v27 }
0x12e4   :  { %8422 = vrot.lane.b32.xlu1 %v17768_v50, %s13427_s18  ;;  %9529 = vmatprep.subr.mxu0 %v8623_v43 }
0x12e5   :  { %8521 = vrot.lane.b32.xlu0 %v17921_v5, %s13425_s16  ;;  %9530 = vmatpush1.msra.mxu0 %v8622_v41 }
0x12e6   :  { %v9177_v38 = vpop.permute.xlu0 %9176  ;;  %v8506_v21 = vpop.permute.xlu1 %8505 }
0x12e7   :  { %v8528_v33 = vsel %vm2568_vm15, %v8506_v21, %v18005_v14  ;;  %v8527_v1 = vsel %vm2568_vm15, %v8504_v54, %v8506_v21 }
0x12e8   :  { %8616 = vrot.lane.b32.xlu1 %v17921_v5, %s13426_s17  ;;  %9531 = vmatprep.subr.mxu0 %v8528_v33 }
0x12e9   :  { %9532 = vmatpush1.msra.mxu0 %v8527_v1  ;;  %9355 = vperm.xlu0 %13376, %v18020_v58  }
0x12ea   :  { %v18028_v50 = vpop.permute.xlu0 %8412  ;;  %v9175_v53 = vpop.permute.xlu1 %9174 }
0x12eb   :  { %v9195_v18 = vsel %vm2664_vm14, %v9175_v53, %v9177_v38  ;;  %v9194_v17 = vsel %vm2664_vm14, %v17890_v56, %v9175_v53 }
0x12ec   :  { %8426 = vrot.lane.b32.xlu1 %v17921_v5, %s13427_s18  ;;  %9588 = vmatprep.subr.mxu1 %v9195_v18 }
0x12ed   :  { %9589 = vmatpush1.msra.mxu1 %v9194_v17 }
0x12ee   :  { %v9082_v48 = vpop.permute.xlu0 %9081  ;;  %v8411_v19 = vpop.permute.xlu1 %8410 }
0x12ef   :  { %v8433_v39 = vsel %vm2472_vm13, %v8411_v19, %v18028_v50  ;;  %v8432_v20 = vsel %vm2472_vm13, %v8409_v29, %v8411_v19 }
0x12f0   :  { %9533 = vmatprep.subr.mxu0 %v8433_v39 }
0x12f1   :  { %9534 = vmatpush1.msra.mxu0 %v8432_v20 }
0x12f2   :  { %v8987_v34 = vpop.permute.xlu0 %8986  ;;  %v9080_v3 = vpop.permute.xlu1 %9079  ;;  %13091 = vmatmul.mubr.msk.f32.vlgmr.msra.gmra.mxu0 %vm1114_vm11, %v17869_v46 }
0x12f3   :  { %v9100_v56 = vsel %vm2568_vm15, %v9080_v3, %v9082_v48  ;;  %v9099_v5 = vsel %vm2568_vm15, %v17906_v42, %v9080_v3  ;;  %9709 = vmatprep.mubr.f32.mxu0 %v17881_v27 }
0x12f4   :  { %9590 = vmatprep.subr.mxu1 %v9100_v56 }
0x12f5   :  { %9591 = vmatpush1.msra.mxu1 %v9099_v5 }
0x12f6   :  { %v18044_v52 = vpop.permute.xlu0 %9180  ;;  %v8985_v13 = vpop.permute.xlu1 %8984 }
0x12f7   :  { %v9005_v6 = vsel %vm2472_vm13, %v8985_v13, %v8987_v34  ;;  %v9004_v31 = vsel %vm2472_vm13, %v17927_v60, %v8985_v13 }
0x12f8   :  { %9592 = vmatprep.subr.mxu1 %v9005_v6 }
0x12f9   :  { %9593 = vmatpush1.msra.mxu1 %v9004_v31 }
0x12fa   :  { %v8892_v35 = vpop.permute.xlu0 %8891  ;;  %v9179_v32 = vpop.permute.xlu1 %9178 }
0x12fb   :  { %v9197_v54 = vsel %vm2664_vm14, %v9179_v32, %v18044_v52  ;;  %v9196_v42 = vsel %vm2664_vm14, %v9177_v38, %v9179_v32 }
0x12fc   :  { %9659 = vmatprep.subr.mxu0 %v9197_v54 }
0x12fd   :  { %9660 = vmatpush1.msra.mxu0 %v9196_v42 }
0x12fe   :  { %v18052_v0 = vpop.permute.xlu0 %9085  ;;  %v8890_v25 = vpop.permute.xlu1 %8889 }
0x12ff   :  { %v8910_v4 = vsel %vm2951_vm10, %v8890_v25, %v8892_v35  ;;  %v8909_v30 = vsel %vm2951_vm10, %v17948_v2, %v8890_v25 }
0x1300   :  { %9594 = vmatprep.subr.mxu1 %v8910_v4 }
0x1301   :  { %9595 = vmatpush1.msra.mxu1 %v8909_v30 }
0x1302   :  { %v8797_v60 = vpop.permute.xlu0 %8796  ;;  %v9084_v8 = vpop.permute.xlu1 %9083 }
0x1303   :  { %v9102_v61 = vsel %vm2568_vm15, %v9084_v8, %v18052_v0  ;;  %v9101_v29 = vsel %vm2568_vm15, %v9082_v48, %v9084_v8 }
0x1304   :  { %9661 = vmatprep.subr.mxu0 %v9102_v61 }
0x1305   :  { %9662 = vmatpush1.msra.mxu0 %v9101_v29 }
0x1306   :  { %v18060_v28 = vpop.permute.xlu0 %8990  ;;  %v8795_v51 = vpop.permute.xlu1 %8794 }
0x1307   :  { %v8815_v11 = vsel %vm559_vm6, %v8795_v51, %v8797_v60  ;;  %v8814_v45 = vsel %vm559_vm6, %v17964_v37, %v8795_v51 }
0x1308   :  { %9596 = vmatprep.subr.mxu1 %v8815_v11 }
0x1309   :  { %9597 = vmatpush1.msra.mxu1 %v8814_v45 }
0x130a   :  { %v8702_v2 = vpop.permute.xlu0 %8701  ;;  %v8989_v63 = vpop.permute.xlu1 %8988 }
0x130b   :  { %v9007_v44 = vsel %vm2472_vm13, %v8989_v63, %v18060_v28  ;;  %v9006_v49 = vsel %vm2472_vm13, %v8987_v34, %v8989_v63 }
0x130c   :  { %9663 = vmatprep.subr.mxu0 %v9007_v44 }
0x130d   :  { %9664 = vmatpush1.msra.mxu0 %v9006_v49 }
0x130e   :  { %v18068_v15 = vpop.permute.xlu0 %8895  ;;  %v8700_v43 = vpop.permute.xlu1 %8699 }
0x130f   :  { %v8720_v41 = vsel %vm2760_vm9, %v8700_v43, %v8702_v2  ;;  %v8719_v38 = vsel %vm2760_vm9, %v17980_v7, %v8700_v43 }
0x1310   :  { %9598 = vmatprep.subr.mxu1 %v8720_v41 }
0x1311   :  { %9599 = vmatpush1.msra.mxu1 %v8719_v38 }
0x1312   :  { %v8607_v37 = vpop.permute.xlu0 %8606  ;;  %v8894_v21 = vpop.permute.xlu1 %8893 }
0x1313   :  { %v8912_v33 = vsel %vm2951_vm10, %v8894_v21, %v18068_v15  ;;  %v8911_v1 = vsel %vm2951_vm10, %v8892_v35, %v8894_v21 }
0x1314   :  { %9665 = vmatprep.subr.mxu0 %v8912_v33 }
0x1315   :  { %9666 = vmatpush1.msra.mxu0 %v8911_v1  ;;  %v13442_v1 = vmov 13  }
0x1316   :  { %v8605_v53 = vpop.permute.xlu1 %8604  ;;  %13377 = vset.pattern.permute.xlu1 %v13442_v1 }
0x1317   :  { %v18076_v18 = vpop.permute.xlu0 %8800  ;;  %v8625_v17 = vsel %vm2664_vm14, %v8605_v53, %v8607_v37  ;;  %v8624_v48 = vsel %vm2664_vm14, %v17996_v9, %v8605_v53  ;;  %10024 = vperm.xlu1 %13377, %v18020_v58  }
0x1318   :  { %9600 = vmatprep.subr.mxu1 %v8625_v17 }
0x1319   :  { %9601 = vmatpush1.msra.mxu1 %v8624_v48 }
0x131a   :  { %v8799_v7 = vpop.permute.xlu1 %8798 }
0x131b   :  { %v8512_v19 = vpop.permute.xlu0 %8511  ;;  %v8817_v39 = vsel %vm559_vm6, %v8799_v7, %v18076_v18  ;;  %v8816_v20 = vsel %vm559_vm6, %v8797_v60, %v8799_v7  ;;  %10393 = vrot.lane.b32.xlu1 %v17881_v27, %s13412_s20 }
0x131c   :  { %9667 = vmatprep.subr.mxu0 %v8817_v39 }
0x131d   :  { %9668 = vmatpush1.msra.mxu0 %v8816_v20 }
0x131e   :  { %v8510_v34 = vpop.permute.xlu1 %8509 }
0x131f   :  { %v18084_v3 = vpop.permute.xlu0 %8705  ;;  %v8530_v56 = vsel %vm2568_vm15, %v8510_v34, %v8512_v19  ;;  %v8529_v5 = vsel %vm2568_vm15, %v18005_v14, %v8510_v34  ;;  %10203 = vrot.lane.b32.xlu1 %v17881_v27, %s13413_s21 }
0x1320   :  { %9602 = vmatprep.subr.mxu1 %v8530_v56 }
0x1321   :  { %9603 = vmatpush1.msra.mxu1 %v8529_v5 }
0x1322   :  { %v8704_v9 = vpop.permute.xlu1 %8703 }
0x1323   :  { %v8417_v13 = vpop.permute.xlu0 %8416  ;;  %v8722_v6 = vsel %vm2760_vm9, %v8704_v9, %v18084_v3  ;;  %v8721_v31 = vsel %vm2760_vm9, %v8702_v2, %v8704_v9 }
0x1324   :  { %9669 = vmatprep.subr.mxu0 %v8722_v6 }
0x1325   :  { %9670 = vmatpush1.msra.mxu0 %v8721_v31 }
0x1326   :  { %v8415_v35 = vpop.permute.xlu1 %8414 }
0x1327   :  { %v18092_v32 = vpop.permute.xlu0 %8610  ;;  %v8435_v54 = vsel %vm2472_vm13, %v8415_v35, %v8417_v13  ;;  %v8434_v42 = vsel %vm2472_vm13, %v18028_v50, %v8415_v35 }
0x1328   :  { %9604 = vmatprep.subr.mxu1 %v8435_v54 }
0x1329   :  { %9605 = vmatpush1.msra.mxu1 %v8434_v42 }
0x132a   :  { %v8609_v14 = vpop.permute.xlu1 %8608  ;;  %13092 = vmatmul.mubr.msk.f32.vlgmr.msra.gmra.mxu1 %vm1114_vm11, %v17869_v46 }
0x132b   :  { %v18099_v25 = vpop.permute.xlu0 %8515  ;;  %v8627_v4 = vsel %vm2664_vm14, %v8609_v14, %v18092_v32  ;;  %v8626_v30 = vsel %vm2664_vm14, %v8607_v37, %v8609_v14  ;;  %9780 = vmatprep.mubr.f32.mxu1 %v17881_v27 }
0x132c   :  { %9671 = vmatprep.subr.mxu0 %v8627_v4 }
0x132d   :  { %9672 = vmatpush1.msra.mxu0 %v8626_v30 }
0x132e   :  { %v8514_v60 = vpop.permute.xlu1 %8513 }
0x132f   :  { %v9185_v8 = vpop.permute.xlu0 %9184  ;;  %v8532_v50 = vsel %vm2568_vm15, %v8514_v60, %v18099_v25  ;;  %v8531_v61 = vsel %vm2568_vm15, %v8512_v19, %v8514_v60 }
0x1330   :  { %9673 = vmatprep.subr.mxu0 %v8532_v50 }
0x1331   :  { %9674 = vmatpush1.msra.mxu0 %v8531_v61  ;;  %v13443_v61 = vmov 14  }
0x1332   :  { %v9183_v29 = vpop.permute.xlu1 %9182  ;;  %13378 = vset.pattern.permute.xlu0 %v13443_v61 }
0x1333   :  { %v18108_v51 = vpop.permute.xlu0 %8420  ;;  %v9199_v11 = vsel %vm2664_vm14, %v9183_v29, %v9185_v8  ;;  %v9198_v45 = vsel %vm2664_vm14, %v18044_v52, %v9183_v29  ;;  %v9200_v52 = vsel %vm2664_vm14, %v9185_v8, %v17749_v22  ;;  %10041 = vperm.xlu0 %13378, %v18020_v58  }
0x1334   :  { %9730 = vmatprep.subr.mxu1 %v9199_v11  ;;  %v13085_v11 = vld [vmem:[%s19342_s4 + $0x1] ss:$8 sm:$0xf] }
0x1335   :  { %9731 = vmatpush1.msra.mxu1 %v9198_v45 }
0x1336   :  { %v8419_v2 = vpop.permute.xlu1 %8418 }
0x1337   :  { %v9090_v63 = vpop.permute.xlu0 %9089  ;;  %v8437_v44 = vsel %vm2472_vm13, %v8419_v2, %v18108_v51  ;;  %v8436_v49 = vsel %vm2472_vm13, %v8417_v13, %v8419_v2  ;;  %10298 = vrot.lane.b32.xlu0 %v17881_v27, %s13414_s23 }
0x1338   :  { %9675 = vmatprep.subr.mxu0 %v8437_v44  ;;  %v9105_v21 = vsel %vm2568_vm15, %v9090_v63, %v17747_v57 }
0x1339   :  { %9676 = vmatpush1.msra.mxu0 %v8436_v49 }
0x133a   :  { %13093 = vmatmul.mubr.msk.f32.vlgmr.msra.gmra.mxu0 %vm1114_vm11, %v17869_v46  ;;  %13271 = vmatprep.subr.mxu0 %v17881_v27  ;;  %v9088_v43 = vpop.permute.xlu1 %9087 }
0x133b   :  { %v8995_v41 = vpop.permute.xlu0 %8994  ;;  %13272 = vmatpush3.msra.mxu0 %v9200_v52  ;;  %v9104_v38 = vsel %vm2568_vm15, %v9088_v43, %v9090_v63  ;;  %v9103_v37 = vsel %vm2568_vm15, %v18052_v0, %v9088_v43  ;;  %13289 = vmatprep.mubr.msk.f32.mxu0 %vm13422_vm12, %v17881_v27 }
0x133c   :  { %9732 = vmatprep.subr.mxu1 %v9104_v38  ;;  %13273 = vmatprep.subr.mxu0 %v17881_v27  ;;  %v9010_v33 = vsel %vm2472_vm13, %v8995_v41, %v17756_v26 }
0x133d   :  { %9733 = vmatpush1.msra.mxu1 %v9103_v37  ;;  %13274 = vmatpush3.msra.mxu0 %v9105_v21 }
0x133e   :  { %13275 = vmatprep.subr.mxu0 %v17881_v27  ;;  %v8993_v22 = vpop.permute.xlu1 %8992 }
0x133f   :  { %v8898_v0 = vpop.permute.xlu0 %8897  ;;  %13276 = vmatpush3.msra.mxu0 %v9010_v33  ;;  %v9009_v53 = vsel %vm2472_vm13, %v8993_v22, %v8995_v41  ;;  %v9008_v17 = vsel %vm2472_vm13, %v18060_v28, %v8993_v22 }
0x1340   :  { %9734 = vmatprep.subr.mxu1 %v9009_v53  ;;  %13277 = vmatprep.subr.mxu0 %v17881_v27  ;;  %v8913_v28 = vsel %vm2951_vm10, %v18068_v15, %v8898_v0 }
0x1341   :  { %9735 = vmatpush1.msra.mxu1 %v9008_v17 }
0x1342   :  { %v8900_v57 = vpop.permute.xlu1 %8899 }
0x1343   :  { %v8805_v48 = vpop.permute.xlu0 %8804  ;;  %v8914_v7 = vsel %vm2951_vm10, %v8898_v0, %v8900_v57  ;;  %v8915_v26 = vsel %vm2951_vm10, %v8900_v57, %v17754_v16  ;;  %vm19468_vm10 = vcmask 236544  }
0x1344   :  { %9736 = vmatprep.subr.mxu1 %v8914_v7  ;;  %13278 = vmatpush3.msra.mxu0 %v8915_v26  ;;  %v8820_v19 = vsel %vm559_vm6, %v8805_v48, %v17764_v55 }
0x1345   :  { %9737 = vmatpush1.msra.mxu1 %v8913_v28  ;;  %13279 = vmatprep.subr.mxu0 %v17881_v27 }
0x1346   :  { %13280 = vmatpush3.msra.mxu0 %v8820_v19  ;;  %v8803_v39 = vpop.permute.xlu1 %8802 }
0x1347   :  { %v8708_v20 = vpop.permute.xlu0 %8707  ;;  %v8819_v34 = vsel %vm559_vm6, %v8803_v39, %v8805_v48  ;;  %v8818_v16 = vsel %vm559_vm6, %v18076_v18, %v8803_v39  ;;  %13281 = vmatprep.subr.mxu0 %v17881_v27 }
0x1348   :  { %9738 = vmatprep.subr.mxu1 %v8819_v34  ;;  %v8723_v9 = vsel %vm2760_vm9, %v18084_v3, %v8708_v20 }
0x1349   :  { %9739 = vmatpush1.msra.mxu1 %v8818_v16 }
0x134a   :  { %v8710_v15 = vpop.permute.xlu1 %8709 }
0x134b   :  { %v8615_v56 = vpop.permute.xlu0 %8614  ;;  %v8724_v5 = vsel %vm2760_vm9, %v8708_v20, %v8710_v15  ;;  %v8725_v55 = vsel %vm2760_vm9, %v8710_v15, %v17762_v24  ;;  %vm19467_vm9 = vmmov %vm19466_vm8 }
0x134c   :  { %9740 = vmatprep.subr.mxu1 %v8724_v5  ;;  %13282 = vmatpush3.msra.mxu0 %v8725_v55 }
0x134d   :  { %9741 = vmatpush1.msra.mxu1 %v8723_v9  ;;  %13283 = vmatprep.subr.mxu0 %v17881_v27 }
0x134e   :  { %v8613_v18 = vpop.permute.xlu1 %8612 }
0x134f   :  { %v8518_v13 = vpop.permute.xlu0 %8517  ;;  %v8629_v6 = vsel %vm2664_vm14, %v8613_v18, %v8615_v56  ;;  %v8628_v31 = vsel %vm2664_vm14, %v18092_v32, %v8613_v18 }
0x1350   :  { %9742 = vmatprep.subr.mxu1 %v8629_v6  ;;  %v8533_v3 = vsel %vm2568_vm15, %v18099_v25, %v8518_v13 }
0x1351   :  { %9743 = vmatpush1.msra.mxu1 %v8628_v31 }
0x1352   :  { %v8520_v35 = vpop.permute.xlu1 %8519 }
0x1353   :  { %v8534_v24 = vsel %vm2568_vm15, %v8518_v13, %v8520_v35  ;;  %v8425_v54 = vpop.permute.xlu0 %8424 }
0x1354   :  { %9744 = vmatprep.subr.mxu1 %v8534_v24 }
0x1355   :  { %9745 = vmatpush1.msra.mxu1 %v8533_v3 }
0x1356   :  { %v8423_v42 = vpop.permute.xlu1 %8422 }
0x1357   :  { %v8439_v14 = vsel %vm2472_vm13, %v8423_v42, %v8425_v54  ;;  %v8438_v4 = vsel %vm2472_vm13, %v18108_v51, %v8423_v42  ;;  %v8522_v32 = vpop.permute.xlu0 %8521 }
0x1358   :  { %9746 = vmatprep.subr.mxu1 %v8439_v14  ;;  %v8535_v25 = vsel %vm2568_vm15, %v8520_v35, %v8522_v32 }
0x1359   :  { %9747 = vmatpush1.msra.mxu1 %v8438_v4  ;;  %v13087_v4 = vld [vmem:[%s19342_s4 + $0x41] ss:$8 sm:$0xf] }
0x135a   :  { %13094 = vmatmul.mubr.msk.f32.vlgmr.msra.gmra.mxu1 %vm1114_vm11, %v17869_v46  ;;  %v8617_v30 = vpop.permute.xlu1 %8616 }
0x135b   :  { %v8630_v60 = vsel %vm2664_vm14, %v8615_v56, %v8617_v30  ;;  %11230 = vmatprep.mubr.f32.mxu1 %v17881_v27  ;;  %vm19469_vm14 = vmmov %vm19468_vm10 }
0x135c   :  { %13284 = vmatpush3.msra.mxu0 %v8630_v60 }
0x135d   :  { %13285 = vmatprep.subr.mxu0 %v17881_v27 }
0x135e   :  { %13286 = vmatpush3.msra.mxu0 %v8535_v25  ;;  %v8427_v8 = vpop.permute.xlu1 %8426  ;;  %v13088_v25 = vld [vmem:[%s19342_s4 + $0x41] ss:$8 sm:$0x10] }
0x135f   :  { %v8440_v50 = vsel %vm2472_vm13, %v8425_v54, %v8427_v8  ;;  %13287 = vmatprep.subr.mxu0 %v17881_v27 }
0x1360   :  { %13288 = vmatpush3.msra.mxu0 %v8440_v50 }
0x1361   :  { %13290 = vmatmul.mubr.msk.f32.vlgmr.msra.gmra.mxu0 %vm1114_vm11, %v17869_v46  ;;  %v13086_v46 = vld [vmem:[%s19342_s4 + $0x1] ss:$8 sm:$0xf0] }
0x1362   :  { %11301 = vmatprep.mubr.f32.mxu0 %v17881_v27  ;;  %v9348_v2 = vor.u32 %v13086_v46, %v13085_v11  ;;  %v9351_v11 = vor.u32 %v13088_v25, %v13087_v4 }
0x1364   :  { %v18182_v51 = vpop.permute.xlu0 %9355  ;;  %v18199_v43 = vrot.slane %v9348_v2, %v14090_v59  ;;  %v18202_v52 = vrot.slane %v9348_v2, %v14092_v23  ;;  %v18215_v33 = vrot.slane %v9348_v2, %v14107_v62  ;;  %v18225_v7 = vrot.slane %v9348_v2, %v14123_v40 }
0x1365   :  { %v18231_v20 = vrot.slane %v9348_v2, %v14125_v10  ;;  %v18241_v9 = vrot.slane %v9348_v2, %v14142_v12  ;;  %v18258_v30 = vrot.slane %v9348_v2, %v14162_v36 }
0x136a   :  { %v9427_v29 = vpop.f32.mrf.mxu0 }
0x136b   :  { %v18191_v63 = vadd.f32 %v9427_v29, %v18182_v51 }
0x136c   :  { %v9429_v45 = vpop.f32.mrf.mxu0 }
0x136d   :  { %v18194_v58 = vadd.f32 %v9429_v45, %v18182_v51  ;;  %v9857_v44 = vmax.f32 %v18191_v63, 0.0 }
0x136f   :  { %v9858_v49 = vmax.f32 %v18194_v58, 0.0  ;;  %v9937_v37 = vmul.f32 %v18199_v43, %v9857_v44 }
0x1371   :  { %v9938_v21 = vmul.f32 %v18202_v52, %v9858_v49  ;;  %v9964_v53 = vmul.f32 %v9937_v37, %v9937_v37 }
0x1373   :  { %v9965_v17 = vmul.f32 %v9938_v21, %v9938_v21  ;;  %v9950_v19 = vadd.f32 %v9938_v21, %v9937_v37 }
0x1375   :  { %v9977_v39 = vadd.f32 %v9965_v17, %v9964_v53  ;;  %v18277_v53 = vrot.slane %v9351_v11, %v14090_v59 }
0x13a2   :  { %v9498_v27 = vpop.f32.mrf.mxu1 }
0x13a3   :  { %v18205_v41 = vadd.f32 %v9498_v27, %v18182_v51  ;;  %v18271_v27 = vrot.slane %v9348_v2, %v14178_v47 }
0x13a4   :  { %v9500_v38 = vpop.f32.mrf.mxu1 }
0x13a5   :  { %v9859_v22 = vmax.f32 %v18205_v41, 0.0  ;;  %v18218_v1 = vadd.f32 %v9500_v38, %v18182_v51 }
0x13a7   :  { %v9939_v57 = vmul.f32 %v18215_v33, %v9859_v22  ;;  %v9860_v48 = vmax.f32 %v18218_v1, 0.0 }
0x13a9   :  { %v9966_v34 = vmul.f32 %v9939_v57, %v9939_v57  ;;  %v9940_v16 = vmul.f32 %v18225_v7, %v9860_v48  ;;  %v9951_v55 = vadd.f32 %v9950_v19, %v9939_v57 }
0x13ab   :  { %v9978_v18 = vadd.f32 %v9977_v39, %v9966_v34  ;;  %v9967_v13 = vmul.f32 %v9940_v16, %v9940_v16  ;;  %v9952_v54 = vadd.f32 %v9951_v55, %v9940_v16  ;;  %v18287_v39 = vrot.slane %v9351_v11, %v14092_v23 }
0x13ad   :  { %v9979_v3 = vadd.f32 %v9978_v18, %v9967_v13 }
0x13b2   :  { %v9569_v0 = vpop.f32.mrf.mxu0 }
0x13b3   :  { %v18228_v26 = vadd.f32 %v9569_v0, %v18182_v51 }
0x13b4   :  { %v9571_v28 = vpop.f32.mrf.mxu0 }
0x13b5   :  { %v9861_v15 = vmax.f32 %v18228_v26, 0.0  ;;  %v18238_v56 = vadd.f32 %v9571_v28, %v18182_v51  ;;  %v19453_v26 = vld [vmem:[#allocation7_spill] sm:$0xff] }
0x13b7   :  { %v9941_v6 = vmul.f32 %v18231_v20, %v9861_v15  ;;  %v9862_v31 = vmax.f32 %v18238_v56, 0.0 }
0x13b9   :  { %v9968_v42 = vmul.f32 %v9941_v6, %v9941_v6  ;;  %v9942_v14 = vmul.f32 %v18241_v9, %v9862_v31  ;;  %v9953_v50 = vadd.f32 %v9952_v54, %v9941_v6 }
0x13bb   :  { %v9980_v61 = vadd.f32 %v9979_v3, %v9968_v42  ;;  %v9969_v29 = vmul.f32 %v9942_v14, %v9942_v14  ;;  %v9954_v21 = vadd.f32 %v9953_v50, %v9942_v14  ;;  %v18296_v42 = vrot.slane %v9351_v11, %v14107_v62 }
0x13bc   :  { %v18302_v50 = vrot.slane %v9351_v11, %v14123_v40 }
0x13bd   :  { %v9981_v0 = vadd.f32 %v9980_v61, %v9969_v29 }
0x13ea   :  { %v9640_v5 = vpop.f32.mrf.mxu1 }
0x13eb   :  { %v18248_v35 = vadd.f32 %v9640_v5, %v18182_v51 }
0x13ec   :  { %v9642_v24 = vpop.f32.mrf.mxu1 }
0x13ed   :  { %v9863_v32 = vmax.f32 %v18248_v35, 0.0  ;;  %v18261_v60 = vadd.f32 %v9642_v24, %v18182_v51 }
0x13ef   :  { %v9943_v46 = vmul.f32 %v18258_v30, %v9863_v32  ;;  %v9864_v45 = vmax.f32 %v18261_v60, 0.0  ;;  %v19458_v60 = vld [vmem:[#allocation11_spill] sm:$0xff] }
0x13f1   :  { %v9970_v17 = vmul.f32 %v9943_v46, %v9943_v46  ;;  %v9944_v57 = vmul.f32 %v18271_v27, %v9864_v45  ;;  %v9955_v2 = vadd.f32 %v9954_v21, %v9943_v46 }
0x13f3   :  { %v9982_v34 = vadd.f32 %v9981_v0, %v9970_v17  ;;  %v9971_v16 = vmul.f32 %v9944_v57, %v9944_v57  ;;  %v9956_v18 = vadd.f32 %v9955_v2, %v9944_v57 }
0x13f5   :  { %v9983_v13 = vadd.f32 %v9982_v34, %v9971_v16  ;;  %v18311_v16 = vrot.slane %v9351_v11, %v14125_v10 }
0x13fa   :  { %v9711_v8 = vpop.f32.mrf.mxu0 }
0x13fb   :  { %v18274_v38 = vadd.f32 %v9711_v8, %v18182_v51 }
0x13fc   :  { %v9713_v37 = vpop.f32.mrf.mxu0 }
0x13fd   :  { %v9865_v28 = vmax.f32 %v18274_v38, 0.0  ;;  %v18284_v19 = vadd.f32 %v9713_v37, %v18182_v51 }
0x13ff   :  { %v9945_v5 = vmul.f32 %v18277_v53, %v9865_v28  ;;  %v9866_v55 = vmax.f32 %v18284_v19, 0.0 }
0x1401   :  { %v9972_v6 = vmul.f32 %v9945_v5, %v9945_v5  ;;  %v9946_v24 = vmul.f32 %v18287_v39, %v9866_v55  ;;  %v9957_v14 = vadd.f32 %v9956_v18, %v9945_v5 }
0x1403   :  { %v9984_v61 = vadd.f32 %v9983_v13, %v9972_v6  ;;  %v9973_v29 = vmul.f32 %v9946_v24, %v9946_v24  ;;  %v9958_v37 = vadd.f32 %v9957_v14, %v9946_v24 }
0x1405   :  { %v9985_v57 = vadd.f32 %v9984_v61, %v9973_v29  ;;  %v18314_v61 = vpop.permute.xlu1 %10024 }
0x1409   :  { %v18316_v29 = vpop.permute.xlu1 %10393 }
0x140d   :  { %v18320_v11 = vpop.permute.xlu1 %10203 }
0x141a   :  { %v9782_v54 = vpop.f32.mrf.mxu1 }
0x141b   :  { %v9783_v3 = vadd.f32 %v9782_v54, %v18182_v51 }
0x141c   :  { %v9784_v4 = vpop.f32.mrf.mxu1 }
0x141d   :  { %v9867_v25 = vmax.f32 %v9783_v3, 0.0  ;;  %v18299_v8 = vadd.f32 %v9784_v4, %v18182_v51 }
0x141f   :  { %v9947_v46 = vmul.f32 %v18296_v42, %v9867_v25  ;;  %v19396_v38 = vmax.f32 %v18299_v8, 0.0 }
0x1421   :  { %v9974_v21 = vmul.f32 %v9947_v46, %v9947_v46  ;;  %v9948_v0 = vmul.f32 %v18302_v50, %v19396_v38  ;;  %v9853_v17 = vpop.f32.mrf.mxu0  ;;  %v9959_v2 = vadd.f32 %v9958_v37, %v9947_v46 }
0x1422   :  { %v9854_v34 = vadd.f32 %v9853_v17, %v18182_v51  ;;  %v18318_v51 = vpop.permute.xlu0 %10041 }
0x1423   :  { %v13291_v5 = vpop.f32.mrf.mxu0  ;;  %v9986_v18 = vadd.f32 %v9985_v57, %v9974_v21  ;;  %v9975_v13 = vmul.f32 %v9948_v0, %v9948_v0  ;;  %v9960_v54 = vadd.f32 %v9959_v2, %v9948_v0 }
0x1424   :  { %v9869_v6 = vmax.f32 %v9854_v34, 0.0 }
0x1425   :  { %v9987_v4 = vadd.f32 %v9986_v18, %v9975_v13 }
0x1426   :  { %v9949_v24 = vmul.f32 %v18311_v16, %v9869_v6  ;;  %v18322_v46 = vpop.permute.xlu0 %10298 }
0x1428   :  { %v9976_v3 = vmul.f32 %v9949_v24, %v9949_v24  ;;  %v9961_v14 = vadd.f32 %v9960_v54, %v9949_v24 }
0x142a   :  { %9962 = vadd.xlane.f32.xlu1 %v9961_v14  ;;  %v9988_v38 = vadd.f32 %v9987_v4, %v9976_v3 }
0x142c   :  { %9989 = vadd.xlane.f32.xlu0 %v9988_v38 }
0x14b3   :  { %v9963_v37 = vpop.xlane.xlu1 %9962 }
0x14b4   :  { %v18324_v21 = vmul.f32 0.0061728396, %v9963_v37 }
0x14b5   :  { %v9990_v0 = vpop.xlane.xlu0 %9989 }
0x14b6   :  { %v9992_v17 = vmul.f32 0.0061728396, %v9990_v0  ;;  %v9993_v57 = vmul.f32 %v18324_v21, %v18324_v21  ;;  %v10003_v34 = vsub.f32 %v9865_v28, %v18324_v21  ;;  %v9995_v5 = vsub.f32 %v9857_v44, %v18324_v21 }
0x14b7   :  { %v10005_v18 = vsub.f32 %v9867_v25, %v18324_v21  ;;  %v9996_v13 = vsub.f32 %v9858_v49, %v18324_v21  ;;  %v10007_v24 = vsub.f32 %v9869_v6, %v18324_v21  ;;  %v9997_v3 = vsub.f32 %v9859_v22, %v18324_v21 }
0x14b8   :  { %v9994_v2 = vsub.f32 %v9992_v17, %v9993_v57  ;;  %v9998_v49 = vsub.f32 %v9860_v48, %v18324_v21  ;;  %v10001_v56 = vsub.f32 %v9863_v32, %v18324_v21  ;;  %v10002_v35 = vsub.f32 %v9864_v45, %v18324_v21  ;;  %v19457_v32 = vld [vmem:[#allocation10_spill] sm:$0xff] }
0x14ba   :  { %v10008_v38 = vadd.f32 1e-05, %v9994_v2 }
0x14bc   :  { %13395 = vrsqrt.f32 %v10008_v38  ;;  %v9999_v38 = vsub.f32 %v9861_v15, %v18324_v21 }
0x14c9   :  { %v18336_v54 = vpop.eup %13395 }
0x14ca   :  { %v10018_v28 = vmul.f32 %v18336_v54, %v10003_v34  ;;  %v10010_v14 = vmul.f32 %v18336_v54, %v9995_v5  ;;  %v10020_v63 = vmul.f32 %v18336_v54, %v10005_v18  ;;  %v10011_v44 = vmul.f32 %v18336_v54, %v9996_v13  ;;  %v19450_v34 = vld [vmem:[#allocation14_spill] sm:$0xff] }
0x14cb   :  { %v10022_v25 = vmul.f32 %v18336_v54, %v10007_v24  ;;  %v10012_v58 = vmul.f32 %v18336_v54, %v9997_v3  ;;  %v10013_v17 = vmul.f32 %v18336_v54, %v9998_v49  ;;  %v19451_v18 = vld [vmem:[#allocation6_spill] sm:$0xff]  ;;  %v10000_v49 = vsub.f32 %v9862_v31, %v18324_v21  ;;  %v19456_v31 = vld [vmem:[#allocation9_spill] sm:$0xff] }
0x14cc   :  { %v10035_v6 = vmul.f32 %v18314_v61, %v10018_v28  ;;  %v10027_v41 = vmul.f32 %v18314_v61, %v10010_v14  ;;  %v10037_v22 = vmul.f32 %v18314_v61, %v10020_v63  ;;  %v10028_v4 = vmul.f32 %v18314_v61, %v10011_v44 }
0x14cd   :  { %v10039_v37 = vmul.f32 %v18314_v61, %v10022_v25  ;;  %v10029_v0 = vmul.f32 %v18314_v61, %v10012_v58  ;;  %v10030_v28 = vmul.f32 %v18314_v61, %v10013_v17  ;;  %v10014_v14 = vmul.f32 %v18336_v54, %v9999_v38  ;;  %v19452_v25 = vld [vmem:[#allocation16_spill] sm:$0xff] }
0x14ce   :  { %v10052_v57 = vadd.f32 %v18318_v51, %v10035_v6  ;;  %v10044_v2 = vadd.f32 %v18318_v51, %v10027_v41  ;;  %v10054_v1 = vadd.f32 %v18318_v51, %v10037_v22  ;;  %v10045_v48 = vadd.f32 %v18318_v51, %v10028_v4  ;;  %v19454_v6 = vld [vmem:[#allocation18_spill] sm:$0xff] }
0x14cf   :  { %v10056_v24 = vadd.f32 %v18318_v51, %v10039_v37  ;;  %v10046_v3 = vadd.f32 %v18318_v51, %v10029_v0  ;;  %v10047_v22 = vadd.f32 %v18318_v51, %v10030_v28  ;;  %v19455_v37 = vld [vmem:[#allocation8_spill] sm:$0xff]  ;;  %v10015_v17 = vmul.f32 %v18336_v54, %v10000_v49 }
0x14d0   :  { %v10078_v5 = vadd.f32 %v10052_v57, %v19450_v34  ;;  %v10070_v13 = vadd.f32 %v10044_v2, %v19451_v18  ;;  %v10080_v58 = vadd.f32 %v10054_v1, %v19452_v25  ;;  %v10071_v15 = vadd.f32 %v10045_v48, %v19453_v26  ;;  %v19461_v26 = vld [vmem:[#allocation13_spill] sm:$0xff] }
0x14d1   :  { %v10082_v41 = vadd.f32 %v10056_v24, %v19454_v6  ;;  %v10072_v0 = vadd.f32 %v10046_v3, %v19455_v37  ;;  %v10073_v57 = vadd.f32 %v10047_v22, %v19456_v31  ;;  %v10032_v1 = vmul.f32 %v18314_v61, %v10015_v17  ;;  %v19463_v22 = vld [vmem:[#allocation17_spill] sm:$0xff] }
0x14d2   :  { %v10091_v63 = vmul.f32 %v10078_v5, %v18277_v53  ;;  %v10083_v44 = vmul.f32 %v10070_v13, %v18199_v43  ;;  %v10031_v53 = vmul.f32 %v18314_v61, %v10014_v14  ;;  %v10093_v43 = vmul.f32 %v10080_v58, %v18296_v42 }
0x14d3   :  { %v10084_v4 = vmul.f32 %v10071_v15, %v18202_v52  ;;  %v10095_v42 = vmul.f32 %v10082_v41, %v18311_v16  ;;  %v10085_v52 = vmul.f32 %v10072_v0, %v18215_v33  ;;  %v10016_v48 = vmul.f32 %v18336_v54, %v10001_v56 }
0x14d4   :  { %10125 = vrot.lane.b32.xlu0 %v10091_v63, %s13411_s22  ;;  %10109 = vrot.lane.b32.xlu1 %v10083_v44, %s13411_s22  ;;  %v10048_v2 = vadd.f32 %v18318_v51, %v10031_v53  ;;  %v10086_v34 = vmul.f32 %v10073_v57, %v18225_v7  ;;  %v10049_v16 = vadd.f32 %v18318_v51, %v10032_v1  ;;  %v19459_v28 = vmax.f32 %v18299_v8, 0.0 }
0x14d5   :  { %v10033_v33 = vmul.f32 %v18314_v61, %v10016_v48  ;;  %v10017_v5 = vmul.f32 %v18336_v54, %v10002_v35  ;;  %v10004_v18 = vsub.f32 %v9866_v55, %v18324_v21  ;;  %v19460_v55 = vld [vmem:[#allocation12_spill] sm:$0xff] }
0x14d6   :  { %v10074_v38 = vadd.f32 %v10048_v2, %v19457_v32  ;;  %v10075_v45 = vadd.f32 %v10049_v16, %v19458_v60  ;;  %v10006_v14 = vsub.f32 %v19459_v28, %v18324_v21 }
0x14d7   :  { %v10050_v24 = vadd.f32 %v18318_v51, %v10033_v33  ;;  %v10034_v7 = vmul.f32 %v18314_v61, %v10017_v5  ;;  %v10019_v3 = vmul.f32 %v18336_v54, %v10004_v18 }
0x14d8   :  { %10129 = vrot.lane.b32.xlu0 %v10093_v43, %s13411_s22  ;;  %10111 = vrot.lane.b32.xlu1 %v10084_v4, %s13411_s22  ;;  %v10087_v13 = vmul.f32 %v10074_v38, %v18231_v20  ;;  %v10021_v63 = vmul.f32 %v18336_v54, %v10006_v14  ;;  %v10088_v19 = vmul.f32 %v10075_v45, %v18241_v9  ;;  %v19462_v54 = vld [vmem:[#allocation15_spill] sm:$0xff] }
0x14d9   :  { %v10076_v20 = vadd.f32 %v10050_v24, %v19460_v55  ;;  %v10051_v44 = vadd.f32 %v18318_v51, %v10034_v7  ;;  %v10036_v25 = vmul.f32 %v18314_v61, %v10019_v3 }
0x14da   :  { %v10038_v21 = vmul.f32 %v18314_v61, %v10021_v63 }
0x14db   :  { %v10089_v58 = vmul.f32 %v10076_v20, %v18258_v30  ;;  %v10077_v15 = vadd.f32 %v10051_v44, %v19461_v26  ;;  %v10053_v8 = vadd.f32 %v18318_v51, %v10036_v25 }
0x14dc   :  { %10133 = vrot.lane.b32.xlu0 %v10095_v42, %s13411_s22  ;;  %10113 = vrot.lane.b32.xlu1 %v10085_v52, %s13411_s22  ;;  %v10055_v6 = vadd.f32 %v18318_v51, %v10038_v21 }
0x14dd   :  { %v10090_v9 = vmul.f32 %v10077_v15, %v18271_v27  ;;  %v10079_v49 = vadd.f32 %v10053_v8, %v19462_v54 }
0x14de   :  { %v10081_v30 = vadd.f32 %v10055_v6, %v19463_v22 }
0x14df   :  { %v10092_v41 = vmul.f32 %v10079_v49, %v18287_v39 }
0x14e0   :  { %10115 = vrot.lane.b32.xlu1 %v10086_v34, %s13411_s22  ;;  %v10094_v53 = vmul.f32 %v10081_v30, %v18302_v50 }
0x14e4   :  { %10117 = vrot.lane.b32.xlu1 %v10087_v13, %s13411_s22 }
0x14e8   :  { %10119 = vrot.lane.b32.xlu1 %v10088_v19, %s13411_s22 }
0x14ec   :  { %10121 = vrot.lane.b32.xlu1 %v10089_v58, %s13411_s22 }
0x14f0   :  { %10123 = vrot.lane.b32.xlu1 %v10090_v9, %s13411_s22 }
0x14f4   :  { %10127 = vrot.lane.b32.xlu1 %v10092_v41, %s13411_s22 }
0x14f8   :  { %10131 = vrot.lane.b32.xlu1 %v10094_v53, %s13411_s22 }
0x1546   :  { %v10126_v61 = vpop.permute.xlu0 %10125  ;;  %v10110_v43 = vpop.permute.xlu1 %10109 }
0x1547   :  { %10161 = vst.msk [vmem:[#allocation2 + $0x8] sm:$0xff] %vm23_vm1, %v10110_v43 }
0x154a   :  { %v10130_v27 = vpop.permute.xlu0 %10129  ;;  %v10112_v4 = vpop.permute.xlu1 %10111 }
0x154b   :  { %v10135_v51 = vsel %vm21_vm0, %v10110_v43, %v10112_v4 }
0x154e   :  { %v10134_v37 = vpop.permute.xlu0 %10133  ;;  %v10114_v0 = vpop.permute.xlu1 %10113  ;;  %v10935_v17 = vld [vmem:[#allocation2 + $0x8] sm:$0xff] }
0x154f   :  { %10174 = vst.msk [vmem:[#allocation2 + $0x70] sm:$0xff] %vm21_vm0, %v10134_v37  ;;  %v18445_v39 = vsel %vm21_vm0, %v10112_v4, %v10114_v0  ;;  %10963 = vrot.lane.b32.xlu1 %v10935_v17, %s13415_s0  ;;  %10868 = vrot.lane.b32.xlu0 %v10935_v17, %s13416_s24 }
0x1552   :  { %v10116_v50 = vpop.permute.xlu1 %10115 }
0x1553   :  { %v18450_v56 = vsel %vm21_vm0, %v10114_v0, %v10116_v50  ;;  %10773 = vrot.lane.b32.xlu1 %v10935_v17, %s13417_s25  ;;  %10678 = vrot.lane.b32.xlu0 %v10935_v17, %s13418_s26 }
0x1556   :  { %v10118_v31 = vpop.permute.xlu1 %10117  ;;  %v10948_v1 = vld [vmem:[#allocation2 + $0x70] sm:$0xff] }
0x1557   :  { %v18455_v57 = vsel %vm21_vm0, %v10116_v50, %v10118_v31  ;;  %10583 = vrot.lane.b32.xlu1 %v10935_v17, %s13419_s27  ;;  %10488 = vrot.lane.b32.xlu0 %v10935_v17, %s13420_s28 }
0x155a   :  { %v10120_v2 = vpop.permute.xlu1 %10119 }
0x155b   :  { %v18460_v42 = vsel %vm21_vm0, %v10118_v31, %v10120_v2  ;;  %10395 = vrot.lane.b32.xlu1 %v10935_v17, %s13412_s20  ;;  %10300 = vrot.lane.b32.xlu0 %v10935_v17, %s13414_s23 }
0x155e   :  { %v10122_v52 = vpop.permute.xlu1 %10121 }
0x155f   :  { %v18465_v48 = vsel %vm21_vm0, %v10120_v2, %v10122_v52  ;;  %10989 = vrot.lane.b32.xlu0 %v10948_v1, %s13415_s0  ;;  %10205 = vrot.lane.b32.xlu1 %v10935_v17, %s13413_s21 }
0x1562   :  { %v10124_v35 = vpop.permute.xlu1 %10123 }
0x1563   :  { %v18470_v32 = vsel %vm21_vm0, %v10122_v52, %v10124_v35  ;;  %v18473_v38 = vsel %vm21_vm0, %v10124_v35, %v10126_v61  ;;  %10799 = vrot.lane.b32.xlu0 %v10948_v1, %s13417_s25  ;;  %10894 = vrot.lane.b32.xlu1 %v10948_v1, %s13416_s24 }
0x1566   :  { %v10128_v34 = vpop.permute.xlu1 %10127 }
0x1567   :  { %v18478_v16 = vsel %vm21_vm0, %v10126_v61, %v10128_v34  ;;  %v18481_v33 = vsel %vm21_vm0, %v10128_v34, %v10130_v27  ;;  %10609 = vrot.lane.b32.xlu0 %v10948_v1, %s13419_s27  ;;  %10704 = vrot.lane.b32.xlu1 %v10948_v1, %s13418_s26 }
0x156a   :  { %v10132_v5 = vpop.permute.xlu1 %10131 }
0x156b   :  { %v18486_v18 = vsel %vm21_vm0, %v10130_v27, %v10132_v5  ;;  %v18489_v13 = vsel %vm21_vm0, %v10132_v5, %v10134_v37  ;;  %10514 = vrot.lane.b32.xlu1 %v10948_v1, %s13420_s28  ;;  %10967 = vrot.lane.b32.xlu0 %v18445_v39, %s13415_s0  ;;  %vm19464_vm0 = vcmask 220160  }
0x156c   :  { %vm19465_vm1 = vmmov %vm19464_vm0 }
0x156d   :  { %vm19470_vm15 = vmmov %vm19464_vm0 }
0x156e   :  { %vm19471_vm13 = vmmov %vm19464_vm0 }
0x156f   :  { %10965 = vrot.lane.b32.xlu1 %v10135_v51, %s13415_s0  ;;  %10870 = vrot.lane.b32.xlu0 %v10135_v51, %s13416_s24 }
0x1573   :  { %10872 = vrot.lane.b32.xlu1 %v18445_v39, %s13416_s24  ;;  %10777 = vrot.lane.b32.xlu0 %v18445_v39, %s13417_s25 }
0x1577   :  { %10775 = vrot.lane.b32.xlu1 %v10135_v51, %s13417_s25  ;;  %10680 = vrot.lane.b32.xlu0 %v10135_v51, %s13418_s26 }
0x157b   :  { %10682 = vrot.lane.b32.xlu1 %v18445_v39, %s13418_s26  ;;  %10587 = vrot.lane.b32.xlu0 %v18445_v39, %s13419_s27 }
0x157f   :  { %10585 = vrot.lane.b32.xlu1 %v10135_v51, %s13419_s27  ;;  %10490 = vrot.lane.b32.xlu0 %v10135_v51, %s13420_s28 }
0x1583   :  { %10397 = vrot.lane.b32.xlu0 %v10135_v51, %s13412_s20  ;;  %10492 = vrot.lane.b32.xlu1 %v18445_v39, %s13420_s28 }
0x1587   :  { %10302 = vrot.lane.b32.xlu1 %v10135_v51, %s13414_s23  ;;  %10969 = vrot.lane.b32.xlu0 %v18450_v56, %s13415_s0 }
0x158b   :  { %10207 = vrot.lane.b32.xlu0 %v10135_v51, %s13413_s21  ;;  %10971 = vrot.lane.b32.xlu1 %v18455_v57, %s13415_s0 }
0x158f   :  { %10874 = vrot.lane.b32.xlu1 %v18450_v56, %s13416_s24  ;;  %10876 = vrot.lane.b32.xlu0 %v18455_v57, %s13416_s24 }
0x1593   :  { %10779 = vrot.lane.b32.xlu0 %v18450_v56, %s13417_s25  ;;  %10781 = vrot.lane.b32.xlu1 %v18455_v57, %s13417_s25 }
0x1597   :  { %10973 = vrot.lane.b32.xlu0 %v18460_v42, %s13415_s0  ;;  %10975 = vrot.lane.b32.xlu1 %v18465_v48, %s13415_s0 }
0x159b   :  { %10684 = vrot.lane.b32.xlu0 %v18450_v56, %s13418_s26  ;;  %10686 = vrot.lane.b32.xlu1 %v18455_v57, %s13418_s26 }
0x159f   :  { %10878 = vrot.lane.b32.xlu0 %v18460_v42, %s13416_s24  ;;  %10880 = vrot.lane.b32.xlu1 %v18465_v48, %s13416_s24 }
0x15a3   :  { %10589 = vrot.lane.b32.xlu0 %v18450_v56, %s13419_s27  ;;  %10591 = vrot.lane.b32.xlu1 %v18455_v57, %s13419_s27 }
0x15a7   :  { %10783 = vrot.lane.b32.xlu0 %v18460_v42, %s13417_s25  ;;  %10785 = vrot.lane.b32.xlu1 %v18465_v48, %s13417_s25 }
0x15ab   :  { %10494 = vrot.lane.b32.xlu0 %v18450_v56, %s13420_s28  ;;  %10496 = vrot.lane.b32.xlu1 %v18455_v57, %s13420_s28 }
0x15af   :  { %10688 = vrot.lane.b32.xlu0 %v18460_v42, %s13418_s26  ;;  %10690 = vrot.lane.b32.xlu1 %v18465_v48, %s13418_s26 }
0x15b3   :  { %10399 = vrot.lane.b32.xlu0 %v18445_v39, %s13412_s20  ;;  %10401 = vrot.lane.b32.xlu1 %v18450_v56, %s13412_s20 }
0x15b7   :  { %10593 = vrot.lane.b32.xlu0 %v18460_v42, %s13419_s27  ;;  %10595 = vrot.lane.b32.xlu1 %v18465_v48, %s13419_s27 }
0x15bb   :  { %10304 = vrot.lane.b32.xlu0 %v18445_v39, %s13414_s23  ;;  %10306 = vrot.lane.b32.xlu1 %v18450_v56, %s13414_s23 }
0x15bf   :  { %10498 = vrot.lane.b32.xlu0 %v18460_v42, %s13420_s28  ;;  %10500 = vrot.lane.b32.xlu1 %v18465_v48, %s13420_s28 }
0x15c1   :  { %v10869_v60 = vpop.permute.xlu0 %10868  ;;  %v10964_v45 = vpop.permute.xlu1 %10963 }
0x15c3   :  { %10209 = vrot.lane.b32.xlu0 %v18445_v39, %s13413_s21  ;;  %10211 = vrot.lane.b32.xlu1 %v18450_v56, %s13413_s21 }
0x15c5   :  { %v10679_v24 = vpop.permute.xlu0 %10678  ;;  %v10774_v7 = vpop.permute.xlu1 %10773 }
0x15c7   :  { %10403 = vrot.lane.b32.xlu0 %v18455_v57, %s13412_s20  ;;  %10405 = vrot.lane.b32.xlu1 %v18460_v42, %s13412_s20 }
0x15c9   :  { %v18577_v3 = vpop.permute.xlu0 %10488  ;;  %v10584_v28 = vpop.permute.xlu1 %10583 }
0x15cb   :  { %10308 = vrot.lane.b32.xlu0 %v18455_v57, %s13414_s23  ;;  %10310 = vrot.lane.b32.xlu1 %v18460_v42, %s13414_s23 }
0x15cd   :  { %v18583_v14 = vpop.permute.xlu0 %10300  ;;  %v18585_v63 = vpop.permute.xlu1 %10395 }
0x15ce   :  { %v10421_v35 = vsel %vm19465_vm1, %v18316_v29, %v18585_v63  ;;  %v10326_v5 = vsel %vm19467_vm9, %v18322_v46, %v18583_v14 }
0x15cf   :  { %10979 = vrot.lane.b32.xlu1 %v18473_v38, %s13415_s0  ;;  %10977 = vrot.lane.b32.xlu0 %v18470_v32, %s13415_s0 }
0x15d1   :  { %v18591_v19 = vpop.permute.xlu0 %10989  ;;  %v18593_v55 = vpop.permute.xlu1 %10205 }
0x15d2   :  { %v10231_v46 = vsel %vm19469_vm14, %v18320_v11, %v18593_v55 }
0x15d3   :  { %10215 = vrot.lane.b32.xlu1 %v18460_v42, %s13413_s21  ;;  %10213 = vrot.lane.b32.xlu0 %v18455_v57, %s13413_s21 }
0x15d5   :  { %v18599_v20 = vpop.permute.xlu0 %10799  ;;  %v18601_v44 = vpop.permute.xlu1 %10894 }
0x15d7   :  { %10884 = vrot.lane.b32.xlu1 %v18473_v38, %s13416_s24  ;;  %10882 = vrot.lane.b32.xlu0 %v18470_v32, %s13416_s24 }
0x15d9   :  { %v18607_v25 = vpop.permute.xlu0 %10609  ;;  %v18609_v58 = vpop.permute.xlu1 %10704 }
0x15db   :  { %10789 = vrot.lane.b32.xlu1 %v18473_v38, %s13417_s25  ;;  %10787 = vrot.lane.b32.xlu0 %v18470_v32, %s13417_s25 }
0x15dd   :  { %v18615_v26 = vpop.permute.xlu0 %10967  ;;  %v18617_v15 = vpop.permute.xlu1 %10514 }
0x15df   :  { %10983 = vrot.lane.b32.xlu1 %v18481_v33, %s13415_s0  ;;  %10981 = vrot.lane.b32.xlu0 %v18478_v16, %s13415_s0 }
0x15e1   :  { %v10871_v8 = vpop.permute.xlu0 %10870  ;;  %v10966_v21 = vpop.permute.xlu1 %10965 }
0x15e2   :  { %v10992_v9 = vsel %vm943_vm2, %v10966_v21, %v18615_v26  ;;  %v10991_v54 = vsel %vm943_vm2, %v10964_v45, %v10966_v21  ;;  %v10896_v22 = vsel %vm847_vm3, %v10869_v60, %v10871_v8 }
0x15e3   :  { %10694 = vrot.lane.b32.xlu1 %v18473_v38, %s13418_s26  ;;  %10692 = vrot.lane.b32.xlu0 %v18470_v32, %s13418_s26 }
0x15e4   :  { %11180 = vmatprep.subr.mxu1 %v10992_v9 }
0x15e5   :  { %11181 = vmatpush1.msra.mxu1 %v10991_v54  ;;  %v18630_v49 = vpop.permute.xlu0 %10777  ;;  %v18632_v6 = vpop.permute.xlu1 %10872 }
0x15e6   :  { %v10897_v41 = vsel %vm847_vm3, %v10871_v8, %v18632_v6 }
0x15e7   :  { %10888 = vrot.lane.b32.xlu1 %v18481_v33, %s13416_s24  ;;  %10886 = vrot.lane.b32.xlu0 %v18478_v16, %s13416_s24 }
0x15e8   :  { %11182 = vmatprep.subr.mxu1 %v10897_v41 }
0x15e9   :  { %11183 = vmatpush1.msra.mxu1 %v10896_v22  ;;  %v10681_v30 = vpop.permute.xlu0 %10680  ;;  %v10776_v53 = vpop.permute.xlu1 %10775 }
0x15ea   :  { %v10802_v61 = vsel %vm751_vm4, %v10776_v53, %v18630_v49  ;;  %v10801_v43 = vsel %vm751_vm4, %v10774_v7, %v10776_v53  ;;  %v10706_v37 = vsel %vm655_vm5, %v10679_v24, %v10681_v30  ;;  %v18707_v7 = vld [vmem:[%s19340_s1 + $0x28] sm:$0xff] }
0x15eb   :  { %10599 = vrot.lane.b32.xlu1 %v18473_v38, %s13419_s27  ;;  %10597 = vrot.lane.b32.xlu0 %v18470_v32, %s13419_s27 }
0x15ec   :  { %11184 = vmatprep.subr.mxu1 %v10802_v61 }
0x15ed   :  { %11185 = vmatpush1.msra.mxu1 %v10801_v43  ;;  %v18648_v27 = vpop.permute.xlu0 %10587  ;;  %v18650_v4 = vpop.permute.xlu1 %10682 }
0x15ee   :  { %v10707_v51 = vsel %vm655_vm5, %v10681_v30, %v18650_v4 }
0x15ef   :  { %10793 = vrot.lane.b32.xlu1 %v18481_v33, %s13417_s25  ;;  %10791 = vrot.lane.b32.xlu0 %v18478_v16, %s13417_s25 }
0x15f0   :  { %11186 = vmatprep.subr.mxu1 %v10707_v51 }
0x15f1   :  { %11187 = vmatpush1.msra.mxu1 %v10706_v37  ;;  %v10491_v0 = vpop.permute.xlu0 %10490  ;;  %v10586_v17 = vpop.permute.xlu1 %10585 }
0x15f2   :  { %v10612_v39 = vsel %vm559_vm6, %v10586_v17, %v18648_v27  ;;  %v10611_v50 = vsel %vm559_vm6, %v10584_v28, %v10586_v17  ;;  %v10516_v2 = vsel %vm463_vm7, %v18577_v3, %v10491_v0 }
0x15f3   :  { %10504 = vrot.lane.b32.xlu1 %v18473_v38, %s13420_s28  ;;  %10502 = vrot.lane.b32.xlu0 %v18470_v32, %s13420_s28 }
0x15f4   :  { %11188 = vmatprep.subr.mxu1 %v10612_v39 }
0x15f5   :  { %11189 = vmatpush1.msra.mxu1 %v10611_v50  ;;  %v18666_v56 = vpop.permute.xlu0 %10397  ;;  %v18668_v31 = vpop.permute.xlu1 %10492 }
0x15f6   :  { %v10517_v57 = vsel %vm463_vm7, %v10491_v0, %v18668_v31  ;;  %v10422_v52 = vsel %vm19464_vm0, %v18585_v63, %v18666_v56  ;;  %vm19472_vm0 = vmmov %vm19466_vm8 }
0x15f7   :  { %10698 = vrot.lane.b32.xlu1 %v18481_v33, %s13418_s26  ;;  %10696 = vrot.lane.b32.xlu0 %v18478_v16, %s13418_s26  ;;  %vm19473_vm1 = vmmov %vm19472_vm0 }
0x15f8   :  { %11190 = vmatprep.subr.mxu1 %v10517_v57 }
0x15f9   :  { %11191 = vmatpush1.msra.mxu1 %v10516_v2  ;;  %v10970_v42 = vpop.permute.xlu0 %10969  ;;  %v18681_v1 = vpop.permute.xlu1 %10302 }
0x15fa   :  { %11192 = vmatprep.subr.mxu1 %v10422_v52  ;;  %v10327_v34 = vsel %vm19466_vm8, %v18583_v14, %v18681_v1  ;;  %v10993_v3 = vsel %vm943_vm2, %v18615_v26, %v10970_v42  ;;  %v18725_v26 = vld [vmem:[#allocation2] sm:$0xff]  ;;  %vm19474_vm8 = vmmov %vm19468_vm10 }
0x15fb   :  { %11193 = vmatpush1.msra.mxu1 %v10421_v35  ;;  %10409 = vrot.lane.b32.xlu1 %v18470_v32, %s13412_s20  ;;  %vm19475_vm9 = vmmov %vm19474_vm8 }
0x15fc   :  { %10407 = vrot.lane.b32.xlu0 %v18465_v48, %s13412_s20  ;;  %11194 = vmatprep.subr.mxu1 %v10327_v34 }
0x15fd   :  { %11195 = vmatpush1.msra.mxu1 %v10326_v5  ;;  %v18696_v60 = vpop.permute.xlu0 %10207  ;;  %v10972_v29 = vpop.permute.xlu1 %10971 }
0x15fe   :  { %v10232_v45 = vsel %vm19468_vm10, %v18593_v55, %v18696_v60  ;;  %v10994_v24 = vsel %vm943_vm2, %v10970_v42, %v10972_v29  ;;  %vm19476_vm10 = vmmov %vm19471_vm13 }
0x15ff   :  { %10603 = vrot.lane.b32.xlu1 %v18481_v33, %s13419_s27  ;;  %11196 = vmatprep.subr.mxu1 %v10232_v45  ;;  %vm19477_vm14 = vmmov %vm19476_vm10 }
0x1600   :  { %10601 = vrot.lane.b32.xlu0 %v18478_v16, %s13419_s27  ;;  %11251 = vmatprep.subr.mxu0 %v10994_v24 }
0x1601   :  { %11197 = vmatpush1.msra.mxu1 %v10231_v46  ;;  %11252 = vmatpush1.msra.mxu0 %v10993_v3  ;;  %v10877_v28 = vpop.permute.xlu0 %10876  ;;  %v10875_v14 = vpop.permute.xlu1 %10874 }
0x1602   :  { %v10899_v63 = vsel %vm847_vm3, %v10875_v14, %v10877_v28  ;;  %v10898_v8 = vsel %vm847_vm3, %v18632_v6, %v10875_v14  ;;  %13101 = vmatmul.mubr.msk.f32.vlgmr.msra.gmra.mxu1 %vm1114_vm11, %v18707_v7 }
0x1603   :  { %10314 = vrot.lane.b32.xlu1 %v18470_v32, %s13414_s23  ;;  %11253 = vmatprep.subr.mxu0 %v10899_v63 }
0x1604   :  { %10312 = vrot.lane.b32.xlu0 %v18465_v48, %s13414_s23  ;;  %11254 = vmatpush1.msra.mxu0 %v10898_v8 }
0x1605   :  { %v10780_v11 = vpop.permute.xlu0 %10779  ;;  %v10782_v55 = vpop.permute.xlu1 %10781  ;;  %11372 = vmatprep.mubr.f32.mxu1 %v18725_v26 }
0x1606   :  { %v10803_v21 = vsel %vm751_vm4, %v18630_v49, %v10780_v11  ;;  %v10804_v9 = vsel %vm751_vm4, %v10780_v11, %v10782_v55 }
0x1607   :  { %10508 = vrot.lane.b32.xlu1 %v18481_v33, %s13420_s28  ;;  %11255 = vmatprep.subr.mxu0 %v10804_v9 }
0x1608   :  { %10506 = vrot.lane.b32.xlu0 %v18478_v16, %s13420_s28  ;;  %11256 = vmatpush1.msra.mxu0 %v10803_v21 }
0x1609   :  { %v10974_v54 = vpop.permute.xlu0 %10973  ;;  %v18735_v6 = vpop.permute.xlu1 %10975 }
0x160a   :  { %v10995_v41 = vsel %vm943_vm2, %v10972_v29, %v10974_v54  ;;  %v10996_v22 = vsel %vm943_vm2, %v10974_v54, %v18735_v6 }
0x160b   :  { %10219 = vrot.lane.b32.xlu1 %v18470_v32, %s13413_s21  ;;  %11322 = vmatprep.subr.mxu1 %v10996_v22 }
0x160c   :  { %10217 = vrot.lane.b32.xlu0 %v18465_v48, %s13413_s21  ;;  %11323 = vmatpush1.msra.mxu1 %v10995_v41 }
0x160d   :  { %v10685_v49 = vpop.permute.xlu0 %10684  ;;  %v10687_v30 = vpop.permute.xlu1 %10686 }
0x160e   :  { %v10708_v53 = vsel %vm655_vm5, %v18650_v4, %v10685_v49  ;;  %v10709_v61 = vsel %vm655_vm5, %v10685_v49, %v10687_v30 }
0x160f   :  { %10413 = vrot.lane.b32.xlu1 %v18478_v16, %s13412_s20  ;;  %11257 = vmatprep.subr.mxu0 %v10709_v61 }
0x1610   :  { %10411 = vrot.lane.b32.xlu0 %v18473_v38, %s13412_s20  ;;  %11258 = vmatpush1.msra.mxu0 %v10708_v53 }
0x1611   :  { %v10879_v32 = vpop.permute.xlu0 %10878  ;;  %v18751_v43 = vpop.permute.xlu1 %10880 }
0x1612   :  { %v10900_v48 = vsel %vm847_vm3, %v10877_v28, %v10879_v32  ;;  %v10901_v51 = vsel %vm847_vm3, %v10879_v32, %v18751_v43  ;;  %v13444_v32 = vmov 15  }
0x1613   :  { %10318 = vrot.lane.b32.xlu1 %v18478_v16, %s13414_s23  ;;  %11324 = vmatprep.subr.mxu1 %v10901_v51 }
0x1614   :  { %10316 = vrot.lane.b32.xlu0 %v18473_v38, %s13414_s23  ;;  %11325 = vmatpush1.msra.mxu1 %v10900_v48 }
0x1615   :  { %v10590_v4 = vpop.permute.xlu0 %10589  ;;  %v10592_v37 = vpop.permute.xlu1 %10591  ;;  %13379 = vset.pattern.permute.xlu1 %v13444_v32 }
0x1616   :  { %v10613_v0 = vsel %vm559_vm6, %v18648_v27, %v10590_v4  ;;  %v10614_v17 = vsel %vm559_vm6, %v10590_v4, %v10592_v37 }
0x1617   :  { %10987 = vrot.lane.b32.xlu1 %v18489_v13, %s13415_s0  ;;  %11259 = vmatprep.subr.mxu0 %v10614_v17 }
0x1618   :  { %10985 = vrot.lane.b32.xlu0 %v18486_v18, %s13415_s0  ;;  %11260 = vmatpush1.msra.mxu0 %v10613_v0 }
0x1619   :  { %v10784_v39 = vpop.permute.xlu0 %10783  ;;  %v18767_v50 = vpop.permute.xlu1 %10785 }
0x161a   :  { %v10805_v57 = vsel %vm751_vm4, %v10782_v55, %v10784_v39  ;;  %v10806_v2 = vsel %vm751_vm4, %v10784_v39, %v18767_v50 }
0x161b   :  { %10223 = vrot.lane.b32.xlu1 %v18478_v16, %s13413_s21  ;;  %11326 = vmatprep.subr.mxu1 %v10806_v2 }
0x161c   :  { %10221 = vrot.lane.b32.xlu0 %v18473_v38, %s13413_s21  ;;  %11327 = vmatpush1.msra.mxu1 %v10805_v57 }
0x161d   :  { %v10495_v27 = vpop.permute.xlu0 %10494  ;;  %v10497_v42 = vpop.permute.xlu1 %10496 }
0x161e   :  { %v10518_v52 = vsel %vm463_vm7, %v18668_v31, %v10495_v27  ;;  %v10519_v35 = vsel %vm463_vm7, %v10495_v27, %v10497_v42 }
0x161f   :  { %10892 = vrot.lane.b32.xlu1 %v18489_v13, %s13416_s24  ;;  %11261 = vmatprep.subr.mxu0 %v10519_v35 }
0x1620   :  { %10890 = vrot.lane.b32.xlu0 %v18486_v18, %s13416_s24  ;;  %11262 = vmatpush1.msra.mxu0 %v10518_v52 }
0x1621   :  { %v10689_v16 = vpop.permute.xlu0 %10688  ;;  %v18783_v34 = vpop.permute.xlu1 %10690 }
0x1622   :  { %v10710_v38 = vsel %vm655_vm5, %v10687_v30, %v10689_v16  ;;  %v10711_v5 = vsel %vm655_vm5, %v10689_v16, %v18783_v34 }
0x1623   :  { %10797 = vrot.lane.b32.xlu1 %v18489_v13, %s13417_s25  ;;  %11328 = vmatprep.subr.mxu1 %v10711_v5 }
0x1624   :  { %10795 = vrot.lane.b32.xlu0 %v18486_v18, %s13417_s25  ;;  %11329 = vmatpush1.msra.mxu1 %v10710_v38 }
0x1625   :  { %v10400_v31 = vpop.permute.xlu0 %10399  ;;  %v10402_v29 = vpop.permute.xlu1 %10401 }
0x1626   :  { %v10423_v45 = vsel %vm19470_vm15, %v18666_v56, %v10400_v31  ;;  %v10424_v24 = vsel %vm19471_vm13, %v10400_v31, %v10402_v29  ;;  %vm19478_vm15 = vmmov %vm19472_vm0 }
0x1627   :  { %10700 = vrot.lane.b32.xlu1 %v18486_v18, %s13418_s26  ;;  %11263 = vmatprep.subr.mxu0 %v10424_v24  ;;  %vm19479_vm13 = vmmov %vm19472_vm0 }
0x1628   :  { %10702 = vrot.lane.b32.xlu0 %v18489_v13, %s13418_s26  ;;  %11264 = vmatpush1.msra.mxu0 %v10423_v45 }
0x1629   :  { %v10594_v46 = vpop.permute.xlu0 %10593  ;;  %v18799_v3 = vpop.permute.xlu1 %10595 }
0x162a   :  { %v10615_v28 = vsel %vm559_vm6, %v10592_v37, %v10594_v46  ;;  %v10616_v14 = vsel %vm559_vm6, %v10594_v46, %v18799_v3 }
0x162b   :  { %10607 = vrot.lane.b32.xlu1 %v18489_v13, %s13419_s27  ;;  %11330 = vmatprep.subr.mxu1 %v10616_v14 }
0x162c   :  { %10605 = vrot.lane.b32.xlu0 %v18486_v18, %s13419_s27  ;;  %11331 = vmatpush1.msra.mxu1 %v10615_v28 }
0x162d   :  { %v10305_v56 = vpop.permute.xlu0 %10304  ;;  %v10307_v63 = vpop.permute.xlu1 %10306 }
0x162e   :  { %v10328_v8 = vsel %vm19472_vm0, %v18681_v1, %v10305_v56  ;;  %v10329_v11 = vsel %vm19473_vm1, %v10305_v56, %v10307_v63  ;;  %vm19480_vm0 = vmmov %vm19474_vm8 }
0x162f   :  { %10510 = vrot.lane.b32.xlu1 %v18486_v18, %s13420_s28  ;;  %11265 = vmatprep.subr.mxu0 %v10329_v11  ;;  %vm19481_vm1 = vmmov %vm19480_vm0 }
0x1630   :  { %10512 = vrot.lane.b32.xlu0 %v18489_v13, %s13420_s28  ;;  %11266 = vmatpush1.msra.mxu0 %v10328_v8 }
0x1631   :  { %v10499_v55 = vpop.permute.xlu0 %10498  ;;  %v18815_v21 = vpop.permute.xlu1 %10500 }
0x1632   :  { %v10520_v9 = vsel %vm463_vm7, %v10497_v42, %v10499_v55  ;;  %v10521_v54 = vsel %vm463_vm7, %v10499_v55, %v18815_v21 }
0x1633   :  { %10417 = vrot.lane.b32.xlu1 %v18486_v18, %s13412_s20  ;;  %11332 = vmatprep.subr.mxu1 %v10521_v54 }
0x1634   :  { %10415 = vrot.lane.b32.xlu0 %v18481_v33, %s13412_s20  ;;  %11333 = vmatpush1.msra.mxu1 %v10520_v9 }
0x1635   :  { %v10210_v1 = vpop.permute.xlu0 %10209  ;;  %v10212_v41 = vpop.permute.xlu1 %10211 }
0x1636   :  { %v10233_v22 = vsel %vm19474_vm8, %v18696_v60, %v10210_v1  ;;  %v10234_v49 = vsel %vm19475_vm9, %v10210_v1, %v10212_v41  ;;  %vm19482_vm8 = vmmov %vm19476_vm10 }
0x1637   :  { %10320 = vrot.lane.b32.xlu1 %v18481_v33, %s13414_s23  ;;  %11267 = vmatprep.subr.mxu0 %v10234_v49  ;;  %vm19483_vm9 = vmmov %vm19482_vm8 }
0x1638   :  { %10322 = vrot.lane.b32.xlu0 %v18486_v18, %s13414_s23  ;;  %11268 = vmatpush1.msra.mxu0 %v10233_v22 }
0x1639   :  { %v10404_v30 = vpop.permute.xlu0 %10403  ;;  %v18831_v53 = vpop.permute.xlu1 %10405  ;;  %13102 = vmatmul.mubr.msk.f32.vlgmr.msra.gmra.mxu0 %vm1114_vm11, %v18707_v7 }
0x163a   :  { %v10425_v61 = vsel %vm19476_vm10, %v10402_v29, %v10404_v30  ;;  %v10426_v60 = vsel %vm19477_vm14, %v10404_v30, %v18831_v53  ;;  %11443 = vmatprep.mubr.f32.mxu0 %v18725_v26  ;;  %vm19484_vm10 = vmmov %vm19479_vm13 }
0x163b   :  { %10227 = vrot.lane.b32.xlu1 %v18486_v18, %s13413_s21  ;;  %11334 = vmatprep.subr.mxu1 %v10426_v60  ;;  %vm19485_vm14 = vmmov %vm19484_vm10 }
0x163c   :  { %10225 = vrot.lane.b32.xlu0 %v18481_v33, %s13413_s21  ;;  %11335 = vmatpush1.msra.mxu1 %v10425_v61  ;;  %v18855_v33 = vld [vmem:[%s19341_s3] sm:$0xff] }
0x163d   :  { %v10309_v48 = vpop.permute.xlu0 %10308  ;;  %v18843_v51 = vpop.permute.xlu1 %10310 }
0x163e   :  { %v10330_v4 = vsel %vm19478_vm15, %v10307_v63, %v10309_v48  ;;  %v10331_v37 = vsel %vm19479_vm13, %v10309_v48, %v18843_v51  ;;  %vm19486_vm15 = vmmov %vm19480_vm0 }
0x163f   :  { %10324 = vrot.lane.b32.xlu1 %v18489_v13, %s13414_s23  ;;  %11336 = vmatprep.subr.mxu1 %v10331_v37  ;;  %vm19487_vm13 = vmmov %vm19480_vm0 }
0x1640   :  { %10419 = vrot.lane.b32.xlu0 %v18489_v13, %s13412_s20  ;;  %11337 = vmatpush1.msra.mxu1 %v10330_v4 }
0x1641   :  { %v10978_v18 = vpop.permute.xlu0 %10977  ;;  %v10980_v0 = vpop.permute.xlu1 %10979 }
0x1642   :  { %v10997_v17 = vsel %vm943_vm2, %v18735_v6, %v10978_v18  ;;  %v10998_v39 = vsel %vm943_vm2, %v10978_v18, %v10980_v0 }
0x1643   :  { %11393 = vmatprep.subr.mxu0 %v10998_v39  ;;  %11160 = vperm.xlu1 %13379, %v18855_v33  }
0x1644   :  { %10229 = vrot.lane.b32.xlu0 %v18489_v13, %s13413_s21  ;;  %11394 = vmatpush1.msra.mxu0 %v10997_v17 }
0x1645   :  { %v10214_v57 = vpop.permute.xlu0 %10213  ;;  %v18863_v2 = vpop.permute.xlu1 %10215 }
0x1646   :  { %v10235_v27 = vsel %vm19480_vm0, %v10212_v41, %v10214_v57  ;;  %v10236_v42 = vsel %vm19481_vm1, %v10214_v57, %v18863_v2  ;;  %vm19488_vm0 = vmmov %vm19482_vm8 }
0x1647   :  { %11338 = vmatprep.subr.mxu1 %v10236_v42  ;;  %vm19489_vm1 = vmmov %vm19488_vm0 }
0x1648   :  { %11339 = vmatpush1.msra.mxu1 %v10235_v27 }
0x1649   :  { %v10883_v6 = vpop.permute.xlu0 %10882  ;;  %v10885_v52 = vpop.permute.xlu1 %10884  ;;  %13103 = vmatmul.mubr.msk.f32.vlgmr.msra.gmra.mxu1 %vm1114_vm11, %v18707_v7 }
0x164a   :  { %v10902_v35 = vsel %vm847_vm3, %v18751_v43, %v10883_v6  ;;  %v10903_v13 = vsel %vm847_vm3, %v10883_v6, %v10885_v52  ;;  %11514 = vmatprep.mubr.f32.mxu1 %v18725_v26 }
0x164b   :  { %11395 = vmatprep.subr.mxu0 %v10903_v13 }
0x164c   :  { %11396 = vmatpush1.msra.mxu0 %v10902_v35 }
0x164d   :  { %v10788_v16 = vpop.permute.xlu0 %10787  ;;  %v10790_v38 = vpop.permute.xlu1 %10789 }
0x164e   :  { %v10807_v5 = vsel %vm751_vm4, %v18767_v50, %v10788_v16  ;;  %v10808_v31 = vsel %vm751_vm4, %v10788_v16, %v10790_v38 }
0x164f   :  { %11397 = vmatprep.subr.mxu0 %v10808_v31 }
0x1650   :  { %11398 = vmatpush1.msra.mxu0 %v10807_v5 }
0x1651   :  { %v10982_v29 = vpop.permute.xlu0 %10981  ;;  %v18877_v45 = vpop.permute.xlu1 %10983 }
0x1652   :  { %v10999_v43 = vsel %vm943_vm2, %v10980_v0, %v10982_v29  ;;  %v11000_v24 = vsel %vm943_vm2, %v10982_v29, %v18877_v45 }
0x1653   :  { %11464 = vmatprep.subr.mxu1 %v11000_v24 }
0x1654   :  { %11465 = vmatpush1.msra.mxu1 %v10999_v43 }
0x1655   :  { %v10693_v46 = vpop.permute.xlu0 %10692  ;;  %v10695_v28 = vpop.permute.xlu1 %10694 }
0x1656   :  { %v10712_v14 = vsel %vm655_vm5, %v18783_v34, %v10693_v46  ;;  %v10713_v50 = vsel %vm655_vm5, %v10693_v46, %v10695_v28 }
0x1657   :  { %11399 = vmatprep.subr.mxu0 %v10713_v50 }
0x1658   :  { %11400 = vmatpush1.msra.mxu0 %v10712_v14 }
0x1659   :  { %v10887_v56 = vpop.permute.xlu0 %10886  ;;  %v18885_v63 = vpop.permute.xlu1 %10888 }
0x165a   :  { %v10904_v8 = vsel %vm847_vm3, %v10885_v52, %v10887_v56  ;;  %v10905_v11 = vsel %vm847_vm3, %v10887_v56, %v18885_v63 }
0x165b   :  { %11466 = vmatprep.subr.mxu1 %v10905_v11 }
0x165c   :  { %11467 = vmatpush1.msra.mxu1 %v10904_v8 }
0x165d   :  { %v10598_v55 = vpop.permute.xlu0 %10597  ;;  %v10600_v9 = vpop.permute.xlu1 %10599 }
0x165e   :  { %v10617_v54 = vsel %vm559_vm6, %v18799_v3, %v10598_v55  ;;  %v10618_v34 = vsel %vm559_vm6, %v10598_v55, %v10600_v9 }
0x165f   :  { %11401 = vmatprep.subr.mxu0 %v10618_v34 }
0x1660   :  { %11402 = vmatpush1.msra.mxu0 %v10617_v54 }
0x1661   :  { %v10792_v1 = vpop.permute.xlu0 %10791  ;;  %v18893_v41 = vpop.permute.xlu1 %10793 }
0x1662   :  { %v10809_v22 = vsel %vm751_vm4, %v10790_v38, %v10792_v1  ;;  %v10810_v49 = vsel %vm751_vm4, %v10792_v1, %v18893_v41 }
0x1663   :  { %11468 = vmatprep.subr.mxu1 %v10810_v49 }
0x1664   :  { %11469 = vmatpush1.msra.mxu1 %v10809_v22 }
0x1665   :  { %v10503_v30 = vpop.permute.xlu0 %10502  ;;  %v10505_v61 = vpop.permute.xlu1 %10504 }
0x1666   :  { %v10522_v60 = vsel %vm463_vm7, %v18815_v21, %v10503_v30  ;;  %v10523_v3 = vsel %vm463_vm7, %v10503_v30, %v10505_v61 }
0x1667   :  { %11403 = vmatprep.subr.mxu0 %v10523_v3 }
0x1668   :  { %11404 = vmatpush1.msra.mxu0 %v10522_v60 }
0x1669   :  { %v10697_v32 = vpop.permute.xlu0 %10696  ;;  %v18901_v48 = vpop.permute.xlu1 %10698 }
0x166a   :  { %v10714_v4 = vsel %vm655_vm5, %v10695_v28, %v10697_v32  ;;  %v10715_v37 = vsel %vm655_vm5, %v10697_v32, %v18901_v48 }
0x166b   :  { %11470 = vmatprep.subr.mxu1 %v10715_v37 }
0x166c   :  { %11471 = vmatpush1.msra.mxu1 %v10714_v4 }
0x166d   :  { %v10410_v18 = vpop.permute.xlu1 %10409 }
0x166e   :  { %v10408_v0 = vpop.permute.xlu0 %10407 }
0x166f   :  { %v10427_v17 = vsel %vm19482_vm8, %v18831_v53, %v10408_v0  ;;  %v10428_v21 = vsel %vm19483_vm9, %v10408_v0, %v10410_v18  ;;  %vm19490_vm8 = vmmov %vm19484_vm10 }
0x1670   :  { %11405 = vmatprep.subr.mxu0 %v10428_v21  ;;  %vm19491_vm9 = vmmov %vm19490_vm8 }
0x1671   :  { %11406 = vmatpush1.msra.mxu0 %v10427_v17  ;;  %v18909_v39 = vpop.permute.xlu1 %10603 }
0x1672   :  { %v10602_v57 = vpop.permute.xlu0 %10601 }
0x1673   :  { %v10619_v27 = vsel %vm559_vm6, %v10600_v9, %v10602_v57  ;;  %v10620_v42 = vsel %vm559_vm6, %v10602_v57, %v18909_v39 }
0x1674   :  { %11472 = vmatprep.subr.mxu1 %v10620_v42 }
0x1675   :  { %11473 = vmatpush1.msra.mxu1 %v10619_v27  ;;  %v10315_v6 = vpop.permute.xlu1 %10314 }
0x1676   :  { %v10313_v52 = vpop.permute.xlu0 %10312 }
0x1677   :  { %v10332_v35 = vsel %vm19484_vm10, %v18843_v51, %v10313_v52  ;;  %v10333_v53 = vsel %vm19485_vm14, %v10313_v52, %v10315_v6  ;;  %vm19492_vm10 = vmmov %vm19487_vm13 }
0x1678   :  { %11407 = vmatprep.subr.mxu0 %v10333_v53  ;;  %vm19493_vm14 = vmmov %vm19492_vm10 }
0x1679   :  { %11408 = vmatpush1.msra.mxu0 %v10332_v35  ;;  %v18917_v13 = vpop.permute.xlu1 %10508 }
0x167a   :  { %v10507_v16 = vpop.permute.xlu0 %10506 }
0x167b   :  { %v10524_v38 = vsel %vm463_vm7, %v10505_v61, %v10507_v16  ;;  %v10525_v5 = vsel %vm463_vm7, %v10507_v16, %v18917_v13 }
0x167c   :  { %11474 = vmatprep.subr.mxu1 %v10525_v5 }
0x167d   :  { %11475 = vmatpush1.msra.mxu1 %v10524_v38  ;;  %v10220_v31 = vpop.permute.xlu1 %10219 }
0x167e   :  { %v10218_v29 = vpop.permute.xlu0 %10217 }
0x167f   :  { %v10237_v43 = vsel %vm19486_vm15, %v18863_v2, %v10218_v29  ;;  %v10238_v51 = vsel %vm19487_vm13, %v10218_v29, %v10220_v31  ;;  %vm19500_vm15 = vmmov %vm19488_vm0 }
0x1680   :  { %11409 = vmatprep.subr.mxu0 %v10238_v51 }
0x1681   :  { %11410 = vmatpush1.msra.mxu0 %v10237_v43  ;;  %v18925_v24 = vpop.permute.xlu1 %10413 }
0x1682   :  { %v10412_v46 = vpop.permute.xlu0 %10411  ;;  %13104 = vmatmul.mubr.msk.f32.vlgmr.msra.gmra.mxu0 %vm1114_vm11, %v18707_v7 }
0x1683   :  { %v10429_v28 = vsel %vm19488_vm0, %v10410_v18, %v10412_v46  ;;  %v10430_v14 = vsel %vm19489_vm1, %v10412_v46, %v18925_v24  ;;  %11585 = vmatprep.mubr.f32.mxu0 %v18725_v26 }
0x1684   :  { %11476 = vmatprep.subr.mxu1 %v10430_v14 }
0x1685   :  { %11477 = vmatpush1.msra.mxu1 %v10429_v28  ;;  %v18933_v2 = vpop.permute.xlu1 %10318 }
0x1686   :  { %v10317_v50 = vpop.permute.xlu0 %10316 }
0x1687   :  { %v10334_v56 = vsel %vm19490_vm8, %v10315_v6, %v10317_v50  ;;  %v10335_v8 = vsel %vm19491_vm9, %v10317_v50, %v18933_v2 }
0x1688   :  { %11478 = vmatprep.subr.mxu1 %v10335_v8  ;;  %v13445_v8 = vmov 16  }
0x1689   :  { %11479 = vmatpush1.msra.mxu1 %v10334_v56  ;;  %v10988_v11 = vpop.permute.xlu1 %10987  ;;  %13380 = vset.pattern.permute.xlu0 %v13445_v8 }
0x168a   :  { %v10986_v55 = vpop.permute.xlu0 %10985  ;;  %v11003_v61 = vsel %vm943_vm2, %v10988_v11, %v18591_v19 }
0x168b   :  { %v11001_v9 = vsel %vm943_vm2, %v18877_v45, %v10986_v55  ;;  %v11002_v54 = vsel %vm943_vm2, %v10986_v55, %v10988_v11  ;;  %vm19494_vm2 = vmmov %vm19488_vm0  ;;  %v13446_v11 = vmov 17  }
0x168c   :  { %11535 = vmatprep.subr.mxu0 %v11002_v54  ;;  %13381 = vset.pattern.permute.xlu1 %v13446_v11 }
0x168d   :  { %11536 = vmatpush1.msra.mxu0 %v11001_v9  ;;  %v18941_v34 = vpop.permute.xlu1 %10223 }
0x168e   :  { %v10222_v1 = vpop.permute.xlu0 %10221 }
0x168f   :  { %v10239_v22 = vsel %vm19492_vm10, %v10220_v31, %v10222_v1  ;;  %v10240_v49 = vsel %vm19493_vm14, %v10222_v1, %v18941_v34  ;;  %v13098_v1 = vld [vmem:[%s19342_s4 + $0x4] ss:$8 sm:$0xf0] }
0x1690   :  { %11480 = vmatprep.subr.mxu1 %v10240_v49 }
0x1691   :  { %11481 = vmatpush1.msra.mxu1 %v10239_v22  ;;  %v10893_v30 = vpop.permute.xlu1 %10892 }
0x1692   :  { %v10891_v60 = vpop.permute.xlu0 %10890  ;;  %13105 = vmatmul.mubr.msk.f32.vlgmr.msra.gmra.mxu1 %vm1114_vm11, %v18707_v7  ;;  %13292 = vmatprep.subr.mxu1 %v18725_v26  ;;  %v10908_v45 = vsel %vm847_vm3, %v10893_v30, %v18601_v44 }
0x1693   :  { %v10906_v3 = vsel %vm847_vm3, %v18885_v63, %v10891_v60  ;;  %13293 = vmatpush3.msra.mxu1 %v11003_v61  ;;  %v10907_v32 = vsel %vm847_vm3, %v10891_v60, %v10893_v30  ;;  %13310 = vmatprep.mubr.msk.f32.mxu1 %vm13422_vm12, %v18725_v26  ;;  %vm19495_vm3 = vmmov %vm19488_vm0 }
0x1694   :  { %11537 = vmatprep.subr.mxu0 %v10907_v32  ;;  %13294 = vmatprep.subr.mxu1 %v18725_v26 }
0x1695   :  { %11538 = vmatpush1.msra.mxu0 %v10906_v3  ;;  %13295 = vmatpush3.msra.mxu1 %v10908_v45  ;;  %v10798_v19 = vpop.permute.xlu1 %10797 }
0x1696   :  { %v10796_v4 = vpop.permute.xlu0 %10795  ;;  %v10813_v37 = vsel %vm751_vm4, %v10798_v19, %v18599_v20  ;;  %13296 = vmatprep.subr.mxu1 %v18725_v26 }
0x1697   :  { %v10811_v44 = vsel %vm751_vm4, %v18893_v41, %v10796_v4  ;;  %v10812_v63 = vsel %vm751_vm4, %v10796_v4, %v10798_v19  ;;  %13297 = vmatpush3.msra.mxu1 %v10813_v37  ;;  %vm19496_vm4 = vmmov %vm19490_vm8 }
0x1698   :  { %11539 = vmatprep.subr.mxu0 %v10812_v63  ;;  %13298 = vmatprep.subr.mxu1 %v18725_v26  ;;  %vm19501_vm13 = vmmov %vm19496_vm4 }
0x1699   :  { %11540 = vmatpush1.msra.mxu0 %v10811_v44  ;;  %v10701_v18 = vpop.permute.xlu1 %10700 }
0x169a   :  { %v10703_v0 = vpop.permute.xlu0 %10702  ;;  %v10716_v17 = vsel %vm655_vm5, %v18901_v48, %v10701_v18 }
0x169b   :  { %v10718_v20 = vsel %vm655_vm5, %v10703_v0, %v18609_v58  ;;  %v10717_v21 = vsel %vm655_vm5, %v10701_v18, %v10703_v0  ;;  %vm19497_vm5 = vmmov %vm19496_vm4 }
0x169c   :  { %11541 = vmatprep.subr.mxu0 %v10717_v21  ;;  %13299 = vmatpush3.msra.mxu1 %v10718_v20 }
0x169d   :  { %11542 = vmatpush1.msra.mxu0 %v10716_v17  ;;  %v10608_v41 = vpop.permute.xlu1 %10607  ;;  %13300 = vmatprep.subr.mxu1 %v18725_v26 }
0x169e   :  { %v10606_v57 = vpop.permute.xlu0 %10605  ;;  %v10623_v27 = vsel %vm559_vm6, %v10608_v41, %v18607_v25 }
0x169f   :  { %v10621_v42 = vsel %vm559_vm6, %v18909_v39, %v10606_v57  ;;  %v10622_v48 = vsel %vm559_vm6, %v10606_v57, %v10608_v41  ;;  %13301 = vmatpush3.msra.mxu1 %v10623_v27  ;;  %vm19498_vm6 = vmmov %vm19492_vm10 }
0x16a0   :  { %11543 = vmatprep.subr.mxu0 %v10622_v48  ;;  %13302 = vmatprep.subr.mxu1 %v18725_v26  ;;  %vm19502_vm0 = vmmov %vm19498_vm6 }
0x16a1   :  { %11544 = vmatpush1.msra.mxu0 %v10621_v42  ;;  %v10511_v58 = vpop.permute.xlu1 %10510 }
0x16a2   :  { %v10513_v6 = vpop.permute.xlu0 %10512  ;;  %v10526_v52 = vsel %vm463_vm7, %v18917_v13, %v10511_v58 }
0x16a3   :  { %v10528_v35 = vsel %vm463_vm7, %v10513_v6, %v18617_v15  ;;  %v10527_v25 = vsel %vm463_vm7, %v10511_v58, %v10513_v6  ;;  %vm19499_vm7 = vmmov %vm19498_vm6 }
0x16a4   :  { %11545 = vmatprep.subr.mxu0 %v10527_v25  ;;  %13303 = vmatpush3.msra.mxu1 %v10528_v35 }
0x16a5   :  { %11546 = vmatpush1.msra.mxu0 %v10526_v52  ;;  %v10418_v39 = vpop.permute.xlu1 %10417  ;;  %13304 = vmatprep.subr.mxu1 %v18725_v26 }
0x16a6   :  { %v10416_v53 = vpop.permute.xlu0 %10415 }
0x16a7   :  { %v10431_v16 = vsel %vm19494_vm2, %v18925_v24, %v10416_v53  ;;  %v10432_v38 = vsel %vm19495_vm3, %v10416_v53, %v10418_v39 }
0x16a8   :  { %11547 = vmatprep.subr.mxu0 %v10432_v38 }
0x16a9   :  { %11548 = vmatpush1.msra.mxu0 %v10431_v16  ;;  %v10321_v13 = vpop.permute.xlu1 %10320 }
0x16aa   :  { %v10323_v5 = vpop.permute.xlu0 %10322  ;;  %v10336_v15 = vsel %vm19496_vm4, %v18933_v2, %v10321_v13 }
0x16ab   :  { %v10337_v31 = vsel %vm19497_vm5, %v10321_v13, %v10323_v5 }
0x16ac   :  { %11549 = vmatprep.subr.mxu0 %v10337_v31 }
0x16ad   :  { %11550 = vmatpush1.msra.mxu0 %v10336_v15  ;;  %v10228_v29 = vpop.permute.xlu1 %10227 }
0x16ae   :  { %v10226_v43 = vpop.permute.xlu0 %10225 }
0x16af   :  { %v10241_v51 = vsel %vm19498_vm6, %v18941_v34, %v10226_v43  ;;  %v10242_v24 = vsel %vm19499_vm7, %v10226_v43, %v10228_v29  ;;  %v13097_v34 = vld [vmem:[%s19342_s4 + $0x4] ss:$8 sm:$0xf] }
0x16b0   :  { %11551 = vmatprep.subr.mxu0 %v10242_v24  ;;  %v11152_v22 = vor.u32 %v13098_v1, %v13097_v34 }
0x16b1   :  { %11552 = vmatpush1.msra.mxu0 %v10241_v51  ;;  %v10325_v28 = vpop.permute.xlu1 %10324 }
0x16b2   :  { %v10420_v46 = vpop.permute.xlu0 %10419  ;;  %13106 = vmatmul.mubr.msk.f32.vlgmr.msra.gmra.mxu0 %vm1114_vm11, %v18707_v7  ;;  %v10338_v2 = vsel %vm19501_vm13, %v10323_v5, %v10325_v28  ;;  %v19021_v60 = vrot.slane %v11152_v22, %v14090_v59  ;;  %v19024_v45 = vrot.slane %v11152_v22, %v14092_v23  ;;  %v19037_v44 = vrot.slane %v11152_v22, %v14107_v62 }
0x16b3   :  { %v10433_v14 = vsel %vm19500_vm15, %v10418_v39, %v10420_v46  ;;  %11934 = vmatprep.mubr.f32.mxu0 %v18725_v26  ;;  %v19047_v41 = vrot.slane %v11152_v22, %v14123_v40  ;;  %v19053_v58 = vrot.slane %v11152_v22, %v14125_v10  ;;  %v19063_v16 = vrot.slane %v11152_v22, %v14142_v12  ;;  %v13099_v46 = vld [vmem:[%s19342_s4 + $0x44] ss:$8 sm:$0xf] }
0x16b4   :  { %13305 = vmatpush3.msra.mxu1 %v10433_v14  ;;  %v19080_v14 = vrot.slane %v11152_v22, %v14162_v36  ;;  %v19093_v36 = vrot.slane %v11152_v22, %v14178_v47 }
0x16b5   :  { %13306 = vmatprep.subr.mxu1 %v18725_v26 }
0x16b6   :  { %v10230_v50 = vpop.permute.xlu0 %10229  ;;  %13307 = vmatpush3.msra.mxu1 %v10338_v2 }
0x16b7   :  { %v10243_v56 = vsel %vm19502_vm0, %v10228_v29, %v10230_v50  ;;  %13308 = vmatprep.subr.mxu1 %v18725_v26  ;;  %v13100_v50 = vld [vmem:[%s19342_s4 + $0x44] ss:$8 sm:$0x10] }
0x16b8   :  { %13309 = vmatpush3.msra.mxu1 %v10243_v56 }
0x16b9   :  { %13311 = vmatmul.mubr.msk.f32.vlgmr.msra.gmra.mxu1 %vm1114_vm11, %v18707_v7  ;;  %vm19503_vm11 = vcmask 64512  }
0x16ba   :  { %12005 = vmatprep.mubr.f32.mxu1 %v18725_v26  ;;  %vm19504_vm1 = vmmov %vm19503_vm11 }
0x16bb   :  { %vm19505_vm8 = vmmov %vm19504_vm1 }
0x16bc   :  { %vm19506_vm9 = vmmov %vm19504_vm1 }
0x16bd   :  { %vm19507_vm10 = vmmov %vm19504_vm1 }
0x16be   :  { %v19004_v54 = vpop.permute.xlu1 %11160  ;;  %vm19508_vm14 = vmmov %vm19504_vm1 }
0x16bf   :  { %vm19509_vm2 = vmmov %vm19504_vm1 }
0x16c0   :  { %vm19510_vm3 = vmmov %vm19504_vm1 }
0x16c1   :  { %vm19511_vm4 = vmmov %vm19504_vm1 }
0x16c2   :  { %v11232_v55 = vpop.f32.mrf.mxu1  ;;  %vm19512_vm5 = vmmov %vm19504_vm1 }
0x16c3   :  { %v19013_v7 = vadd.f32 %v11232_v55, %v19004_v54  ;;  %vm19513_vm6 = vmmov %vm19504_vm1 }
0x16c4   :  { %v11234_v9 = vpop.f32.mrf.mxu1  ;;  %vm19514_vm7 = vmmov %vm19504_vm1 }
0x16c5   :  { %v19016_v26 = vadd.f32 %v11234_v9, %v19004_v54  ;;  %v11662_v30 = vmax.f32 %v19013_v7, 0.0  ;;  %v11156_v9 = vor.u32 %v13100_v50, %v13099_v46  ;;  %vm19515_vm15 = vmmov %vm19504_vm1 }
0x16c6   :  { %vm19516_vm13 = vmmov %vm19504_vm1 }
0x16c7   :  { %v11663_v61 = vmax.f32 %v19016_v26, 0.0  ;;  %v11742_v19 = vmul.f32 %v19021_v60, %v11662_v30  ;;  %v19109_v22 = vrot.slane %v11156_v9, %v14092_v23 }
0x16c9   :  { %v11743_v4 = vmul.f32 %v19024_v45, %v11663_v61  ;;  %v11769_v0 = vmul.f32 %v11742_v19, %v11742_v19 }
0x16cb   :  { %v11770_v17 = vmul.f32 %v11743_v4, %v11743_v4  ;;  %v11755_v42 = vadd.f32 %v11743_v4, %v11742_v19 }
0x16cd   :  { %v11782_v48 = vadd.f32 %v11770_v17, %v11769_v0 }
0x16f9   :  { %v11303_v49 = vpop.f32.mrf.mxu0 }
0x16fa   :  { %v19027_v3 = vadd.f32 %v11303_v49, %v19004_v54 }
0x16fb   :  { %v11305_v32 = vpop.f32.mrf.mxu0 }
0x16fc   :  { %v11664_v37 = vmax.f32 %v19027_v3, 0.0  ;;  %v19040_v63 = vadd.f32 %v11305_v32, %v19004_v54 }
0x16fe   :  { %v11744_v20 = vmul.f32 %v19037_v44, %v11664_v37  ;;  %v11665_v21 = vmax.f32 %v19040_v63, 0.0 }
0x1700   :  { %v11771_v6 = vmul.f32 %v11744_v20, %v11744_v20  ;;  %v11745_v52 = vmul.f32 %v19047_v41, %v11665_v21  ;;  %v11756_v53 = vadd.f32 %v11755_v42, %v11744_v20 }
0x1702   :  { %v11783_v38 = vadd.f32 %v11782_v48, %v11771_v6  ;;  %v11772_v13 = vmul.f32 %v11745_v52, %v11745_v52  ;;  %v11757_v43 = vadd.f32 %v11756_v53, %v11745_v52 }
0x1704   :  { %v11784_v51 = vadd.f32 %v11783_v38, %v11772_v13 }
0x1709   :  { %v11374_v18 = vpop.f32.mrf.mxu1 }
0x170a   :  { %v19050_v57 = vadd.f32 %v11374_v18, %v19004_v54  ;;  %v19099_v18 = vrot.slane %v11156_v9, %v14090_v59 }
0x170b   :  { %v11376_v27 = vpop.f32.mrf.mxu1 }
0x170c   :  { %v11666_v35 = vmax.f32 %v19050_v57, 0.0  ;;  %v19060_v25 = vadd.f32 %v11376_v27, %v19004_v54 }
0x170e   :  { %v11746_v5 = vmul.f32 %v19053_v58, %v11666_v35  ;;  %v11667_v15 = vmax.f32 %v19060_v25, 0.0 }
0x1710   :  { %v11773_v24 = vmul.f32 %v11746_v5, %v11746_v5  ;;  %v11747_v12 = vmul.f32 %v19063_v16, %v11667_v15  ;;  %v11758_v8 = vadd.f32 %v11757_v43, %v11746_v5 }
0x1712   :  { %v11785_v11 = vadd.f32 %v11784_v51, %v11773_v24  ;;  %v11774_v55 = vmul.f32 %v11747_v12, %v11747_v12  ;;  %v11759_v19 = vadd.f32 %v11758_v8, %v11747_v12  ;;  %v19122_v12 = vrot.slane %v11156_v9, %v14123_v40 }
0x1714   :  { %v11786_v4 = vadd.f32 %v11785_v11, %v11774_v55 }
0x1742   :  { %v11445_v39 = vpop.f32.mrf.mxu0 }
0x1743   :  { %v19070_v31 = vadd.f32 %v11445_v39, %v19004_v54 }
0x1744   :  { %v11447_v29 = vpop.f32.mrf.mxu0 }
0x1745   :  { %v11668_v28 = vmax.f32 %v19070_v31, 0.0  ;;  %v19083_v2 = vadd.f32 %v11447_v29, %v19004_v54  ;;  %v19118_v29 = vrot.slane %v11156_v9, %v14107_v62 }
0x1747   :  { %v11748_v34 = vmul.f32 %v19080_v14, %v11668_v28  ;;  %v11669_v1 = vmax.f32 %v19083_v2, 0.0 }
0x1749   :  { %v11775_v0 = vmul.f32 %v11748_v34, %v11748_v34  ;;  %v11749_v17 = vmul.f32 %v19093_v36, %v11669_v1  ;;  %v11760_v47 = vadd.f32 %v11759_v19, %v11748_v34 }
0x174b   :  { %v11787_v42 = vadd.f32 %v11786_v4, %v11775_v0  ;;  %v11776_v48 = vmul.f32 %v11749_v17, %v11749_v17  ;;  %v11761_v52 = vadd.f32 %v11760_v47, %v11749_v17  ;;  %v19130_v0 = vrot.slane %v11156_v9, %v14125_v10 }
0x174c   :  { %v13447_v10 = vmov 18  }
0x174d   :  { %v11788_v39 = vadd.f32 %v11787_v42, %v11776_v48 }
0x1752   :  { %v11516_v56 = vpop.f32.mrf.mxu1 }
0x1753   :  { %v19096_v49 = vadd.f32 %v11516_v56, %v19004_v54 }
0x1754   :  { %v11518_v32 = vpop.f32.mrf.mxu1 }
0x1755   :  { %v11670_v20 = vmax.f32 %v19096_v49, 0.0  ;;  %v19106_v27 = vadd.f32 %v11518_v32, %v19004_v54 }
0x1757   :  { %v11750_v59 = vmul.f32 %v19099_v18, %v11670_v20  ;;  %v11671_v6 = vmax.f32 %v19106_v27, 0.0 }
0x1759   :  { %v11777_v53 = vmul.f32 %v11750_v59, %v11750_v59  ;;  %v11751_v38 = vmul.f32 %v19109_v22, %v11671_v6  ;;  %v11762_v23 = vadd.f32 %v11761_v52, %v11750_v59 }
0x175b   :  { %v11789_v46 = vadd.f32 %v11788_v39, %v11777_v53  ;;  %v11778_v50 = vmul.f32 %v11751_v38, %v11751_v38  ;;  %v11763_v11 = vadd.f32 %v11762_v23, %v11751_v38 }
0x175d   :  { %v11790_v62 = vadd.f32 %v11789_v46, %v11778_v50 }
0x1772   :  { %v11587_v13 = vpop.f32.mrf.mxu0 }
0x1773   :  { %v11588_v5 = vadd.f32 %v11587_v13, %v19004_v54 }
0x1774   :  { %v11589_v43 = vpop.f32.mrf.mxu0 }
0x1775   :  { %v11672_v51 = vmax.f32 %v11588_v5, 0.0  ;;  %v11590_v24 = vadd.f32 %v11589_v43, %v19004_v54 }
0x1777   :  { %v11752_v56 = vmul.f32 %v19118_v29, %v11672_v51  ;;  %v11673_v8 = vmax.f32 %v11590_v24, 0.0 }
0x1779   :  { %v11779_v55 = vmul.f32 %v11752_v56, %v11752_v56  ;;  %v11753_v34 = vmul.f32 %v19122_v12, %v11673_v8  ;;  %v11658_v32 = vpop.f32.mrf.mxu1  ;;  %v11764_v19 = vadd.f32 %v11763_v11, %v11752_v56 }
0x177a   :  { %v19127_v4 = vadd.f32 %v11658_v32, %v19004_v54 }
0x177b   :  { %v13312_v40 = vpop.f32.mrf.mxu1  ;;  %v11791_v17 = vadd.f32 %v11790_v62, %v11779_v55  ;;  %v11780_v27 = vmul.f32 %v11753_v34, %v11753_v34  ;;  %v11765_v42 = vadd.f32 %v11764_v19, %v11753_v34 }
0x177c   :  { %v11674_v47 = vmax.f32 %v19127_v4, 0.0 }
0x177d   :  { %v11792_v39 = vadd.f32 %v11791_v17, %v11780_v27  ;;  %v11862_v27 = vld [vmem:[%s19343_s2] sm:$0xff] }
0x177e   :  { %v11754_v48 = vmul.f32 %v19130_v0, %v11674_v47 }
0x1780   :  { %v11781_v59 = vmul.f32 %v11754_v48, %v11754_v48  ;;  %v11766_v52 = vadd.f32 %v11765_v42, %v11754_v48 }
0x1782   :  { %11767 = vadd.xlane.f32.xlu0 %v11766_v52  ;;  %v11793_v53 = vadd.f32 %v11792_v39, %v11781_v59 }
0x1784   :  { %11794 = vadd.xlane.f32.xlu1 %v11793_v53 }
0x1795   :  { %11846 = vperm.xlu1 %13381, %v18855_v33  }
0x1798   :  { %11829 = vperm.xlu0 %13380, %v18855_v33  }
0x1799   :  { %13382 = vset.pattern.permute.xlu1 %v13447_v10 }
0x179a   :  { %11864 = vperm.xlu1 %13382, %v18855_v33  }
0x180b   :  { %v11768_v54 = vpop.xlane.xlu0 %11767 }
0x180c   :  { %v11796_v9 = vmul.f32 0.0017301039, %v11768_v54 }
0x180d   :  { %v11795_v38 = vpop.xlane.xlu1 %11794 }
0x180e   :  { %v11797_v13 = vmul.f32 0.0017301039, %v11795_v38  ;;  %v11798_v5 = vmul.f32 %v11796_v9, %v11796_v9  ;;  %v11801_v24 = vsub.f32 %v11663_v61, %v11796_v9  ;;  %v11803_v46 = vsub.f32 %v11665_v21, %v11796_v9 }
0x180f   :  { %v11800_v50 = vsub.f32 %v11662_v30, %v11796_v9  ;;  %v11802_v33 = vsub.f32 %v11664_v37, %v11796_v9  ;;  %v11805_v56 = vsub.f32 %v11667_v15, %v11796_v9  ;;  %v11807_v11 = vsub.f32 %v11669_v1, %v11796_v9 }
0x1810   :  { %v11799_v23 = vsub.f32 %v11797_v13, %v11798_v5  ;;  %v11804_v55 = vsub.f32 %v11666_v35, %v11796_v9  ;;  %v11806_v26 = vsub.f32 %v11668_v28, %v11796_v9  ;;  %v11809_v21 = vsub.f32 %v11671_v6, %v11796_v9 }
0x1811   :  { %v11811_v7 = vsub.f32 %v11673_v8, %v11796_v9  ;;  %v11808_v30 = vsub.f32 %v11670_v20, %v11796_v9  ;;  %v11810_v3 = vsub.f32 %v11672_v51, %v11796_v9  ;;  %v11847_v2 = vpop.permute.xlu1 %11846  ;;  %v11812_v52 = vsub.f32 %v11674_v47, %v11796_v9 }
0x1812   :  { %v11813_v43 = vadd.f32 1e-05, %v11799_v23 }
0x1813   :  { %v11830_v63 = vpop.permute.xlu0 %11829 }
0x1814   :  { %13397 = vrsqrt.f32 %v11813_v43 }
0x1821   :  { %v13398_v61 = vpop.eup %13397 }
0x1822   :  { %v11816_v37 = vmul.f32 %v13398_v61, %v11801_v24  ;;  %v11818_v25 = vmul.f32 %v13398_v61, %v11803_v46  ;;  %v11815_v15 = vmul.f32 %v13398_v61, %v11800_v50  ;;  %v11817_v34 = vmul.f32 %v13398_v61, %v11802_v33  ;;  %v19160_v46 = vld [vmem:[#allocation2] sm:$0xff] }
0x1823   :  { %v11820_v1 = vmul.f32 %v13398_v61, %v11805_v56  ;;  %v11822_v32 = vmul.f32 %v13398_v61, %v11807_v11  ;;  %v11819_v57 = vmul.f32 %v13398_v61, %v11804_v55  ;;  %v11821_v35 = vmul.f32 %v13398_v61, %v11806_v26 }
0x1824   :  { %v11833_v62 = vmul.f32 %v11830_v63, %v11816_v37  ;;  %v11835_v31 = vmul.f32 %v11830_v63, %v11818_v25  ;;  %v11832_v28 = vmul.f32 %v11830_v63, %v11815_v15  ;;  %v11834_v19 = vmul.f32 %v11830_v63, %v11817_v34 }
0x1825   :  { %v11837_v4 = vmul.f32 %v11830_v63, %v11820_v1  ;;  %v11839_v6 = vmul.f32 %v11830_v63, %v11822_v32  ;;  %v11836_v8 = vmul.f32 %v11830_v63, %v11819_v57  ;;  %v11838_v40 = vmul.f32 %v11830_v63, %v11821_v35 }
0x1826   :  { %v11850_v49 = vadd.f32 %v11847_v2, %v11833_v62  ;;  %v11852_v20 = vadd.f32 %v11847_v2, %v11835_v31  ;;  %v11849_v51 = vadd.f32 %v11847_v2, %v11832_v28  ;;  %v11851_v17 = vadd.f32 %v11847_v2, %v11834_v19 }
0x1827   :  { %v11854_v42 = vadd.f32 %v11847_v2, %v11837_v4  ;;  %v11856_v48 = vadd.f32 %v11847_v2, %v11839_v6  ;;  %v11853_v59 = vadd.f32 %v11847_v2, %v11836_v8  ;;  %v11824_v39 = vmul.f32 %v13398_v61, %v11809_v21 }
0x1828   :  { %11900 = vmatprep.subr.mxu0 %v11850_v49  ;;  %11971 = vmatprep.subr.mxu1 %v11852_v20  ;;  %v11826_v53 = vmul.f32 %v13398_v61, %v11811_v7  ;;  %v11823_v10 = vmul.f32 %v13398_v61, %v11808_v30  ;;  %v11855_v54 = vadd.f32 %v11847_v2, %v11838_v40  ;;  %v13448_v55 = vmov 19  }
0x1829   :  { %11901 = vmatpush1.msra.mxu0 %v11849_v51  ;;  %11972 = vmatpush1.msra.mxu1 %v11851_v17  ;;  %v11825_v38 = vmul.f32 %v13398_v61, %v11810_v3  ;;  %v11827_v13 = vmul.f32 %v13398_v61, %v11812_v52  ;;  %v11841_v5 = vmul.f32 %v11830_v63, %v11824_v39  ;;  %v13449_v26 = vmov 20   ;;  %v19176_v61 = vpop.permute.xlu1 %11864 }
0x182a   :  { %13108 = vmatmul.mubr.msk.f32.vlgmr.msra.gmra.mxu0 %vm19503_vm11, %v11862_v27  ;;  %13109 = vmatmul.mubr.msk.f32.vlgmr.msra.gmra.mxu1 %vm19504_vm1, %v11862_v27  ;;  %v11843_v23 = vmul.f32 %v11830_v63, %v11826_v53  ;;  %v11840_v43 = vmul.f32 %v11830_v63, %v11823_v10 }
0x182b   :  { %12042 = vmatprep.subr.mxu0 %v11854_v42  ;;  %12113 = vmatprep.subr.mxu1 %v11856_v48  ;;  %v11842_v47 = vmul.f32 %v11830_v63, %v11825_v38  ;;  %v11858_v9 = vadd.f32 %v11847_v2, %v11841_v5  ;;  %v11844_v56 = vmul.f32 %v11830_v63, %v11827_v13 }
0x182c   :  { %12043 = vmatpush1.msra.mxu0 %v11853_v59  ;;  %12114 = vmatpush1.msra.mxu1 %v11855_v54  ;;  %v11860_v24 = vadd.f32 %v11847_v2, %v11843_v23  ;;  %v11857_v50 = vadd.f32 %v11847_v2, %v11840_v43 }
0x182d   :  { %12076 = vmatprep.mubr.f32.mxu0 %v19160_v46  ;;  %12147 = vmatprep.mubr.f32.mxu1 %v19160_v46  ;;  %v11859_v33 = vadd.f32 %v11847_v2, %v11842_v47  ;;  %v11861_v11 = vadd.f32 %v11847_v2, %v11844_v56 }
0x182e   :  { %12184 = vmatprep.subr.mxu0 %v11858_v9  ;;  %12255 = vmatprep.subr.mxu1 %v11860_v24 }
0x182f   :  { %13110 = vmatmul.mubr.msk.f32.vlgmr.msra.gmra.mxu0 %vm19505_vm8, %v11862_v27  ;;  %13111 = vmatmul.mubr.msk.f32.vlgmr.msra.gmra.mxu1 %vm19506_vm9, %v11862_v27 }
0x1830   :  { %12185 = vmatpush1.msra.mxu0 %v11857_v50  ;;  %12256 = vmatpush1.msra.mxu1 %v11859_v33 }
0x1831   :  { %12218 = vmatprep.mubr.f32.mxu0 %v19160_v46  ;;  %12289 = vmatprep.mubr.f32.mxu1 %v19160_v46 }
0x1832   :  { %13313 = vmatprep.subr.mxu0 %v19160_v46  ;;  %13383 = vset.pattern.permute.xlu1 %v13448_v55 }
0x1833   :  { %13112 = vmatmul.mubr.msk.f32.vlgmr.msra.gmra.mxu0 %vm19507_vm10, %v11862_v27  ;;  %13113 = vmatmul.mubr.msk.f32.vlgmr.msra.gmra.mxu1 %vm19508_vm14, %v11862_v27 }
0x1834   :  { %13314 = vmatpush3.msra.mxu0 %v11861_v11  ;;  %13315 = vmatprep.mubr.msk.f32.mxu0 %vm13422_vm12, %v19160_v46 }
0x1835   :  { %12572 = vmatprep.mubr.f32.mxu1 %v19160_v46  ;;  %13384 = vset.pattern.permute.xlu0 %v13449_v26 }
0x1837   :  { %13316 = vmatmul.mubr.msk.f32.vlgmr.msra.gmra.mxu0 %vm19509_vm2, %v11862_v27 }
0x1838   :  { %12643 = vmatprep.mubr.f32.mxu0 %v19160_v46 }
0x18ea   :  { %v11936_v63 = vpop.f32.mrf.mxu0  ;;  %v12007_v21 = vpop.f32.mrf.mxu1 }
0x18eb   :  { %v19179_v7 = vadd.f32 %v11936_v63, %v19176_v61  ;;  %v19182_v30 = vadd.f32 %v12007_v21, %v19176_v61 }
0x18ec   :  { %v11938_v3 = vpop.f32.mrf.mxu0  ;;  %v12009_v37 = vpop.f32.mrf.mxu1 }
0x18ed   :  { %v12366_v25 = vmax.f32 %v19179_v7, 0.0  ;;  %v12368_v15 = vmax.f32 %v19182_v30, 0.0  ;;  %v19187_v34 = vadd.f32 %v11938_v3, %v19176_v61  ;;  %v19190_v2 = vadd.f32 %v12009_v37, %v19176_v61 }
0x18ef   :  { %v12379_v1 = vmul.f32 %v12366_v25, %v19021_v60  ;;  %v12367_v32 = vmax.f32 %v19187_v34, 0.0  ;;  %v12369_v57 = vmax.f32 %v19190_v2, 0.0  ;;  %v12078_v35 = vpop.f32.mrf.mxu0  ;;  %v12149_v62 = vpop.f32.mrf.mxu1  ;;  %v12381_v31 = vmul.f32 %v12368_v15, %v19037_v44 }
0x18f0   :  { %v19201_v28 = vadd.f32 %v12078_v35, %v19176_v61  ;;  %v19204_v19 = vadd.f32 %v12149_v62, %v19176_v61 }
0x18f1   :  { %v12380_v60 = vmul.f32 %v12367_v32, %v19024_v45  ;;  %v12080_v4 = vpop.f32.mrf.mxu0  ;;  %v12151_v6 = vpop.f32.mrf.mxu1  ;;  %v12406_v44 = vmul.f32 %v12379_v1, %v12379_v1  ;;  %v12382_v17 = vmul.f32 %v12369_v57, %v19047_v41  ;;  %v12408_v42 = vmul.f32 %v12381_v31, %v12381_v31 }
0x18f2   :  { %v12370_v8 = vmax.f32 %v19201_v28, 0.0  ;;  %v19211_v40 = vadd.f32 %v12080_v4, %v19176_v61  ;;  %v19214_v49 = vadd.f32 %v12151_v6, %v19176_v61  ;;  %v12372_v45 = vmax.f32 %v19204_v19, 0.0 }
0x18f3   :  { %v12392_v20 = vadd.f32 %v12380_v60, %v12379_v1  ;;  %v12407_v51 = vmul.f32 %v12380_v60, %v12380_v60  ;;  %v12220_v27 = vpop.f32.mrf.mxu0  ;;  %v12291_v59 = vpop.f32.mrf.mxu1  ;;  %v12409_v5 = vmul.f32 %v12382_v17, %v12382_v17 }
0x18f4   :  { %v12371_v48 = vmax.f32 %v19211_v40, 0.0  ;;  %v12383_v53 = vmul.f32 %v12370_v8, %v19053_v58  ;;  %v19225_v10 = vadd.f32 %v12220_v27, %v19176_v61  ;;  %v12373_v38 = vmax.f32 %v19214_v49, 0.0 }
0x18f5   :  { %v12419_v52 = vadd.f32 %v12407_v51, %v12406_v44  ;;  %v12393_v39 = vadd.f32 %v12392_v20, %v12381_v31  ;;  %v12222_v54 = vpop.f32.mrf.mxu0  ;;  %v12385_v47 = vmul.f32 %v12372_v45, %v19080_v14  ;;  %v19235_v58 = vadd.f32 %v12291_v59, %v19176_v61  ;;  %v12293_v24 = vpop.f32.mrf.mxu1 }
0x18f6   :  { %v12384_v41 = vmul.f32 %v12371_v48, %v19063_v16  ;;  %v19238_v9 = vadd.f32 %v12222_v54, %v19176_v61  ;;  %v12410_v16 = vmul.f32 %v12383_v53, %v12383_v53  ;;  %v12374_v56 = vmax.f32 %v19225_v10, 0.0 }
0x18f7   :  { %v12394_v13 = vadd.f32 %v12393_v39, %v12382_v17  ;;  %v12420_v23 = vadd.f32 %v12419_v52, %v12408_v42  ;;  %v12362_v43 = vpop.f32.mrf.mxu0  ;;  %v12386_v26 = vmul.f32 %v12373_v38, %v19093_v36  ;;  %v12294_v3 = vadd.f32 %v12293_v24, %v19176_v61 }
0x18f8   :  { %v12411_v55 = vmul.f32 %v12384_v41, %v12384_v41  ;;  %v12375_v21 = vmax.f32 %v19238_v9, 0.0  ;;  %v12412_v37 = vmul.f32 %v12385_v47, %v12385_v47  ;;  %v12376_v1 = vmax.f32 %v19235_v58, 0.0 }
0x18f9   :  { %v12421_v50 = vadd.f32 %v12420_v23, %v12409_v5  ;;  %v12395_v33 = vadd.f32 %v12394_v13, %v12383_v53  ;;  %v13317_v11 = vpop.f32.mrf.mxu0  ;;  %v12387_v31 = vmul.f32 %v12374_v56, %v19099_v18  ;;  %v19251_v60 = vadd.f32 %v12362_v43, %v19176_v61 }
0x18fa   :  { %v12413_v4 = vmul.f32 %v12386_v26, %v12386_v26  ;;  %v12388_v44 = vmul.f32 %v12375_v21, %v19109_v22  ;;  %v12377_v20 = vmax.f32 %v12294_v3, 0.0  ;;  %v12389_v51 = vmul.f32 %v12376_v1, %v19118_v29 }
0x18fb   :  { %v12422_v63 = vadd.f32 %v12421_v50, %v12410_v16  ;;  %v12396_v14 = vadd.f32 %v12395_v33, %v12384_v41  ;;  %v12414_v42 = vmul.f32 %v12387_v31, %v12387_v31  ;;  %v12378_v59 = vmax.f32 %v19251_v60, 0.0 }
0x18fc   :  { %v12415_v53 = vmul.f32 %v12388_v44, %v12388_v44  ;;  %v12390_v18 = vmul.f32 %v12377_v20, %v19122_v12  ;;  %v12416_v61 = vmul.f32 %v12389_v51, %v12389_v51  ;;  %v13409_v12 = vld [vmem:[%s19341_s3] sm:$0xff]  ;;  %v13450_v9 = vmov 21  }
0x18fd   :  { %v12423_v35 = vadd.f32 %v12422_v63, %v12411_v55  ;;  %v12397_v62 = vadd.f32 %v12396_v14, %v12385_v47  ;;  %v12391_v22 = vmul.f32 %v12378_v59, %v19130_v0 }
0x18fe   :  { %v12417_v5 = vmul.f32 %v12390_v18, %v12390_v18 }
0x18ff   :  { %v12398_v36 = vadd.f32 %v12397_v62, %v12386_v26  ;;  %v12424_v6 = vadd.f32 %v12423_v35, %v12412_v37  ;;  %v12418_v23 = vmul.f32 %v12391_v22, %v12391_v22 }
0x1901   :  { %v12425_v17 = vadd.f32 %v12424_v6, %v12413_v4  ;;  %v12399_v27 = vadd.f32 %v12398_v36, %v12387_v31 }
0x1903   :  { %v12426_v52 = vadd.f32 %v12425_v17, %v12414_v42  ;;  %v12400_v39 = vadd.f32 %v12399_v27, %v12388_v44  ;;  %v13115_v27 = vld [vmem:[%s19343_s2 + $0x8] sm:$0xff] }
0x1905   :  { %v12427_v54 = vadd.f32 %v12426_v52, %v12415_v53  ;;  %v12401_v41 = vadd.f32 %v12400_v39, %v12389_v51 }
0x1907   :  { %v12402_v13 = vadd.f32 %v12401_v41, %v12390_v18  ;;  %v12428_v29 = vadd.f32 %v12427_v54, %v12416_v61 }
0x1909   :  { %v12403_v43 = vadd.f32 %v12402_v13, %v12391_v22  ;;  %v12429_v47 = vadd.f32 %v12428_v29, %v12417_v5 }
0x190b   :  { %12404 = vadd.xlane.f32.xlu1 %v12403_v43  ;;  %v12430_v58 = vadd.f32 %v12429_v47, %v12418_v23 }
0x190d   :  { %12431 = vadd.xlane.f32.xlu0 %v12430_v58 }
0x191c   :  { %12466 = vperm.xlu1 %13383, %v13409_v12  }
0x1920   :  { %13385 = vset.pattern.permute.xlu1 %v13450_v9 }
0x1921   :  { %12502 = vperm.xlu1 %13385, %v13409_v12  }
0x1923   :  { %12483 = vperm.xlu0 %13384, %v13409_v12  }
0x1927   :  { %13386 = vset.pattern.permute.xlu0 %v13450_v9 }
0x1994   :  { %v12405_v0 = vpop.xlane.xlu1 %12404 }
0x1995   :  { %v12433_v24 = vmul.f32 0.0017301039, %v12405_v0 }
0x1996   :  { %v12432_v50 = vpop.xlane.xlu0 %12431 }
0x1997   :  { %v12434_v33 = vmul.f32 0.0017301039, %v12432_v50  ;;  %v12435_v16 = vmul.f32 %v12433_v24, %v12433_v24  ;;  %v12438_v26 = vsub.f32 %v12367_v32, %v12433_v24  ;;  %v12440_v63 = vsub.f32 %v12369_v57, %v12433_v24 }
0x1998   :  { %v12437_v14 = vsub.f32 %v12366_v25, %v12433_v24  ;;  %v12439_v3 = vsub.f32 %v12368_v15, %v12433_v24  ;;  %v12442_v37 = vsub.f32 %v12371_v48, %v12433_v24  ;;  %v12444_v35 = vsub.f32 %v12373_v38, %v12433_v24  ;;  %v12467_v32 = vpop.permute.xlu1 %12466 }
0x1999   :  { %v12436_v11 = vsub.f32 %v12434_v33, %v12435_v16  ;;  %v12441_v62 = vsub.f32 %v12370_v8, %v12433_v24  ;;  %v12443_v34 = vsub.f32 %v12372_v45, %v12433_v24  ;;  %v12446_v57 = vsub.f32 %v12375_v21, %v12433_v24 }
0x199a   :  { %v12448_v7 = vsub.f32 %v12377_v20, %v12433_v24  ;;  %v12445_v30 = vsub.f32 %v12374_v56, %v12433_v24  ;;  %v12447_v25 = vsub.f32 %v12376_v1, %v12433_v24  ;;  %v12449_v53 = vsub.f32 %v12378_v59, %v12433_v24 }
0x199b   :  { %v12450_v55 = vadd.f32 1e-05, %v12436_v11 }
0x199c   :  { %v12503_v0 = vpop.permute.xlu1 %12502 }
0x199d   :  { %13399 = vrsqrt.f32 %v12450_v55 }
0x199e   :  { %v12484_v49 = vpop.permute.xlu0 %12483 }
0x19aa   :  { %v13400_v2 = vpop.eup %13399 }
0x19ab   :  { %v12453_v15 = vmul.f32 %v13400_v2, %v12438_v26  ;;  %v12455_v40 = vmul.f32 %v13400_v2, %v12440_v63  ;;  %v12452_v48 = vmul.f32 %v13400_v2, %v12437_v14  ;;  %v12454_v31 = vmul.f32 %v13400_v2, %v12439_v3 }
0x19ac   :  { %v12457_v38 = vmul.f32 %v13400_v2, %v12442_v37  ;;  %v12459_v4 = vmul.f32 %v13400_v2, %v12444_v35  ;;  %v12456_v28 = vmul.f32 %v13400_v2, %v12441_v62  ;;  %v12458_v8 = vmul.f32 %v13400_v2, %v12443_v34 }
0x19ad   :  { %v12470_v36 = vmul.f32 %v12467_v32, %v12453_v15  ;;  %v12472_v19 = vmul.f32 %v12467_v32, %v12455_v40  ;;  %v12469_v45 = vmul.f32 %v12467_v32, %v12452_v48  ;;  %v12471_v6 = vmul.f32 %v12467_v32, %v12454_v31 }
0x19ae   :  { %v12474_v44 = vmul.f32 %v12467_v32, %v12457_v38  ;;  %v12476_v21 = vmul.f32 %v12467_v32, %v12459_v4  ;;  %v12473_v20 = vmul.f32 %v12467_v32, %v12456_v28  ;;  %v12475_v51 = vmul.f32 %v12467_v32, %v12458_v8 }
0x19af   :  { %v12487_v10 = vadd.f32 %v12484_v49, %v12470_v36  ;;  %v12489_v56 = vadd.f32 %v12484_v49, %v12472_v19  ;;  %v12486_v1 = vadd.f32 %v12484_v49, %v12469_v45  ;;  %v12488_v17 = vadd.f32 %v12484_v49, %v12471_v6 }
0x19b0   :  { %v12491_v42 = vadd.f32 %v12484_v49, %v12474_v44  ;;  %v12493_v52 = vadd.f32 %v12484_v49, %v12476_v21  ;;  %v12490_v39 = vadd.f32 %v12484_v49, %v12473_v20  ;;  %v12461_v18 = vmul.f32 %v13400_v2, %v12446_v57 }
0x19b1   :  { %12538 = vmatprep.subr.mxu1 %v12487_v10  ;;  %12609 = vmatprep.subr.mxu0 %v12489_v56  ;;  %v12463_v61 = vmul.f32 %v13400_v2, %v12448_v7  ;;  %v12460_v54 = vmul.f32 %v13400_v2, %v12445_v30  ;;  %v12492_v41 = vadd.f32 %v12484_v49, %v12475_v51 }
0x19b2   :  { %12539 = vmatpush1.msra.mxu1 %v12486_v1  ;;  %12610 = vmatpush1.msra.mxu0 %v12488_v17  ;;  %v12462_v22 = vmul.f32 %v13400_v2, %v12447_v25  ;;  %v12464_v13 = vmul.f32 %v13400_v2, %v12449_v53  ;;  %v12478_v5 = vmul.f32 %v12467_v32, %v12461_v18 }
0x19b3   :  { %13116 = vmatmul.mubr.msk.f32.vlgmr.msra.gmra.mxu1 %vm19510_vm3, %v13115_v27  ;;  %13117 = vmatmul.mubr.msk.f32.vlgmr.msra.gmra.mxu0 %vm19511_vm4, %v13115_v27  ;;  %v12480_v29 = vmul.f32 %v12467_v32, %v12463_v61  ;;  %v12477_v23 = vmul.f32 %v12467_v32, %v12460_v54 }
0x19b4   :  { %12680 = vmatprep.subr.mxu1 %v12491_v42  ;;  %12751 = vmatprep.subr.mxu0 %v12493_v52  ;;  %v12479_v60 = vmul.f32 %v12467_v32, %v12462_v22  ;;  %v12495_v59 = vadd.f32 %v12484_v49, %v12478_v5  ;;  %v12481_v12 = vmul.f32 %v12467_v32, %v12464_v13 }
0x19b5   :  { %12681 = vmatpush1.msra.mxu1 %v12490_v39  ;;  %12752 = vmatpush1.msra.mxu0 %v12492_v41  ;;  %v12497_v43 = vadd.f32 %v12484_v49, %v12480_v29  ;;  %v12494_v47 = vadd.f32 %v12484_v49, %v12477_v23 }
0x19b6   :  { %12714 = vmatprep.mubr.f32.mxu1 %v19160_v46  ;;  %12785 = vmatprep.mubr.f32.mxu0 %v19160_v46  ;;  %v12496_v58 = vadd.f32 %v12484_v49, %v12479_v60  ;;  %v12498_v9 = vadd.f32 %v12484_v49, %v12481_v12 }
0x19b7   :  { %12822 = vmatprep.subr.mxu1 %v12495_v59  ;;  %12893 = vmatprep.subr.mxu0 %v12497_v43 }
0x19b8   :  { %13118 = vmatmul.mubr.msk.f32.vlgmr.msra.gmra.mxu1 %vm19512_vm5, %v13115_v27  ;;  %13119 = vmatmul.mubr.msk.f32.vlgmr.msra.gmra.mxu0 %vm19513_vm6, %v13115_v27 }
0x19b9   :  { %12823 = vmatpush1.msra.mxu1 %v12494_v47  ;;  %12894 = vmatpush1.msra.mxu0 %v12496_v58 }
0x19ba   :  { %12856 = vmatprep.mubr.f32.mxu1 %v19160_v46  ;;  %13318 = vmatprep.subr.mxu1 %v19160_v46 }
0x19bb   :  { %12927 = vmatprep.mubr.f32.mxu0 %v19160_v46 }
0x19bc   :  { %13120 = vmatmul.mubr.msk.f32.vlgmr.msra.gmra.mxu1 %vm19514_vm7, %v13115_v27  ;;  %13121 = vmatmul.mubr.msk.f32.vlgmr.msra.gmra.mxu0 %vm19515_vm15, %v13115_v27 }
0x19bd   :  { %13319 = vmatpush3.msra.mxu1 %v12498_v9  ;;  %13320 = vmatprep.mubr.msk.f32.mxu1 %vm13422_vm12, %v19160_v46 }
0x19c0   :  { %13321 = vmatmul.mubr.msk.f32.vlgmr.msra.gmra.mxu1 %vm19516_vm13, %v13115_v27 }
0x1a73   :  { %v12574_v24 = vpop.f32.mrf.mxu1  ;;  %v12645_v50 = vpop.f32.mrf.mxu0 }
0x1a74   :  { %v12575_v33 = vadd.f32 %v12574_v24, %v12503_v0  ;;  %v12646_v16 = vadd.f32 %v12645_v50, %v12503_v0 }
0x1a75   :  { %v12576_v11 = vpop.f32.mrf.mxu1  ;;  %v12647_v55 = vpop.f32.mrf.mxu0 }
0x1a76   :  { %v12577_v26 = vadd.f32 %v12576_v11, %v12503_v0  ;;  %13004 = vst [vmem:[%s19344_s5] sm:$0xff] %v12575_v33  ;;  %13006 = vst [vmem:[%s19344_s5 + $0x10] sm:$0xff] %v12646_v16  ;;  %v12648_v63 = vadd.f32 %v12647_v55, %v12503_v0 }
0x1a78   :  { %13005 = vst [vmem:[%s19344_s5 + $0x8] sm:$0xff] %v12577_v26  ;;  %13007 = vst [vmem:[%s19344_s5 + $0x18] sm:$0xff] %v12648_v63  ;;  %v12716_v46 = vpop.f32.mrf.mxu1  ;;  %v12787_v14 = vpop.f32.mrf.mxu0 }
0x1a79   :  { %v12717_v3 = vadd.f32 %v12716_v46, %v12503_v0  ;;  %v12788_v37 = vadd.f32 %v12787_v14, %v12503_v0 }
0x1a7a   :  { %v12718_v35 = vpop.f32.mrf.mxu1  ;;  %v12789_v62 = vpop.f32.mrf.mxu0 }
0x1a7b   :  { %13008 = vst [vmem:[%s19344_s5 + $0x20] sm:$0xff] %v12717_v3  ;;  %v12719_v34 = vadd.f32 %v12718_v35, %v12503_v0  ;;  %13010 = vst [vmem:[%s19344_s5 + $0x30] sm:$0xff] %v12788_v37  ;;  %v12790_v2 = vadd.f32 %v12789_v62, %v12503_v0 }
0x1a7c   :  { %v12858_v32 = vpop.f32.mrf.mxu1  ;;  %v12929_v57 = vpop.f32.mrf.mxu0 }
0x1a7d   :  { %13009 = vst [vmem:[%s19344_s5 + $0x28] sm:$0xff] %v12719_v34  ;;  %13011 = vst [vmem:[%s19344_s5 + $0x38] sm:$0xff] %v12790_v2  ;;  %v12859_v7 = vadd.f32 %v12858_v32, %v12503_v0  ;;  %v12930_v30 = vadd.f32 %v12929_v57, %v12503_v0 }
0x1a7e   :  { %v12860_v25 = vpop.f32.mrf.mxu1  ;;  %v12931_v15 = vpop.f32.mrf.mxu0 }
0x1a7f   :  { %13012 = vst [vmem:[%s19344_s5 + $0x40] sm:$0xff] %v12859_v7  ;;  %v12861_v40 = vadd.f32 %v12860_v25, %v12503_v0  ;;  %13014 = vst [vmem:[%s19344_s5 + $0x50] sm:$0xff] %v12930_v30  ;;  %v12932_v48 = vadd.f32 %v12931_v15, %v12503_v0 }
0x1a80   :  { %v13000_v31 = vpop.f32.mrf.mxu1 }
0x1a81   :  { %13013 = vst [vmem:[%s19344_s5 + $0x48] sm:$0xff] %v12861_v40  ;;  %13015 = vst [vmem:[%s19344_s5 + $0x58] sm:$0xff] %v12932_v48  ;;  %v13001_v49 = vadd.f32 %v13000_v31, %v12503_v0 }
0x1a82   :  { %v13322_v38 = vpop.f32.mrf.mxu1 }
0x1a83   :  { %13016 = vst [vmem:[%s19344_s5 + $0x60] sm:$0xff] %v13001_v49 }

</bundles_post_ra>
